<compile_context>
chip_gen: v5e
topology: v5e:2x2
jax: 0.10.0
libtpu: 0.0.40
codegen_flags: <defaults>
</compile_context>

<pallas_src>
import numpy as np
import jax
import jax.numpy as jnp
from jax import lax
from jax.experimental import pallas as pl
from jax.experimental.pallas import tpu as pltpu

_VMEM_LIMIT = 64 * 1024 * 1024   # <= physical VMEM on v5e/v6e (128 MiB) and v7x (64 MiB)


def _silu(y):
    # y is f32.  exp and the approx reciprocal both run on the EUP slot
    # (frees VALU); error << bf16 storage rounding.
    return y * pl.reciprocal(1.0 + jnp.exp(-y), approx=True)


def _row_tile(m, max_rows=2048):
    """Row tile + padded row count for the row-parallel 1x1 stages.

    Returns (tm, mp): tm divides mp, tm is a multiple of 16 (bf16 sublane
    packing) whenever tiling is required, and mp >= m.  Callers zero-pad to mp
    rows and slice back, so an awkward m can never force a whole-array block.
    """
    if m <= max_rows:
        return m, m
    tm = max(16, (max_rows // 16) * 16)
    mp = ((m + tm - 1) // tm) * tm
    return tm, mp


# ----------------------------------------------------------------------------
# K1: fused head  (cv1 = 1x1 conv + BN + SiLU,  cv2 = plain 1x1 conv)
# One matmul against [W1 || W2]; reads x once, produces both branches.
# ----------------------------------------------------------------------------
def _csp_head_kernel(x_ref, w12_ref, s1_ref, b1_ref, a1_ref, y2_ref):
    c_ = a1_ref.shape[-1]
    x = x_ref[...]                                            # bf16 (tm, c1)
    y = jnp.dot(x, w12_ref[...], preferred_element_type=jnp.float32)  # (tm, 2c_)
    a1_ref[...] = _silu(y[:, :c_] * s1_ref[...] + b1_ref[...]).astype(a1_ref.dtype)
    y2_ref[...] = y[:, c_:].astype(y2_ref.dtype)


def csp_head(x2, w1, s1, b1, w2, max_rows=2048):
    m, c1 = x2.shape
    c_ = w1.shape[1]
    tm, mp = _row_tile(m, max_rows)
    if mp != m:
        x2 = jnp.pad(x2, ((0, mp - m), (0, 0)))
    w12 = jnp.concatenate([w1, w2], axis=1)                   # (c1, 2c_): one MXU pass
    a1, y2 = pl.pallas_call(
        _csp_head_kernel,
        out_shape=(jax.ShapeDtypeStruct((mp, c_), x2.dtype),
                   jax.ShapeDtypeStruct((mp, c_), x2.dtype)),
        grid=(mp // tm,),
        in_specs=[
            pl.BlockSpec((tm, c1), lambda i: (i, 0)),
            pl.BlockSpec((c1, 2 * c_), lambda i: (0, 0)),
            pl.BlockSpec((1, c_), lambda i: (0, 0)),
            pl.BlockSpec((1, c_), lambda i: (0, 0)),
        ],
        out_specs=(pl.BlockSpec((tm, c_), lambda i: (i, 0)),
                   pl.BlockSpec((tm, c_), lambda i: (i, 0))),
        compiler_params=pltpu.CompilerParams(
            dimension_semantics=("parallel",),
            vmem_limit_bytes=_VMEM_LIMIT),
    )(x2, w12, s1.reshape(1, c_), b1.reshape(1, c_))
    if mp != m:
        a1, y2 = a1[:m], y2[:m]
    return a1, y2


# ----------------------------------------------------------------------------
# K2: one Bottleneck = two fused 3x3 stride-1 "same" convs (+BN+SiLU each) plus
# the residual add, all in a single pallas_call per image.  Each conv is ONE
# im2col matmul (K = 9*cin): patches come from a single zero-padded slab via
# static row-shifted slices; W borders use in-kernel iota column selects.
# ----------------------------------------------------------------------------
def _im2col_conv_bn_silu(x32, w, s, b, not_left, not_right, H, W):
    """x32: (hw, cin) f32, w: (9*cin, cout) bf16, s/b: (1, cout) f32 -> (hw, cout) f32."""
    hw = H * W
    cin = x32.shape[-1]
    pad = jnp.zeros((W + 1, cin), jnp.float32)
    xp = jnp.concatenate([pad, x32, pad], axis=0)        # one padded copy per conv
    taps = []
    for dh in (-1, 0, 1):
        for dw in (-1, 0, 1):
            start = (W + 1) + dh * W + dw
            t = xp[start:start + hw, :]                  # static row-shifted slice
            if dw == -1:
                t = jnp.where(not_left, t, 0.0)
            elif dw == 1:
                t = jnp.where(not_right, t, 0.0)
            taps.append(t)
    patches = jnp.concatenate(taps, axis=-1)             # (hw, 9*cin) f32
    acc = jnp.dot(patches.astype(w.dtype), w, preferred_element_type=jnp.float32)
    return _silu(acc * s + b)


def _make_bottleneck_kernel(H, W, add_residual):
    hw = H * W

    def kernel(x_ref, wa_ref, sa_ref, ba_ref, wb_ref, sb_ref, bb_ref, o_ref):
        # Column masks generated in-kernel (no HBM-resident mask arrays).
        col = lax.broadcasted_iota(jnp.int32, (hw, 1), 0) % W
        not_left = col != 0
        not_right = col != (W - 1)
        x32 = x_ref[...].astype(jnp.float32)             # (hw, c_)
        t = _im2col_conv_bn_silu(x32, wa_ref[...], sa_ref[...], ba_ref[...],
                                 not_left, not_right, H, W)
        # t stays in VMEM; the second matmul's bf16 patch cast reproduces the
        # reference's bf16 storage of the intermediate activation.
        y = _im2col_conv_bn_silu(t, wb_ref[...], sb_ref[...], bb_ref[...],
                                 not_left, not_right, H, W)
        if add_residual:
            y = y + x32
        o_ref[...] = y.astype(o_ref.dtype)

    return kernel


def bottleneck_3x3_pair(h, H, W, wa, sa, ba, wb, sb, bb, add_residual):
    n, hw, c = h.shape
    assert hw == H * W
    wa2 = wa.reshape(9 * c, c)
    wb2 = wb.reshape(9 * c, c)

    def cvec():
        return pl.BlockSpec((1, c), lambda i: (0, 0))

    return pl.pallas_call(
        _make_bottleneck_kernel(H, W, add_residual),
        out_shape=jax.ShapeDtypeStruct((n, hw, c), h.dtype),
        grid=(n,),
        in_specs=[
            pl.BlockSpec((None, hw, c), lambda i: (i, 0, 0)),
            pl.BlockSpec((9 * c, c), lambda i: (0, 0)),
            cvec(), cvec(),
            pl.BlockSpec((9 * c, c), lambda i: (0, 0)),
            cvec(), cvec(),
        ],
        out_specs=pl.BlockSpec((None, hw, c), lambda i: (i, 0, 0)),
        compiler_params=pltpu.CompilerParams(
            dimension_semantics=("parallel",),
            vmem_limit_bytes=_VMEM_LIMIT),
    )(h, wa2, sa.reshape(1, c), ba.reshape(1, c),
      wb2, sb.reshape(1, c), bb.reshape(1, c))


# ----------------------------------------------------------------------------
# K3: fused tail  cv3 (plain 1x1) + BN/act on the (never materialized) concat
# + cv4 (one K = 2*c_ matmul against full W4, then BN4 + SiLU).
# ----------------------------------------------------------------------------
def _csp_tail_kernel(m_ref, y2_ref, w3_ref, cs_ref, cb_ref, w4_ref, s4_ref,
                     b4_ref, o_ref):
    y1 = jnp.dot(m_ref[...], w3_ref[...], preferred_element_type=jnp.float32)
    cat = jnp.concatenate([y1, y2_ref[...].astype(jnp.float32)], axis=-1)
    t = _silu(cat * cs_ref[...] + cb_ref[...])
    z = jnp.dot(t.astype(w4_ref.dtype), w4_ref[...],
                preferred_element_type=jnp.float32)
    o_ref[...] = _silu(z * s4_ref[...] + b4_ref[...]).astype(o_ref.dtype)


def csp_tail(m_out, y2, w3, cs, cb, w4, s4, b4, max_rows=2048):
    m, c_ = m_out.shape
    c2 = w4.shape[1]
    tm, mp = _row_tile(m, max_rows)
    if mp != m:
        m_out = jnp.pad(m_out, ((0, mp - m), (0, 0)))
        y2 = jnp.pad(y2, ((0, mp - m), (0, 0)))
    out = pl.pallas_call(
        _csp_tail_kernel,
        out_shape=jax.ShapeDtypeStruct((mp, c2), m_out.dtype),
        grid=(mp // tm,),
        in_specs=[
            pl.BlockSpec((tm, c_), lambda i: (i, 0)),
            pl.BlockSpec((tm, c_), lambda i: (i, 0)),
            pl.BlockSpec((c_, c_), lambda i: (0, 0)),
            pl.BlockSpec((1, 2 * c_), lambda i: (0, 0)),
            pl.BlockSpec((1, 2 * c_), lambda i: (0, 0)),
            pl.BlockSpec((2 * c_, c2), lambda i: (0, 0)),
            pl.BlockSpec((1, c2), lambda i: (0, 0)),
            pl.BlockSpec((1, c2), lambda i: (0, 0)),
        ],
        out_specs=pl.BlockSpec((tm, c2), lambda i: (i, 0)),
        compiler_params=pltpu.CompilerParams(
            dimension_semantics=("parallel",),
            vmem_limit_bytes=_VMEM_LIMIT),
    )(m_out, y2, w3, cs.reshape(1, 2 * c_), cb.reshape(1, 2 * c_), w4,
      s4.reshape(1, c2), b4.reshape(1, c2))
    return out[:m] if mp != m else out


# ----------------------------------------------------------------------------
# Parameters (eval-mode BN folded to scale/bias) and forward pass
# ----------------------------------------------------------------------------
def make_bottleneck_csp_params(key, c1, c2, n=1, e=0.5, dtype=jnp.bfloat16):
    c_ = int(c2 * e)
    ki = iter(jax.random.split(key, 8 + 4 * n))

    def bn_fold(c, k):
        kg, kb, km, kv = jax.random.split(k, 4)
        gamma = 1.0 + 0.1 * jax.random.normal(kg, (c,), jnp.float32)
        beta = 0.1 * jax.random.normal(kb, (c,), jnp.float32)
        mean = 0.1 * jax.random.normal(km, (c,), jnp.float32)
        var = jnp.abs(1.0 + 0.1 * jax.random.normal(kv, (c,), jnp.float32))
        scale = gamma * lax.rsqrt(var + 1e-5)
        return scale, beta - mean * scale                 # f32 scale/bias

    def w1x1(cin, cout, k):
        return (jax.random.normal(k, (cin, cout), jnp.float32)
                / np.sqrt(cin)).astype(dtype)

    def w3x3(cin, cout, k):
        return (jax.random.normal(k, (3, 3, cin, cout), jnp.float32)
                / np.sqrt(9 * cin)).astype(dtype)

    return dict(
        w1=w1x1(c1, c_, next(ki)), bn1=bn_fold(c_, next(ki)),
        w2=w1x1(c1, c_, next(ki)),
        w3=w1x1(c_, c_, next(ki)),
        w4=w1x1(2 * c_, c2, next(ki)), bn4=bn_fold(c2, next(ki)),
        bnc=bn_fold(2 * c_, next(ki)),
        m=[dict(wa=w3x3(c_, c_, next(ki)), bna=bn_fold(c_, next(ki)),
                wb=w3x3(c_, c_, next(ki)), bnb=bn_fold(c_, next(ki)))
           for _ in range(n)],
    )


def bottleneck_csp_forward(x_nhwc, p, shortcut=True, max_rows=2048):
    n_, H, W, c1 = x_nhwc.shape
    c_ = p['w1'].shape[1]
    c2 = p['w4'].shape[1]
    m = n_ * H * W

    s1, b1 = p['bn1']
    a1, y2 = csp_head(x_nhwc.reshape(m, c1), p['w1'], s1, b1, p['w2'],
                      max_rows=max_rows)
    h = a1.reshape(n_, H * W, c_)
    for bp in p['m']:
        sa, ba = bp['bna']
        sb, bb = bp['bnb']
        h = bottleneck_3x3_pair(h, H, W, bp['wa'], sa, ba, bp['wb'], sb, bb,
                                add_residual=shortcut)
    cs, cb = p['bnc']
    s4, b4 = p['bn4']
    out = csp_tail(h.reshape(m, c_), y2, p['w3'], cs, cb, p['w4'], s4, b4,
                   max_rows=max_rows)
    return out.reshape(n_, H, W, c2)


# ----------------------------------------------------------------------------
# Pure-JAX reference (same bf16 storage points, f32 math) for correctness
# ----------------------------------------------------------------------------
def _ref_forward(x, p, shortcut=True):
    f32 = jnp.float32
    store = p['w1'].dtype

    def silu(v):
        return v * jax.nn.sigmoid(v)

    def mm(a, w):
        return jnp.einsum('...c,cd->...d', a.astype(f32), w.astype(f32),
                          precision=lax.Precision.HIGHEST)

    def conv3(a, w):
        return lax.conv_general_dilated(
            a.astype(f32), w.astype(f32), (1, 1), 'SAME',
            dimension_numbers=('NHWC', 'HWIO', 'NHWC'),
            precision=lax.Precision.HIGHEST)

    s1, b1 = p['bn1']
    a1 = silu(mm(x, p['w1']) * s1 + b1).astype(store)
    y2 = mm(x, p['w2']).astype(store)
    h = a1
    for bp in p['m']:
        sa, ba = bp['bna']
        sb, bb = bp['bnb']
        t = silu(conv3(h, bp['wa']) * sa + ba).astype(store)
        u = silu(conv3(t, bp['wb']) * sb + bb)
        if shortcut:
            u = u + h.astype(f32)
        h = u.astype(store)
    y1 = mm(h, p['w3'])
    cs, cb = p['bnc']
    cat = jnp.concatenate([y1, y2.astype(f32)], axis=-1)
    tcat = silu(cat * cs + cb).astype(store)
    s4, b4 = p['bn4']
    out = silu(mm(tcat, p['w4']) * s4 + b4)
    return out.astype(store)


if __name__ == "__main__":
    key = jax.random.PRNGKey(0)
    kx, kp = jax.random.split(key)

    # BottleneckCSP(c1=32, c2=32, n=1, shortcut=True, g=1, e=0.5) -> c_ = 16
    c1 = c2 = 32
    N, H, W = 2, 16, 16
    n = 1
    act_dtype = jnp.bfloat16          # bf16 storage, f32 accumulation/activations

    params = make_bottleneck_csp_params(kp, c1, c2, n=n, dtype=act_dtype)
    x = jax.random.normal(kx, (N, H, W, c1), jnp.float32).astype(act_dtype)

    fwd = jax.jit(bottleneck_csp_forward)
    out = jax.block_until_ready(fwd(x, params))
    assert out.shape == (N, H, W, c2), out.shape

    ref = _ref_forward(x, params)
    out32 = out.astype(jnp.float32)
    ref32 = ref.astype(jnp.float32)
    max_err = jnp.max(jnp.abs(out32 - ref32))
    assert jnp.allclose(out32, ref32, rtol=2e-2, atol=2e-2), (
        f"mismatch vs reference, max abs err = {max_err}")

    print("KERNEL_OK")
</pallas_src>

<mosaic_0001>
module attributes {stable_mosaic.version = 11 : i64} {
  func.func @_csp_head_kernel(%arg0: i32, %arg1: memref<512x32xbf16, #tpu.memory_space<vmem>>, %arg2: memref<32x32xbf16, #tpu.memory_space<vmem>>, %arg3: memref<1x16xf32, #tpu.memory_space<vmem>>, %arg4: memref<1x16xf32, #tpu.memory_space<vmem>>, %arg5: memref<512x16xbf16, #tpu.memory_space<vmem>>, %arg6: memref<512x16xbf16, #tpu.memory_space<vmem>>) attributes {dimension_semantics = [#tpu.dimension_semantics<parallel>], iteration_bounds = array<i64: 1>, scalar_prefetch = 0 : i64, scratch_operands = 0 : i64, tpu.core_type = #tpu.core_type<tc>, window_params = [{transform_indices = @transform_0, window_bounds = array<i64: 512, 32>}, {pipeline_mode = #tpu.pipeline_mode<synchronous>, transform_indices = @transform_1, window_bounds = array<i64: 32, 32>}, {pipeline_mode = #tpu.pipeline_mode<synchronous>, transform_indices = @transform_2, window_bounds = array<i64: 1, 16>}, {pipeline_mode = #tpu.pipeline_mode<synchronous>, transform_indices = @transform_3, window_bounds = array<i64: 1, 16>}, {transform_indices = @transform_4, window_bounds = array<i64: 512, 16>}, {transform_indices = @transform_5, window_bounds = array<i64: 512, 16>}]} {
    %c0 = arith.constant 0 : index
    %c0_0 = arith.constant 0 : index
    %0 = vector.load %arg1[%c0, %c0_0] : memref<512x32xbf16, #tpu.memory_space<vmem>>, vector<512x32xbf16>
    %c0_1 = arith.constant 0 : index
    %c0_2 = arith.constant 0 : index
    %1 = vector.load %arg2[%c0_1, %c0_2] : memref<32x32xbf16, #tpu.memory_space<vmem>>, vector<32x32xbf16>
    %cst = arith.constant dense<0.000000e+00> : vector<512x32xf32>
    %2 = tpu.matmul %0, %1, %cst {dimension_numbers = #tpu.dot_dimension_numbers<[1], [0], [0], [1], [0, 0, 1, 1], [], []>} : vector<512x32xbf16>, vector<32x32xbf16>, vector<512x32xf32> -> vector<512x32xf32>
    %3 = vector.extract_strided_slice %2 {offsets = [0, 0], sizes = [512, 16], strides = [1, 1]} : vector<512x32xf32> to vector<512x16xf32>
    %c0_3 = arith.constant 0 : index
    %c0_4 = arith.constant 0 : index
    %4 = vector.load %arg3[%c0_3, %c0_4] : memref<1x16xf32, #tpu.memory_space<vmem>>, vector<1x16xf32>
    %5 = vector.broadcast %4 : vector<1x16xf32> to vector<512x16xf32>
    %6 = arith.mulf %3, %5 : vector<512x16xf32>
    %c0_5 = arith.constant 0 : index
    %c0_6 = arith.constant 0 : index
    %7 = vector.load %arg4[%c0_5, %c0_6] : memref<1x16xf32, #tpu.memory_space<vmem>>, vector<1x16xf32>
    %8 = vector.broadcast %7 : vector<1x16xf32> to vector<512x16xf32>
    %9 = arith.addf %6, %8 : vector<512x16xf32>
    %cst_7 = arith.constant 0.000000e+00 : f32
    %10 = vector.broadcast %cst_7 : f32 to vector<512x16xf32>
    %11 = arith.subf %10, %9 : vector<512x16xf32>
    %12 = math.exp %11 : vector<512x16xf32>
    %cst_8 = arith.constant 1.000000e+00 : f32
    %13 = vector.broadcast %cst_8 : f32 to vector<512x16xf32>
    %14 = arith.addf %13, %12 : vector<512x16xf32>
    %15 = tpu.reciprocal %14 {approx = true} : vector<512x16xf32> -> vector<512x16xf32>
    %16 = arith.mulf %9, %15 : vector<512x16xf32>
    %17 = arith.truncf %16 : vector<512x16xf32> to vector<512x16xbf16>
    %c0_9 = arith.constant 0 : index
    %c0_10 = arith.constant 0 : index
    %18 = vector.load %arg5[%c0_9, %c0_10] : memref<512x16xbf16, #tpu.memory_space<vmem>>, vector<512x16xbf16>
    tpu.vector_store %arg5[%c0_9, %c0_10], %17 {strides = array<i32>} : memref<512x16xbf16, #tpu.memory_space<vmem>>, vector<512x16xbf16>,
    %19 = vector.extract_strided_slice %2 {offsets = [0, 16], sizes = [512, 16], strides = [1, 1]} : vector<512x32xf32> to vector<512x16xf32>
    %20 = arith.truncf %19 : vector<512x16xf32> to vector<512x16xbf16>
    %c0_11 = arith.constant 0 : index
    %c0_12 = arith.constant 0 : index
    %21 = vector.load %arg6[%c0_11, %c0_12] : memref<512x16xbf16, #tpu.memory_space<vmem>>, vector<512x16xbf16>
    tpu.vector_store %arg6[%c0_11, %c0_12], %20 {strides = array<i32>} : memref<512x16xbf16, #tpu.memory_space<vmem>>, vector<512x16xbf16>,
    return
  }
  func.func @transform_0(%arg0: i32) -> (i32, i32) {
    %c0_i32 = arith.constant 0 : i32
    %c0_i32_0 = arith.constant 0 : i32
    return %arg0, %c0_i32 : i32, i32
  }
  func.func @transform_1(%arg0: i32) -> (i32, i32) {
    %c0_i32 = arith.constant 0 : i32
    %c0_i32_0 = arith.constant 0 : i32
    %c0_i32_1 = arith.constant 0 : i32
    return %c0_i32, %c0_i32_0 : i32, i32
  }
  func.func @transform_2(%arg0: i32) -> (i32, i32) {
    %c0_i32 = arith.constant 0 : i32
    %c0_i32_0 = arith.constant 0 : i32
    %c0_i32_1 = arith.constant 0 : i32
    return %c0_i32, %c0_i32_0 : i32, i32
  }
  func.func @transform_3(%arg0: i32) -> (i32, i32) {
    %c0_i32 = arith.constant 0 : i32
    %c0_i32_0 = arith.constant 0 : i32
    %c0_i32_1 = arith.constant 0 : i32
    return %c0_i32, %c0_i32_0 : i32, i32
  }
  func.func @transform_4(%arg0: i32) -> (i32, i32) {
    %c0_i32 = arith.constant 0 : i32
    %c0_i32_0 = arith.constant 0 : i32
    return %arg0, %c0_i32 : i32, i32
  }
  func.func @transform_5(%arg0: i32) -> (i32, i32) {
    %c0_i32 = arith.constant 0 : i32
    %c0_i32_0 = arith.constant 0 : i32
    return %arg0, %c0_i32 : i32, i32
  }
}

module attributes {stable_mosaic.version = 11 : i64} {
  func.func @kernel(%arg0: i32, %arg1: memref<1x256x16xbf16, #tpu.memory_space<vmem>>, %arg2: memref<144x16xbf16, #tpu.memory_space<vmem>>, %arg3: memref<1x16xf32, #tpu.memory_space<vmem>>, %arg4: memref<1x16xf32, #tpu.memory_space<vmem>>, %arg5: memref<144x16xbf16, #tpu.memory_space<vmem>>, %arg6: memref<1x16xf32, #tpu.memory_space<vmem>>, %arg7: memref<1x16xf32, #tpu.memory_space<vmem>>, %arg8: memref<1x256x16xbf16, #tpu.memory_space<vmem>>) attributes {dimension_semantics = [#tpu.dimension_semantics<parallel>], iteration_bounds = array<i64: 2>, scalar_prefetch = 0 : i64, scratch_operands = 0 : i64, tpu.core_type = #tpu.core_type<tc>, window_params = [{transform_indices = @transform_0, window_bounds = array<i64: 1, 256, 16>}, {pipeline_mode = #tpu.pipeline_mode<synchronous>, transform_indices = @transform_1, window_bounds = array<i64: 144, 16>}, {pipeline_mode = #tpu.pipeline_mode<synchronous>, transform_indices = @transform_2, window_bounds = array<i64: 1, 16>}, {pipeline_mode = #tpu.pipeline_mode<synchronous>, transform_indices = @transform_3, window_bounds = array<i64: 1, 16>}, {pipeline_mode = #tpu.pipeline_mode<synchronous>, transform_indices = @transform_4, window_bounds = array<i64: 144, 16>}, {pipeline_mode = #tpu.pipeline_mode<synchronous>, transform_indices = @transform_5, window_bounds = array<i64: 1, 16>}, {pipeline_mode = #tpu.pipeline_mode<synchronous>, transform_indices = @transform_6, window_bounds = array<i64: 1, 16>}, {transform_indices = @transform_7, window_bounds = array<i64: 1, 256, 16>}]} {
    %0 = tpu.iota {dimensions = array<i32: 0>} : vector<256x1xi32>
    %c16_i32 = arith.constant 16 : i32
    %c0_i32 = arith.constant 0 : i32
    %1 = arith.cmpi eq, %c16_i32, %c0_i32 : i32
    %c1_i32 = arith.constant 1 : i32
    %2 = arith.select %1, %c1_i32, %c16_i32 : i32
    %3 = vector.broadcast %2 : i32 to vector<256x1xi32>
    %4 = arith.remsi %0, %3 : vector<256x1xi32>
    %c0_i32_0 = arith.constant 0 : i32
    %5 = vector.broadcast %c0_i32_0 : i32 to vector<256x1xi32>
    %6 = arith.cmpi ne, %4, %5 : vector<256x1xi32>
    %c0_i32_1 = arith.constant 0 : i32
    %7 = vector.broadcast %c0_i32_1 : i32 to vector<256x1xi32>
    %8 = arith.cmpi slt, %4, %7 : vector<256x1xi32>
    %c0_i32_2 = arith.constant 0 : i32
    %9 = arith.cmpi slt, %2, %c0_i32_2 : i32
    %10 = vector.broadcast %9 : i1 to vector<256x1xi1>
    %11 = vector.broadcast %10 : vector<256x1xi1> to vector<256x1xi1>
    %12 = arith.xori %8, %11 : vector<256x1xi1>
    %13 = arith.andi %12, %6 : vector<256x1xi1>
    %14 = vector.broadcast %2 : i32 to vector<256x1xi32>
    %15 = arith.addi %4, %14 : vector<256x1xi32>
    %16 = arith.select %13, %15, %4 : vector<256x1xi1>, vector<256x1xi32>
    %c0_i32_3 = arith.constant 0 : i32
    %17 = vector.broadcast %c0_i32_3 : i32 to vector<256x1xi32>
    %18 = arith.cmpi ne, %16, %17 : vector<256x1xi32>
    %c15_i32 = arith.constant 15 : i32
    %19 = vector.broadcast %c15_i32 : i32 to vector<256x1xi32>
    %20 = arith.cmpi ne, %16, %19 : vector<256x1xi32>
    %c0 = arith.constant 0 : index
    %c0_4 = arith.constant 0 : index
    %c0_5 = arith.constant 0 : index
    %21 = vector.load %arg1[%c0, %c0_4, %c0_5] : memref<1x256x16xbf16, #tpu.memory_space<vmem>>, vector<1x256x16xbf16>
    %22 = vector.shape_cast %21 : vector<1x256x16xbf16> to vector<256x16xbf16>
    %23 = arith.extf %22 : vector<256x16xbf16> to vector<256x16xf32>
    %c0_6 = arith.constant 0 : index
    %c0_7 = arith.constant 0 : index
    %24 = vector.load %arg2[%c0_6, %c0_7] : memref<144x16xbf16, #tpu.memory_space<vmem>>, vector<144x16xbf16>
    %c0_8 = arith.constant 0 : index
    %c0_9 = arith.constant 0 : index
    %25 = vector.load %arg3[%c0_8, %c0_9] : memref<1x16xf32, #tpu.memory_space<vmem>>, vector<1x16xf32>
    %c0_10 = arith.constant 0 : index
    %c0_11 = arith.constant 0 : index
    %26 = vector.load %arg4[%c0_10, %c0_11] : memref<1x16xf32, #tpu.memory_space<vmem>>, vector<1x16xf32>
    %cst = arith.constant 0.000000e+00 : f32
    %27 = vector.broadcast %cst : f32 to vector<17x16xf32>
    %28 = tpu.concatenate %27, %23, %27 in 0 : vector<17x16xf32>, vector<256x16xf32>, vector<17x16xf32> -> vector<290x16xf32>
    %29 = vector.extract_strided_slice %28 {offsets = [0, 0], sizes = [256, 16], strides = [1, 1]} : vector<290x16xf32> to vector<256x16xf32>
    %cst_12 = arith.constant 0.000000e+00 : f32
    %30 = vector.shape_cast %18 : vector<256x1xi1> to vector<256x1xi1>
    %31 = vector.broadcast %30 : vector<256x1xi1> to vector<256x16xi1>
    %32 = vector.broadcast %cst_12 : f32 to vector<256x16xf32>
    %33 = arith.select %31, %29, %32 : vector<256x16xi1>, vector<256x16xf32>
    %34 = vector.extract_strided_slice %28 {offsets = [1, 0], sizes = [256, 16], strides = [1, 1]} : vector<290x16xf32> to vector<256x16xf32>
    %35 = vector.extract_strided_slice %28 {offsets = [2, 0], sizes = [256, 16], strides = [1, 1]} : vector<290x16xf32> to vector<256x16xf32>
    %cst_13 = arith.constant 0.000000e+00 : f32
    %36 = vector.shape_cast %20 : vector<256x1xi1> to vector<256x1xi1>
    %37 = vector.broadcast %36 : vector<256x1xi1> to vector<256x16xi1>
    %38 = vector.broadcast %cst_13 : f32 to vector<256x16xf32>
    %39 = arith.select %37, %35, %38 : vector<256x16xi1>, vector<256x16xf32>
    %40 = vector.extract_strided_slice %28 {offsets = [16, 0], sizes = [256, 16], strides = [1, 1]} : vector<290x16xf32> to vector<256x16xf32>
    %cst_14 = arith.constant 0.000000e+00 : f32
    %41 = vector.shape_cast %18 : vector<256x1xi1> to vector<256x1xi1>
    %42 = vector.broadcast %41 : vector<256x1xi1> to vector<256x16xi1>
    %43 = vector.broadcast %cst_14 : f32 to vector<256x16xf32>
    %44 = arith.select %42, %40, %43 : vector<256x16xi1>, vector<256x16xf32>
    %45 = vector.extract_strided_slice %28 {offsets = [17, 0], sizes = [256, 16], strides = [1, 1]} : vector<290x16xf32> to vector<256x16xf32>
    %46 = vector.extract_strided_slice %28 {offsets = [18, 0], sizes = [256, 16], strides = [1, 1]} : vector<290x16xf32> to vector<256x16xf32>
    %cst_15 = arith.constant 0.000000e+00 : f32
    %47 = vector.shape_cast %20 : vector<256x1xi1> to vector<256x1xi1>
    %48 = vector.broadcast %47 : vector<256x1xi1> to vector<256x16xi1>
    %49 = vector.broadcast %cst_15 : f32 to vector<256x16xf32>
    %50 = arith.select %48, %46, %49 : vector<256x16xi1>, vector<256x16xf32>
    %51 = vector.extract_strided_slice %28 {offsets = [32, 0], sizes = [256, 16], strides = [1, 1]} : vector<290x16xf32> to vector<256x16xf32>
    %cst_16 = arith.constant 0.000000e+00 : f32
    %52 = vector.shape_cast %18 : vector<256x1xi1> to vector<256x1xi1>
    %53 = vector.broadcast %52 : vector<256x1xi1> to vector<256x16xi1>
    %54 = vector.broadcast %cst_16 : f32 to vector<256x16xf32>
    %55 = arith.select %53, %51, %54 : vector<256x16xi1>, vector<256x16xf32>
    %56 = vector.extract_strided_slice %28 {offsets = [33, 0], sizes = [256, 16], strides = [1, 1]} : vector<290x16xf32> to vector<256x16xf32>
    %57 = vector.extract_strided_slice %28 {offsets = [34, 0], sizes = [256, 16], strides = [1, 1]} : vector<290x16xf32> to vector<256x16xf32>
    %cst_17 = arith.constant 0.000000e+00 : f32
    %58 = vector.shape_cast %20 : vector<256x1xi1> to vector<256x1xi1>
    %59 = vector.broadcast %58 : vector<256x1xi1> to vector<256x16xi1>
    %60 = vector.broadcast %cst_17 : f32 to vector<256x16xf32>
    %61 = arith.select %59, %57, %60 : vector<256x16xi1>, vector<256x16xf32>
    %62 = tpu.concatenate %33, %34, %39, %44, %45, %50, %55, %56, %61 in 1 : vector<256x16xf32>, vector<256x16xf32>, vector<256x16xf32>, vector<256x16xf32>, vector<256x16xf32>, vector<256x16xf32>, vector<256x16xf32>, vector<256x16xf32>, vector<256x16xf32> -> vector<256x144xf32>
    %63 = arith.truncf %62 : vector<256x144xf32> to vector<256x144xbf16>
    %cst_18 = arith.constant dense<0.000000e+00> : vector<256x16xf32>
    %64 = tpu.matmul %63, %24, %cst_18 {dimension_numbers = #tpu.dot_dimension_numbers<[1], [0], [0], [1], [0, 0, 1, 1], [], []>} : vector<256x144xbf16>, vector<144x16xbf16>, vector<256x16xf32> -> vector<256x16xf32>
    %65 = vector.broadcast %25 : vector<1x16xf32> to vector<256x16xf32>
    %66 = arith.mulf %64, %65 : vector<256x16xf32>
    %67 = vector.broadcast %26 : vector<1x16xf32> to vector<256x16xf32>
    %68 = arith.addf %66, %67 : vector<256x16xf32>
    %cst_19 = arith.constant 0.000000e+00 : f32
    %69 = vector.broadcast %cst_19 : f32 to vector<256x16xf32>
    %70 = arith.subf %69, %68 : vector<256x16xf32>
    %71 = math.exp %70 : vector<256x16xf32>
    %cst_20 = arith.constant 1.000000e+00 : f32
    %72 = vector.broadcast %cst_20 : f32 to vector<256x16xf32>
    %73 = arith.addf %72, %71 : vector<256x16xf32>
    %74 = tpu.reciprocal %73 {approx = true} : vector<256x16xf32> -> vector<256x16xf32>
    %75 = arith.mulf %68, %74 : vector<256x16xf32>
    %c0_21 = arith.constant 0 : index
    %c0_22 = arith.constant 0 : index
    %76 = vector.load %arg5[%c0_21, %c0_22] : memref<144x16xbf16, #tpu.memory_space<vmem>>, vector<144x16xbf16>
    %c0_23 = arith.constant 0 : index
    %c0_24 = arith.constant 0 : index
    %77 = vector.load %arg6[%c0_23, %c0_24] : memref<1x16xf32, #tpu.memory_space<vmem>>, vector<1x16xf32>
    %c0_25 = arith.constant 0 : index
    %c0_26 = arith.constant 0 : index
    %78 = vector.load %arg7[%c0_25, %c0_26] : memref<1x16xf32, #tpu.memory_space<vmem>>, vector<1x16xf32>
    %cst_27 = arith.constant 0.000000e+00 : f32
    %79 = vector.broadcast %cst_27 : f32 to vector<17x16xf32>
    %80 = tpu.concatenate %79, %75, %79 in 0 : vector<17x16xf32>, vector<256x16xf32>, vector<17x16xf32> -> vector<290x16xf32>
    %81 = vector.extract_strided_slice %80 {offsets = [0, 0], sizes = [256, 16], strides = [1, 1]} : vector<290x16xf32> to vector<256x16xf32>
    %cst_28 = arith.constant 0.000000e+00 : f32
    %82 = vector.shape_cast %18 : vector<256x1xi1> to vector<256x1xi1>
    %83 = vector.broadcast %82 : vector<256x1xi1> to vector<256x16xi1>
    %84 = vector.broadcast %cst_28 : f32 to vector<256x16xf32>
    %85 = arith.select %83, %81, %84 : vector<256x16xi1>, vector<256x16xf32>
    %86 = vector.extract_strided_slice %80 {offsets = [1, 0], sizes = [256, 16], strides = [1, 1]} : vector<290x16xf32> to vector<256x16xf32>
    %87 = vector.extract_strided_slice %80 {offsets = [2, 0], sizes = [256, 16], strides = [1, 1]} : vector<290x16xf32> to vector<256x16xf32>
    %cst_29 = arith.constant 0.000000e+00 : f32
    %88 = vector.shape_cast %20 : vector<256x1xi1> to vector<256x1xi1>
    %89 = vector.broadcast %88 : vector<256x1xi1> to vector<256x16xi1>
    %90 = vector.broadcast %cst_29 : f32 to vector<256x16xf32>
    %91 = arith.select %89, %87, %90 : vector<256x16xi1>, vector<256x16xf32>
    %92 = vector.extract_strided_slice %80 {offsets = [16, 0], sizes = [256, 16], strides = [1, 1]} : vector<290x16xf32> to vector<256x16xf32>
    %cst_30 = arith.constant 0.000000e+00 : f32
    %93 = vector.shape_cast %18 : vector<256x1xi1> to vector<256x1xi1>
    %94 = vector.broadcast %93 : vector<256x1xi1> to vector<256x16xi1>
    %95 = vector.broadcast %cst_30 : f32 to vector<256x16xf32>
    %96 = arith.select %94, %92, %95 : vector<256x16xi1>, vector<256x16xf32>
    %97 = vector.extract_strided_slice %80 {offsets = [17, 0], sizes = [256, 16], strides = [1, 1]} : vector<290x16xf32> to vector<256x16xf32>
    %98 = vector.extract_strided_slice %80 {offsets = [18, 0], sizes = [256, 16], strides = [1, 1]} : vector<290x16xf32> to vector<256x16xf32>
    %cst_31 = arith.constant 0.000000e+00 : f32
    %99 = vector.shape_cast %20 : vector<256x1xi1> to vector<256x1xi1>
    %100 = vector.broadcast %99 : vector<256x1xi1> to vector<256x16xi1>
    %101 = vector.broadcast %cst_31 : f32 to vector<256x16xf32>
    %102 = arith.select %100, %98, %101 : vector<256x16xi1>, vector<256x16xf32>
    %103 = vector.extract_strided_slice %80 {offsets = [32, 0], sizes = [256, 16], strides = [1, 1]} : vector<290x16xf32> to vector<256x16xf32>
    %cst_32 = arith.constant 0.000000e+00 : f32
    %104 = vector.shape_cast %18 : vector<256x1xi1> to vector<256x1xi1>
    %105 = vector.broadcast %104 : vector<256x1xi1> to vector<256x16xi1>
    %106 = vector.broadcast %cst_32 : f32 to vector<256x16xf32>
    %107 = arith.select %105, %103, %106 : vector<256x16xi1>, vector<256x16xf32>
    %108 = vector.extract_strided_slice %80 {offsets = [33, 0], sizes = [256, 16], strides = [1, 1]} : vector<290x16xf32> to vector<256x16xf32>
    %109 = vector.extract_strided_slice %80 {offsets = [34, 0], sizes = [256, 16], strides = [1, 1]} : vector<290x16xf32> to vector<256x16xf32>
    %cst_33 = arith.constant 0.000000e+00 : f32
    %110 = vector.shape_cast %20 : vector<256x1xi1> to vector<256x1xi1>
    %111 = vector.broadcast %110 : vector<256x1xi1> to vector<256x16xi1>
    %112 = vector.broadcast %cst_33 : f32 to vector<256x16xf32>
    %113 = arith.select %111, %109, %112 : vector<256x16xi1>, vector<256x16xf32>
    %114 = tpu.concatenate %85, %86, %91, %96, %97, %102, %107, %108, %113 in 1 : vector<256x16xf32>, vector<256x16xf32>, vector<256x16xf32>, vector<256x16xf32>, vector<256x16xf32>, vector<256x16xf32>, vector<256x16xf32>, vector<256x16xf32>, vector<256x16xf32> -> vector<256x144xf32>
    %115 = arith.truncf %114 : vector<256x144xf32> to vector<256x144xbf16>
    %cst_34 = arith.constant dense<0.000000e+00> : vector<256x16xf32>
    %116 = tpu.matmul %115, %76, %cst_34 {dimension_numbers = #tpu.dot_dimension_numbers<[1], [0], [0], [1], [0, 0, 1, 1], [], []>} : vector<256x144xbf16>, vector<144x16xbf16>, vector<256x16xf32> -> vector<256x16xf32>
    %117 = vector.broadcast %77 : vector<1x16xf32> to vector<256x16xf32>
    %118 = arith.mulf %116, %117 : vector<256x16xf32>
    %119 = vector.broadcast %78 : vector<1x16xf32> to vector<256x16xf32>
    %120 = arith.addf %118, %119 : vector<256x16xf32>
    %cst_35 = arith.constant 0.000000e+00 : f32
    %121 = vector.broadcast %cst_35 : f32 to vector<256x16xf32>
    %122 = arith.subf %121, %120 : vector<256x16xf32>
    %123 = math.exp %122 : vector<256x16xf32>
    %cst_36 = arith.constant 1.000000e+00 : f32
    %124 = vector.broadcast %cst_36 : f32 to vector<256x16xf32>
    %125 = arith.addf %124, %123 : vector<256x16xf32>
    %126 = tpu.reciprocal %125 {approx = true} : vector<256x16xf32> -> vector<256x16xf32>
    %127 = arith.mulf %120, %126 : vector<256x16xf32>
    %128 = arith.addf %127, %23 : vector<256x16xf32>
    %129 = arith.truncf %128 : vector<256x16xf32> to vector<256x16xbf16>
    %c0_37 = arith.constant 0 : index
    %c0_38 = arith.constant 0 : index
    %c0_39 = arith.constant 0 : index
    %130 = vector.load %arg8[%c0_37, %c0_38, %c0_39] : memref<1x256x16xbf16, #tpu.memory_space<vmem>>, vector<1x256x16xbf16>
    %131 = vector.shape_cast %130 : vector<1x256x16xbf16> to vector<256x16xbf16>
    %132 = vector.shape_cast %129 : vector<256x16xbf16> to vector<1x256x16xbf16>
    tpu.vector_store %arg8[%c0_37, %c0_38, %c0_39], %132 {strides = array<i32>} : memref<1x256x16xbf16, #tpu.memory_space<vmem>>, vector<1x256x16xbf16>,
    return
  }
  func.func @transform_0(%arg0: i32) -> (i32, i32, i32) {
    %c0_i32 = arith.constant 0 : i32
    %c0_i32_0 = arith.constant 0 : i32
    %c0_i32_1 = arith.constant 0 : i32
    return %arg0, %c0_i32, %c0_i32_0 : i32, i32, i32
  }
  func.func @transform_1(%arg0: i32) -> (i32, i32) {
    %c0_i32 = arith.constant 0 : i32
    %c0_i32_0 = arith.constant 0 : i32
    %c0_i32_1 = arith.constant 0 : i32
    return %c0_i32, %c0_i32_0 : i32, i32
  }
  func.func @transform_2(%arg0: i32) -> (i32, i32) {
    %c0_i32 = arith.constant 0 : i32
    %c0_i32_0 = arith.constant 0 : i32
    %c0_i32_1 = arith.constant 0 : i32
    return %c0_i32, %c0_i32_0 : i32, i32
  }
  func.func @transform_3(%arg0: i32) -> (i32, i32) {
    %c0_i32 = arith.constant 0 : i32
    %c0_i32_0 = arith.constant 0 : i32
    %c0_i32_1 = arith.constant 0 : i32
    return %c0_i32, %c0_i32_0 : i32, i32
  }
  func.func @transform_4(%arg0: i32) -> (i32, i32) {
    %c0_i32 = arith.constant 0 : i32
    %c0_i32_0 = arith.constant 0 : i32
    %c0_i32_1 = arith.constant 0 : i32
    return %c0_i32, %c0_i32_0 : i32, i32
  }
  func.func @transform_5(%arg0: i32) -> (i32, i32) {
    %c0_i32 = arith.constant 0 : i32
    %c0_i32_0 = arith.constant 0 : i32
    %c0_i32_1 = arith.constant 0 : i32
    return %c0_i32, %c0_i32_0 : i32, i32
  }
  func.func @transform_6(%arg0: i32) -> (i32, i32) {
    %c0_i32 = arith.constant 0 : i32
    %c0_i32_0 = arith.constant 0 : i32
    %c0_i32_1 = arith.constant 0 : i32
    return %c0_i32, %c0_i32_0 : i32, i32
  }
  func.func @transform_7(%arg0: i32) -> (i32, i32, i32) {
    %c0_i32 = arith.constant 0 : i32
    %c0_i32_0 = arith.constant 0 : i32
    %c0_i32_1 = arith.constant 0 : i32
    return %arg0, %c0_i32, %c0_i32_0 : i32, i32, i32
  }
}

module attributes {stable_mosaic.version = 11 : i64} {
  func.func @_csp_tail_kernel(%arg0: i32, %arg1: memref<512x16xbf16, #tpu.memory_space<vmem>>, %arg2: memref<512x16xbf16, #tpu.memory_space<vmem>>, %arg3: memref<16x16xbf16, #tpu.memory_space<vmem>>, %arg4: memref<1x32xf32, #tpu.memory_space<vmem>>, %arg5: memref<1x32xf32, #tpu.memory_space<vmem>>, %arg6: memref<32x32xbf16, #tpu.memory_space<vmem>>, %arg7: memref<1x32xf32, #tpu.memory_space<vmem>>, %arg8: memref<1x32xf32, #tpu.memory_space<vmem>>, %arg9: memref<512x32xbf16, #tpu.memory_space<vmem>>) attributes {dimension_semantics = [#tpu.dimension_semantics<parallel>], iteration_bounds = array<i64: 1>, scalar_prefetch = 0 : i64, scratch_operands = 0 : i64, tpu.core_type = #tpu.core_type<tc>, window_params = [{transform_indices = @transform_0, window_bounds = array<i64: 512, 16>}, {transform_indices = @transform_1, window_bounds = array<i64: 512, 16>}, {pipeline_mode = #tpu.pipeline_mode<synchronous>, transform_indices = @transform_2, window_bounds = array<i64: 16, 16>}, {pipeline_mode = #tpu.pipeline_mode<synchronous>, transform_indices = @transform_3, window_bounds = array<i64: 1, 32>}, {pipeline_mode = #tpu.pipeline_mode<synchronous>, transform_indices = @transform_4, window_bounds = array<i64: 1, 32>}, {pipeline_mode = #tpu.pipeline_mode<synchronous>, transform_indices = @transform_5, window_bounds = array<i64: 32, 32>}, {pipeline_mode = #tpu.pipeline_mode<synchronous>, transform_indices = @transform_6, window_bounds = array<i64: 1, 32>}, {pipeline_mode = #tpu.pipeline_mode<synchronous>, transform_indices = @transform_7, window_bounds = array<i64: 1, 32>}, {transform_indices = @transform_8, window_bounds = array<i64: 512, 32>}]} {
    %c0 = arith.constant 0 : index
    %c0_0 = arith.constant 0 : index
    %0 = vector.load %arg1[%c0, %c0_0] : memref<512x16xbf16, #tpu.memory_space<vmem>>, vector<512x16xbf16>
    %c0_1 = arith.constant 0 : index
    %c0_2 = arith.constant 0 : index
    %1 = vector.load %arg3[%c0_1, %c0_2] : memref<16x16xbf16, #tpu.memory_space<vmem>>, vector<16x16xbf16>
    %cst = arith.constant dense<0.000000e+00> : vector<512x16xf32>
    %2 = tpu.matmul %0, %1, %cst {dimension_numbers = #tpu.dot_dimension_numbers<[1], [0], [0], [1], [0, 0, 1, 1], [], []>} : vector<512x16xbf16>, vector<16x16xbf16>, vector<512x16xf32> -> vector<512x16xf32>
    %c0_3 = arith.constant 0 : index
    %c0_4 = arith.constant 0 : index
    %3 = vector.load %arg2[%c0_3, %c0_4] : memref<512x16xbf16, #tpu.memory_space<vmem>>, vector<512x16xbf16>
    %4 = arith.extf %3 : vector<512x16xbf16> to vector<512x16xf32>
    %5 = tpu.concatenate %2, %4 in 1 : vector<512x16xf32>, vector<512x16xf32> -> vector<512x32xf32>
    %c0_5 = arith.constant 0 : index
    %c0_6 = arith.constant 0 : index
    %6 = vector.load %arg4[%c0_5, %c0_6] : memref<1x32xf32, #tpu.memory_space<vmem>>, vector<1x32xf32>
    %7 = vector.broadcast %6 : vector<1x32xf32> to vector<512x32xf32>
    %8 = arith.mulf %5, %7 : vector<512x32xf32>
    %c0_7 = arith.constant 0 : index
    %c0_8 = arith.constant 0 : index
    %9 = vector.load %arg5[%c0_7, %c0_8] : memref<1x32xf32, #tpu.memory_space<vmem>>, vector<1x32xf32>
    %10 = vector.broadcast %9 : vector<1x32xf32> to vector<512x32xf32>
    %11 = arith.addf %8, %10 : vector<512x32xf32>
    %cst_9 = arith.constant 0.000000e+00 : f32
    %12 = vector.broadcast %cst_9 : f32 to vector<512x32xf32>
    %13 = arith.subf %12, %11 : vector<512x32xf32>
    %14 = math.exp %13 : vector<512x32xf32>
    %cst_10 = arith.constant 1.000000e+00 : f32
    %15 = vector.broadcast %cst_10 : f32 to vector<512x32xf32>
    %16 = arith.addf %15, %14 : vector<512x32xf32>
    %17 = tpu.reciprocal %16 {approx = true} : vector<512x32xf32> -> vector<512x32xf32>
    %18 = arith.mulf %11, %17 : vector<512x32xf32>
    %19 = arith.truncf %18 : vector<512x32xf32> to vector<512x32xbf16>
    %c0_11 = arith.constant 0 : index
    %c0_12 = arith.constant 0 : index
    %20 = vector.load %arg6[%c0_11, %c0_12] : memref<32x32xbf16, #tpu.memory_space<vmem>>, vector<32x32xbf16>
    %cst_13 = arith.constant dense<0.000000e+00> : vector<512x32xf32>
    %21 = tpu.matmul %19, %20, %cst_13 {dimension_numbers = #tpu.dot_dimension_numbers<[1], [0], [0], [1], [0, 0, 1, 1], [], []>} : vector<512x32xbf16>, vector<32x32xbf16>, vector<512x32xf32> -> vector<512x32xf32>
    %c0_14 = arith.constant 0 : index
    %c0_15 = arith.constant 0 : index
    %22 = vector.load %arg7[%c0_14, %c0_15] : memref<1x32xf32, #tpu.memory_space<vmem>>, vector<1x32xf32>
    %23 = vector.broadcast %22 : vector<1x32xf32> to vector<512x32xf32>
    %24 = arith.mulf %21, %23 : vector<512x32xf32>
    %c0_16 = arith.constant 0 : index
    %c0_17 = arith.constant 0 : index
    %25 = vector.load %arg8[%c0_16, %c0_17] : memref<1x32xf32, #tpu.memory_space<vmem>>, vector<1x32xf32>
    %26 = vector.broadcast %25 : vector<1x32xf32> to vector<512x32xf32>
    %27 = arith.addf %24, %26 : vector<512x32xf32>
    %cst_18 = arith.constant 0.000000e+00 : f32
    %28 = vector.broadcast %cst_18 : f32 to vector<512x32xf32>
    %29 = arith.subf %28, %27 : vector<512x32xf32>
    %30 = math.exp %29 : vector<512x32xf32>
    %cst_19 = arith.constant 1.000000e+00 : f32
    %31 = vector.broadcast %cst_19 : f32 to vector<512x32xf32>
    %32 = arith.addf %31, %30 : vector<512x32xf32>
    %33 = tpu.reciprocal %32 {approx = true} : vector<512x32xf32> -> vector<512x32xf32>
    %34 = arith.mulf %27, %33 : vector<512x32xf32>
    %35 = arith.truncf %34 : vector<512x32xf32> to vector<512x32xbf16>
    %c0_20 = arith.constant 0 : index
    %c0_21 = arith.constant 0 : index
    %36 = vector.load %arg9[%c0_20, %c0_21] : memref<512x32xbf16, #tpu.memory_space<vmem>>, vector<512x32xbf16>
    tpu.vector_store %arg9[%c0_20, %c0_21], %35 {strides = array<i32>} : memref<512x32xbf16, #tpu.memory_space<vmem>>, vector<512x32xbf16>,
    return
  }
  func.func @transform_0(%arg0: i32) -> (i32, i32) {
    %c0_i32 = arith.constant 0 : i32
    %c0_i32_0 = arith.constant 0 : i32
    return %arg0, %c0_i32 : i32, i32
  }
  func.func @transform_1(%arg0: i32) -> (i32, i32) {
    %c0_i32 = arith.constant 0 : i32
    %c0_i32_0 = arith.constant 0 : i32
    return %arg0, %c0_i32 : i32, i32
  }
  func.func @transform_2(%arg0: i32) -> (i32, i32) {
    %c0_i32 = arith.constant 0 : i32
    %c0_i32_0 = arith.constant 0 : i32
    %c0_i32_1 = arith.constant 0 : i32
    return %c0_i32, %c0_i32_0 : i32, i32
  }
  func.func @transform_3(%arg0: i32) -> (i32, i32) {
    %c0_i32 = arith.constant 0 : i32
    %c0_i32_0 = arith.constant 0 : i32
    %c0_i32_1 = arith.constant 0 : i32
    return %c0_i32, %c0_i32_0 : i32, i32
  }
  func.func @transform_4(%arg0: i32) -> (i32, i32) {
    %c0_i32 = arith.constant 0 : i32
    %c0_i32_0 = arith.constant 0 : i32
    %c0_i32_1 = arith.constant 0 : i32
    return %c0_i32, %c0_i32_0 : i32, i32
  }
  func.func @transform_5(%arg0: i32) -> (i32, i32) {
    %c0_i32 = arith.constant 0 : i32
    %c0_i32_0 = arith.constant 0 : i32
    %c0_i32_1 = arith.constant 0 : i32
    return %c0_i32, %c0_i32_0 : i32, i32
  }
  func.func @transform_6(%arg0: i32) -> (i32, i32) {
    %c0_i32 = arith.constant 0 : i32
    %c0_i32_0 = arith.constant 0 : i32
    %c0_i32_1 = arith.constant 0 : i32
    return %c0_i32, %c0_i32_0 : i32, i32
  }
  func.func @transform_7(%arg0: i32) -> (i32, i32) {
    %c0_i32 = arith.constant 0 : i32
    %c0_i32_0 = arith.constant 0 : i32
    %c0_i32_1 = arith.constant 0 : i32
    return %c0_i32, %c0_i32_0 : i32, i32
  }
  func.func @transform_8(%arg0: i32) -> (i32, i32) {
    %c0_i32 = arith.constant 0 : i32
    %c0_i32_0 = arith.constant 0 : i32
    return %arg0, %c0_i32 : i32, i32
  }
}

</mosaic_0001>

<bundles_post_ra>
// kernel: bottleneck_csp_forward.3
= control target key start
LH: loop header
LB: loop body
LE: loop exit
PB: predicated region body
PF: predicated region fallthrough
CT: control target
= control target key end

     0   :  { %11 = vsyncpa [#allocation3], 0  ;;  %s2082_s21 = smov [#allocation2]   ;;  %s2083_s23 = smov 64   ;;  %s3411_s0 = inlined_call_operand.hbm [shape: bf16[512,32], index: 0, kind: input, shape index: {}]   ;;  %s3412_s1 = inlined_call_operand.vmem [shape: bf16[32,32], index: 1, kind: input, shape index: {}]   ;;  %s3413_s2 = inlined_call_operand.vmem [shape: f32[1,16], index: 2, kind: input, shape index: {}]   ;;  %s3414_s3 = inlined_call_operand.vmem [shape: f32[1,16], index: 3, kind: input, shape index: {}]   ;;  %s3415_s4 = inlined_call_operand.vmem [shape: bf16[512,16], index: 4, kind: output, shape index: {0}]   ;;  %s3416_s5 = inlined_call_operand.vmem [shape: bf16[512,16], index: 5, kind: output, shape index: {1}]  }
   0x1   :  { %s16_s20 = sshll.u32 %s3411_s0, 4  ;;  %s18_s22 = sshll.u32 %s2082_s21, 4  ;;  %s17_s20 = int_to_ptr.hbm [resolvable:$true] %s16_s20  ;;  %s19_s22 = int_to_ptr.vmem [resolvable:$true] %s18_s22 }
   0x2   :  { %s2084_s24 = smov 4  }
   0x3   :  { %24 = dma.hbm_to_vmem [thread:$0]  %s17_s20, 4096, %s19_s22, [#allocation3], %s2083_s23, %s2083_s23, %s2084_s24  }
   0x4   :  { %2080 = dma.done.wait [#allocation3], 4096  }
   0x5   :  { %2081 = vsyncadd [#allocation3], 4294963200  ;;  %v1785_v0 = vld [vmem:[%s3412_s1 + $0x8] sm:$0xff]  ;;  %v1784_v1 = vld [vmem:[%s3412_s1] sm:$0xff]  ;;  %vm276_vm0 = vcmask 261120   ;;  %s2085_s6 = smov 112  }
   0x6   :  { %379 = vmatpush.bf16.msra.mxu0 %v1785_v0  ;;  %1786 = vmatpush.bf16.msra.mxu1 %v1785_v0  ;;  %v1752_v2 = vld [vmem:[#allocation2] sm:$0xff]  ;;  %v1753_v6 = vld [vmem:[#allocation2 + $0x8] sm:$0xff]  ;;  %v1754_v10 = vld [vmem:[#allocation2 + $0x10] sm:$0xff]  ;;  %vm1126_vm1 = vcmask 125952  }
   0x7   :  { %1787 = vmatpush.bf16.msra.mxu2 %v1785_v0  ;;  %1788 = vmatpush.bf16.msra.mxu3 %v1785_v0  ;;  %v1760_v3 = vld [vmem:[#allocation2 + $0x40] sm:$0xff]  ;;  %v1761_v7 = vld [vmem:[#allocation2 + $0x48] sm:$0xff]  ;;  %v1762_v11 = vld [vmem:[#allocation2 + $0x50] sm:$0xff] }
   0x8   :  { %v1768_v4 = vld [vmem:[#allocation2 + $0x80] sm:$0xff]  ;;  %v1769_v8 = vld [vmem:[#allocation2 + $0x88] sm:$0xff]  ;;  %v1770_v12 = vld [vmem:[#allocation2 + $0x90] sm:$0xff] }
   0x9   :  { %v1776_v5 = vld [vmem:[#allocation2 + $0xc0] sm:$0xff]  ;;  %v1777_v9 = vld [vmem:[#allocation2 + $0xc8] sm:$0xff]  ;;  %v1778_v13 = vld [vmem:[#allocation2 + $0xd0] sm:$0xff] }
   0xa   :  { %380 = vmatpush.bf16.msra.mxu0 %v1784_v1  ;;  %1789 = vmatpush.bf16.msra.mxu1 %v1784_v1  ;;  %v1755_v14 = vld [vmem:[#allocation2 + $0x18] sm:$0xff]  ;;  %v1756_v18 = vld [vmem:[#allocation2 + $0x20] sm:$0xff]  ;;  %v1757_v22 = vld [vmem:[#allocation2 + $0x28] sm:$0xff] }
   0xb   :  { %1790 = vmatpush.bf16.msra.mxu2 %v1784_v1  ;;  %1791 = vmatpush.bf16.msra.mxu3 %v1784_v1  ;;  %v1763_v15 = vld [vmem:[#allocation2 + $0x58] sm:$0xff]  ;;  %v1764_v19 = vld [vmem:[#allocation2 + $0x60] sm:$0xff]  ;;  %v1765_v23 = vld [vmem:[#allocation2 + $0x68] sm:$0xff] }
   0xc   :  { %v1771_v16 = vld [vmem:[#allocation2 + $0x98] sm:$0xff]  ;;  %v1772_v20 = vld [vmem:[#allocation2 + $0xa0] sm:$0xff]  ;;  %v1773_v24 = vld [vmem:[#allocation2 + $0xa8] sm:$0xff] }
   0xd   :  { %1720 = vmatmul.msk.bf16.vlgmr.msra.gmra.mxu0 %vm276_vm0, %v1752_v2  ;;  %1728 = vmatmul.msk.bf16.vlgmr.msra.gmra.mxu1 %vm276_vm0, %v1760_v3  ;;  %v1779_v17 = vld [vmem:[#allocation2 + $0xd8] sm:$0xff]  ;;  %v1780_v21 = vld [vmem:[#allocation2 + $0xe0] sm:$0xff]  ;;  %v1781_v25 = vld [vmem:[#allocation2 + $0xe8] sm:$0xff] }
   0xe   :  { %1736 = vmatmul.msk.bf16.vlgmr.msra.gmra.mxu2 %vm276_vm0, %v1768_v4  ;;  %1744 = vmatmul.msk.bf16.vlgmr.msra.gmra.mxu3 %vm276_vm0, %v1776_v5  ;;  %v1758_v26 = vld [vmem:[#allocation2 + $0x30] sm:$0xff]  ;;  %v1759_v30 = vld [vmem:[#allocation2 + $0x38] sm:$0xff]  ;;  %v2160_v34 = vld [vmem:[%s3413_s2] ss:$0 sm:$0xff] }
   0xf   :  { %v1766_v27 = vld [vmem:[#allocation2 + $0x70] sm:$0xff]  ;;  %v1767_v31 = vld [vmem:[#allocation2 + $0x78] sm:$0xff]  ;;  %v2165_v35 = vld [vmem:[%s3414_s3] ss:$0 sm:$0xff] }
  0x10   :  { %v1774_v28 = vld [vmem:[#allocation2 + $0xb0] sm:$0xff]  ;;  %v1775_v32 = vld [vmem:[#allocation2 + $0xb8] sm:$0xff] }
  0x11   :  { %v1782_v29 = vld [vmem:[#allocation2 + $0xf0] sm:$0xff]  ;;  %v1783_v33 = vld [vmem:[#allocation2 + $0xf8] sm:$0xff] }
  0x1d   :  { %1721 = vmatmul.msk.bf16.gmra.mxu0 %vm276_vm0, %v1753_v6  ;;  %1729 = vmatmul.msk.bf16.gmra.mxu1 %vm276_vm0, %v1761_v7 }
  0x1e   :  { %1737 = vmatmul.msk.bf16.gmra.mxu2 %vm276_vm0, %v1769_v8  ;;  %1745 = vmatmul.msk.bf16.gmra.mxu3 %vm276_vm0, %v1777_v9 }
  0x2d   :  { %1722 = vmatmul.msk.bf16.gmra.mxu0 %vm276_vm0, %v1754_v10  ;;  %1730 = vmatmul.msk.bf16.gmra.mxu1 %vm276_vm0, %v1762_v11 }
  0x2e   :  { %1738 = vmatmul.msk.bf16.gmra.mxu2 %vm276_vm0, %v1770_v12  ;;  %1746 = vmatmul.msk.bf16.gmra.mxu3 %vm276_vm0, %v1778_v13 }
  0x3d   :  { %1723 = vmatmul.msk.bf16.gmra.mxu0 %vm276_vm0, %v1755_v14  ;;  %1731 = vmatmul.msk.bf16.gmra.mxu1 %vm276_vm0, %v1763_v15 }
  0x3e   :  { %1739 = vmatmul.msk.bf16.gmra.mxu2 %vm276_vm0, %v1771_v16  ;;  %1747 = vmatmul.msk.bf16.gmra.mxu3 %vm276_vm0, %v1779_v17 }
  0x4d   :  { %1724 = vmatmul.msk.bf16.gmra.mxu0 %vm276_vm0, %v1756_v18  ;;  %1732 = vmatmul.msk.bf16.gmra.mxu1 %vm276_vm0, %v1764_v19 }
  0x4e   :  { %1740 = vmatmul.msk.bf16.gmra.mxu2 %vm276_vm0, %v1772_v20  ;;  %1748 = vmatmul.msk.bf16.gmra.mxu3 %vm276_vm0, %v1780_v21 }
  0x5d   :  { %1725 = vmatmul.msk.bf16.gmra.mxu0 %vm276_vm0, %v1757_v22  ;;  %1733 = vmatmul.msk.bf16.gmra.mxu1 %vm276_vm0, %v1765_v23 }
  0x5e   :  { %1741 = vmatmul.msk.bf16.gmra.mxu2 %vm276_vm0, %v1773_v24  ;;  %1749 = vmatmul.msk.bf16.gmra.mxu3 %vm276_vm0, %v1781_v25 }
  0x6d   :  { %1726 = vmatmul.msk.bf16.gmra.mxu0 %vm276_vm0, %v1758_v26  ;;  %1734 = vmatmul.msk.bf16.gmra.mxu1 %vm276_vm0, %v1766_v27 }
  0x6e   :  { %1742 = vmatmul.msk.bf16.gmra.mxu2 %vm276_vm0, %v1774_v28  ;;  %1750 = vmatmul.msk.bf16.gmra.mxu3 %vm276_vm0, %v1782_v29 }
  0x7d   :  { %1727 = vmatmul.msk.bf16.gmra.mxu0 %vm276_vm0, %v1759_v30  ;;  %1735 = vmatmul.msk.bf16.gmra.mxu1 %vm276_vm0, %v1767_v31 }
  0x7e   :  { %1743 = vmatmul.msk.bf16.gmra.mxu2 %vm276_vm0, %v1775_v32  ;;  %1751 = vmatmul.msk.bf16.gmra.mxu3 %vm276_vm0, %v1783_v33 }
  0x8a   :  { %v382_v36 = vpop.f32.mrf.mxu0  ;;  %v422_v37 = vpop.f32.mrf.mxu1 }
  0x8b   :  { %v546_v38 = vmul.f32 %v2160_v34, %v382_v36  ;;  %v562_v39 = vmul.f32 %v2160_v34, %v422_v37  ;;  %v1191_v40 = vpack.c.bf16 %v382_v36, %v382_v36  ;;  %v1207_v41 = vpack.c.bf16 %v422_v37, %v422_v37 }
  0x8d   :  { %v2170_v42 = vadd.f32 %v2165_v35, %v546_v38  ;;  %v2173_v43 = vadd.f32 %v2165_v35, %v562_v39  ;;  %1319 = vrot.lane.b32.xlu0 %v1191_v40, %s2085_s6  ;;  %1351 = vrot.lane.b32.xlu1 %v1207_v41, %s2085_s6 }
  0x8f   :  { %v678_v44 = vsub.f32 0.0, %v2170_v42  ;;  %v694_v45 = vsub.f32 0.0, %v2173_v43 }
  0x91   :  { %v742_v46 = vmul.f32 1.442695, %v678_v44  ;;  %v774_v47 = vmul.f32 1.442695, %v694_v45  ;;  %v462_v48 = vpop.f32.mrf.mxu2  ;;  %v502_v49 = vpop.f32.mrf.mxu3 }
  0x92   :  { %v578_v50 = vmul.f32 %v2160_v34, %v462_v48  ;;  %v594_v51 = vmul.f32 %v2160_v34, %v502_v49  ;;  %v1239_v52 = vpack.c.bf16 %v502_v49, %v502_v49  ;;  %v384_v53 = vpop.f32.mrf.mxu0  ;;  %v424_v54 = vpop.f32.mrf.mxu1  ;;  %v1223_v55 = vpack.c.bf16 %v462_v48, %v462_v48 }
  0x93   :  { %1798 = vpow2.f32 %v742_v46  ;;  %v547_v56 = vmul.f32 %v2160_v34, %v384_v53  ;;  %v563_v57 = vmul.f32 %v2160_v34, %v424_v54  ;;  %v1192_v6 = vpack.c.bf16 %v384_v53, %v384_v53 }
  0x94   :  { %1800 = vpow2.f32 %v774_v47  ;;  %v2184_v58 = vadd.f32 %v2165_v35, %v578_v50  ;;  %v2187_v59 = vadd.f32 %v2165_v35, %v594_v51  ;;  %1383 = vrot.lane.b32.xlu2 %v1223_v55, %s2085_s6  ;;  %v1208_v7 = vpack.c.bf16 %v424_v54, %v424_v54 }
  0x95   :  { %v2191_v60 = vadd.f32 %v2165_v35, %v547_v56  ;;  %v2194_v61 = vadd.f32 %v2165_v35, %v563_v57  ;;  %1415 = vrot.lane.b32.xlu0 %v1239_v52, %s2085_s6 }
  0x96   :  { %v710_v62 = vsub.f32 0.0, %v2184_v58  ;;  %v726_v63 = vsub.f32 0.0, %v2187_v59 }
  0x97   :  { %v679_v0 = vsub.f32 0.0, %v2191_v60  ;;  %v695_v1 = vsub.f32 0.0, %v2194_v61 }
  0x98   :  { %v806_v2 = vmul.f32 1.442695, %v710_v62  ;;  %v838_v3 = vmul.f32 1.442695, %v726_v63 }
  0x99   :  { %v1799_v4 = vpop.eup %1798  ;;  %v744_v5 = vmul.f32 1.442695, %v679_v0  ;;  %v464_v8 = vpop.f32.mrf.mxu2  ;;  %v776_v12 = vmul.f32 1.442695, %v695_v1 }
  0x9a   :  { %v504_v9 = vpop.f32.mrf.mxu3  ;;  %v1801_v10 = vpop.eup %1800  ;;  %v870_v11 = vadd.f32 1.0, %v1799_v4  ;;  %1802 = vpow2.f32 %v806_v2  ;;  %v579_v13 = vmul.f32 %v2160_v34, %v464_v8  ;;  %v1224_v48 = vpack.c.bf16 %v464_v8, %v464_v8 }
  0x9b   :  { %v387_v14 = vpop.f32.mrf.mxu0  ;;  %v2202_v15 = vpop.f32.mrf.mxu1  ;;  %v886_v16 = vadd.f32 1.0, %v1801_v10  ;;  %1804 = vpow2.f32 %v838_v3  ;;  %v595_v17 = vmul.f32 %v2160_v34, %v504_v9  ;;  %v1240_v18 = vpack.c.bf16 %v504_v9, %v504_v9 }
  0x9c   :  { %1806 = vrcp.f32 %v870_v11  ;;  %v2206_v19 = vadd.f32 %v2165_v35, %v579_v13  ;;  %v548_v20 = vmul.f32 %v2160_v34, %v387_v14  ;;  %1353 = vrot.lane.b32.xlu2 %v1208_v7, %s2085_s6  ;;  %v564_v22 = vmul.f32 %v2160_v34, %v2202_v15 }
  0x9d   :  { %1808 = vrcp.f32 %v886_v16  ;;  %v2211_v21 = vadd.f32 %v2165_v35, %v595_v17  ;;  %1417 = vrot.lane.b32.xlu1 %v1240_v18, %s2085_s6  ;;  %1321 = vrot.lane.b32.xlu0 %v1192_v6, %s2085_s6  ;;  %v1193_v33 = vpack.c.bf16 %v387_v14, %v387_v14  ;;  %v1209_v0 = vpack.c.bf16 %v2202_v15, %v2202_v15 }
  0x9e   :  { %1810 = vpow2.f32 %v744_v5  ;;  %v711_v23 = vsub.f32 0.0, %v2206_v19  ;;  %v2219_v24 = vadd.f32 %v2165_v35, %v548_v20  ;;  %v2223_v26 = vadd.f32 %v2165_v35, %v564_v22 }
  0x9f   :  { %1812 = vpow2.f32 %v776_v12  ;;  %v727_v25 = vsub.f32 0.0, %v2211_v21 }
  0xa0   :  { %v1803_v27 = vpop.eup %1802  ;;  %v808_v28 = vmul.f32 1.442695, %v711_v23  ;;  %v680_v29 = vsub.f32 0.0, %v2219_v24  ;;  %v696_v36 = vsub.f32 0.0, %v2223_v26 }
  0xa1   :  { %v1805_v30 = vpop.eup %1804  ;;  %v902_v31 = vadd.f32 1.0, %v1803_v27  ;;  %v840_v32 = vmul.f32 1.442695, %v727_v25  ;;  %v2227_v37 = vpop.f32.mrf.mxu2 }
  0xa2   :  { %v507_v38 = vpop.f32.mrf.mxu3  ;;  %v1807_v39 = vpop.eup %1806  ;;  %v918_v40 = vadd.f32 1.0, %v1805_v30  ;;  %1814 = vpow2.f32 %v808_v28  ;;  %v746_v41 = vmul.f32 1.442695, %v680_v29  ;;  %v580_v44 = vmul.f32 %v2160_v34, %v2227_v37 }
  0xa3   :  { %v2231_v45 = vpop.f32.mrf.mxu0  ;;  %v1809_v46 = vpop.eup %1808  ;;  %v998_v47 = vmul.f32 %v1807_v39, %v2170_v42  ;;  %1816 = vrcp.f32 %v902_v31  ;;  %v778_v49 = vmul.f32 1.442695, %v696_v36  ;;  %v596_v53 = vmul.f32 %v2160_v34, %v507_v38 }
  0xa4   :  { %v1811_v50 = vpop.eup %1810  ;;  %v1014_v51 = vmul.f32 %v1809_v46, %v2173_v43  ;;  %1818 = vrcp.f32 %v918_v40  ;;  %v2236_v52 = vadd.f32 %v2165_v35, %v580_v44  ;;  %v1241_v57 = vpack.c.bf16 %v507_v38, %v507_v38  ;;  %v2239_v62 = vpop.f32.mrf.mxu1 }
  0xa5   :  { %v1813_v54 = vpop.eup %1812  ;;  %v1062_v55 = vpack.c.bf16 %v998_v47, %v998_v47  ;;  %v871_v56 = vadd.f32 1.0, %v1811_v50  ;;  %1820 = vpow2.f32 %v840_v32  ;;  %1323 = vrot.lane.b32.xlu1 %v1193_v33, %s2085_s6  ;;  %1385 = vrot.lane.b32.xlu0 %v1224_v48, %s2085_s6  ;;  %v2251_v1 = vadd.f32 %v2165_v35, %v596_v53 }
  0xa6   :  { %v1078_v42 = vpack.c.bf16 %v1014_v51, %v1014_v51  ;;  %v887_v63 = vadd.f32 1.0, %v1813_v54  ;;  %1822 = vpow2.f32 %v746_v41  ;;  %v712_v43 = vsub.f32 0.0, %v2236_v52  ;;  %1419 = vrot.lane.b32.xlu2 %v1241_v57, %s2085_s6 }
  0xa7   :  { %1127 = vst.msk [vmem:[%s3415_s4] sm:$0xf] %vm1126_vm1, %v1062_v55  ;;  %1824 = vrcp.f32 %v871_v56  ;;  %v549_v2 = vmul.f32 %v2160_v34, %v2231_v45  ;;  %v1225_v5 = vpack.c.bf16 %v2227_v37, %v2227_v37  ;;  %v565_v6 = vmul.f32 %v2160_v34, %v2239_v62 }
  0xa8   :  { %v1815_v3 = vpop.eup %1814  ;;  %1143 = vst.msk [vmem:[%s3415_s4 + $0x40] sm:$0xf] %vm1126_vm1, %v1078_v42  ;;  %1826 = vrcp.f32 %v887_v63  ;;  %v810_v4 = vmul.f32 1.442695, %v712_v43  ;;  %v728_v9 = vsub.f32 0.0, %v2251_v1  ;;  %v1194_v56 = vpack.c.bf16 %v2231_v45, %v2231_v45 }
  0xa9   :  { %v1817_v7 = vpop.eup %1816  ;;  %v903_v8 = vadd.f32 1.0, %v1815_v3  ;;  %1828 = vpow2.f32 %v778_v49  ;;  %v2266_v10 = vadd.f32 %v2165_v35, %v549_v2  ;;  %v469_v11 = vpop.f32.mrf.mxu2  ;;  %v2270_v14 = vadd.f32 %v2165_v35, %v565_v6 }
  0xaa   :  { %v1819_v12 = vpop.eup %1818  ;;  %v1030_v13 = vmul.f32 %v1817_v7, %v2184_v58  ;;  %1830 = vpow2.f32 %v810_v4  ;;  %v581_v15 = vmul.f32 %v2160_v34, %v469_v11  ;;  %v2273_v16 = vpop.f32.mrf.mxu3  ;;  %v842_v22 = vmul.f32 1.442695, %v728_v9 }
  0xab   :  { %v2275_v17 = vpop.f32.mrf.mxu0  ;;  %v1821_v18 = vpop.eup %1820  ;;  %v1046_v20 = vmul.f32 %v1819_v12, %v2187_v59  ;;  %1832 = vrcp.f32 %v903_v8  ;;  %v681_v23 = vsub.f32 0.0, %v2266_v10  ;;  %v697_v28 = vsub.f32 0.0, %v2270_v14 }
  0xac   :  { %v1823_v25 = vpop.eup %1822  ;;  %v1094_v27 = vpack.c.bf16 %v1030_v13, %v1030_v13  ;;  %v919_v58 = vadd.f32 1.0, %v1821_v18  ;;  %v2281_v29 = vadd.f32 %v2165_v35, %v581_v15  ;;  %1834 = vpow2.f32 %v842_v22  ;;  %v2298_v46 = vpop.f32.mrf.mxu1 }
  0xad   :  { %v1825_v30 = vpop.eup %1824  ;;  %v1110_v31 = vpack.c.bf16 %v1046_v20, %v1046_v20  ;;  %v872_v32 = vadd.f32 1.0, %v1823_v25  ;;  %v748_v33 = vmul.f32 1.442695, %v681_v23  ;;  %1387 = vrot.lane.b32.xlu1 %v1225_v5, %s2085_s6  ;;  %1355 = vrot.lane.b32.xlu0 %v1209_v0, %s2085_s6  ;;  %v780_v37 = vmul.f32 1.442695, %v697_v28 }
  0xae   :  { %v1827_v59 = vpop.eup %1826  ;;  %1159 = vst.msk [vmem:[%s3415_s4 + $0x80] sm:$0xf] %vm1126_vm1, %v1094_v27  ;;  %v999_v36 = vmul.f32 %v1825_v30, %v2191_v60  ;;  %1836 = vrcp.f32 %v919_v58  ;;  %v713_v38 = vsub.f32 0.0, %v2281_v29  ;;  %v1226_v41 = vpack.c.bf16 %v469_v11, %v469_v11 }
  0xaf   :  { %v1829_v39 = vpop.eup %1828  ;;  %1175 = vst.msk [vmem:[%s3415_s4 + $0xc0] sm:$0xf] %vm1126_vm1, %v1110_v31  ;;  %v1015_v40 = vmul.f32 %v1827_v59, %v2194_v61  ;;  %1838 = vrcp.f32 %v872_v32  ;;  %v597_v44 = vmul.f32 %v2160_v34, %v2273_v16  ;;  %v550_v57 = vmul.f32 %v2160_v34, %v2275_v17 }
  0xb0   :  { %v1831_v60 = vpop.eup %1830  ;;  %v1063_v47 = vpack.c.bf16 %v999_v36, %v999_v36  ;;  %v888_v48 = vadd.f32 1.0, %v1829_v39  ;;  %1840 = vpow2.f32 %v748_v33  ;;  %v812_v49 = vmul.f32 1.442695, %v713_v38  ;;  %1389 = vrot.lane.b32.xlu2 %v1226_v41, %s2085_s6 }
  0xb1   :  { %v1833_v50 = vpop.eup %1832  ;;  %v1079_v51 = vpack.c.bf16 %v1015_v40, %v1015_v40  ;;  %v904_v53 = vadd.f32 1.0, %v1831_v60  ;;  %1842 = vpow2.f32 %v780_v37  ;;  %v2301_v54 = vadd.f32 %v2165_v35, %v597_v44  ;;  %v2304_v61 = vpop.f32.mrf.mxu2 }
  0xb2   :  { %1128 = vst.msk [vmem:[%s3415_s4 + $0x4] sm:$0xf] %vm1126_vm1, %v1063_v47  ;;  %v1031_v55 = vmul.f32 %v1833_v50, %v2206_v19  ;;  %1844 = vrcp.f32 %v888_v48  ;;  %v1835_v42 = vpop.eup %1834  ;;  %v1242_v43 = vpack.c.bf16 %v2273_v16, %v2273_v16  ;;  %v566_v19 = vmul.f32 %v2160_v34, %v2298_v46  ;;  %v2329_v5 = vpop.f32.mrf.mxu3 }
  0xb3   :  { %1144 = vst.msk [vmem:[%s3415_s4 + $0x44] sm:$0xf] %vm1126_vm1, %v1079_v51  ;;  %1846 = vrcp.f32 %v904_v53  ;;  %v729_v63 = vsub.f32 0.0, %v2301_v54  ;;  %v2324_v0 = vpop.f32.mrf.mxu0  ;;  %v920_v3 = vadd.f32 1.0, %v1835_v42  ;;  %v2327_v4 = vadd.f32 %v2165_v35, %v550_v57 }
  0xb4   :  { %v1837_v45 = vpop.eup %1836  ;;  %v1095_v2 = vpack.c.bf16 %v1031_v55, %v1031_v55  ;;  %1848 = vpow2.f32 %v812_v49  ;;  %v1195_v9 = vpack.c.bf16 %v2275_v17, %v2275_v17  ;;  %v2335_v11 = vadd.f32 %v2165_v35, %v566_v19  ;;  %v2358_v32 = vpop.f32.mrf.mxu1 }
  0xb5   :  { %v1839_v6 = vpop.eup %1838  ;;  %v1047_v7 = vmul.f32 %v1837_v45, %v2211_v21  ;;  %v844_v8 = vmul.f32 1.442695, %v729_v63  ;;  %1325 = vrot.lane.b32.xlu1 %v1194_v56, %s2085_s6  ;;  %1421 = vrot.lane.b32.xlu0 %v1242_v43, %s2085_s6  ;;  %1850 = vrcp.f32 %v920_v3  ;;  %v682_v21 = vsub.f32 0.0, %v2327_v4 }
  0xb6   :  { %v1841_v12 = vpop.eup %1840  ;;  %1160 = vst.msk [vmem:[%s3415_s4 + $0x84] sm:$0xf] %vm1126_vm1, %v1095_v2  ;;  %v1000_v13 = vmul.f32 %v1839_v6, %v2219_v24  ;;  %v582_v15 = vmul.f32 %v2160_v34, %v2304_v61  ;;  %v698_v20 = vsub.f32 0.0, %v2335_v11  ;;  %v1227_v31 = vpack.c.bf16 %v2304_v61, %v2304_v61 }
  0xb7   :  { %v1843_v16 = vpop.eup %1842  ;;  %v1111_v17 = vpack.c.bf16 %v1047_v7, %v1047_v7  ;;  %v873_v18 = vadd.f32 1.0, %v1841_v12  ;;  %1852 = vpow2.f32 %v844_v8  ;;  %v750_v27 = vmul.f32 1.442695, %v682_v21 }
  0xb8   :  { %v1845_v22 = vpop.eup %1844  ;;  %v1064_v23 = vpack.c.bf16 %v1000_v13, %v1000_v13  ;;  %v889_v25 = vadd.f32 1.0, %v1843_v16  ;;  %v2349_v58 = vadd.f32 %v2165_v35, %v582_v15  ;;  %v782_v30 = vmul.f32 1.442695, %v698_v20  ;;  %1327 = vrot.lane.b32.xlu2 %v1195_v9, %s2085_s6 }
  0xb9   :  { %v1847_v24 = vpop.eup %1846  ;;  %1176 = vst.msk [vmem:[%s3415_s4 + $0xc4] sm:$0xf] %vm1126_vm1, %v1111_v17  ;;  %v1016_v28 = vmul.f32 %v1845_v22, %v2223_v26  ;;  %1854 = vrcp.f32 %v873_v18  ;;  %v598_v36 = vmul.f32 %v2160_v34, %v2329_v5  ;;  %v1210_v38 = vpack.c.bf16 %v2239_v62, %v2239_v62  ;;  %v2371_v40 = vpop.f32.mrf.mxu2 }
  0xba   :  { %v1849_v33 = vpop.eup %1848  ;;  %1129 = vst.msk [vmem:[%s3415_s4 + $0x8] sm:$0xf] %vm1126_vm1, %v1064_v23  ;;  %v1032_v59 = vmul.f32 %v1847_v24, %v2236_v52  ;;  %1856 = vrcp.f32 %v889_v25  ;;  %v714_v26 = vsub.f32 0.0, %v2349_v58  ;;  %v1211_v62 = vpack.c.bf16 %v2298_v46, %v2298_v46  ;;  %v2395_v46 = vpop.f32.mrf.mxu3 }
  0xbb   :  { %v1080_v37 = vpack.c.bf16 %v1016_v28, %v1016_v28  ;;  %v905_v39 = vadd.f32 1.0, %v1849_v33  ;;  %1858 = vpow2.f32 %v750_v27  ;;  %v1851_v41 = vpop.eup %1850  ;;  %v2374_v52 = vadd.f32 %v2165_v35, %v598_v36  ;;  %v2385_v50 = vpop.f32.mrf.mxu0 }
  0xbc   :  { %v1096_v44 = vpack.c.bf16 %v1032_v59, %v1032_v59  ;;  %1860 = vpow2.f32 %v782_v30  ;;  %v814_v60 = vmul.f32 1.442695, %v714_v26  ;;  %v1048_v48 = vmul.f32 %v1851_v41, %v2251_v1  ;;  %v2423_v17 = vpop.f32.mrf.mxu1 }
  0xbd   :  { %v1853_v47 = vpop.eup %1852  ;;  %1145 = vst.msk [vmem:[%s3415_s4 + $0x48] sm:$0xf] %vm1126_vm1, %v1080_v37  ;;  %1862 = vrcp.f32 %v905_v39  ;;  %v551_v49 = vmul.f32 %v2160_v34, %v2324_v0  ;;  %1357 = vrot.lane.b32.xlu1 %v1210_v38, %s2085_s6  ;;  %v730_v1 = vsub.f32 0.0, %v2374_v52  ;;  %v567_v53 = vmul.f32 %v2160_v34, %v2358_v32  ;;  %1391 = vrot.lane.b32.xlu0 %v1227_v31, %s2085_s6 }
  0xbe   :  { %1161 = vst.msk [vmem:[%s3415_s4 + $0x88] sm:$0xf] %vm1126_vm1, %v1096_v44  ;;  %v921_v51 = vadd.f32 1.0, %v1853_v47  ;;  %1864 = vpow2.f32 %v814_v60  ;;  %v1112_v55 = vpack.c.bf16 %v1048_v48, %v1048_v48  ;;  %v1243_v56 = vpack.c.bf16 %v2329_v5, %v2329_v5 }
  0xbf   :  { %v1855_v61 = vpop.eup %1854  ;;  %v2401_v57 = vadd.f32 %v2165_v35, %v551_v49  ;;  %v583_v42 = vmul.f32 %v2160_v34, %v2371_v40  ;;  %v846_v19 = vmul.f32 1.442695, %v730_v1  ;;  %v2407_v45 = vadd.f32 %v2165_v35, %v567_v53 }
  0xc0   :  { %v1857_v63 = vpop.eup %1856  ;;  %v1001_v43 = vmul.f32 %v1855_v61, %v2266_v10  ;;  %1866 = vrcp.f32 %v921_v51  ;;  %1177 = vst.msk [vmem:[%s3415_s4 + $0xc8] sm:$0xf] %vm1126_vm1, %v1112_v55  ;;  %v1212_v6 = vpack.c.bf16 %v2358_v32, %v2358_v32  ;;  %1359 = vrot.lane.b32.xlu2 %v1211_v62, %s2085_s6  ;;  %v599_v23 = vmul.f32 %v2160_v34, %v2395_v46 }
  0xc1   :  { %v1859_v2 = vpop.eup %1858  ;;  %v1017_v3 = vmul.f32 %v1857_v63, %v2270_v14  ;;  %v683_v5 = vsub.f32 0.0, %v2401_v57  ;;  %v2418_v10 = vadd.f32 %v2165_v35, %v583_v42  ;;  %1868 = vpow2.f32 %v846_v19  ;;  %v2438_v28 = vpop.f32.mrf.mxu2 }
  0xc2   :  { %v1861_v7 = vpop.eup %1860  ;;  %v1065_v8 = vpack.c.bf16 %v1001_v43, %v1001_v43  ;;  %v874_v9 = vadd.f32 1.0, %v1859_v2  ;;  %v699_v12 = vsub.f32 0.0, %v2407_v45  ;;  %v1196_v27 = vpack.c.bf16 %v2324_v0, %v2324_v0  ;;  %v2464_v39 = vpop.f32.mrf.mxu3 }
  0xc3   :  { %v1863_v13 = vpop.eup %1862  ;;  %v1081_v21 = vpack.c.bf16 %v1017_v3, %v1017_v3  ;;  %v890_v15 = vadd.f32 1.0, %v1861_v7  ;;  %v752_v14 = vmul.f32 1.442695, %v683_v5  ;;  %v715_v16 = vsub.f32 0.0, %v2418_v10  ;;  %v2452_v26 = vpop.f32.mrf.mxu0 }
  0xc4   :  { %v1865_v18 = vpop.eup %1864  ;;  %1130 = vst.msk [vmem:[%s3415_s4 + $0xc] sm:$0xf] %vm1126_vm1, %v1065_v8  ;;  %v1033_v20 = vmul.f32 %v1863_v13, %v2281_v29  ;;  %1870 = vrcp.f32 %v874_v9  ;;  %v784_v22 = vmul.f32 1.442695, %v699_v12  ;;  %v2442_v31 = vadd.f32 %v2165_v35, %v599_v23  ;;  %v2490_v2 = vpop.f32.mrf.mxu1 }
  0xc5   :  { %1146 = vst.msk [vmem:[%s3415_s4 + $0x4c] sm:$0xf] %vm1126_vm1, %v1081_v21  ;;  %1872 = vrcp.f32 %v890_v15  ;;  %v906_v25 = vadd.f32 1.0, %v1865_v18  ;;  %v816_v24 = vmul.f32 1.442695, %v715_v16  ;;  %1423 = vrot.lane.b32.xlu1 %v1243_v56, %s2085_s6  ;;  %v552_v32 = vmul.f32 %v2160_v34, %v2385_v50  ;;  %1361 = vrot.lane.b32.xlu0 %v1212_v6, %s2085_s6 }
  0xc6   :  { %v1867_v29 = vpop.eup %1866  ;;  %v1097_v30 = vpack.c.bf16 %v1033_v20, %v1033_v20  ;;  %1874 = vpow2.f32 %v752_v14  ;;  %v1228_v0 = vpack.c.bf16 %v2371_v40, %v2371_v40  ;;  %v568_v59 = vmul.f32 %v2160_v34, %v2423_v17 }
  0xc7   :  { %v1049_v33 = vmul.f32 %v1867_v29, %v2301_v54  ;;  %1876 = vrcp.f32 %v906_v25  ;;  %v1869_v36 = vpop.eup %1868  ;;  %v731_v37 = vsub.f32 0.0, %v2442_v31  ;;  %v1244_v54 = vpack.c.bf16 %v2395_v46, %v2395_v46 }
  0xc8   :  { %1162 = vst.msk [vmem:[%s3415_s4 + $0x8c] sm:$0xf] %vm1126_vm1, %v1097_v30  ;;  %1878 = vpow2.f32 %v784_v22  ;;  %v2462_v38 = vadd.f32 %v2165_v35, %v552_v32  ;;  %v922_v41 = vadd.f32 1.0, %v1869_v36  ;;  %v2467_v44 = vadd.f32 %v2165_v35, %v568_v59  ;;  %1329 = vrot.lane.b32.xlu2 %v1196_v27, %s2085_s6 }
  0xc9   :  { %v1113_v40 = vpack.c.bf16 %v1049_v33, %v1049_v33  ;;  %1880 = vpow2.f32 %v816_v24  ;;  %v848_v47 = vmul.f32 1.442695, %v731_v37  ;;  %v1197_v62 = vpack.c.bf16 %v2385_v50, %v2385_v50  ;;  %v2503_v13 = vpop.f32.mrf.mxu2 }
  0xca   :  { %v1871_v60 = vpop.eup %1870  ;;  %v684_v48 = vsub.f32 0.0, %v2462_v38  ;;  %v584_v49 = vmul.f32 %v2160_v34, %v2438_v28  ;;  %1882 = vrcp.f32 %v922_v41  ;;  %v700_v53 = vsub.f32 0.0, %v2467_v44  ;;  %v2530_v30 = vpop.f32.mrf.mxu3 }
  0xcb   :  { %v1873_v51 = vpop.eup %1872  ;;  %1178 = vst.msk [vmem:[%s3415_s4 + $0xcc] sm:$0xf] %vm1126_vm1, %v1113_v40  ;;  %v1002_v1 = vmul.f32 %v1871_v60, %v2327_v4  ;;  %v600_v46 = vmul.f32 %v2160_v34, %v2464_v39  ;;  %1884 = vpow2.f32 %v848_v47  ;;  %v1213_v9 = vpack.c.bf16 %v2423_v17, %v2423_v17  ;;  %v2513_v20 = vpop.f32.mrf.mxu0 }
  0xcc   :  { %v1875_v61 = vpop.eup %1874  ;;  %v1018_v50 = vmul.f32 %v1873_v51, %v2335_v11  ;;  %v754_v55 = vmul.f32 1.442695, %v684_v48  ;;  %v2485_v56 = vadd.f32 %v2165_v35, %v584_v49  ;;  %v786_v19 = vmul.f32 1.442695, %v700_v53  ;;  %v2554_v51 = vpop.f32.mrf.mxu1 }
  0xcd   :  { %v1877_v42 = vpop.eup %1876  ;;  %v1066_v63 = vpack.c.bf16 %v1002_v1, %v1002_v1  ;;  %v875_v43 = vadd.f32 1.0, %v1875_v61  ;;  %v2488_v4 = vadd.f32 %v2165_v35, %v600_v46  ;;  %1393 = vrot.lane.b32.xlu1 %v1228_v0, %s2085_s6  ;;  %1331 = vrot.lane.b32.xlu0 %v1197_v62, %s2085_s6  ;;  %v1229_v16 = vpack.c.bf16 %v2438_v28, %v2438_v28 }
  0xce   :  { %v1879_v3 = vpop.eup %1878  ;;  %v1082_v5 = vpack.c.bf16 %v1018_v50, %v1018_v50  ;;  %v1034_v11 = vmul.f32 %v1877_v42, %v2349_v58  ;;  %1886 = vpow2.f32 %v754_v55  ;;  %v716_v6 = vsub.f32 0.0, %v2485_v56 }
  0xcf   :  { %v1881_v7 = vpop.eup %1880  ;;  %1131 = vst.msk [vmem:[%s3415_s4 + $0x10] sm:$0xf] %vm1126_vm1, %v1066_v63  ;;  %1888 = vrcp.f32 %v875_v43  ;;  %v891_v8 = vadd.f32 1.0, %v1879_v3  ;;  %v732_v12 = vsub.f32 0.0, %v2488_v4  ;;  %v553_v17 = vmul.f32 %v2160_v34, %v2452_v26 }
  0xd0   :  { %1147 = vst.msk [vmem:[%s3415_s4 + $0x50] sm:$0xf] %vm1126_vm1, %v1082_v5  ;;  %v1098_v58 = vpack.c.bf16 %v1034_v11, %v1034_v11  ;;  %v907_v21 = vadd.f32 1.0, %v1881_v7  ;;  %1890 = vpow2.f32 %v786_v19  ;;  %v818_v15 = vmul.f32 1.442695, %v716_v6  ;;  %v1883_v14 = vpop.eup %1882  ;;  %1425 = vrot.lane.b32.xlu2 %v1244_v54, %s2085_s6 }
  0xd1   :  { %1892 = vrcp.f32 %v891_v8  ;;  %v850_v18 = vmul.f32 1.442695, %v732_v12  ;;  %v1885_v22 = vpop.eup %1884  ;;  %v1050_v23 = vmul.f32 %v1883_v14, %v2374_v52  ;;  %v1245_v25 = vpack.c.bf16 %v2464_v39, %v2464_v39  ;;  %v2563_v43 = vpop.f32.mrf.mxu2 }
  0xd2   :  { %1163 = vst.msk [vmem:[%s3415_s4 + $0x90] sm:$0xf] %vm1126_vm1, %v1098_v58  ;;  %1894 = vrcp.f32 %v907_v21  ;;  %v569_v27 = vmul.f32 %v2160_v34, %v2490_v2  ;;  %v923_v24 = vadd.f32 1.0, %v1885_v22  ;;  %v2526_v28 = vadd.f32 %v2165_v35, %v553_v17 }
  0xd3   :  { %1896 = vpow2.f32 %v818_v15  ;;  %v585_v29 = vmul.f32 %v2160_v34, %v2503_v13  ;;  %v1114_v33 = vpack.c.bf16 %v1050_v23, %v1050_v23  ;;  %v1198_v52 = vpack.c.bf16 %v2452_v26, %v2452_v26  ;;  %v2574_v8 = vpop.f32.mrf.mxu0 }
  0xd4   :  { %v1887_v32 = vpop.eup %1886  ;;  %1898 = vpow2.f32 %v850_v18  ;;  %v2535_v0 = vadd.f32 %v2165_v35, %v569_v27  ;;  %v685_v37 = vsub.f32 0.0, %v2526_v28  ;;  %v1214_v41 = vpack.c.bf16 %v2490_v2, %v2490_v2 }
  0xd5   :  { %v1889_v59 = vpop.eup %1888  ;;  %1900 = vrcp.f32 %v923_v24  ;;  %v876_v36 = vadd.f32 1.0, %v1887_v32  ;;  %v2539_v54 = vadd.f32 %v2165_v35, %v585_v29  ;;  %1363 = vrot.lane.b32.xlu1 %v1213_v9, %s2085_s6  ;;  %1179 = vst.msk [vmem:[%s3415_s4 + $0xd0] sm:$0xf] %vm1126_vm1, %v1114_v33  ;;  %v601_v60 = vmul.f32 %v2160_v34, %v2530_v30  ;;  %1427 = vrot.lane.b32.xlu0 %v1245_v25, %s2085_s6 }
  0xd6   :  { %v1891_v39 = vpop.eup %1890  ;;  %v1003_v26 = vmul.f32 %v1889_v59, %v2401_v57  ;;  %v701_v40 = vsub.f32 0.0, %v2535_v0  ;;  %v756_v62 = vmul.f32 1.442695, %v685_v37  ;;  %v554_v63 = vmul.f32 %v2160_v34, %v2513_v20 }
  0xd7   :  { %v1893_v47 = vpop.eup %1892  ;;  %1902 = vrcp.f32 %v876_v36  ;;  %v892_v48 = vadd.f32 1.0, %v1891_v39  ;;  %v717_v49 = vsub.f32 0.0, %v2539_v54  ;;  %v2558_v61 = vadd.f32 %v2165_v35, %v601_v60  ;;  %v2617_v36 = vpop.f32.mrf.mxu1 }
  0xd8   :  { %v1895_v1 = vpop.eup %1894  ;;  %v1067_v57 = vpack.c.bf16 %v1003_v26, %v1003_v26  ;;  %v1019_v53 = vmul.f32 %v1893_v47, %v2407_v45  ;;  %v788_v46 = vmul.f32 1.442695, %v701_v40  ;;  %1395 = vrot.lane.b32.xlu2 %v1229_v16, %s2085_s6  ;;  %v2572_v7 = vadd.f32 %v2165_v35, %v554_v63  ;;  %v2592_v16 = vpop.f32.mrf.mxu3 }
  0xd9   :  { %v1897_v50 = vpop.eup %1896  ;;  %v1035_v55 = vmul.f32 %v1895_v1, %v2418_v10  ;;  %1904 = vrcp.f32 %v892_v48  ;;  %v820_v42 = vmul.f32 1.442695, %v717_v49  ;;  %v733_v10 = vsub.f32 0.0, %v2558_v61 }
  0xda   :  { %v1899_v19 = vpop.eup %1898  ;;  %1132 = vst.msk [vmem:[%s3415_s4 + $0x14] sm:$0xf] %vm1126_vm1, %v1067_v57  ;;  %v1083_v45 = vpack.c.bf16 %v1019_v53, %v1019_v53  ;;  %v908_v3 = vadd.f32 1.0, %v1897_v50  ;;  %1906 = vpow2.f32 %v756_v62  ;;  %v1230_v12 = vpack.c.bf16 %v2503_v13, %v2503_v13 }
  0xdb   :  { %v1901_v5 = vpop.eup %1900  ;;  %v1099_v11 = vpack.c.bf16 %v1035_v55, %v1035_v55  ;;  %v924_v6 = vadd.f32 1.0, %v1899_v19  ;;  %1908 = vpow2.f32 %v788_v46  ;;  %v852_v58 = vmul.f32 1.442695, %v733_v10  ;;  %v2636_v62 = vpop.f32.mrf.mxu0 }
  0xdc   :  { %1148 = vst.msk [vmem:[%s3415_s4 + $0x54] sm:$0xf] %vm1126_vm1, %v1083_v45  ;;  %v1051_v9 = vmul.f32 %v1901_v5, %v2442_v31  ;;  %1910 = vrcp.f32 %v908_v3  ;;  %v1246_v15 = vpack.c.bf16 %v2530_v30, %v2530_v30  ;;  %v686_v14 = vsub.f32 0.0, %v2572_v7 }
  0xdd   :  { %v1903_v21 = vpop.eup %1902  ;;  %1164 = vst.msk [vmem:[%s3415_s4 + $0x94] sm:$0xf] %vm1126_vm1, %v1099_v11  ;;  %1912 = vrcp.f32 %v924_v6  ;;  %v570_v31 = vmul.f32 %v2160_v34, %v2554_v51  ;;  %1333 = vrot.lane.b32.xlu1 %v1198_v52, %s2085_s6  ;;  %v586_v17 = vmul.f32 %v2160_v34, %v2563_v43  ;;  %1397 = vrot.lane.b32.xlu0 %v1230_v12, %s2085_s6 }
  0xde   :  { %v1115_v13 = vpack.c.bf16 %v1051_v9, %v1051_v9  ;;  %v1004_v18 = vmul.f32 %v1903_v21, %v2462_v38  ;;  %1914 = vpow2.f32 %v820_v42  ;;  %v758_v23 = vmul.f32 1.442695, %v686_v14 }
  0xdf   :  { %v1905_v22 = vpop.eup %1904  ;;  %1916 = vpow2.f32 %v852_v58  ;;  %v1199_v25 = vpack.c.bf16 %v2513_v20, %v2513_v20  ;;  %v2602_v27 = vadd.f32 %v2165_v35, %v570_v31  ;;  %v2610_v30 = vadd.f32 %v2165_v35, %v586_v17  ;;  %v2671_v21 = vpop.f32.mrf.mxu1 }
  0xe0   :  { %v1907_v24 = vpop.eup %1906  ;;  %1180 = vst.msk [vmem:[%s3415_s4 + $0xd4] sm:$0xf] %vm1126_vm1, %v1115_v13  ;;  %v1068_v38 = vpack.c.bf16 %v1004_v18, %v1004_v18  ;;  %v1020_v29 = vmul.f32 %v1905_v22, %v2467_v44  ;;  %v602_v32 = vmul.f32 %v2160_v34, %v2592_v16  ;;  %1918 = vpow2.f32 %v758_v23  ;;  %1365 = vrot.lane.b32.xlu2 %v1214_v41, %s2085_s6  ;;  %v2634_v41 = vpop.f32.mrf.mxu2 }
  0xe1   :  { %v1909_v33 = vpop.eup %1908  ;;  %v877_v20 = vadd.f32 1.0, %v1907_v24  ;;  %v702_v52 = vsub.f32 0.0, %v2602_v27  ;;  %v1215_v59 = vpack.c.bf16 %v2554_v51, %v2554_v51  ;;  %v718_v26 = vsub.f32 0.0, %v2610_v30  ;;  %v2656_v3 = vpop.f32.mrf.mxu3 }
  0xe2   :  { %v1911_v44 = vpop.eup %1910  ;;  %1133 = vst.msk [vmem:[%s3415_s4 + $0x18] sm:$0xf] %vm1126_vm1, %v1068_v38  ;;  %v1084_v37 = vpack.c.bf16 %v1020_v29, %v1020_v29  ;;  %v893_v39 = vadd.f32 1.0, %v1909_v33  ;;  %v2629_v40 = vadd.f32 %v2165_v35, %v602_v32  ;;  %v555_v2 = vmul.f32 %v2160_v34, %v2574_v8 }
  0xe3   :  { %v1913_v60 = vpop.eup %1912  ;;  %v1036_v47 = vmul.f32 %v1911_v44, %v2485_v56  ;;  %1920 = vrcp.f32 %v877_v20  ;;  %v790_v48 = vmul.f32 1.442695, %v702_v52  ;;  %v822_v1 = vmul.f32 1.442695, %v718_v26 }
  0xe4   :  { %v1915_v49 = vpop.eup %1914  ;;  %1149 = vst.msk [vmem:[%s3415_s4 + $0x58] sm:$0xf] %vm1126_vm1, %v1084_v37  ;;  %v1052_v51 = vmul.f32 %v1913_v60, %v2488_v4  ;;  %1922 = vrcp.f32 %v893_v39  ;;  %v734_v56 = vsub.f32 0.0, %v2629_v40  ;;  %v2645_v50 = vadd.f32 %v2165_v35, %v555_v2 }
  0xe5   :  { %v1917_v57 = vpop.eup %1916  ;;  %v1100_v53 = vpack.c.bf16 %v1036_v47, %v1036_v47  ;;  %v909_v46 = vadd.f32 1.0, %v1915_v49  ;;  %1924 = vpow2.f32 %v790_v48  ;;  %1429 = vrot.lane.b32.xlu1 %v1246_v15, %s2085_s6  ;;  %1367 = vrot.lane.b32.xlu0 %v1215_v59, %s2085_s6  ;;  %v571_v45 = vmul.f32 %v2160_v34, %v2617_v36 }
  0xe6   :  { %v1116_v55 = vpack.c.bf16 %v1052_v51, %v1052_v51  ;;  %v925_v42 = vadd.f32 1.0, %v1917_v57  ;;  %1926 = vpow2.f32 %v822_v1  ;;  %v854_v63 = vmul.f32 1.442695, %v734_v56  ;;  %v1919_v4 = vpop.eup %1918 }
  0xe7   :  { %1165 = vst.msk [vmem:[%s3415_s4 + $0x98] sm:$0xf] %vm1126_vm1, %v1100_v53  ;;  %1928 = vrcp.f32 %v909_v46  ;;  %v687_v19 = vsub.f32 0.0, %v2645_v50  ;;  %v878_v10 = vadd.f32 1.0, %v1919_v4  ;;  %v1231_v5 = vpack.c.bf16 %v2563_v43, %v2563_v43  ;;  %v2745_v4 = vpop.f32.mrf.mxu1 }
  0xe8   :  { %1181 = vst.msk [vmem:[%s3415_s4 + $0xd8] sm:$0xf] %vm1126_vm1, %v1116_v55  ;;  %1930 = vrcp.f32 %v925_v42  ;;  %v587_v11 = vmul.f32 %v2160_v34, %v2634_v41  ;;  %v1247_v9 = vpack.c.bf16 %v2592_v16, %v2592_v16  ;;  %v2669_v58 = vadd.f32 %v2165_v35, %v571_v45  ;;  %1335 = vrot.lane.b32.xlu2 %v1199_v25, %s2085_s6  ;;  %v2678_v34 = vld [vmem:[%s3414_s3] ss:$0 sm:$0xff]  ;;  %v2700_v20 = vpop.f32.mrf.mxu2 }
  0xe9   :  { %v1921_v6 = vpop.eup %1920  ;;  %1932 = vpow2.f32 %v854_v63  ;;  %v760_v12 = vmul.f32 1.442695, %v687_v19  ;;  %v2686_v35 = vld [vmem:[%s3413_s2] ss:$0 sm:$0xff]  ;;  %v1200_v13 = vpack.c.bf16 %v2574_v8, %v2574_v8  ;;  %v2702_v8 = vpop.f32.mrf.mxu0  ;;  %v1216_v47 = vpack.c.bf16 %v2617_v36, %v2617_v36 }
  0xea   :  { %v1923_v15 = vpop.eup %1922  ;;  %v1005_v14 = vmul.f32 %v1921_v6, %v2526_v28  ;;  %1934 = vrcp.f32 %v878_v10  ;;  %v2681_v43 = vadd.f32 %v2678_v34, %v587_v11  ;;  %v603_v31 = vmul.f32 %v2686_v35, %v2656_v3  ;;  %v2737_v55 = vpop.f32.mrf.mxu3 }
  0xeb   :  { %v1925_v16 = vpop.eup %1924  ;;  %v1021_v28 = vmul.f32 %v1923_v15, %v2535_v0  ;;  %1936 = vpow2.f32 %v760_v12  ;;  %v703_v18 = vsub.f32 0.0, %v2669_v58  ;;  %v556_v0 = vmul.f32 %v2686_v35, %v2636_v62 }
  0xec   :  { %v1927_v17 = vpop.eup %1926  ;;  %v1069_v22 = vpack.c.bf16 %v1005_v14, %v1005_v14  ;;  %v894_v23 = vadd.f32 1.0, %v1925_v16  ;;  %v719_v25 = vsub.f32 0.0, %v2681_v43  ;;  %v2696_v24 = vadd.f32 %v2678_v34, %v603_v31 }
  0xed   :  { %v1929_v38 = vpop.eup %1928  ;;  %v1085_v29 = vpack.c.bf16 %v1021_v28, %v1021_v28  ;;  %v910_v32 = vadd.f32 1.0, %v1927_v17  ;;  %v792_v33 = vmul.f32 1.442695, %v703_v18  ;;  %1399 = vrot.lane.b32.xlu1 %v1231_v5, %s2085_s6  ;;  %1337 = vrot.lane.b32.xlu0 %v1200_v13, %s2085_s6  ;;  %v1232_v53 = vpack.c.bf16 %v2634_v41, %v2634_v41 }
  0xee   :  { %v1931_v52 = vpop.eup %1930  ;;  %1134 = vst.msk [vmem:[%s3415_s4 + $0x1c] sm:$0xf] %vm1126_vm1, %v1069_v22  ;;  %v1037_v59 = vmul.f32 %v1929_v38, %v2539_v54  ;;  %1938 = vrcp.f32 %v894_v23  ;;  %v824_v44 = vmul.f32 1.442695, %v719_v25  ;;  %v735_v37 = vsub.f32 0.0, %v2696_v24  ;;  %v1384_v39 = vpop.permute.xlu2 %1383 }
  0xef   :  { %v1933_v26 = vpop.eup %1932  ;;  %1150 = vst.msk [vmem:[%s3415_s4 + $0x5c] sm:$0xf] %vm1126_vm1, %v1085_v29  ;;  %v1053_v60 = vmul.f32 %v1931_v52, %v2558_v61  ;;  %1940 = vrcp.f32 %v910_v32  ;;  %v2720_v54 = vadd.f32 %v2678_v34, %v556_v0  ;;  %v572_v46 = vmul.f32 %v2686_v35, %v2671_v21 }
  0xf0   :  { %v1935_v48 = vpop.eup %1934  ;;  %v1101_v2 = vpack.c.bf16 %v1037_v59, %v1037_v59  ;;  %v926_v49 = vadd.f32 1.0, %v1933_v26  ;;  %1942 = vpow2.f32 %v792_v33  ;;  %v856_v51 = vmul.f32 1.442695, %v735_v37  ;;  %1543 = vst.msk [vmem:[%s3416_s5 + $0x80] sm:$0xf] %vm1126_vm1, %v1384_v39  ;;  %1431 = vrot.lane.b32.xlu2 %v1247_v9, %s2085_s6 }
  0xf1   :  { %v1937_v1 = vpop.eup %1936  ;;  %v1117_v56 = vpack.c.bf16 %v1053_v60, %v1053_v60  ;;  %v1006_v61 = vmul.f32 %v1935_v48, %v2572_v7  ;;  %1944 = vpow2.f32 %v824_v44  ;;  %v688_v36 = vsub.f32 0.0, %v2720_v54  ;;  %v2778_v17 = vpop.f32.mrf.mxu0 }
  0xf2   :  { %1166 = vst.msk [vmem:[%s3415_s4 + $0x9c] sm:$0xf] %vm1126_vm1, %v1101_v2  ;;  %1946 = vrcp.f32 %v926_v49  ;;  %v879_v57 = vadd.f32 1.0, %v1937_v1  ;;  %v588_v63 = vmul.f32 %v2686_v35, %v2700_v20  ;;  %v1248_v41 = vpack.c.bf16 %v2656_v3, %v2656_v3  ;;  %v2807_v49 = vpop.f32.mrf.mxu3 }
  0xf3   :  { %1182 = vst.msk [vmem:[%s3415_s4 + $0xdc] sm:$0xf] %vm1126_vm1, %v1117_v56  ;;  %v1070_v7 = vpack.c.bf16 %v1006_v61, %v1006_v61  ;;  %1948 = vpow2.f32 %v856_v51  ;;  %v762_v42 = vmul.f32 1.442695, %v688_v36  ;;  %v2750_v45 = vadd.f32 %v2678_v34, %v572_v46  ;;  %v2821_v36 = vpop.f32.mrf.mxu1 }
  0xf4   :  { %v1939_v19 = vpop.eup %1938  ;;  %1950 = vrcp.f32 %v879_v57  ;;  %v557_v10 = vmul.f32 %v2686_v35, %v2702_v8  ;;  %v1201_v6 = vpack.c.bf16 %v2636_v62, %v2636_v62  ;;  %v2762_v3 = vadd.f32 %v2678_v34, %v588_v63 }
  0xf5   :  { %v1941_v5 = vpop.eup %1940  ;;  %1135 = vst.msk [vmem:[%s3415_s4 + $0x20] sm:$0xf] %vm1126_vm1, %v1070_v7  ;;  %v1022_v11 = vmul.f32 %v1939_v19, %v2602_v27  ;;  %1952 = vpow2.f32 %v762_v42  ;;  %1369 = vrot.lane.b32.xlu1 %v1216_v47, %s2085_s6  ;;  %v704_v15 = vsub.f32 0.0, %v2750_v45  ;;  %v573_v27 = vmul.f32 %v2686_v35, %v2745_v4  ;;  %1433 = vrot.lane.b32.xlu0 %v1248_v41, %s2085_s6 }
  0xf6   :  { %v1943_v9 = vpop.eup %1942  ;;  %v1038_v12 = vmul.f32 %v1941_v5, %v2610_v30  ;;  %v2768_v14 = vadd.f32 %v2678_v34, %v557_v10  ;;  %v1354_v31 = vpop.permute.xlu2 %1353  ;;  %v720_v13 = vsub.f32 0.0, %v2762_v3  ;;  %v1233_v18 = vpack.c.bf16 %v2700_v20, %v2700_v20 }
  0xf7   :  { %v1945_v62 = vpop.eup %1944  ;;  %v1086_v16 = vpack.c.bf16 %v1022_v11, %v1022_v11  ;;  %v895_v28 = vadd.f32 1.0, %v1943_v9  ;;  %v2776_v30 = vpop.f32.mrf.mxu2  ;;  %1528 = vst.msk [vmem:[%s3416_s5 + $0x44] sm:$0xf] %vm1126_vm1, %v1354_v31  ;;  %v794_v38 = vmul.f32 1.442695, %v704_v15  ;;  %v2791_v20 = vadd.f32 %v2678_v34, %v573_v27 }
  0xf8   :  { %v1947_v22 = vpop.eup %1946  ;;  %v1102_v23 = vpack.c.bf16 %v1038_v12, %v1038_v12  ;;  %v911_v25 = vadd.f32 1.0, %v1945_v62  ;;  %v689_v29 = vsub.f32 0.0, %v2768_v14  ;;  %v826_v0 = vmul.f32 1.442695, %v720_v13  ;;  %1401 = vrot.lane.b32.xlu2 %v1232_v53, %s2085_s6 }
  0xf9   :  { %v1949_v32 = vpop.eup %1948  ;;  %1151 = vst.msk [vmem:[%s3415_s4 + $0x60] sm:$0xf] %vm1126_vm1, %v1086_v16  ;;  %v1054_v33 = vmul.f32 %v1947_v22, %v2629_v40  ;;  %1954 = vrcp.f32 %v895_v28  ;;  %v604_v37 = vmul.f32 %v2686_v35, %v2737_v55  ;;  %v705_v60 = vsub.f32 0.0, %v2791_v20  ;;  %v2852_v15 = vpop.f32.mrf.mxu0 }
  0xfa   :  { %v1951_v52 = vpop.eup %1950  ;;  %1167 = vst.msk [vmem:[%s3415_s4 + $0xa0] sm:$0xf] %vm1126_vm1, %v1102_v23  ;;  %1956 = vrcp.f32 %v911_v25  ;;  %v927_v59 = vadd.f32 1.0, %v1949_v32  ;;  %v764_v44 = vmul.f32 1.442695, %v689_v29  ;;  %v1217_v48 = vpack.c.bf16 %v2671_v21, %v2671_v21 }
  0xfb   :  { %v1953_v40 = vpop.eup %1952  ;;  %v1118_v39 = vpack.c.bf16 %v1054_v33, %v1054_v33  ;;  %v1007_v26 = vmul.f32 %v1951_v52, %v2645_v50  ;;  %1958 = vpow2.f32 %v794_v38  ;;  %v2805_v2 = vadd.f32 %v2678_v34, %v604_v37 }
  0xfc   :  { %1960 = vrcp.f32 %v927_v59  ;;  %v880_v47 = vadd.f32 1.0, %v1953_v40  ;;  %v796_v50 = vmul.f32 1.442695, %v705_v60  ;;  %v589_v1 = vmul.f32 %v2686_v35, %v2776_v30 }
  0xfd   :  { %1183 = vst.msk [vmem:[%s3415_s4 + $0xe0] sm:$0xf] %vm1126_vm1, %v1118_v39  ;;  %v1071_v51 = vpack.c.bf16 %v1007_v26, %v1007_v26  ;;  %1962 = vpow2.f32 %v826_v0  ;;  %1339 = vrot.lane.b32.xlu1 %v1201_v6, %s2085_s6  ;;  %v1202_v21 = vpack.c.bf16 %v2702_v8, %v2702_v8  ;;  %v736_v56 = vsub.f32 0.0, %v2805_v2  ;;  %1403 = vrot.lane.b32.xlu0 %v1233_v18, %s2085_s6  ;;  %v2890_v39 = vpop.f32.mrf.mxu3 }
  0xfe   :  { %1964 = vrcp.f32 %v880_v47  ;;  %v558_v61 = vmul.f32 %v2686_v35, %v2778_v17  ;;  %v1218_v53 = vpack.c.bf16 %v2745_v4, %v2745_v4  ;;  %v2831_v46 = vadd.f32 %v2678_v34, %v589_v1 }
  0xff   :  { %v1955_v57 = vpop.eup %1954  ;;  %1136 = vst.msk [vmem:[%s3415_s4 + $0x24] sm:$0xf] %vm1126_vm1, %v1071_v51  ;;  %1966 = vpow2.f32 %v764_v44  ;;  %v605_v7 = vmul.f32 %v2686_v35, %v2807_v49  ;;  %v2835_v42 = vpop.f32.mrf.mxu2  ;;  %v858_v10 = vmul.f32 1.442695, %v736_v56  ;;  %v1249_v9 = vpack.c.bf16 %v2737_v55, %v2737_v55 }
 0x100   :  { %v1320_v63 = vpop.permute.xlu0 %1319  ;;  %v1957_v19 = vpop.eup %1956  ;;  %v1023_v41 = vmul.f32 %v1955_v57, %v2669_v58  ;;  %1968 = vpow2.f32 %v796_v50  ;;  %v2839_v5 = vadd.f32 %v2678_v34, %v558_v61  ;;  %v721_v12 = vsub.f32 0.0, %v2831_v46  ;;  %1371 = vrot.lane.b32.xlu2 %v1217_v48, %s2085_s6 }
 0x101   :  { %1511 = vst.msk [vmem:[%s3416_s5] sm:$0xf] %vm1126_vm1, %v1320_v63  ;;  %v1352_v4 = vpop.permute.xlu1 %1351  ;;  %v1959_v11 = vpop.eup %1958  ;;  %v1039_v6 = vmul.f32 %v1957_v19, %v2681_v43  ;;  %v2850_v58 = vadd.f32 %v2678_v34, %v605_v7  ;;  %1970 = vpow2.f32 %v858_v10  ;;  %v559_v29 = vmul.f32 %v2686_v35, %v2852_v15 }
 0x102   :  { %v1420_v27 = vpop.permute.xlu2 %1419  ;;  %1527 = vst.msk [vmem:[%s3416_s5 + $0x40] sm:$0xf] %vm1126_vm1, %v1352_v4  ;;  %v1961_v31 = vpop.eup %1960  ;;  %v1087_v43 = vpack.c.bf16 %v1023_v41, %v1023_v41  ;;  %v896_v62 = vadd.f32 1.0, %v1959_v11  ;;  %v690_v55 = vsub.f32 0.0, %v2839_v5  ;;  %v828_v18 = vmul.f32 1.442695, %v721_v12 }
 0x103   :  { %1561 = vst.msk [vmem:[%s3416_s5 + $0xc8] sm:$0xf] %vm1126_vm1, %v1420_v27  ;;  %v1963_v16 = vpop.eup %1962  ;;  %v1103_v28 = vpack.c.bf16 %v1039_v6, %v1039_v6  ;;  %v1055_v13 = vmul.f32 %v1961_v31, %v2696_v24  ;;  %v737_v22 = vsub.f32 0.0, %v2850_v58  ;;  %v1234_v0 = vpack.c.bf16 %v2776_v30, %v2776_v30  ;;  %v2897_v50 = vpop.f32.mrf.mxu1 }
 0x104   :  { %v1965_v23 = vpop.eup %1964  ;;  %1152 = vst.msk [vmem:[%s3415_s4 + $0x64] sm:$0xf] %vm1126_vm1, %v1087_v43  ;;  %1972 = vrcp.f32 %v896_v62  ;;  %v912_v25 = vadd.f32 1.0, %v1963_v16  ;;  %v766_v38 = vmul.f32 1.442695, %v690_v55  ;;  %v2881_v37 = vadd.f32 %v2678_v34, %v559_v29 }
 0x105   :  { %v1967_v32 = vpop.eup %1966  ;;  %1168 = vst.msk [vmem:[%s3415_s4 + $0xa4] sm:$0xf] %vm1126_vm1, %v1103_v28  ;;  %v1119_v24 = vpack.c.bf16 %v1055_v13, %v1055_v13  ;;  %v1008_v33 = vmul.f32 %v1965_v23, %v2720_v54  ;;  %1974 = vpow2.f32 %v828_v18  ;;  %1435 = vrot.lane.b32.xlu1 %v1249_v9, %s2085_s6  ;;  %v860_v44 = vmul.f32 1.442695, %v737_v22  ;;  %1373 = vrot.lane.b32.xlu0 %v1218_v53, %s2085_s6 }
 0x106   :  { %v1969_v52 = vpop.eup %1968  ;;  %1976 = vrcp.f32 %v912_v25  ;;  %v881_v59 = vadd.f32 1.0, %v1967_v32  ;;  %v574_v30 = vmul.f32 %v2686_v35, %v2821_v36  ;;  %v1203_v47 = vpack.c.bf16 %v2778_v17, %v2778_v17 }
 0x107   :  { %1184 = vst.msk [vmem:[%s3415_s4 + $0xe4] sm:$0xf] %vm1126_vm1, %v1119_v24  ;;  %v1072_v54 = vpack.c.bf16 %v1008_v33, %v1008_v33  ;;  %v897_v40 = vadd.f32 1.0, %v1969_v52  ;;  %1978 = vpow2.f32 %v766_v38  ;;  %v1971_v60 = vpop.eup %1970  ;;  %v691_v48 = vsub.f32 0.0, %v2881_v37  ;;  %v2912_v61 = vpop.f32.mrf.mxu2 }
 0x108   :  { %v1416_v26 = vpop.permute.xlu0 %1415  ;;  %1980 = vrcp.f32 %v881_v59  ;;  %v590_v51 = vmul.f32 %v2686_v35, %v2835_v42  ;;  %v928_v1 = vadd.f32 1.0, %v1971_v60  ;;  %v1250_v17 = vpack.c.bf16 %v2807_v49, %v2807_v49  ;;  %1341 = vrot.lane.b32.xlu2 %v1202_v21, %s2085_s6  ;;  %v2963_v52 = vpop.f32.mrf.mxu0 }
 0x109   :  { %1559 = vst.msk [vmem:[%s3416_s5 + $0xc0] sm:$0xf] %vm1126_vm1, %v1416_v26  ;;  %1982 = vrcp.f32 %v897_v40  ;;  %v2910_v56 = vadd.f32 %v2678_v34, %v574_v30  ;;  %v768_v53 = vmul.f32 1.442695, %v691_v48  ;;  %v606_v63 = vmul.f32 %v2686_v35, %v2890_v39 }
 0x10a   :  { %1137 = vst.msk [vmem:[%s3415_s4 + $0x28] sm:$0xf] %vm1126_vm1, %v1072_v54  ;;  %v1973_v57 = vpop.eup %1972  ;;  %1984 = vpow2.f32 %v860_v44  ;;  %v2919_v7 = vadd.f32 %v2678_v34, %v590_v51  ;;  %v1219_v10 = vpack.c.bf16 %v2821_v36, %v2821_v36  ;;  %v1390_v8 = vpop.permute.xlu2 %1389  ;;  %v575_v31 = vmul.f32 %v2686_v35, %v2897_v50 }
 0x10b   :  { %v1975_v49 = vpop.eup %1974  ;;  %v1024_v19 = vmul.f32 %v1973_v57, %v2750_v45  ;;  %1986 = vrcp.f32 %v928_v1  ;;  %v706_v41 = vsub.f32 0.0, %v2910_v56  ;;  %v2929_v6 = vadd.f32 %v2678_v34, %v606_v63  ;;  %1546 = vst.msk [vmem:[%s3416_s5 + $0x8c] sm:$0xf] %vm1126_vm1, %v1390_v8  ;;  %v2969_v30 = vpop.f32.mrf.mxu1 }
 0x10c   :  { %v1977_v21 = vpop.eup %1976  ;;  %v913_v4 = vadd.f32 1.0, %v1975_v49  ;;  %1988 = vpow2.f32 %v768_v53  ;;  %v722_v11 = vsub.f32 0.0, %v2919_v7  ;;  %v2947_v18 = vadd.f32 %v2678_v34, %v575_v31 }
 0x10d   :  { %v1979_v45 = vpop.eup %1978  ;;  %v1088_v9 = vpack.c.bf16 %v1024_v19, %v1024_v19  ;;  %v1040_v12 = vmul.f32 %v1977_v21, %v2762_v3  ;;  %v798_v27 = vmul.f32 1.442695, %v706_v41  ;;  %1405 = vrot.lane.b32.xlu1 %v1234_v0, %s2085_s6  ;;  %v738_v16 = vsub.f32 0.0, %v2929_v6  ;;  %1343 = vrot.lane.b32.xlu0 %v1203_v47, %s2085_s6  ;;  %v2961_v0 = vpop.f32.mrf.mxu3 }
 0x10e   :  { %v1981_v43 = vpop.eup %1980  ;;  %1990 = vrcp.f32 %v913_v4  ;;  %v882_v62 = vadd.f32 1.0, %v1979_v45  ;;  %v830_v55 = vmul.f32 1.442695, %v722_v11  ;;  %v1251_v32 = vpack.c.bf16 %v2890_v39, %v2890_v39 }
 0x10f   :  { %v1983_v28 = vpop.eup %1982  ;;  %1153 = vst.msk [vmem:[%s3415_s4 + $0x68] sm:$0xf] %vm1126_vm1, %v1088_v9  ;;  %v1104_v3 = vpack.c.bf16 %v1040_v12, %v1040_v12  ;;  %v1009_v13 = vmul.f32 %v1981_v43, %v2768_v14  ;;  %1992 = vpow2.f32 %v798_v27  ;;  %v1418_v22 = vpop.permute.xlu1 %1417  ;;  %v862_v29 = vmul.f32 1.442695, %v738_v16 }
 0x110   :  { %v1322_v23 = vpop.permute.xlu0 %1321  ;;  %v1985_v25 = vpop.eup %1984  ;;  %v1025_v38 = vmul.f32 %v1983_v28, %v2791_v20  ;;  %1994 = vrcp.f32 %v882_v62  ;;  %1560 = vst.msk [vmem:[%s3416_s5 + $0xc4] sm:$0xf] %vm1126_vm1, %v1418_v22  ;;  %v707_v20 = vsub.f32 0.0, %v2947_v18  ;;  %1437 = vrot.lane.b32.xlu2 %v1250_v17, %s2085_s6  ;;  %v591_v40 = vmul.f32 %v2686_v35, %v2912_v61 }
 0x111   :  { %v1987_v14 = vpop.eup %1986  ;;  %1169 = vst.msk [vmem:[%s3415_s4 + $0xa8] sm:$0xf] %vm1126_vm1, %v1104_v3  ;;  %v1073_v24 = vpack.c.bf16 %v1009_v13, %v1009_v13  ;;  %v929_v33 = vadd.f32 1.0, %v1985_v25  ;;  %1996 = vpow2.f32 %v830_v55  ;;  %v607_v1 = vmul.f32 %v2686_v35, %v2961_v0  ;;  %v3048_v25 = vpop.f32.mrf.mxu0 }
 0x112   :  { %v1989_v59 = vpop.eup %1988  ;;  %v1089_v44 = vpack.c.bf16 %v1025_v38, %v1025_v38  ;;  %v1056_v54 = vmul.f32 %v1987_v14, %v2805_v2  ;;  %1998 = vpow2.f32 %v862_v29  ;;  %1512 = vst.msk [vmem:[%s3416_s5 + $0x4] sm:$0xf] %vm1126_vm1, %v1322_v23  ;;  %v800_v26 = vmul.f32 1.442695, %v707_v20  ;;  %v2979_v2 = vpop.f32.mrf.mxu2 }
 0x113   :  { %1138 = vst.msk [vmem:[%s3415_s4 + $0x2c] sm:$0xf] %vm1126_vm1, %v1073_v24  ;;  %2000 = vrcp.f32 %v929_v33  ;;  %v883_v39 = vadd.f32 1.0, %v1989_v59  ;;  %v1328_v60 = vpop.permute.xlu2 %1327  ;;  %v2986_v51 = vadd.f32 %v2678_v34, %v591_v40  ;;  %v1235_v53 = vpack.c.bf16 %v2835_v42, %v2835_v42  ;;  %v3053_v33 = vpop.f32.mrf.mxu1 }
 0x114   :  { %v1991_v47 = vpop.eup %1990  ;;  %1154 = vst.msk [vmem:[%s3415_s4 + $0x6c] sm:$0xf] %vm1126_vm1, %v1089_v44  ;;  %v1120_v48 = vpack.c.bf16 %v1056_v54, %v1056_v54  ;;  %v560_v63 = vmul.f32 %v2686_v35, %v2963_v52  ;;  %v3009_v19 = vadd.f32 %v2678_v34, %v607_v1  ;;  %v576_v21 = vmul.f32 %v2686_v35, %v2969_v30 }
 0x115   :  { %v1993_v17 = vpop.eup %1992  ;;  %v1041_v57 = vmul.f32 %v1991_v47, %v2831_v46  ;;  %2002 = vrcp.f32 %v883_v39  ;;  %1515 = vst.msk [vmem:[%s3416_s5 + $0x10] sm:$0xf] %vm1126_vm1, %v1328_v60  ;;  %1375 = vrot.lane.b32.xlu1 %v1219_v10, %s2085_s6  ;;  %v723_v42 = vsub.f32 0.0, %v2986_v51  ;;  %1439 = vrot.lane.b32.xlu0 %v1251_v32, %s2085_s6  ;;  %v1204_v28 = vpack.c.bf16 %v2852_v15, %v2852_v15  ;;  %v3035_v13 = vpop.f32.mrf.mxu3 }
 0x116   :  { %v1995_v49 = vpop.eup %1994  ;;  %1185 = vst.msk [vmem:[%s3415_s4 + $0xe8] sm:$0xf] %vm1126_vm1, %v1120_v48  ;;  %v898_v46 = vadd.f32 1.0, %v1993_v17  ;;  %2004 = vpow2.f32 %v800_v26  ;;  %v3014_v10 = vadd.f32 %v2678_v34, %v560_v63  ;;  %v739_v27 = vsub.f32 0.0, %v3009_v19 }
 0x117   :  { %v1997_v41 = vpop.eup %1996  ;;  %v1105_v8 = vpack.c.bf16 %v1041_v57, %v1041_v57  ;;  %v1010_v36 = vmul.f32 %v1995_v49, %v2839_v5  ;;  %v1324_v4 = vpop.permute.xlu1 %1323  ;;  %v832_v12 = vmul.f32 1.442695, %v723_v42  ;;  %v3029_v55 = vadd.f32 %v2678_v34, %v576_v21 }
 0x118   :  { %v1386_v11 = vpop.permute.xlu0 %1385  ;;  %v1999_v45 = vpop.eup %1998  ;;  %2006 = vrcp.f32 %v898_v46  ;;  %v914_v9 = vadd.f32 1.0, %v1997_v41  ;;  %1513 = vst.msk [vmem:[%s3416_s5 + $0x8] sm:$0xf] %vm1126_vm1, %v1324_v4  ;;  %v692_v62 = vsub.f32 0.0, %v3014_v10  ;;  %1407 = vrot.lane.b32.xlu2 %v1235_v53, %s2085_s6  ;;  %v864_v3 = vmul.f32 1.442695, %v739_v27 }
 0x119   :  { %v2001_v5 = vpop.eup %2000  ;;  %1170 = vst.msk [vmem:[%s3415_s4 + $0xac] sm:$0xf] %vm1126_vm1, %v1105_v8  ;;  %v1074_v31 = vpack.c.bf16 %v1010_v36, %v1010_v36  ;;  %v930_v43 = vadd.f32 1.0, %v1999_v45  ;;  %v708_v23 = vsub.f32 0.0, %v3029_v55  ;;  %v592_v15 = vmul.f32 %v2686_v35, %v2979_v2 }
 0x11a   :  { %v1057_v16 = vmul.f32 %v2001_v5, %v2850_v58  ;;  %2008 = vrcp.f32 %v914_v9  ;;  %1544 = vst.msk [vmem:[%s3416_s5 + $0x84] sm:$0xf] %vm1126_vm1, %v1386_v11  ;;  %v770_v58 = vmul.f32 1.442695, %v692_v62  ;;  %v1236_v24 = vpack.c.bf16 %v2912_v61, %v2912_v61  ;;  %v3062_v54 = vpop.f32.mrf.mxu2 }
 0x11b   :  { %v2003_v22 = vpop.eup %2002  ;;  %1139 = vst.msk [vmem:[%s3415_s4 + $0x30] sm:$0xf] %vm1126_vm1, %v1074_v31  ;;  %2010 = vrcp.f32 %v930_v43  ;;  %v1360_v38 = vpop.permute.xlu2 %1359  ;;  %v802_v59 = vmul.f32 1.442695, %v708_v23  ;;  %v3060_v44 = vadd.f32 %v2678_v34, %v592_v15  ;;  %v1220_v40 = vpack.c.bf16 %v2897_v50, %v2897_v50 }
 0x11c   :  { %v2005_v29 = vpop.eup %2004  ;;  %v1121_v32 = vpack.c.bf16 %v1057_v16, %v1057_v16  ;;  %v1011_v14 = vmul.f32 %v2003_v22, %v2881_v37  ;;  %2012 = vpow2.f32 %v832_v12  ;;  %1531 = vst.msk [vmem:[%s3416_s5 + $0x50] sm:$0xf] %vm1126_vm1, %v1360_v38  ;;  %v561_v39 = vmul.f32 %v2686_v35, %v3048_v25 }
 0x11d   :  { %v899_v20 = vadd.f32 1.0, %v2005_v29  ;;  %2014 = vpow2.f32 %v864_v3  ;;  %1345 = vrot.lane.b32.xlu1 %v1204_v28, %s2085_s6  ;;  %1409 = vrot.lane.b32.xlu0 %v1236_v24, %s2085_s6  ;;  %v724_v60 = vsub.f32 0.0, %v3060_v44  ;;  %v577_v47 = vmul.f32 %v2686_v35, %v3053_v33  ;;  %v3115_v31 = vpop.f32.mrf.mxu3 }
 0x11e   :  { %v2007_v37 = vpop.eup %2006  ;;  %1186 = vst.msk [vmem:[%s3415_s4 + $0xec] sm:$0xf] %vm1126_vm1, %v1121_v32  ;;  %v1075_v61 = vpack.c.bf16 %v1011_v14, %v1011_v14  ;;  %2016 = vpow2.f32 %v770_v58  ;;  %v1237_v50 = vpack.c.bf16 %v2979_v2, %v2979_v2  ;;  %v593_v57 = vmul.f32 %v2686_v35, %v3062_v54 }
 0x11f   :  { %v1026_v26 = vmul.f32 %v2007_v37, %v2910_v56  ;;  %2018 = vrcp.f32 %v899_v20  ;;  %v1388_v48 = vpop.permute.xlu1 %1387  ;;  %v3085_v56 = vadd.f32 %v2678_v34, %v561_v39  ;;  %v834_v46 = vmul.f32 1.442695, %v724_v60 }
 0x120   :  { %v1356_v1 = vpop.permute.xlu0 %1355  ;;  %v2009_v17 = vpop.eup %2008  ;;  %1140 = vst.msk [vmem:[%s3415_s4 + $0x34] sm:$0xf] %vm1126_vm1, %v1075_v61  ;;  %2020 = vpow2.f32 %v802_v59  ;;  %v3091_v42 = vadd.f32 %v2678_v34, %v577_v47  ;;  %1377 = vrot.lane.b32.xlu2 %v1220_v40, %s2085_s6  ;;  %v1221_v8 = vpack.c.bf16 %v2969_v30, %v2969_v30  ;;  %v1205_v16 = vpack.c.bf16 %v2963_v52, %v2963_v52 }
 0x121   :  { %v2011_v53 = vpop.eup %2010  ;;  %v1090_v63 = vpack.c.bf16 %v1026_v26, %v1026_v26  ;;  %v1042_v49 = vmul.f32 %v2009_v17, %v2919_v7  ;;  %1545 = vst.msk [vmem:[%s3416_s5 + $0x88] sm:$0xf] %vm1126_vm1, %v1388_v48  ;;  %v693_v36 = vsub.f32 0.0, %v3085_v56  ;;  %v3103_v7 = vadd.f32 %v2678_v34, %v593_v57 }
 0x122   :  { %v2013_v2 = vpop.eup %2012  ;;  %v1058_v41 = vmul.f32 %v2011_v53, %v2929_v6  ;;  %1529 = vst.msk [vmem:[%s3416_s5 + $0x48] sm:$0xf] %vm1126_vm1, %v1356_v1  ;;  %2022 = vpow2.f32 %v834_v46  ;;  %v709_v30 = vsub.f32 0.0, %v3091_v42  ;;  %v608_v28 = vmul.f32 %v2686_v35, %v3035_v13 }
 0x123   :  { %v2015_v21 = vpop.eup %2014  ;;  %1155 = vst.msk [vmem:[%s3415_s4 + $0x70] sm:$0xf] %vm1126_vm1, %v1090_v63  ;;  %v1106_v6 = vpack.c.bf16 %v1042_v49, %v1042_v49  ;;  %v915_v4 = vadd.f32 1.0, %v2013_v2  ;;  %v1330_v11 = vpop.permute.xlu2 %1329  ;;  %v772_v27 = vmul.f32 1.442695, %v693_v36  ;;  %v725_v5 = vsub.f32 0.0, %v3103_v7 }
 0x124   :  { %v2017_v45 = vpop.eup %2016  ;;  %v1122_v9 = vpack.c.bf16 %v1058_v41, %v1058_v41  ;;  %v931_v12 = vadd.f32 1.0, %v2015_v21  ;;  %1516 = vst.msk [vmem:[%s3416_s5 + $0x14] sm:$0xf] %vm1126_vm1, %v1330_v11  ;;  %v804_v58 = vmul.f32 1.442695, %v709_v30  ;;  %v3137_v15 = vadd.f32 %v2678_v34, %v608_v28 }
 0x125   :  { %v2019_v43 = vpop.eup %2018  ;;  %1171 = vst.msk [vmem:[%s3415_s4 + $0xb0] sm:$0xf] %vm1126_vm1, %v1106_v6  ;;  %2024 = vrcp.f32 %v915_v4  ;;  %v884_v62 = vadd.f32 1.0, %v2017_v45  ;;  %1411 = vrot.lane.b32.xlu1 %v1237_v50, %s2085_s6  ;;  %v836_v23 = vmul.f32 1.442695, %v725_v5  ;;  %1379 = vrot.lane.b32.xlu0 %v1221_v8, %s2085_s6  ;;  %v609_v38 = vmul.f32 %v2686_v35, %v3115_v31 }
 0x126   :  { %v2021_v3 = vpop.eup %2020  ;;  %1187 = vst.msk [vmem:[%s3415_s4 + $0xf0] sm:$0xf] %vm1126_vm1, %v1122_v9  ;;  %v1027_v22 = vmul.f32 %v2019_v43, %v2947_v18  ;;  %2026 = vrcp.f32 %v931_v12  ;;  %v740_v24 = vsub.f32 0.0, %v3137_v15  ;;  %v1222_v37 = vpack.c.bf16 %v3053_v33, %v3053_v33 }
 0x127   :  { %2028 = vrcp.f32 %v884_v62  ;;  %v900_v52 = vadd.f32 1.0, %v2021_v3  ;;  %v1326_v29 = vpop.permute.xlu1 %1325  ;;  %v3147_v20 = vadd.f32 %v2678_v34, %v609_v38  ;;  %v1206_v60 = vpack.c.bf16 %v3048_v25, %v3048_v25 }
 0x128   :  { %v1422_v32 = vpop.permute.xlu0 %1421  ;;  %v1091_v14 = vpack.c.bf16 %v1027_v22, %v1027_v22  ;;  %2030 = vpow2.f32 %v772_v27  ;;  %1514 = vst.msk [vmem:[%s3416_s5 + $0xc] sm:$0xf] %vm1126_vm1, %v1326_v29  ;;  %v2023_v18 = vpop.eup %2022  ;;  %1347 = vrot.lane.b32.xlu2 %v1205_v16, %s2085_s6  ;;  %v866_v34 = vmul.f32 1.442695, %v740_v24  ;;  %v1238_v53 = vpack.c.bf16 %v3062_v54, %v3062_v54 }
 0x129   :  { %2032 = vrcp.f32 %v900_v52  ;;  %1562 = vst.msk [vmem:[%s3416_s5 + $0xcc] sm:$0xf] %vm1126_vm1, %v1422_v32  ;;  %v916_v35 = vadd.f32 1.0, %v2023_v18  ;;  %v741_v61 = vsub.f32 0.0, %v3147_v20  ;;  %v1252_v21 = vpack.c.bf16 %v2961_v0, %v2961_v0 }
 0x12a   :  { %1156 = vst.msk [vmem:[%s3415_s4 + $0x74] sm:$0xf] %vm1126_vm1, %v1091_v14  ;;  %2034 = vpow2.f32 %v804_v58  ;;  %v1254_v11 = vpack.c.bf16 %v3115_v31, %v3115_v31  ;;  %v1253_v12 = vpack.c.bf16 %v3035_v13, %v3035_v13 }
 0x12b   :  { %v2025_v59 = vpop.eup %2024  ;;  %2036 = vpow2.f32 %v836_v23  ;;  %v1426_v40 = vpop.permute.xlu2 %1425  ;;  %v868_v48 = vmul.f32 1.442695, %v741_v61 }
 0x12c   :  { %v2027_v39 = vpop.eup %2026  ;;  %v1043_v26 = vmul.f32 %v2025_v59, %v2986_v51  ;;  %2038 = vrcp.f32 %v916_v35  ;;  %1564 = vst.msk [vmem:[%s3416_s5 + $0xd4] sm:$0xf] %vm1126_vm1, %v1426_v40 }
 0x12d   :  { %v2029_v47 = vpop.eup %2028  ;;  %v1059_v33 = vmul.f32 %v2027_v39, %v3009_v19  ;;  %2040 = vpow2.f32 %v866_v34  ;;  %1381 = vrot.lane.b32.xlu1 %v1222_v37, %s2085_s6  ;;  %1349 = vrot.lane.b32.xlu0 %v1206_v60, %s2085_s6 }
 0x12e   :  { %v2031_v1 = vpop.eup %2030  ;;  %v1107_v17 = vpack.c.bf16 %v1043_v26, %v1043_v26  ;;  %v1012_v51 = vmul.f32 %v2029_v47, %v3014_v10  ;;  %2042 = vpow2.f32 %v868_v48 }
 0x12f   :  { %v2033_v50 = vpop.eup %2032  ;;  %v1123_v25 = vpack.c.bf16 %v1059_v33, %v1059_v33  ;;  %v885_v57 = vadd.f32 1.0, %v2031_v1  ;;  %v1358_v63 = vpop.permute.xlu1 %1357 }
 0x130   :  { %v2035_v49 = vpop.eup %2034  ;;  %1172 = vst.msk [vmem:[%s3415_s4 + $0xb4] sm:$0xf] %vm1126_vm1, %v1107_v17  ;;  %v1076_v19 = vpack.c.bf16 %v1012_v51, %v1012_v51  ;;  %v1028_v46 = vmul.f32 %v2033_v50, %v3029_v55  ;;  %v1392_v10 = vpop.permute.xlu0 %1391  ;;  %1413 = vrot.lane.b32.xlu2 %v1238_v53, %s2085_s6 }
 0x131   :  { %v2037_v2 = vpop.eup %2036  ;;  %1188 = vst.msk [vmem:[%s3415_s4 + $0xf4] sm:$0xf] %vm1126_vm1, %v1123_v25  ;;  %2044 = vrcp.f32 %v885_v57  ;;  %v901_v54 = vadd.f32 1.0, %v2035_v49 }
 0x132   :  { %v2039_v41 = vpop.eup %2038  ;;  %1141 = vst.msk [vmem:[%s3415_s4 + $0x38] sm:$0xf] %vm1126_vm1, %v1076_v19  ;;  %v1092_v8 = vpack.c.bf16 %v1028_v46, %v1028_v46  ;;  %v917_v36 = vadd.f32 1.0, %v2037_v2 }
 0x133   :  { %v2041_v55 = vpop.eup %2040  ;;  %v1044_v6 = vmul.f32 %v2039_v41, %v3060_v44  ;;  %2046 = vrcp.f32 %v901_v54  ;;  %1530 = vst.msk [vmem:[%s3416_s5 + $0x4c] sm:$0xf] %vm1126_vm1, %v1358_v63  ;;  %v1396_v4 = vpop.permute.xlu2 %1395 }
 0x134   :  { %1157 = vst.msk [vmem:[%s3415_s4 + $0x78] sm:$0xf] %vm1126_vm1, %v1092_v8  ;;  %2048 = vrcp.f32 %v917_v36  ;;  %v932_v30 = vadd.f32 1.0, %v2041_v55  ;;  %v2043_v0 = vpop.eup %2042 }
 0x135   :  { %v1108_v45 = vpack.c.bf16 %v1044_v6, %v1044_v6  ;;  %1549 = vst.msk [vmem:[%s3416_s5 + $0x98] sm:$0xf] %vm1126_vm1, %v1396_v4  ;;  %1441 = vrot.lane.b32.xlu1 %v1252_v21, %s2085_s6  ;;  %v933_v44 = vadd.f32 1.0, %v2043_v0  ;;  %1445 = vrot.lane.b32.xlu0 %v1254_v11, %s2085_s6 }
 0x136   :  { %2050 = vrcp.f32 %v932_v30  ;;  %1547 = vst.msk [vmem:[%s3416_s5 + $0x90] sm:$0xf] %vm1126_vm1, %v1392_v10 }
 0x137   :  { %v2045_v9 = vpop.eup %2044  ;;  %1173 = vst.msk [vmem:[%s3415_s4 + $0xb8] sm:$0xf] %vm1126_vm1, %v1108_v45  ;;  %v1424_v27 = vpop.permute.xlu1 %1423  ;;  %2052 = vrcp.f32 %v933_v44 }
 0x138   :  { %v1013_v5 = vmul.f32 %v2045_v9, %v3085_v56  ;;  %1563 = vst.msk [vmem:[%s3416_s5 + $0xd0] sm:$0xf] %vm1126_vm1, %v1424_v27  ;;  %v1362_v31 = vpop.permute.xlu0 %1361  ;;  %1443 = vrot.lane.b32.xlu2 %v1253_v12, %s2085_s6 }
 0x139   :  { %v2047_v43 = vpop.eup %2046  ;;  %1532 = vst.msk [vmem:[%s3416_s5 + $0x54] sm:$0xf] %vm1126_vm1, %v1362_v31 }
 0x13a   :  { %v2049_v62 = vpop.eup %2048  ;;  %v1077_v13 = vpack.c.bf16 %v1013_v5, %v1013_v5  ;;  %v1029_v16 = vmul.f32 %v2047_v43, %v3091_v42 }
 0x13b   :  { %v1045_v56 = vmul.f32 %v2049_v62, %v3103_v7  ;;  %v1366_v28 = vpop.permute.xlu2 %1365 }
 0x13c   :  { %v2051_v3 = vpop.eup %2050  ;;  %1142 = vst.msk [vmem:[%s3415_s4 + $0x3c] sm:$0xf] %vm1126_vm1, %v1077_v13  ;;  %v1093_v22 = vpack.c.bf16 %v1029_v16, %v1029_v16 }
 0x13d   :  { %v1109_v58 = vpack.c.bf16 %v1045_v56, %v1045_v56  ;;  %v1060_v23 = vmul.f32 %v2051_v3, %v3137_v15  ;;  %1534 = vst.msk [vmem:[%s3416_s5 + $0x5c] sm:$0xf] %vm1126_vm1, %v1366_v28  ;;  %v2053_v52 = vpop.eup %2052 }
 0x13e   :  { %1158 = vst.msk [vmem:[%s3415_s4 + $0x7c] sm:$0xf] %vm1126_vm1, %v1093_v22  ;;  %v1061_v7 = vmul.f32 %v2053_v52, %v3147_v20 }
 0x13f   :  { %1174 = vst.msk [vmem:[%s3415_s4 + $0xbc] sm:$0xf] %vm1126_vm1, %v1109_v58  ;;  %v1124_v42 = vpack.c.bf16 %v1060_v23, %v1060_v23  ;;  %v1394_v15 = vpop.permute.xlu1 %1393 }
 0x140   :  { %1548 = vst.msk [vmem:[%s3416_s5 + $0x94] sm:$0xf] %vm1126_vm1, %v1394_v15  ;;  %v1332_v38 = vpop.permute.xlu0 %1331  ;;  %v1125_v29 = vpack.c.bf16 %v1061_v7, %v1061_v7 }
 0x141   :  { %1189 = vst.msk [vmem:[%s3415_s4 + $0xf8] sm:$0xf] %vm1126_vm1, %v1124_v42 }
 0x142   :  { %1517 = vst.msk [vmem:[%s3416_s5 + $0x18] sm:$0xf] %vm1126_vm1, %v1332_v38 }
 0x143   :  { %1190 = vst.msk [vmem:[%s3415_s4 + $0xfc] sm:$0xf] %vm1126_vm1, %v1125_v29  ;;  %v1336_v32 = vpop.permute.xlu2 %1335 }
 0x144   :  { %1519 = vst.msk [vmem:[%s3416_s5 + $0x20] sm:$0xf] %vm1126_vm1, %v1336_v32 }
 0x147   :  { %v1364_v14 = vpop.permute.xlu1 %1363 }
 0x148   :  { %1533 = vst.msk [vmem:[%s3416_s5 + $0x58] sm:$0xf] %vm1126_vm1, %v1364_v14  ;;  %v1428_v18 = vpop.permute.xlu0 %1427 }
 0x149   :  { %1565 = vst.msk [vmem:[%s3416_s5 + $0xd8] sm:$0xf] %vm1126_vm1, %v1428_v18 }
 0x14b   :  { %v1432_v24 = vpop.permute.xlu2 %1431 }
 0x14c   :  { %1567 = vst.msk [vmem:[%s3416_s5 + $0xe0] sm:$0xf] %vm1126_vm1, %v1432_v24 }
 0x14f   :  { %v1334_v20 = vpop.permute.xlu1 %1333 }
 0x150   :  { %1518 = vst.msk [vmem:[%s3416_s5 + $0x1c] sm:$0xf] %vm1126_vm1, %v1334_v20  ;;  %v1398_v35 = vpop.permute.xlu0 %1397 }
 0x151   :  { %1550 = vst.msk [vmem:[%s3416_s5 + $0x9c] sm:$0xf] %vm1126_vm1, %v1398_v35 }
 0x153   :  { %v1402_v59 = vpop.permute.xlu2 %1401 }
 0x154   :  { %1552 = vst.msk [vmem:[%s3416_s5 + $0xa4] sm:$0xf] %vm1126_vm1, %v1402_v59 }
 0x157   :  { %v1430_v37 = vpop.permute.xlu1 %1429 }
 0x158   :  { %1566 = vst.msk [vmem:[%s3416_s5 + $0xdc] sm:$0xf] %vm1126_vm1, %v1430_v37  ;;  %v1368_v34 = vpop.permute.xlu0 %1367 }
 0x159   :  { %1535 = vst.msk [vmem:[%s3416_s5 + $0x60] sm:$0xf] %vm1126_vm1, %v1368_v34 }
 0x15b   :  { %v1372_v61 = vpop.permute.xlu2 %1371 }
 0x15c   :  { %1537 = vst.msk [vmem:[%s3416_s5 + $0x68] sm:$0xf] %vm1126_vm1, %v1372_v61 }
 0x15f   :  { %v1400_v40 = vpop.permute.xlu1 %1399 }
 0x160   :  { %1551 = vst.msk [vmem:[%s3416_s5 + $0xa0] sm:$0xf] %vm1126_vm1, %v1400_v40  ;;  %v1338_v39 = vpop.permute.xlu0 %1337 }
 0x161   :  { %1520 = vst.msk [vmem:[%s3416_s5 + $0x24] sm:$0xf] %vm1126_vm1, %v1338_v39 }
 0x163   :  { %v1342_v26 = vpop.permute.xlu2 %1341 }
 0x164   :  { %1522 = vst.msk [vmem:[%s3416_s5 + $0x2c] sm:$0xf] %vm1126_vm1, %v1342_v26 }
 0x167   :  { %v1370_v60 = vpop.permute.xlu1 %1369 }
 0x168   :  { %1536 = vst.msk [vmem:[%s3416_s5 + $0x64] sm:$0xf] %vm1126_vm1, %v1370_v60  ;;  %v1434_v47 = vpop.permute.xlu0 %1433 }
 0x169   :  { %1568 = vst.msk [vmem:[%s3416_s5 + $0xe4] sm:$0xf] %vm1126_vm1, %v1434_v47 }
 0x16b   :  { %v1438_v33 = vpop.permute.xlu2 %1437 }
 0x16c   :  { %1570 = vst.msk [vmem:[%s3416_s5 + $0xec] sm:$0xf] %vm1126_vm1, %v1438_v33 }
 0x16f   :  { %v1340_v48 = vpop.permute.xlu1 %1339 }
 0x170   :  { %1521 = vst.msk [vmem:[%s3416_s5 + $0x28] sm:$0xf] %vm1126_vm1, %v1340_v48  ;;  %v1404_v1 = vpop.permute.xlu0 %1403 }
 0x171   :  { %1553 = vst.msk [vmem:[%s3416_s5 + $0xa8] sm:$0xf] %vm1126_vm1, %v1404_v1 }
 0x173   :  { %v1408_v17 = vpop.permute.xlu2 %1407 }
 0x174   :  { %1555 = vst.msk [vmem:[%s3416_s5 + $0xb0] sm:$0xf] %vm1126_vm1, %v1408_v17 }
 0x177   :  { %v1436_v51 = vpop.permute.xlu1 %1435 }
 0x178   :  { %1569 = vst.msk [vmem:[%s3416_s5 + $0xe8] sm:$0xf] %vm1126_vm1, %v1436_v51  ;;  %v1374_v50 = vpop.permute.xlu0 %1373 }
 0x179   :  { %1538 = vst.msk [vmem:[%s3416_s5 + $0x6c] sm:$0xf] %vm1126_vm1, %v1374_v50 }
 0x17b   :  { %v1378_v25 = vpop.permute.xlu2 %1377 }
 0x17c   :  { %1540 = vst.msk [vmem:[%s3416_s5 + $0x74] sm:$0xf] %vm1126_vm1, %v1378_v25 }
 0x17f   :  { %v1406_v57 = vpop.permute.xlu1 %1405 }
 0x180   :  { %1554 = vst.msk [vmem:[%s3416_s5 + $0xac] sm:$0xf] %vm1126_vm1, %v1406_v57  ;;  %v1344_v53 = vpop.permute.xlu0 %1343 }
 0x181   :  { %1523 = vst.msk [vmem:[%s3416_s5 + $0x30] sm:$0xf] %vm1126_vm1, %v1344_v53 }
 0x183   :  { %v1348_v63 = vpop.permute.xlu2 %1347 }
 0x184   :  { %1525 = vst.msk [vmem:[%s3416_s5 + $0x38] sm:$0xf] %vm1126_vm1, %v1348_v63 }
 0x187   :  { %v1376_v49 = vpop.permute.xlu1 %1375 }
 0x188   :  { %1539 = vst.msk [vmem:[%s3416_s5 + $0x70] sm:$0xf] %vm1126_vm1, %v1376_v49  ;;  %v1440_v19 = vpop.permute.xlu0 %1439 }
 0x189   :  { %1571 = vst.msk [vmem:[%s3416_s5 + $0xf0] sm:$0xf] %vm1126_vm1, %v1440_v19 }
 0x18b   :  { %v1414_v46 = vpop.permute.xlu2 %1413 }
 0x18c   :  { %1558 = vst.msk [vmem:[%s3416_s5 + $0xbc] sm:$0xf] %vm1126_vm1, %v1414_v46 }
 0x18f   :  { %v1346_v10 = vpop.permute.xlu1 %1345 }
 0x190   :  { %1524 = vst.msk [vmem:[%s3416_s5 + $0x34] sm:$0xf] %vm1126_vm1, %v1346_v10  ;;  %v1410_v2 = vpop.permute.xlu0 %1409 }
 0x191   :  { %1556 = vst.msk [vmem:[%s3416_s5 + $0xb4] sm:$0xf] %vm1126_vm1, %v1410_v2 }
 0x193   :  { %v1444_v54 = vpop.permute.xlu2 %1443 }
 0x194   :  { %1573 = vst.msk [vmem:[%s3416_s5 + $0xf8] sm:$0xf] %vm1126_vm1, %v1444_v54 }
 0x197   :  { %v1412_v41 = vpop.permute.xlu1 %1411 }
 0x198   :  { %1557 = vst.msk [vmem:[%s3416_s5 + $0xb8] sm:$0xf] %vm1126_vm1, %v1412_v41  ;;  %v1380_v8 = vpop.permute.xlu0 %1379 }
 0x199   :  { %1541 = vst.msk [vmem:[%s3416_s5 + $0x78] sm:$0xf] %vm1126_vm1, %v1380_v8 }
 0x19f   :  { %v1382_v36 = vpop.permute.xlu1 %1381 }
 0x1a0   :  { %1542 = vst.msk [vmem:[%s3416_s5 + $0x7c] sm:$0xf] %vm1126_vm1, %v1382_v36  ;;  %v1350_v55 = vpop.permute.xlu0 %1349 }
 0x1a1   :  { %1526 = vst.msk [vmem:[%s3416_s5 + $0x3c] sm:$0xf] %vm1126_vm1, %v1350_v55 }
 0x1a7   :  { %v1442_v21 = vpop.permute.xlu1 %1441 }
 0x1a8   :  { %1572 = vst.msk [vmem:[%s3416_s5 + $0xf4] sm:$0xf] %vm1126_vm1, %v1442_v21  ;;  %v1446_v6 = vpop.permute.xlu0 %1445 }
 0x1a9   :  { %1574 = vst.msk [vmem:[%s3416_s5 + $0xfc] sm:$0xf] %vm1126_vm1, %v1446_v6 }
 0x1aa   :  { %1583 = vsyncpa [#allocation3], 1 }

// kernel: bottleneck_csp_forward.5
= control target key start
LH: loop header
LB: loop body
LE: loop exit
PB: predicated region body
PF: predicated region fallthrough
CT: control target
= control target key end

     0   :  { %13 = vsyncpa [#allocation3], 0  ;;  %s5009_s0 = inlined_call_operand.vmem [shape: bf16[512,16], index: 0, kind: input, shape index: {}]   ;;  %s5010_s1 = inlined_call_operand.vmem [shape: bf16[512,16], index: 1, kind: input, shape index: {}]   ;;  %s5011_s2 = inlined_call_operand.vmem [shape: bf16[16,16], index: 2, kind: input, shape index: {}]   ;;  %s5012_s3 = inlined_call_operand.vmem [shape: f32[1,32], index: 3, kind: input, shape index: {}]   ;;  %s5013_s4 = inlined_call_operand.hbm [shape: f32[1,32], index: 4, kind: input, shape index: {}]   ;;  %s5014_s5 = inlined_call_operand.vmem [shape: bf16[32,32], index: 5, kind: input, shape index: {}]   ;;  %s5015_s6 = inlined_call_operand.hbm [shape: f32[1,32], index: 6, kind: input, shape index: {}]   ;;  %s5016_s7 = inlined_call_operand.hbm [shape: f32[1,32], index: 7, kind: input, shape index: {}]   ;;  %s5017_s8 = inlined_call_operand.hbm [shape: bf16[512,32], index: 8, kind: output, shape index: {}]  }
   0x1   :  { %14 = vsyncpa [#allocation6], 0  ;;  %s42_s29 = sshll.u32 %s5015_s6, 4  ;;  %s43_s29 = int_to_ptr.hbm [resolvable:$true] %s42_s29 }
   0x2   :  { %15 = vsyncpa [#allocation4], 0  ;;  %s3715_s30 = smov [#allocation5]   ;;  %s29_s12 = sshll.u32 %s5013_s4, 4  ;;  %s30_s12 = int_to_ptr.hbm [resolvable:$true] %s29_s12 }
   0x3   :  { %s44_s9 = sshll.u32 %s3715_s30, 4  ;;  %s3716_s13 = smov [#allocation2]   ;;  %s45_s9 = int_to_ptr.vmem [resolvable:$true] %s44_s9 }
   0x4   :  { %47 = dma.hbm_to_vmem [thread:$0]  %s43_s29, 16, %s45_s9, [#allocation6]  }
   0x5   :  { %s31_s14 = sshll.u32 %s3716_s13, 4  ;;  %s53_s17 = sshll.u32 %s5016_s7, 4  ;;  %s32_s14 = int_to_ptr.vmem [resolvable:$true] %s31_s14  ;;  %s54_s17 = int_to_ptr.hbm [resolvable:$true] %s53_s17 }
   0x6   :  { %34 = dma.hbm_to_vmem [thread:$0]  %s30_s12, 16, %s32_s14, [#allocation3]  }
   0x7   :  { %s3717_s6 = smov [#allocation7]  }
   0x8   :  { %s55_s18 = sshll.u32 %s3717_s6, 4  ;;  %s56_s18 = int_to_ptr.vmem [resolvable:$true] %s55_s18 }
   0x9   :  { %58 = dma.hbm_to_vmem [thread:$0]  %s54_s17, 16, %s56_s18, [#allocation6]  }
   0xa   :  { %3709 = dma.done.wait [#allocation3], 16  }
   0xb   :  { %3710 = vsyncadd [#allocation3], 4294967280 }
   0xc   :  { %3711 = dma.done.wait [#allocation6], 32  }
   0xd   :  { %3712 = vsyncadd [#allocation6], 4294967264  ;;  %v2757_v0 = vld [vmem:[%s5011_s2] sm:$0xff]  ;;  %v2904_v5 = vld [vmem:[%s5010_s1 + $0x88] sm:$0xff]   ;;  %vm304_vm0 = vcmask 130048   ;;  %s3718_s28 = smov 16  }
   0xe   :  { %v2903_v1 = vld [vmem:[%s5010_s1 + $0x80] sm:$0xff]   ;;  %408 = vmatpush.bf16.msra.mxu0 %v2757_v0  ;;  %v2830_v7 = vunpack.c.l.bf16 %v2904_v5  ;;  %v2831_v8 = vunpack.c.h.bf16 %v2904_v5  ;;  %v2888_v9 = vld [vmem:[%s5010_s1 + $0x8] sm:$0xff]   ;;  %2919 = vmatpush.bf16.msra.mxu3 %v2757_v0  ;;  %v2905_v19 = vld [vmem:[%s5010_s1 + $0x90] sm:$0xff]   ;;  %vm1586_vm1 = vcmask 261120   ;;  %vm2436_vm2 = vcmask 257024   ;;  %s2507_s29 = sshll.u32 %s5017_s8, 4  ;;  %s2508_s29 = int_to_ptr.hbm [resolvable:$true] %s2507_s29 }
   0xf   :  { %v2725_v2 = vld [vmem:[%s5009_s0] sm:$0xff]  ;;  %v2826_v3 = vunpack.c.l.bf16 %v2903_v1  ;;  %v2827_v4 = vunpack.c.h.bf16 %v2903_v1  ;;  %v2766_v14 = vunpack.c.l.bf16 %v2888_v9  ;;  %v2767_v15 = vunpack.c.h.bf16 %v2888_v9  ;;  %v2726_v18 = vld [vmem:[%s5009_s0 + $0x8] sm:$0xff]  ;;  %v2890_v20 = vld [vmem:[%s5010_s1 + $0x18] sm:$0xff]   ;;  %s3720_s30 = smov 64   ;;  %s3721_s9 = smov 4  }
  0x10   :  { %v2761_v6 = vld [vmem:[%s5010_s1] sm:$0xff]   ;;  %v2939_v11 = vpack.i.bf16 %v2831_v8, %v2830_v7  ;;  %v2834_v21 = vunpack.c.l.bf16 %v2905_v19  ;;  %v2835_v22 = vunpack.c.h.bf16 %v2905_v19  ;;  %v2774_v23 = vunpack.c.l.bf16 %v2890_v20  ;;  %v2727_v27 = vld [vmem:[%s5009_s0 + $0x10] sm:$0xff]  ;;  %v2906_v29 = vld [vmem:[%s5010_s1 + $0x98] sm:$0xff]  }
  0x11   :  { %v2929_v10 = vpack.i.bf16 %v2827_v4, %v2826_v3  ;;  %2653 = vmatmul.msk.bf16.vlgmr.msra.gmra.mxu0 %vm304_vm0, %v2725_v2  ;;  %v2762_v12 = vunpack.c.l.bf16 %v2761_v6  ;;  %v2763_v13 = vunpack.c.h.bf16 %v2761_v6  ;;  %v2944_v17 = vpack.i.bf16 %v2767_v15, %v2766_v14  ;;  %v2889_v28 = vld [vmem:[%s5010_s1 + $0x10] sm:$0xff]   ;;  %v2891_v36 = vld [vmem:[%s5010_s1 + $0x20] sm:$0xff]   ;;  %v2728_v40 = vld [vmem:[%s5009_s0 + $0x18] sm:$0xff] }
  0x12   :  { %2940 = vrot.lane.b32.xlu1 %v2939_v11, %s3718_s28  ;;  %v2775_v24 = vunpack.c.h.bf16 %v2890_v20  ;;  %v2949_v25 = vpack.i.bf16 %v2835_v22, %v2834_v21  ;;  %v2770_v30 = vunpack.c.l.bf16 %v2889_v28  ;;  %v2771_v31 = vunpack.c.h.bf16 %v2889_v28  ;;  %v2729_v41 = vld [vmem:[%s5009_s0 + $0x20] sm:$0xff]  ;;  %v2908_v42 = vld [vmem:[%s5010_s1 + $0xa8] sm:$0xff]   ;;  %v2893_v47 = vld [vmem:[%s5010_s1 + $0x30] sm:$0xff]  }
  0x13   :  { %2930 = vrot.lane.b32.xlu0 %v2929_v10, %s3718_s28  ;;  %v2934_v16 = vpack.i.bf16 %v2763_v13, %v2762_v12  ;;  %v2838_v32 = vunpack.c.l.bf16 %v2906_v29  ;;  %v2839_v33 = vunpack.c.h.bf16 %v2906_v29  ;;  %v2778_v37 = vunpack.c.l.bf16 %v2891_v36  ;;  %v2907_v46 = vld [vmem:[%s5010_s1 + $0xa0] sm:$0xff]   ;;  %v2730_v54 = vld [vmem:[%s5009_s0 + $0x28] sm:$0xff]  ;;  %v2909_v56 = vld [vmem:[%s5010_s1 + $0xb0] sm:$0xff]  }
  0x14   :  { %v2964_v26 = vpack.i.bf16 %v2775_v24, %v2774_v23  ;;  %2950 = vrot.lane.b32.xlu2 %v2949_v25, %s3718_s28  ;;  %v2954_v34 = vpack.i.bf16 %v2771_v31, %v2770_v30  ;;  %v2779_v38 = vunpack.c.h.bf16 %v2891_v36  ;;  %v2846_v43 = vunpack.c.l.bf16 %v2908_v42  ;;  %v2892_v55 = vld [vmem:[%s5010_s1 + $0x28] sm:$0xff]   ;;  %v2894_v63 = vld [vmem:[%s5010_s1 + $0x38] sm:$0xff]   ;;  %v2731_v3 = vld [vmem:[%s5009_s0 + $0x30] sm:$0xff] }
  0x15   :  { %v2959_v35 = vpack.i.bf16 %v2839_v33, %v2838_v32  ;;  %v2847_v44 = vunpack.c.h.bf16 %v2908_v42  ;;  %v2842_v48 = vunpack.c.l.bf16 %v2907_v46  ;;  %v2843_v49 = vunpack.c.h.bf16 %v2907_v46  ;;  %v2732_v4 = vld [vmem:[%s5009_s0 + $0x38] sm:$0xff]  ;;  %v2911_v5 = vld [vmem:[%s5010_s1 + $0xc0] sm:$0xff]   ;;  %v2896_v11 = vld [vmem:[%s5010_s1 + $0x48] sm:$0xff]  }
  0x16   :  { %v2974_v39 = vpack.i.bf16 %v2779_v38, %v2778_v37  ;;  %v2786_v50 = vunpack.c.l.bf16 %v2893_v47  ;;  %v2787_v51 = vunpack.c.h.bf16 %v2893_v47  ;;  %v2782_v57 = vunpack.c.l.bf16 %v2892_v55  ;;  %v2910_v10 = vld [vmem:[%s5010_s1 + $0xb8] sm:$0xff]   ;;  %v2759_v19 = vld [vmem:[%s5014_s5 + $0x8] sm:$0xff]  ;;  %v3891_v21 = vld [vmem:[%s5012_s3] ss:$0 sm:$0xff] }
  0x17   :  { %v2979_v45 = vpack.i.bf16 %v2847_v44, %v2846_v43  ;;  %v2969_v52 = vpack.i.bf16 %v2843_v49, %v2842_v48  ;;  %v2783_v58 = vunpack.c.h.bf16 %v2892_v55  ;;  %v2850_v59 = vunpack.c.l.bf16 %v2909_v56  ;;  %v2733_v22 = vld [vmem:[%s5009_s0 + $0x40] sm:$0xff]  ;;  %1689 = vmatpush.bf16.msra.mxu1 %v2759_v19  ;;  %v2912_v24 = vld [vmem:[%s5010_s1 + $0xc8] sm:$0xff]   ;;  %2920 = vmatpush.bf16.msra.mxu2 %v2759_v19 }
  0x18   :  { %v2994_v53 = vpack.i.bf16 %v2787_v51, %v2786_v50  ;;  %v2851_v60 = vunpack.c.h.bf16 %v2909_v56  ;;  %v2790_v0 = vunpack.c.l.bf16 %v2894_v63  ;;  %v2791_v1 = vunpack.c.h.bf16 %v2894_v63  ;;  %v2895_v23 = vld [vmem:[%s5010_s1 + $0x40] sm:$0xff]  }
  0x19   :  { %v2984_v61 = vpack.i.bf16 %v2783_v58, %v2782_v57  ;;  %v2858_v6 = vunpack.c.l.bf16 %v2911_v5  ;;  %v2859_v7 = vunpack.c.h.bf16 %v2911_v5  ;;  %v2854_v12 = vunpack.c.l.bf16 %v2910_v10  ;;  %v2758_v33 = vld [vmem:[%s5014_s5] sm:$0xff] }
  0x1a   :  { %2945 = vrot.lane.b32.xlu1 %v2944_v17, %s3718_s28  ;;  %v2989_v62 = vpack.i.bf16 %v2851_v60, %v2850_v59  ;;  %v3004_v2 = vpack.i.bf16 %v2791_v1, %v2790_v0  ;;  %v2855_v13 = vunpack.c.h.bf16 %v2910_v10  ;;  %v2798_v14 = vunpack.c.l.bf16 %v2896_v11 }
  0x1b   :  { %2935 = vrot.lane.b32.xlu0 %v2934_v16, %s3718_s28  ;;  %v3009_v8 = vpack.i.bf16 %v2859_v7, %v2858_v6  ;;  %v2799_v15 = vunpack.c.h.bf16 %v2896_v11  ;;  %v2794_v28 = vunpack.c.l.bf16 %v2895_v23  ;;  %v2795_v29 = vunpack.c.h.bf16 %v2895_v23  ;;  %1690 = vmatpush.bf16.msra.mxu1 %v2758_v33  ;;  %v2735_v11 = vld [vmem:[%s5009_s0 + $0x50] sm:$0xff] }
  0x1c   :  { %2955 = vrot.lane.b32.xlu2 %v2954_v34, %s3718_s28  ;;  %v2999_v16 = vpack.i.bf16 %v2855_v13, %v2854_v12  ;;  %v2862_v30 = vunpack.c.l.bf16 %v2912_v24  ;;  %v2863_v31 = vunpack.c.h.bf16 %v2912_v24  ;;  %2921 = vmatpush.bf16.msra.mxu2 %v2758_v33  ;;  %v2914_v12 = vld [vmem:[%s5010_s1 + $0xd8] sm:$0xff]   ;;  %v2899_v33 = vld [vmem:[%s5010_s1 + $0x60] sm:$0xff]  }
  0x1d   :  { %v3024_v17 = vpack.i.bf16 %v2799_v15, %v2798_v14 }
  0x1e   :  { %v3019_v36 = vpack.i.bf16 %v2863_v31, %v2862_v30 }
  0x21   :  { %2654 = vmatmul.msk.bf16.gmra.mxu0 %vm304_vm0, %v2726_v18 }
  0x22   :  { %2965 = vrot.lane.b32.xlu1 %v2964_v26, %s3718_s28  ;;  %v3902_v26 = vld [vmem:[#allocation2] ss:$0 sm:$0xff] }
  0x23   :  { %2960 = vrot.lane.b32.xlu0 %v2959_v35, %s3718_s28  ;;  %v3014_v35 = vpack.i.bf16 %v2795_v29, %v2794_v28 }
  0x24   :  { %2970 = vrot.lane.b32.xlu2 %v2969_v52, %s3718_s28  ;;  %v2734_v52 = vld [vmem:[%s5009_s0 + $0x48] sm:$0xff] }
  0x2a   :  { %2980 = vrot.lane.b32.xlu1 %v2979_v45, %s3718_s28 }
  0x2b   :  { %2975 = vrot.lane.b32.xlu0 %v2974_v39, %s3718_s28 }
  0x2c   :  { %2985 = vrot.lane.b32.xlu2 %v2984_v61, %s3718_s28 }
  0x31   :  { %2655 = vmatmul.msk.bf16.gmra.mxu0 %vm304_vm0, %v2727_v27 }
  0x32   :  { %2995 = vrot.lane.b32.xlu1 %v2994_v53, %s3718_s28 }
  0x33   :  { %2990 = vrot.lane.b32.xlu0 %v2989_v62, %s3718_s28 }
  0x34   :  { %3000 = vrot.lane.b32.xlu2 %v2999_v16, %s3718_s28  ;;  %v2870_v16 = vunpack.c.l.bf16 %v2914_v12 }
  0x3a   :  { %3010 = vrot.lane.b32.xlu1 %v3009_v8, %s3718_s28 }
  0x3b   :  { %3005 = vrot.lane.b32.xlu0 %v3004_v2, %s3718_s28 }
  0x3c   :  { %3015 = vrot.lane.b32.xlu2 %v3014_v35, %s3718_s28 }
  0x41   :  { %2656 = vmatmul.msk.bf16.gmra.mxu0 %vm304_vm0, %v2728_v40  ;;  %v2897_v40 = vld [vmem:[%s5010_s1 + $0x50] sm:$0xff]  }
  0x42   :  { %3025 = vrot.lane.b32.xlu1 %v3024_v17, %s3718_s28  ;;  %v2802_v43 = vunpack.c.l.bf16 %v2897_v40  ;;  %v2803_v44 = vunpack.c.h.bf16 %v2897_v40  ;;  %v2871_v17 = vunpack.c.h.bf16 %v2914_v12 }
  0x43   :  { %3020 = vrot.lane.b32.xlu0 %v3019_v36, %s3718_s28 }
  0x44   :  { %v3034_v48 = vpack.i.bf16 %v2803_v44, %v2802_v43  ;;  %v3039_v24 = vpack.i.bf16 %v2871_v17, %v2870_v16 }
  0x4a   :  { %3040 = vrot.lane.b32.xlu1 %v3039_v24, %s3718_s28 }
  0x4b   :  { %3035 = vrot.lane.b32.xlu0 %v3034_v48, %s3718_s28 }
  0x51   :  { %2657 = vmatmul.msk.bf16.gmra.mxu0 %vm304_vm0, %v2729_v41 }
  0x61   :  { %2658 = vmatmul.msk.bf16.gmra.mxu0 %vm304_vm0, %v2730_v54 }
  0x6e   :  { %v3925_v55 = vpop.permute.xlu2 %2950 }
  0x71   :  { %2659 = vmatmul.msk.bf16.gmra.mxu0 %vm304_vm0, %v2731_v3 }
  0x76   :  { %v2956_v5 = vpop.permute.xlu2 %2955 }
  0x77   :  { %v2957_v7 = vunpack.i.l.bf16 %v2956_v5  ;;  %v2958_v30 = vunpack.i.h.bf16 %v2956_v5 }
  0x81   :  { %2660 = vmatmul.msk.bf16.gmra.mxu0 %vm304_vm0, %v2732_v4 }
  0x84   :  { %v3904_v27 = vpop.permute.xlu1 %2940 }
  0x85   :  { %v3875_v9 = vpop.permute.xlu0 %2930 }
  0x8c   :  { %v2946_v47 = vpop.permute.xlu1 %2945 }
  0x8d   :  { %v2936_v18 = vpop.permute.xlu0 %2935  ;;  %v2947_v50 = vunpack.i.l.bf16 %v2946_v47  ;;  %v2948_v61 = vunpack.i.h.bf16 %v2946_v47 }
  0x8e   :  { %v2937_v20 = vunpack.i.l.bf16 %v2936_v18  ;;  %v410_v25 = vpop.f32.mrf.mxu0  ;;  %v2938_v38 = vunpack.i.h.bf16 %v2936_v18 }
  0x90   :  { %v954_v32 = vsel %vm304_vm0, %v410_v25, %v2937_v20 }
  0x91   :  { %v1022_v34 = vmul.f32 %v3891_v21, %v954_v32  ;;  %2661 = vmatmul.msk.bf16.gmra.mxu0 %vm304_vm0, %v2733_v22  ;;  %v2913_v32 = vld [vmem:[%s5010_s1 + $0xd0] sm:$0xff]  }
  0x93   :  { %v1090_v37 = vadd.f32 %v3902_v26, %v1022_v34 }
  0x94   :  { %v2966_v44 = vpop.permute.xlu1 %2965 }
  0x95   :  { %v1154_v39 = vsub.f32 0.0, %v1090_v37  ;;  %v2968_v12 = vunpack.i.h.bf16 %v2966_v44 }
  0x96   :  { %v412_v42 = vpop.f32.mrf.mxu0 }
  0x97   :  { %v1218_v41 = vmul.f32 1.442695, %v1154_v39  ;;  %v955_v45 = vsel %vm304_vm0, %v412_v42, %v2938_v38  ;;  %v2867_v38 = vunpack.c.h.bf16 %v2913_v32  ;;  %v2810_v39 = vunpack.c.l.bf16 %v2899_v33 }
  0x98   :  { %v1023_v46 = vmul.f32 %v3891_v21, %v955_v45  ;;  %v2811_v42 = vunpack.c.h.bf16 %v2899_v33 }
  0x99   :  { %3093 = vpow2.f32 %v1218_v41 }
  0x9a   :  { %v1091_v49 = vadd.f32 %v3902_v26, %v1023_v46  ;;  %v3054_v46 = vpack.i.bf16 %v2811_v42, %v2810_v39 }
  0x9c   :  { %v1155_v51 = vsub.f32 0.0, %v1091_v49  ;;  %3055 = vrot.lane.b32.xlu1 %v3054_v46, %s3718_s28 }
  0x9e   :  { %v1220_v53 = vmul.f32 1.442695, %v1155_v51  ;;  %v415_v54 = vpop.f32.mrf.mxu0  ;;  %v2736_v51 = vld [vmem:[%s5009_s0 + $0x58] sm:$0xff] }
  0x9f   :  { %v3094_v56 = vpop.eup %3093  ;;  %v956_v57 = vsel %vm304_vm0, %v415_v54, %v2947_v50 }
  0xa0   :  { %3095 = vpow2.f32 %v1220_v53  ;;  %v1024_v58 = vmul.f32 %v3891_v21, %v956_v57  ;;  %v1346_v59 = vadd.f32 1.0, %v3094_v56  ;;  %v2915_v53 = vld [vmem:[%s5010_s1 + $0xe0] sm:$0xff]   ;;  %v3978_v57 = vpop.permute.xlu0 %2960 }
  0xa1   :  { %2662 = vmatmul.msk.bf16.gmra.mxu0 %vm304_vm0, %v2734_v52  ;;  %v2898_v52 = vld [vmem:[%s5010_s1 + $0x58] sm:$0xff]  }
  0xa2   :  { %v3931_v60 = vadd.f32 %v3902_v26, %v1024_v58  ;;  %3097 = vrcp.f32 %v1346_v59  ;;  %v2806_v58 = vunpack.c.l.bf16 %v2898_v52  ;;  %v2807_v59 = vunpack.c.h.bf16 %v2898_v52 }
  0xa4   :  { %v1156_v62 = vsub.f32 0.0, %v3931_v60  ;;  %v3044_v5 = vpack.i.bf16 %v2807_v59, %v2806_v58  ;;  %v2738_v58 = vld [vmem:[%s5009_s0 + $0x68] sm:$0xff] }
  0xa5   :  { %v2742_v59 = vld [vmem:[%s5009_s0 + $0x88] sm:$0xff] }
  0xa6   :  { %v3096_v63 = vpop.eup %3095  ;;  %v1222_v0 = vmul.f32 1.442695, %v1156_v62  ;;  %v417_v1 = vpop.f32.mrf.mxu0  ;;  %2670 = vmatmul.msk.bf16.vlgmr.msra.gmra.mxu3 %vm304_vm0, %v2742_v59 }
  0xa7   :  { %v1347_v2 = vadd.f32 1.0, %v3096_v63  ;;  %v957_v3 = vsel %vm304_vm0, %v417_v1, %v2948_v61  ;;  %v2874_v61 = vunpack.c.l.bf16 %v2915_v53  ;;  %v2875_v1 = vunpack.c.h.bf16 %v2915_v53 }
  0xa8   :  { %3099 = vpow2.f32 %v1222_v0  ;;  %v1025_v4 = vmul.f32 %v3891_v21, %v957_v3  ;;  %v3098_v8 = vpop.eup %3097 }
  0xa9   :  { %3101 = vrcp.f32 %v1347_v2  ;;  %v1474_v20 = vmul.f32 %v3098_v8, %v1090_v37  ;;  %v2866_v37 = vunpack.c.l.bf16 %v2913_v32 }
  0xaa   :  { %v3937_v6 = vadd.f32 %v3902_v26, %v1025_v4 }
  0xab   :  { %v3029_v45 = vpack.i.bf16 %v2867_v38, %v2866_v37 }
  0xac   :  { %v1157_v10 = vsub.f32 0.0, %v3937_v6 }
  0xad   :  { %3030 = vrot.lane.b32.xlu2 %v3029_v45, %s3718_s28 }
  0xae   :  { %v3100_v13 = vpop.eup %3099  ;;  %v1224_v14 = vmul.f32 1.442695, %v1157_v10  ;;  %v420_v15 = vpop.f32.mrf.mxu0 }
  0xaf   :  { %v3102_v18 = vpop.eup %3101  ;;  %v958_v19 = vsel %vm304_vm0, %v420_v15, %v2957_v7  ;;  %v1348_v25 = vadd.f32 1.0, %v3100_v13  ;;  %v3049_v7 = vpack.i.bf16 %v2875_v1, %v2874_v61  ;;  %v2917_v61 = vld [vmem:[%s5010_s1 + $0xf0] sm:$0xff]   ;;  %v4029_v1 = vpop.permute.xlu1 %2980 }
  0xb0   :  { %3103 = vpow2.f32 %v1224_v14  ;;  %v1026_v22 = vmul.f32 %v3891_v21, %v958_v19  ;;  %v1475_v23 = vmul.f32 %v3102_v18, %v1091_v49  ;;  %v2967_v49 = vunpack.i.l.bf16 %v2966_v44 }
  0xb1   :  { %2663 = vmatmul.msk.bf16.gmra.mxu0 %vm304_vm0, %v2735_v11  ;;  %3105 = vrcp.f32 %v1348_v25  ;;  %3050 = vrot.lane.b32.xlu0 %v3049_v7, %s3718_s28 }
  0xb2   :  { %v3950_v28 = vadd.f32 %v3902_v26, %v1026_v22  ;;  %v1538_v29 = vpack.c.bf16 %v1475_v23, %v1474_v20  ;;  %v2976_v22 = vpop.permute.xlu0 %2975 }
  0xb3   :  { %v2977_v25 = vunpack.i.l.bf16 %v2976_v22  ;;  %v2978_v44 = vunpack.i.h.bf16 %v2976_v22 }
  0xb4   :  { %v1158_v31 = vsub.f32 0.0, %v3950_v28  ;;  %2693 = vmatmul.msk.bf16.vlgmr.msra.gmra.mxu1 %vm1586_vm1, %v1538_v29 }
  0xb5   :  { %3045 = vrot.lane.b32.xlu2 %v3044_v5, %s3718_s28 }
  0xb6   :  { %v3104_v34 = vpop.eup %3103  ;;  %v1226_v35 = vmul.f32 1.442695, %v1158_v31  ;;  %v422_v36 = vpop.f32.mrf.mxu0  ;;  %v2737_v31 = vld [vmem:[%s5009_s0 + $0x60] sm:$0xff] }
  0xb7   :  { %v1349_v40 = vadd.f32 1.0, %v3104_v34  ;;  %v959_v41 = vsel %vm304_vm0, %v422_v36, %v2958_v30  ;;  %v3106_v48 = vpop.eup %3105 }
  0xb8   :  { %v1027_v43 = vmul.f32 %v3891_v21, %v959_v41  ;;  %v1476_v0 = vmul.f32 %v3106_v48, %v3931_v60 }
  0xb9   :  { %3107 = vrcp.f32 %v1349_v40 }
  0xba   :  { %3109 = vpow2.f32 %v1226_v35  ;;  %v3964_v47 = vadd.f32 %v3902_v26, %v1027_v43  ;;  %v4002_v35 = vpop.permute.xlu2 %2970 }
  0xbc   :  { %v1159_v50 = vsub.f32 0.0, %v3964_v47 }
  0xbe   :  { %v1228_v54 = vmul.f32 1.442695, %v1159_v50  ;;  %v425_v56 = vpop.f32.mrf.mxu0 }
  0xbf   :  { %v3108_v62 = vpop.eup %3107  ;;  %v960_v63 = vsel %vm304_vm0, %v425_v56, %v2967_v49 }
  0xc0   :  { %v3110_v2 = vpop.eup %3109  ;;  %3111 = vpow2.f32 %v1228_v54  ;;  %v1028_v3 = vmul.f32 %v3891_v21, %v960_v63  ;;  %v1477_v4 = vmul.f32 %v3108_v62, %v3937_v6  ;;  %v2900_v6 = vld [vmem:[%s5010_s1 + $0x68] sm:$0xff]  }
  0xc1   :  { %2664 = vmatmul.msk.bf16.gmra.mxu0 %vm304_vm0, %v2736_v51  ;;  %v1350_v11 = vadd.f32 1.0, %v3110_v2  ;;  %v2814_v16 = vunpack.c.l.bf16 %v2900_v6  ;;  %v2815_v17 = vunpack.c.h.bf16 %v2900_v6  ;;  %v2882_v2 = vunpack.c.l.bf16 %v2917_v61 }
  0xc2   :  { %v3986_v8 = vadd.f32 %v3902_v26, %v1028_v3  ;;  %v1539_v10 = vpack.c.bf16 %v1477_v4, %v1476_v0  ;;  %v2986_v51 = vpop.permute.xlu2 %2985  ;;  %v2883_v3 = vunpack.c.h.bf16 %v2917_v61 }
  0xc3   :  { %3113 = vrcp.f32 %v1350_v11  ;;  %v3064_v23 = vpack.i.bf16 %v2815_v17, %v2814_v16  ;;  %v2987_v53 = vunpack.i.l.bf16 %v2986_v51  ;;  %v2902_v16 = vld [vmem:[%s5010_s1 + $0x78] sm:$0xff]  }
  0xc4   :  { %v1160_v60 = vsub.f32 0.0, %v3986_v8  ;;  %2694 = vmatmul.msk.bf16.gmra.mxu1 %vm1586_vm1, %v1539_v10 }
  0xc5   :  { %3065 = vrot.lane.b32.xlu0 %v3064_v23, %s3718_s28  ;;  %v2822_v23 = vunpack.c.l.bf16 %v2902_v16 }
  0xc6   :  { %v3112_v13 = vpop.eup %3111  ;;  %v1230_v14 = vmul.f32 1.442695, %v1160_v60  ;;  %v427_v15 = vpop.f32.mrf.mxu0 }
  0xc7   :  { %v1351_v18 = vadd.f32 1.0, %v3112_v13  ;;  %v961_v19 = vsel %vm304_vm0, %v427_v15, %v2968_v12  ;;  %v3069_v12 = vpack.i.bf16 %v2883_v3, %v2882_v2 }
  0xc8   :  { %3115 = vpow2.f32 %v1230_v14  ;;  %v1029_v20 = vmul.f32 %v3891_v21, %v961_v19  ;;  %v2988_v14 = vunpack.i.h.bf16 %v2986_v51 }
  0xc9   :  { %3117 = vrcp.f32 %v1351_v18  ;;  %v3114_v30 = vpop.eup %3113  ;;  %3070 = vrot.lane.b32.xlu1 %v3069_v12, %s3718_s28  ;;  %v2740_v12 = vld [vmem:[%s5009_s0 + $0x78] sm:$0xff] }
  0xca   :  { %v1097_v24 = vadd.f32 %v3902_v26, %v1029_v20  ;;  %v1478_v39 = vmul.f32 %v3114_v30, %v3950_v28 }
  0xcc   :  { %v1161_v29 = vsub.f32 0.0, %v1097_v24 }
  0xce   :  { %v3116_v32 = vpop.eup %3115  ;;  %v1232_v33 = vmul.f32 1.442695, %v1161_v29  ;;  %v430_v34 = vpop.f32.mrf.mxu0  ;;  %v2823_v29 = vunpack.c.h.bf16 %v2902_v16 }
  0xcf   :  { %v3118_v36 = vpop.eup %3117  ;;  %v962_v37 = vsel %vm304_vm0, %v430_v34, %v2977_v25  ;;  %v1352_v41 = vadd.f32 1.0, %v3116_v32 }
  0xd0   :  { %3119 = vpow2.f32 %v1232_v33  ;;  %v1030_v38 = vmul.f32 %v3891_v21, %v962_v37  ;;  %v1479_v40 = vmul.f32 %v3118_v36, %v3964_v47  ;;  %v3084_v33 = vpack.i.bf16 %v2823_v29, %v2822_v23 }
  0xd1   :  { %2665 = vmatmul.msk.bf16.gmra.mxu0 %vm304_vm0, %v2737_v31  ;;  %3121 = vrcp.f32 %v1352_v41  ;;  %v2996_v31 = vpop.permute.xlu1 %2995  ;;  %v2901_v41 = vld [vmem:[%s5010_s1 + $0x70] sm:$0xff]  }
  0xd2   :  { %v4010_v42 = vadd.f32 %v3902_v26, %v1030_v38  ;;  %v1540_v43 = vpack.c.bf16 %v1479_v40, %v1478_v39  ;;  %v2997_v37 = vunpack.i.l.bf16 %v2996_v31  ;;  %3085 = vrot.lane.b32.xlu1 %v3084_v33, %s3718_s28  ;;  %v2739_v39 = vld [vmem:[%s5009_s0 + $0x70] sm:$0xff]  ;;  %v2998_v61 = vunpack.i.h.bf16 %v2996_v31 }
  0xd3   :  { %v2743_v40 = vld [vmem:[%s5009_s0 + $0x90] sm:$0xff] }
  0xd4   :  { %v1162_v45 = vsub.f32 0.0, %v4010_v42  ;;  %2695 = vmatmul.msk.bf16.gmra.mxu1 %vm1586_vm1, %v1540_v43  ;;  %2671 = vmatmul.msk.bf16.gmra.mxu3 %vm304_vm0, %v2743_v40 }
  0xd6   :  { %v3120_v46 = vpop.eup %3119  ;;  %v1234_v48 = vmul.f32 1.442695, %v1162_v45  ;;  %v432_v49 = vpop.f32.mrf.mxu0 }
  0xd7   :  { %v1353_v50 = vadd.f32 1.0, %v3120_v46  ;;  %v963_v28 = vsel %vm304_vm0, %v432_v49, %v2978_v44  ;;  %v3122_v54 = vpop.eup %3121  ;;  %v4062_v45 = vpop.permute.xlu0 %2990  ;;  %v2818_v46 = vunpack.c.l.bf16 %v2901_v41 }
  0xd8   :  { %3123 = vpow2.f32 %v1234_v48  ;;  %v1031_v47 = vmul.f32 %v3891_v21, %v963_v28  ;;  %v1480_v7 = vmul.f32 %v3122_v54, %v3986_v8  ;;  %v2916_v8 = vld [vmem:[%s5010_s1 + $0xe8] sm:$0xff]   ;;  %v2819_v48 = vunpack.c.h.bf16 %v2901_v41  ;;  %v2741_v41 = vld [vmem:[%s5009_s0 + $0x80] sm:$0xff] }
  0xd9   :  { %3125 = vrcp.f32 %v1353_v50  ;;  %v2878_v20 = vunpack.c.l.bf16 %v2916_v8  ;;  %v2879_v22 = vunpack.c.h.bf16 %v2916_v8 }
  0xda   :  { %v4017_v52 = vadd.f32 %v3902_v26, %v1031_v47  ;;  %v3074_v54 = vpack.i.bf16 %v2819_v48, %v2818_v46  ;;  %v4106_v48 = vpop.permute.xlu1 %3010 }
  0xdb   :  { %v3059_v32 = vpack.i.bf16 %v2879_v22, %v2878_v20 }
  0xdc   :  { %v1163_v56 = vsub.f32 0.0, %v4017_v52 }
  0xdd   :  { %3060 = vrot.lane.b32.xlu2 %v3059_v32, %s3718_s28 }
  0xde   :  { %v3124_v62 = vpop.eup %3123  ;;  %v1236_v63 = vmul.f32 1.442695, %v1163_v56  ;;  %v435_v0 = vpop.f32.mrf.mxu0 }
  0xdf   :  { %v3126_v4 = vpop.eup %3125  ;;  %v964_v5 = vsel %vm304_vm0, %v435_v0, %v2987_v53  ;;  %v1354_v60 = vadd.f32 1.0, %v3124_v62 }
  0xe0   :  { %3127 = vpow2.f32 %v1236_v63  ;;  %v1032_v10 = vmul.f32 %v3891_v21, %v964_v5  ;;  %v1481_v11 = vmul.f32 %v3126_v4, %v1097_v24  ;;  %v3006_v4 = vpop.permute.xlu0 %3005 }
  0xe1   :  { %2666 = vmatmul.msk.bf16.gmra.mxu0 %vm304_vm0, %v2738_v58  ;;  %3129 = vrcp.f32 %v1354_v60  ;;  %v2744_v60 = vld [vmem:[%s5009_s0 + $0x98] sm:$0xff] }
  0xe2   :  { %v4037_v6 = vadd.f32 %v3902_v26, %v1032_v10  ;;  %v1541_v13 = vpack.c.bf16 %v1481_v11, %v1480_v7  ;;  %v3007_v7 = vunpack.i.l.bf16 %v3006_v4 }
  0xe4   :  { %v1164_v15 = vsub.f32 0.0, %v4037_v6  ;;  %2696 = vmatmul.msk.bf16.gmra.mxu1 %vm1586_vm1, %v1541_v13  ;;  %2672 = vmatmul.msk.bf16.gmra.mxu3 %vm304_vm0, %v2744_v60 }
  0xe5   :  { %3075 = vrot.lane.b32.xlu2 %v3074_v54, %s3718_s28 }
  0xe6   :  { %v3128_v17 = vpop.eup %3127  ;;  %v1238_v18 = vmul.f32 1.442695, %v1164_v15  ;;  %v437_v19 = vpop.f32.mrf.mxu0 }
  0xe7   :  { %v1355_v24 = vadd.f32 1.0, %v3128_v17  ;;  %v965_v25 = vsel %vm304_vm0, %v437_v19, %v2988_v14  ;;  %v3130_v36 = vpop.eup %3129  ;;  %v4085_v15 = vpop.permute.xlu2 %3000 }
  0xe8   :  { %v1033_v30 = vmul.f32 %v3891_v21, %v965_v25  ;;  %v1482_v28 = vmul.f32 %v3130_v36, %v4010_v42  ;;  %v3008_v25 = vunpack.i.h.bf16 %v3006_v4 }
  0xe9   :  { %3131 = vrcp.f32 %v1355_v24 }
  0xea   :  { %3133 = vpow2.f32 %v1238_v18  ;;  %v1101_v34 = vadd.f32 %v3902_v26, %v1033_v30 }
  0xec   :  { %v1165_v38 = vsub.f32 0.0, %v1101_v34 }
  0xee   :  { %v1240_v43 = vmul.f32 1.442695, %v1165_v38  ;;  %v440_v44 = vpop.f32.mrf.mxu0 }
  0xef   :  { %v3132_v49 = vpop.eup %3131  ;;  %v966_v50 = vsel %vm304_vm0, %v440_v44, %v2997_v37  ;;  %v3016_v36 = vpop.permute.xlu2 %3015 }
  0xf0   :  { %v3134_v47 = vpop.eup %3133  ;;  %3135 = vpow2.f32 %v1240_v43  ;;  %v1034_v51 = vmul.f32 %v3891_v21, %v966_v50  ;;  %v1483_v53 = vmul.f32 %v3132_v49, %v4017_v52  ;;  %v3017_v38 = vunpack.i.l.bf16 %v3016_v36  ;;  %v2745_v43 = vld [vmem:[%s5009_s0 + $0xa0] sm:$0xff] }
  0xf1   :  { %2667 = vmatmul.msk.bf16.gmra.mxu0 %vm304_vm0, %v2739_v39  ;;  %v1356_v59 = vadd.f32 1.0, %v3134_v47 }
  0xf2   :  { %v4071_v56 = vadd.f32 %v3902_v26, %v1034_v51  ;;  %v1542_v58 = vpack.c.bf16 %v1483_v53, %v1482_v28 }
  0xf3   :  { %3137 = vrcp.f32 %v1356_v59 }
  0xf4   :  { %v1166_v42 = vsub.f32 0.0, %v4071_v56  ;;  %2697 = vmatmul.msk.bf16.gmra.mxu1 %vm1586_vm1, %v1542_v58  ;;  %2673 = vmatmul.msk.bf16.gmra.mxu3 %vm304_vm0, %v2745_v43 }
  0xf6   :  { %v3136_v62 = vpop.eup %3135  ;;  %v1242_v63 = vmul.f32 1.442695, %v1166_v42  ;;  %v442_v0 = vpop.f32.mrf.mxu0 }
  0xf7   :  { %v1357_v52 = vadd.f32 1.0, %v3136_v62  ;;  %v967_v2 = vsel %vm304_vm0, %v442_v0, %v2998_v61  ;;  %v3018_v61 = vunpack.i.h.bf16 %v3016_v36 }
  0xf8   :  { %v1035_v3 = vmul.f32 %v3891_v21, %v967_v2 }
  0xf9   :  { %3139 = vrcp.f32 %v1357_v52  ;;  %v3138_v11 = vpop.eup %3137 }
  0xfa   :  { %3141 = vpow2.f32 %v1242_v63  ;;  %v1103_v5 = vadd.f32 %v3902_v26, %v1035_v3  ;;  %v1484_v19 = vmul.f32 %v3138_v11, %v4037_v6  ;;  %v3026_v3 = vpop.permute.xlu1 %3025  ;;  %v2746_v11 = vld [vmem:[%s5009_s0 + $0xa8] sm:$0xff] }
  0xfc   :  { %v1167_v10 = vsub.f32 0.0, %v1103_v5 }
  0xfe   :  { %v1244_v13 = vmul.f32 1.442695, %v1167_v10  ;;  %v445_v14 = vpop.f32.mrf.mxu0 }
  0xff   :  { %v3140_v8 = vpop.eup %3139  ;;  %v968_v16 = vsel %vm304_vm0, %v445_v14, %v3007_v7 }
 0x100   :  { %v3142_v17 = vpop.eup %3141  ;;  %3143 = vpow2.f32 %v1244_v13  ;;  %v1036_v18 = vmul.f32 %v3891_v21, %v968_v16  ;;  %v1485_v20 = vmul.f32 %v3140_v8, %v1101_v34  ;;  %v4124_v13 = vpop.permute.xlu0 %3020 }
 0x101   :  { %2668 = vmatmul.msk.bf16.gmra.mxu0 %vm304_vm0, %v2740_v12  ;;  %v1358_v24 = vadd.f32 1.0, %v3142_v17 }
 0x102   :  { %v4093_v22 = vadd.f32 %v3902_v26, %v1036_v18  ;;  %v1543_v23 = vpack.c.bf16 %v1485_v20, %v1484_v19 }
 0x103   :  { %3145 = vrcp.f32 %v1358_v24 }
 0x104   :  { %v1168_v29 = vsub.f32 0.0, %v4093_v22  ;;  %2698 = vmatmul.msk.bf16.gmra.mxu1 %vm1586_vm1, %v1543_v23  ;;  %2674 = vmatmul.msk.bf16.gmra.mxu3 %vm304_vm0, %v2746_v11 }
 0x106   :  { %v3144_v30 = vpop.eup %3143  ;;  %v1246_v31 = vmul.f32 1.442695, %v1168_v29  ;;  %v447_v32 = vpop.f32.mrf.mxu0 }
 0x107   :  { %v1359_v33 = vadd.f32 1.0, %v3144_v30  ;;  %v969_v6 = vsel %vm304_vm0, %v447_v32, %v3008_v25  ;;  %v3028_v25 = vunpack.i.h.bf16 %v3026_v3 }
 0x108   :  { %v1037_v34 = vmul.f32 %v3891_v21, %v969_v6 }
 0x109   :  { %3147 = vrcp.f32 %v1359_v33  ;;  %v3146_v40 = vpop.eup %3145 }
 0x10a   :  { %3149 = vpow2.f32 %v1246_v31  ;;  %v1105_v37 = vadd.f32 %v3902_v26, %v1037_v34  ;;  %v1486_v51 = vmul.f32 %v3146_v40, %v4071_v56  ;;  %v3036_v34 = vpop.permute.xlu0 %3035  ;;  %v2747_v40 = vld [vmem:[%s5009_s0 + $0xb0] sm:$0xff] }
 0x10c   :  { %v1169_v39 = vsub.f32 0.0, %v1105_v37 }
 0x10e   :  { %v1248_v44 = vmul.f32 1.442695, %v1169_v39  ;;  %v450_v46 = vpop.f32.mrf.mxu0 }
 0x10f   :  { %v3148_v49 = vpop.eup %3147  ;;  %v970_v50 = vsel %vm304_vm0, %v450_v46, %v3017_v38  ;;  %v4141_v46 = vld [vmem:[#allocation5] ss:$0 sm:$0xff] }
 0x110   :  { %v3150_v28 = vpop.eup %3149  ;;  %3151 = vpow2.f32 %v1248_v44  ;;  %v1038_v47 = vmul.f32 %v3891_v21, %v970_v50  ;;  %v1487_v53 = vmul.f32 %v3148_v49, %v1103_v5  ;;  %v3027_v5 = vunpack.i.l.bf16 %v3026_v3  ;;  %v4143_v49 = vpop.permute.xlu2 %3030 }
 0x111   :  { %2669 = vmatmul.msk.bf16.gmra.mxu0 %vm304_vm0, %v2741_v41  ;;  %v1360_v59 = vadd.f32 1.0, %v3150_v28 }
 0x112   :  { %v4114_v54 = vadd.f32 %v3902_v26, %v1038_v47  ;;  %v1544_v58 = vpack.c.bf16 %v1487_v53, %v1486_v51  ;;  %v4148_v51 = vld [vmem:[#allocation7] ss:$0 sm:$0xff] }
 0x113   :  { %3153 = vrcp.f32 %v1360_v59 }
 0x114   :  { %v1170_v42 = vsub.f32 0.0, %v4114_v54  ;;  %2699 = vmatmul.msk.bf16.gmra.mxu1 %vm1586_vm1, %v1544_v58  ;;  %2675 = vmatmul.msk.bf16.gmra.mxu3 %vm304_vm0, %v2747_v40 }
 0x116   :  { %v3152_v62 = vpop.eup %3151  ;;  %v1250_v63 = vmul.f32 1.442695, %v1170_v42  ;;  %v452_v0 = vpop.f32.mrf.mxu0 }
 0x117   :  { %v1361_v52 = vadd.f32 1.0, %v3152_v62  ;;  %v971_v56 = vsel %vm304_vm0, %v452_v0, %v3018_v61  ;;  %v3038_v0 = vunpack.i.h.bf16 %v3036_v34 }
 0x118   :  { %v1039_v2 = vmul.f32 %v3891_v21, %v971_v56 }
 0x119   :  { %3155 = vrcp.f32 %v1361_v52  ;;  %v3154_v10 = vpop.eup %3153 }
 0x11a   :  { %3157 = vpow2.f32 %v1250_v63  ;;  %v1107_v4 = vadd.f32 %v3902_v26, %v1039_v2  ;;  %v1488_v18 = vmul.f32 %v3154_v10, %v4093_v22 }
 0x11c   :  { %v1171_v7 = vsub.f32 0.0, %v1107_v4 }
 0x11e   :  { %v1252_v12 = vmul.f32 1.442695, %v1171_v7  ;;  %v455_v60 = vpop.f32.mrf.mxu0 }
 0x11f   :  { %v3156_v14 = vpop.eup %3155  ;;  %v972_v8 = vsel %vm304_vm0, %v455_v60, %v3027_v5 }
 0x120   :  { %v3158_v16 = vpop.eup %3157  ;;  %3159 = vpow2.f32 %v1252_v12  ;;  %v1040_v17 = vmul.f32 %v3891_v21, %v972_v8  ;;  %v1489_v19 = vmul.f32 %v3156_v14, %v1105_v37  ;;  %v3037_v37 = vunpack.i.l.bf16 %v3036_v34  ;;  %v3046_v12 = vpop.permute.xlu2 %3045 }
 0x121   :  { %v1362_v24 = vadd.f32 1.0, %v3158_v16  ;;  %v3047_v16 = vunpack.i.l.bf16 %v3046_v12 }
 0x122   :  { %v4131_v20 = vadd.f32 %v3902_v26, %v1040_v17  ;;  %v1545_v23 = vpack.c.bf16 %v1489_v19, %v1488_v18 }
 0x123   :  { %3161 = vrcp.f32 %v1362_v24 }
 0x124   :  { %v1172_v29 = vsub.f32 0.0, %v4131_v20  ;;  %2700 = vmatmul.msk.bf16.gmra.mxu1 %vm1586_vm1, %v1545_v23 }
 0x126   :  { %v3160_v30 = vpop.eup %3159  ;;  %v1254_v31 = vmul.f32 1.442695, %v1172_v29  ;;  %v457_v32 = vpop.f32.mrf.mxu0 }
 0x127   :  { %v1363_v33 = vadd.f32 1.0, %v3160_v30  ;;  %v973_v6 = vsel %vm304_vm0, %v457_v32, %v3028_v25  ;;  %v4172_v30 = vpop.permute.xlu1 %3040 }
 0x128   :  { %3163 = vpow2.f32 %v1254_v31  ;;  %v1041_v22 = vmul.f32 %v3891_v21, %v973_v6  ;;  %v2748_v31 = vld [vmem:[%s5009_s0 + $0xb8] sm:$0xff] }
 0x129   :  { %3165 = vrcp.f32 %v1363_v33  ;;  %v3162_v39 = vpop.eup %3161  ;;  %2676 = vmatmul.msk.bf16.gmra.mxu3 %vm304_vm0, %v2748_v31 }
 0x12a   :  { %v1109_v36 = vadd.f32 %v3902_v26, %v1041_v22  ;;  %v1490_v53 = vmul.f32 %v3162_v39, %v4114_v54 }
 0x12c   :  { %v1173_v38 = vsub.f32 0.0, %v1109_v36 }
 0x12e   :  { %v3164_v41 = vpop.eup %3163  ;;  %v1256_v43 = vmul.f32 1.442695, %v1173_v38  ;;  %v460_v44 = vpop.f32.mrf.mxu0 }
 0x12f   :  { %v3166_v50 = vpop.eup %3165  ;;  %v974_v28 = vsel %vm304_vm0, %v460_v44, %v3037_v37  ;;  %v1364_v61 = vadd.f32 1.0, %v3164_v41 }
 0x130   :  { %3167 = vpow2.f32 %v1256_v43  ;;  %v1042_v47 = vmul.f32 %v3891_v21, %v974_v28  ;;  %v1491_v58 = vmul.f32 %v3166_v50, %v1107_v4 }
 0x131   :  { %v1692_v59 = vpop.f32.mrf.mxu1  ;;  %3169 = vrcp.f32 %v1364_v61 }
 0x132   :  { %v4152_v42 = vadd.f32 %v3902_v26, %v1042_v47  ;;  %v1856_v62 = vmul.f32 %v4141_v46, %v1692_v59  ;;  %v1546_v63 = vpack.c.bf16 %v1491_v58, %v1490_v53 }
 0x134   :  { %v1174_v52 = vsub.f32 0.0, %v4152_v42  ;;  %v4157_v56 = vadd.f32 %v4148_v51, %v1856_v62  ;;  %2701 = vmatmul.msk.bf16.gmra.mxu1 %vm1586_vm1, %v1546_v63 }
 0x136   :  { %v3168_v2 = vpop.eup %3167  ;;  %v1258_v54 = vmul.f32 1.442695, %v1174_v52  ;;  %v1988_v3 = vsub.f32 0.0, %v4157_v56  ;;  %v462_v4 = vpop.f32.mrf.mxu0 }
 0x137   :  { %v1365_v5 = vadd.f32 1.0, %v3168_v2  ;;  %v975_v7 = vsel %vm304_vm0, %v462_v4, %v3038_v0  ;;  %v3170_v17 = vpop.eup %3169  ;;  %v3056_v2 = vpop.permute.xlu1 %3055 }
 0x138   :  { %3171 = vpow2.f32 %v1258_v54  ;;  %v2052_v10 = vmul.f32 1.442695, %v1988_v3  ;;  %v1043_v11 = vmul.f32 %v3891_v21, %v975_v7  ;;  %v1492_v6 = vmul.f32 %v3170_v17, %v4131_v20 }
 0x139   :  { %3173 = vrcp.f32 %v1365_v5  ;;  %v1694_v60 = vpop.f32.mrf.mxu1  ;;  %v3048_v20 = vunpack.i.h.bf16 %v3046_v12 }
 0x13a   :  { %3175 = vpow2.f32 %v2052_v10  ;;  %v4164_v14 = vadd.f32 %v3902_v26, %v1043_v11  ;;  %v1857_v8 = vmul.f32 %v4141_v46, %v1694_v60  ;;  %v3057_v11 = vunpack.i.l.bf16 %v3056_v2 }
 0x13c   :  { %v1175_v18 = vsub.f32 0.0, %v4164_v14  ;;  %v4169_v19 = vadd.f32 %v4148_v51, %v1857_v8 }
 0x13e   :  { %v3172_v23 = vpop.eup %3171  ;;  %v1260_v24 = vmul.f32 1.442695, %v1175_v18  ;;  %v1989_v25 = vsub.f32 0.0, %v4169_v19  ;;  %v465_v29 = vpop.f32.mrf.mxu0 }
 0x13f   :  { %v3174_v32 = vpop.eup %3173  ;;  %v976_v33 = vsel %vm304_vm0, %v465_v29, %v3047_v16  ;;  %v1366_v50 = vadd.f32 1.0, %v3172_v23 }
 0x140   :  { %v3176_v22 = vpop.eup %3175  ;;  %3177 = vpow2.f32 %v1260_v24  ;;  %v2054_v34 = vmul.f32 1.442695, %v1989_v25  ;;  %v1044_v37 = vmul.f32 %v3891_v21, %v976_v33  ;;  %v1493_v38 = vmul.f32 %v3174_v32, %v1109_v36  ;;  %v4204_v24 = vpop.permute.xlu0 %3050  ;;  %v2749_v25 = vld [vmem:[%s5009_s0 + $0xc0] sm:$0xff] }
 0x141   :  { %v2180_v39 = vadd.f32 1.0, %v3176_v22  ;;  %v1697_v40 = vpop.f32.mrf.mxu1  ;;  %2677 = vmatmul.msk.bf16.gmra.mxu3 %vm304_vm0, %v2749_v25 }
 0x142   :  { %3179 = vpow2.f32 %v2054_v34  ;;  %v4182_v41 = vadd.f32 %v3902_v26, %v1044_v37  ;;  %v1858_v43 = vmul.f32 %v4141_v46, %v1697_v40  ;;  %v1547_v44 = vpack.c.bf16 %v1493_v38, %v1492_v6 }
 0x143   :  { %3181 = vrcp.f32 %v2180_v39 }
 0x144   :  { %v1176_v28 = vsub.f32 0.0, %v4182_v41  ;;  %v4187_v47 = vadd.f32 %v4148_v51, %v1858_v43  ;;  %2702 = vmatmul.msk.bf16.gmra.mxu1 %vm1586_vm1, %v1547_v44  ;;  %3183 = vrcp.f32 %v1366_v50 }
 0x146   :  { %v3178_v36 = vpop.eup %3177  ;;  %v1262_v53 = vmul.f32 1.442695, %v1176_v28  ;;  %v1990_v58 = vsub.f32 0.0, %v4187_v47  ;;  %v467_v59 = vpop.f32.mrf.mxu0 }
 0x147   :  { %v1367_v61 = vadd.f32 1.0, %v3178_v36  ;;  %v977_v62 = vsel %vm304_vm0, %v467_v59, %v3048_v20 }
 0x148   :  { %v3180_v63 = vpop.eup %3179  ;;  %3185 = vpow2.f32 %v1262_v53  ;;  %v2056_v0 = vmul.f32 1.442695, %v1990_v58  ;;  %v1045_v52 = vmul.f32 %v3891_v21, %v977_v62 }
 0x149   :  { %v3182_v54 = vpop.eup %3181  ;;  %3187 = vrcp.f32 %v1367_v61  ;;  %v2181_v3 = vadd.f32 1.0, %v3180_v63  ;;  %v1699_v4 = vpop.f32.mrf.mxu1  ;;  %v4230_v63 = vld [vmem:[%s5012_s3] ss:$0 sm:$0xff] }
 0x14a   :  { %v2308_v5 = vmul.f32 %v3182_v54, %v4157_v56  ;;  %3189 = vpow2.f32 %v2056_v0  ;;  %v4195_v7 = vadd.f32 %v3902_v26, %v1045_v52  ;;  %v1859_v10 = vmul.f32 %v4141_v46, %v1699_v4  ;;  %v3184_v16 = vpop.eup %3183  ;;  %v3066_v52 = vpop.permute.xlu0 %3065 }
 0x14b   :  { %3191 = vrcp.f32 %v2181_v3  ;;  %v1494_v39 = vmul.f32 %v3184_v16, %v4152_v42 }
 0x14c   :  { %v2372_v12 = vpack.c.bf16 %v2308_v5, %v2308_v5  ;;  %v1177_v60 = vsub.f32 0.0, %v4195_v7  ;;  %v4200_v8 = vadd.f32 %v4148_v51, %v1859_v10  ;;  %v4234_v5 = vld [vmem:[#allocation2] ss:$0 sm:$0xff] }
 0x14e   :  { %v3186_v17 = vpop.eup %3185  ;;  %2437 = vst.msk [vmem:[#allocation8] sm:$0xf] %vm2436_vm2, %v2372_v12  ;;  %v1264_v56 = vmul.f32 1.442695, %v1177_v60  ;;  %v1991_v18 = vsub.f32 0.0, %v4200_v8  ;;  %v470_v23 = vpop.f32.mrf.mxu0  ;;  %v3067_v12 = vunpack.i.l.bf16 %v3066_v52 }
 0x14f   :  { %v3188_v29 = vpop.eup %3187  ;;  %v978_v31 = vsel %vm304_vm0, %v470_v23, %v3057_v11  ;;  %v1368_v50 = vadd.f32 1.0, %v3186_v17 }
 0x150   :  { %v3190_v32 = vpop.eup %3189  ;;  %3193 = vpow2.f32 %v1264_v56  ;;  %v2058_v33 = vmul.f32 1.442695, %v1991_v18  ;;  %v1046_v6 = vmul.f32 %v3891_v21, %v978_v31  ;;  %v1495_v22 = vmul.f32 %v3188_v29, %v4164_v14  ;;  %v4246_v29 = vpop.permute.xlu2 %3060  ;;  %v2750_v31 = vld [vmem:[%s5009_s0 + $0xc8] sm:$0xff] }
 0x151   :  { %v3192_v34 = vpop.eup %3191  ;;  %v2182_v37 = vadd.f32 1.0, %v3190_v32  ;;  %v1702_v38 = vpop.f32.mrf.mxu1  ;;  %v3058_v21 = vunpack.i.h.bf16 %v3056_v2  ;;  %2678 = vmatmul.msk.bf16.gmra.mxu3 %vm304_vm0, %v2750_v31 }
 0x152   :  { %v2309_v40 = vmul.f32 %v3192_v34, %v4169_v19  ;;  %3195 = vpow2.f32 %v2058_v33  ;;  %v4216_v43 = vadd.f32 %v3902_v26, %v1046_v6  ;;  %v1860_v44 = vmul.f32 %v4141_v46, %v1702_v38 }
 0x153   :  { %3197 = vrcp.f32 %v2182_v37  ;;  %v1548_v20 = vpack.c.bf16 %v1495_v22, %v1494_v39 }
 0x154   :  { %v2373_v14 = vpack.c.bf16 %v2309_v40, %v2309_v40  ;;  %v1178_v28 = vsub.f32 0.0, %v4216_v43  ;;  %v4221_v36 = vadd.f32 %v4148_v51, %v1860_v44  ;;  %3199 = vrcp.f32 %v1368_v50 }
 0x155   :  { %2703 = vmatmul.msk.bf16.gmra.mxu1 %vm1586_vm1, %v1548_v20 }
 0x156   :  { %v3194_v42 = vpop.eup %3193  ;;  %2438 = vst.msk [vmem:[#allocation8 + $0x4] sm:$0xf] %vm2436_vm2, %v2373_v14  ;;  %v1266_v19 = vmul.f32 1.442695, %v1178_v28  ;;  %v1992_v26 = vsub.f32 0.0, %v4221_v36  ;;  %v472_v53 = vpop.f32.mrf.mxu0  ;;  %v3068_v28 = vunpack.i.h.bf16 %v3066_v52 }
 0x157   :  { %v1369_v58 = vadd.f32 1.0, %v3194_v42  ;;  %v979_v59 = vsel %vm304_vm0, %v472_v53, %v3058_v21 }
 0x158   :  { %v3196_v61 = vpop.eup %3195  ;;  %3201 = vpow2.f32 %v1266_v19  ;;  %v2060_v62 = vmul.f32 1.442695, %v1992_v26  ;;  %v1047_v0 = vmul.f32 %v4230_v63, %v979_v59 }
 0x159   :  { %v3198_v2 = vpop.eup %3197  ;;  %3203 = vrcp.f32 %v1369_v58  ;;  %v2183_v54 = vadd.f32 1.0, %v3196_v61  ;;  %v1704_v3 = vpop.f32.mrf.mxu1 }
 0x15a   :  { %v2310_v4 = vmul.f32 %v3198_v2, %v4187_v47  ;;  %3205 = vpow2.f32 %v2060_v62  ;;  %v4237_v10 = vadd.f32 %v4234_v5, %v1047_v0  ;;  %v1861_v11 = vmul.f32 %v4141_v46, %v1704_v3  ;;  %v3200_v56 = vpop.eup %3199 }
 0x15b   :  { %3207 = vrcp.f32 %v2183_v54  ;;  %v1496_v44 = vmul.f32 %v3200_v56, %v4182_v41  ;;  %v3076_v54 = vpop.permute.xlu2 %3075 }
 0x15c   :  { %v2374_v60 = vpack.c.bf16 %v2310_v4, %v2310_v4  ;;  %v1179_v16 = vsub.f32 0.0, %v4237_v10  ;;  %v4242_v17 = vadd.f32 %v4148_v51, %v1861_v11  ;;  %v3077_v56 = vunpack.i.l.bf16 %v3076_v54 }
 0x15e   :  { %v3202_v18 = vpop.eup %3201  ;;  %2439 = vst.msk [vmem:[#allocation8 + $0x8] sm:$0xf] %vm2436_vm2, %v2374_v60  ;;  %v1268_v47 = vmul.f32 1.442695, %v1179_v16  ;;  %v1993_v23 = vsub.f32 0.0, %v4242_v17  ;;  %v475_v25 = vpop.f32.mrf.mxu0 }
 0x15f   :  { %v3204_v32 = vpop.eup %3203  ;;  %v980_v33 = vsel %vm304_vm0, %v475_v25, %v3067_v12  ;;  %v1370_v14 = vadd.f32 1.0, %v3202_v18 }
 0x160   :  { %v3206_v6 = vpop.eup %3205  ;;  %3209 = vpow2.f32 %v1268_v47  ;;  %v2062_v22 = vmul.f32 1.442695, %v1993_v23  ;;  %v1048_v34 = vmul.f32 %v4230_v63, %v980_v33  ;;  %v1497_v37 = vmul.f32 %v3204_v32, %v4195_v7  ;;  %v4261_v7 = vpop.f32.mrf.mxu3 }
 0x161   :  { %v3208_v38 = vpop.eup %3207  ;;  %v2184_v39 = vadd.f32 1.0, %v3206_v6  ;;  %v1707_v40 = vpop.f32.mrf.mxu1 }
 0x162   :  { %v2311_v50 = vmul.f32 %v3208_v38, %v4200_v8  ;;  %3211 = vpow2.f32 %v2062_v22  ;;  %v4258_v21 = vadd.f32 %v4234_v5, %v1048_v34  ;;  %v1862_v20 = vmul.f32 %v4141_v46, %v1707_v40  ;;  %v4285_v22 = vpop.permute.xlu1 %3070  ;;  %v2751_v34 = vld [vmem:[%s5009_s0 + $0xd0] sm:$0xff] }
 0x163   :  { %3213 = vrcp.f32 %v2184_v39  ;;  %v1549_v42 = vpack.c.bf16 %v1497_v37, %v1496_v44  ;;  %2679 = vmatmul.msk.bf16.gmra.mxu3 %vm304_vm0, %v2751_v34 }
 0x164   :  { %v2375_v19 = vpack.c.bf16 %v2311_v50, %v2311_v50  ;;  %v1180_v26 = vsub.f32 0.0, %v4258_v21  ;;  %v4265_v53 = vadd.f32 %v4148_v51, %v1862_v20  ;;  %3215 = vrcp.f32 %v1370_v14 }
 0x165   :  { %2704 = vmatmul.msk.bf16.gmra.mxu1 %vm1586_vm1, %v1549_v42 }
 0x166   :  { %v3210_v41 = vpop.eup %3209  ;;  %2440 = vst.msk [vmem:[#allocation8 + $0xc] sm:$0xf] %vm2436_vm2, %v2375_v19  ;;  %v1270_v8 = vmul.f32 1.442695, %v1180_v26  ;;  %v1994_v58 = vsub.f32 0.0, %v4265_v53  ;;  %v477_v59 = vpop.f32.mrf.mxu0 }
 0x167   :  { %v1371_v61 = vadd.f32 1.0, %v3210_v41  ;;  %v981_v62 = vsel %vm304_vm0, %v477_v59, %v3068_v28 }
 0x168   :  { %v3212_v0 = vpop.eup %3211  ;;  %3217 = vpow2.f32 %v1270_v8  ;;  %v2064_v52 = vmul.f32 1.442695, %v1994_v58  ;;  %v1049_v2 = vmul.f32 %v4230_v63, %v981_v62  ;;  %v4277_v18 = vpop.f32.mrf.mxu3  ;;  %v3078_v8 = vunpack.i.h.bf16 %v3076_v54 }
 0x169   :  { %v3214_v3 = vpop.eup %3213  ;;  %3219 = vrcp.f32 %v1371_v61  ;;  %v2185_v4 = vadd.f32 1.0, %v3212_v0  ;;  %v1709_v11 = vpop.f32.mrf.mxu1 }
 0x16a   :  { %v2312_v12 = vmul.f32 %v3214_v3, %v4221_v36  ;;  %3221 = vpow2.f32 %v2064_v52  ;;  %v4274_v60 = vadd.f32 %v4234_v5, %v1049_v2  ;;  %v1863_v16 = vmul.f32 %v4141_v46, %v1709_v11  ;;  %v3216_v31 = vpop.eup %3215 }
 0x16b   :  { %3223 = vrcp.f32 %v2185_v4  ;;  %v1498_v14 = vmul.f32 %v3216_v31, %v4216_v43 }
 0x16c   :  { %v2376_v47 = vpack.c.bf16 %v2312_v12, %v2312_v12  ;;  %v1181_v23 = vsub.f32 0.0, %v4274_v60  ;;  %v4281_v25 = vadd.f32 %v4148_v51, %v1863_v16  ;;  %v3086_v16 = vpop.permute.xlu1 %3085 }
 0x16e   :  { %v3218_v32 = vpop.eup %3217  ;;  %2441 = vst.msk [vmem:[#allocation8 + $0x10] sm:$0xf] %vm2436_vm2, %v2376_v47  ;;  %v1272_v36 = vmul.f32 1.442695, %v1181_v23  ;;  %v1995_v33 = vsub.f32 0.0, %v4281_v25  ;;  %v480_v6 = vpop.f32.mrf.mxu0 }
 0x16f   :  { %v3220_v37 = vpop.eup %3219  ;;  %v982_v38 = vsel %vm304_vm0, %v480_v6, %v3077_v56 }
 0x170   :  { %v3222_v39 = vpop.eup %3221  ;;  %v1499_v40 = vmul.f32 %v3220_v37, %v4237_v10  ;;  %3225 = vpow2.f32 %v1272_v36  ;;  %v2066_v44 = vmul.f32 1.442695, %v1995_v33  ;;  %v1050_v50 = vmul.f32 %v4230_v63, %v982_v38  ;;  %v4300_v59 = vpop.f32.mrf.mxu3 }
 0x171   :  { %v3224_v20 = vpop.eup %3223  ;;  %v2186_v28 = vadd.f32 1.0, %v3222_v39  ;;  %v1712_v42 = vpop.f32.mrf.mxu1  ;;  %v1372_v10 = vadd.f32 1.0, %v3218_v32  ;;  %v3087_v33 = vunpack.i.l.bf16 %v3086_v16 }
 0x172   :  { %v2313_v19 = vmul.f32 %v3224_v20, %v4242_v17  ;;  %3227 = vpow2.f32 %v2066_v44  ;;  %v4297_v26 = vadd.f32 %v4234_v5, %v1050_v50  ;;  %v1864_v41 = vmul.f32 %v4141_v46, %v1712_v42 }
 0x173   :  { %3229 = vrcp.f32 %v2186_v28  ;;  %v1550_v58 = vpack.c.bf16 %v1499_v40, %v1498_v14  ;;  %v2752_v28 = vld [vmem:[%s5009_s0 + $0xd8] sm:$0xff] }
 0x174   :  { %v2377_v61 = vpack.c.bf16 %v2313_v19, %v2313_v19  ;;  %v1182_v62 = vsub.f32 0.0, %v4297_v26  ;;  %v4304_v43 = vadd.f32 %v4148_v51, %v1864_v41  ;;  %3231 = vrcp.f32 %v1372_v10  ;;  %2680 = vmatmul.msk.bf16.gmra.mxu3 %vm304_vm0, %v2752_v28 }
 0x175   :  { %2705 = vmatmul.msk.bf16.gmra.mxu1 %vm1586_vm1, %v1550_v58 }
 0x176   :  { %v3226_v17 = vpop.eup %3225  ;;  %2442 = vst.msk [vmem:[#allocation8 + $0x14] sm:$0xf] %vm2436_vm2, %v2377_v61  ;;  %v1274_v0 = vmul.f32 1.442695, %v1182_v62  ;;  %v1996_v52 = vsub.f32 0.0, %v4304_v43  ;;  %v482_v2 = vpop.f32.mrf.mxu0 }
 0x177   :  { %v1373_v54 = vadd.f32 1.0, %v3226_v17  ;;  %v983_v3 = vsel %vm304_vm0, %v482_v2, %v3078_v8  ;;  %v3088_v2 = vunpack.i.h.bf16 %v3086_v16 }
 0x178   :  { %v3228_v4 = vpop.eup %3227  ;;  %3233 = vpow2.f32 %v1274_v0  ;;  %v2068_v11 = vmul.f32 1.442695, %v1996_v52  ;;  %v1051_v12 = vmul.f32 %v4230_v63, %v983_v3  ;;  %v4316_v6 = vpop.f32.mrf.mxu3 }
 0x179   :  { %v3230_v56 = vpop.eup %3229  ;;  %3235 = vrcp.f32 %v1373_v54  ;;  %v2187_v47 = vadd.f32 1.0, %v3228_v4  ;;  %v1714_v23 = vpop.f32.mrf.mxu1 }
 0x17a   :  { %v2314_v31 = vmul.f32 %v3230_v56, %v4265_v53  ;;  %3237 = vpow2.f32 %v2068_v11  ;;  %v4313_v32 = vadd.f32 %v4234_v5, %v1051_v12  ;;  %v1865_v36 = vmul.f32 %v4141_v46, %v1714_v23  ;;  %v3232_v39 = vpop.eup %3231 }
 0x17b   :  { %3239 = vrcp.f32 %v2187_v47  ;;  %v1500_v58 = vmul.f32 %v3232_v39, %v4258_v21  ;;  %v2943_v39 = vunpack.i.h.bf16 %v3904_v27 }
 0x17c   :  { %v2378_v34 = vpack.c.bf16 %v2314_v31, %v2314_v31  ;;  %v1183_v37 = vsub.f32 0.0, %v4313_v32  ;;  %v4320_v38 = vadd.f32 %v4148_v51, %v1865_v36  ;;  %v2942_v36 = vunpack.i.l.bf16 %v3904_v27 }
 0x17e   :  { %v3234_v40 = vpop.eup %3233  ;;  %2443 = vst.msk [vmem:[#allocation8 + $0x18] sm:$0xf] %vm2436_vm2, %v2378_v34  ;;  %v1276_v53 = vmul.f32 1.442695, %v1183_v37  ;;  %v1997_v44 = vsub.f32 0.0, %v4320_v38  ;;  %v485_v50 = vpop.f32.mrf.mxu0  ;;  %v988_v27 = vsel %vm304_vm0, %v4261_v7, %v2942_v36 }
 0x17f   :  { %v3236_v20 = vpop.eup %3235  ;;  %v984_v14 = vsel %vm304_vm0, %v485_v50, %v3087_v33 }
 0x180   :  { %v3238_v42 = vpop.eup %3237  ;;  %v1501_v19 = vmul.f32 %v3236_v20, %v4274_v60  ;;  %3241 = vpow2.f32 %v1276_v53  ;;  %v2070_v41 = vmul.f32 1.442695, %v1997_v44  ;;  %v1052_v10 = vmul.f32 %v4230_v63, %v984_v14  ;;  %v4337_v3 = vpop.f32.mrf.mxu3 }
 0x181   :  { %v3240_v8 = vpop.eup %3239  ;;  %v2188_v61 = vadd.f32 1.0, %v3238_v42  ;;  %v1717_v62 = vpop.f32.mrf.mxu1  ;;  %v1374_v60 = vadd.f32 1.0, %v3234_v40  ;;  %v2932_v14 = vunpack.i.l.bf16 %v3875_v9 }
 0x182   :  { %v2315_v17 = vmul.f32 %v3240_v8, %v4281_v25  ;;  %3243 = vpow2.f32 %v2070_v41  ;;  %v4334_v0 = vadd.f32 %v4234_v5, %v1052_v10  ;;  %v1866_v52 = vmul.f32 %v4141_v46, %v1717_v62 }
 0x183   :  { %3245 = vrcp.f32 %v2188_v61  ;;  %v1551_v54 = vpack.c.bf16 %v1501_v19, %v1500_v58  ;;  %v989_v61 = vsel %vm304_vm0, %v4277_v18, %v2943_v39 }
 0x184   :  { %v2379_v4 = vpack.c.bf16 %v2315_v17, %v2315_v17  ;;  %v1184_v21 = vsub.f32 0.0, %v4334_v0  ;;  %v4341_v11 = vadd.f32 %v4148_v51, %v1866_v52  ;;  %3247 = vrcp.f32 %v1374_v60  ;;  %v2753_v60 = vld [vmem:[%s5009_s0 + $0xe0] sm:$0xff] }
 0x185   :  { %2706 = vmatmul.msk.bf16.gmra.mxu1 %vm1586_vm1, %v1551_v54  ;;  %v1056_v52 = vmul.f32 %v4230_v63, %v988_v27  ;;  %2681 = vmatmul.msk.bf16.gmra.mxu3 %vm304_vm0, %v2753_v60 }
 0x186   :  { %v3242_v25 = vpop.eup %3241  ;;  %2444 = vst.msk [vmem:[#allocation8 + $0x1c] sm:$0xf] %vm2436_vm2, %v2379_v4  ;;  %v1278_v12 = vmul.f32 1.442695, %v1184_v21  ;;  %v1998_v56 = vsub.f32 0.0, %v4341_v11  ;;  %v487_v47 = vpop.f32.mrf.mxu0 }
 0x187   :  { %v1375_v16 = vadd.f32 1.0, %v3242_v25  ;;  %v985_v23 = vsel %vm304_vm0, %v487_v47, %v3088_v2  ;;  %v4384_v36 = vadd.f32 %v4234_v5, %v1056_v52 }
 0x188   :  { %v3244_v31 = vpop.eup %3243  ;;  %3249 = vpow2.f32 %v1278_v12  ;;  %v2072_v33 = vmul.f32 1.442695, %v1998_v56  ;;  %v1053_v34 = vmul.f32 %v4230_v63, %v985_v23  ;;  %v4356_v28 = vpop.f32.mrf.mxu3  ;;  %v1057_v56 = vmul.f32 %v4230_v63, %v989_v61 }
 0x189   :  { %v3246_v37 = vpop.eup %3245  ;;  %3251 = vrcp.f32 %v1375_v16  ;;  %v2189_v40 = vadd.f32 1.0, %v3244_v31  ;;  %v1719_v53 = vpop.f32.mrf.mxu1 }
 0x18a   :  { %v2316_v44 = vmul.f32 %v3246_v37, %v4304_v43  ;;  %3253 = vpow2.f32 %v2072_v33  ;;  %v4352_v50 = vadd.f32 %v4234_v5, %v1053_v34  ;;  %v1867_v20 = vmul.f32 %v4141_v46, %v1719_v53  ;;  %v3248_v43 = vpop.eup %3247 }
 0x18b   :  { %3255 = vrcp.f32 %v2189_v40  ;;  %v1502_v18 = vmul.f32 %v3248_v43, %v4297_v26  ;;  %v4394_v40 = vadd.f32 %v4234_v5, %v1057_v56 }
 0x18c   :  { %v2380_v42 = vpack.c.bf16 %v2316_v44, %v2316_v44  ;;  %v1185_v19 = vsub.f32 0.0, %v4352_v50  ;;  %v4362_v41 = vadd.f32 %v4148_v51, %v1867_v20 }
 0x18e   :  { %v3250_v10 = vpop.eup %3249  ;;  %2445 = vst.msk [vmem:[#allocation8 + $0x20] sm:$0xf] %vm2436_vm2, %v2380_v42  ;;  %v1280_v8 = vmul.f32 1.442695, %v1185_v19  ;;  %v1999_v58 = vsub.f32 0.0, %v4362_v41  ;;  %v490_v62 = vpop.f32.mrf.mxu0  ;;  %v1188_v42 = vsub.f32 0.0, %v4384_v36 }
 0x18f   :  { %v3252_v17 = vpop.eup %3251  ;;  %v986_v7 = vsel %vm304_vm0, %v490_v62, %v2932_v14  ;;  %v1376_v31 = vadd.f32 1.0, %v3250_v10  ;;  %v1189_v62 = vsub.f32 0.0, %v4394_v40 }
 0x190   :  { %v3254_v2 = vpop.eup %3253  ;;  %v1503_v54 = vmul.f32 %v3252_v17, %v4313_v32  ;;  %3257 = vpow2.f32 %v1280_v8  ;;  %v2074_v4 = vmul.f32 1.442695, %v1999_v58  ;;  %v1054_v21 = vmul.f32 %v4230_v63, %v986_v7  ;;  %v4386_v33 = vpop.f32.mrf.mxu3 }
 0x191   :  { %v3256_v25 = vpop.eup %3255  ;;  %v2190_v12 = vadd.f32 1.0, %v3254_v2  ;;  %v1722_v47 = vpop.f32.mrf.mxu1  ;;  %v2952_v58 = vunpack.i.l.bf16 %v3925_v55  ;;  %v1286_v2 = vmul.f32 1.442695, %v1188_v42 }
 0x192   :  { %v2317_v16 = vmul.f32 %v3256_v25, %v4320_v38  ;;  %3259 = vpow2.f32 %v2074_v4  ;;  %v4380_v23 = vadd.f32 %v4234_v5, %v1054_v21  ;;  %v1868_v32 = vmul.f32 %v4141_v46, %v1722_v47 }
 0x193   :  { %3261 = vrcp.f32 %v2190_v12  ;;  %v1552_v26 = vpack.c.bf16 %v1503_v54, %v1502_v18  ;;  %v2933_v38 = vunpack.i.h.bf16 %v3875_v9  ;;  %v1288_v12 = vmul.f32 1.442695, %v1189_v62 }
 0x194   :  { %v2381_v34 = vpack.c.bf16 %v2317_v16, %v2317_v16  ;;  %v1186_v37 = vsub.f32 0.0, %v4380_v23  ;;  %v4390_v39 = vadd.f32 %v4148_v51, %v1868_v32  ;;  %3263 = vrcp.f32 %v1376_v31 }
 0x195   :  { %2707 = vmatmul.msk.bf16.gmra.mxu1 %vm1586_vm1, %v1552_v26  ;;  %v2953_v31 = vunpack.i.h.bf16 %v3925_v55  ;;  %v2754_v26 = vld [vmem:[%s5009_s0 + $0xe8] sm:$0xff] }
 0x196   :  { %v3258_v53 = vpop.eup %3257  ;;  %2446 = vst.msk [vmem:[#allocation8 + $0x24] sm:$0xf] %vm2436_vm2, %v2381_v34  ;;  %v1282_v44 = vmul.f32 1.442695, %v1186_v37  ;;  %v2000_v20 = vsub.f32 0.0, %v4390_v39  ;;  %v492_v14 = vpop.f32.mrf.mxu0  ;;  %2682 = vmatmul.msk.bf16.gmra.mxu3 %vm304_vm0, %v2754_v26 }
 0x197   :  { %v1377_v27 = vadd.f32 1.0, %v3258_v53  ;;  %v987_v19 = vsel %vm304_vm0, %v492_v14, %v2933_v38 }
 0x198   :  { %v3260_v43 = vpop.eup %3259  ;;  %3265 = vpow2.f32 %v1282_v44  ;;  %v2076_v9 = vmul.f32 1.442695, %v2000_v20  ;;  %v1055_v10 = vmul.f32 %v4230_v63, %v987_v19  ;;  %v4409_v54 = vpop.f32.mrf.mxu3 }
 0x199   :  { %v3262_v8 = vpop.eup %3261  ;;  %3267 = vrcp.f32 %v1377_v27  ;;  %v2191_v61 = vadd.f32 1.0, %v3260_v43  ;;  %v1724_v17 = vpop.f32.mrf.mxu1  ;;  %v991_v43 = vsel %vm304_vm0, %v4316_v6, %v2953_v31 }
 0x19a   :  { %v2318_v52 = vmul.f32 %v3262_v8, %v4341_v11  ;;  %3269 = vpow2.f32 %v2076_v9  ;;  %v4406_v7 = vadd.f32 %v4234_v5, %v1055_v10  ;;  %v1869_v60 = vmul.f32 %v4141_v46, %v1724_v17  ;;  %v3264_v18 = vpop.eup %3263 }
 0x19b   :  { %3271 = vrcp.f32 %v2191_v61  ;;  %v990_v11 = vsel %vm304_vm0, %v4300_v59, %v2952_v58  ;;  %v1504_v37 = vmul.f32 %v3264_v18, %v4334_v0  ;;  %v1059_v17 = vmul.f32 %v4230_v63, %v991_v43 }
 0x19c   :  { %v2382_v4 = vpack.c.bf16 %v2318_v52, %v2318_v52  ;;  %v1187_v21 = vsub.f32 0.0, %v4406_v7  ;;  %v4413_v25 = vadd.f32 %v4148_v51, %v1869_v60  ;;  %3273 = vpow2.f32 %v1286_v2 }
 0x19d   :  { %v1058_v20 = vmul.f32 %v4230_v63, %v990_v11  ;;  %v2962_v18 = vunpack.i.l.bf16 %v3978_v57 }
 0x19e   :  { %v3266_v56 = vpop.eup %3265  ;;  %2447 = vst.msk [vmem:[#allocation8 + $0x28] sm:$0xf] %vm2436_vm2, %v2382_v4  ;;  %v1284_v47 = vmul.f32 1.442695, %v1187_v21  ;;  %v2001_v16 = vsub.f32 0.0, %v4413_v25 }
 0x19f   :  { %v3268_v32 = vpop.eup %3267  ;;  %v1378_v19 = vadd.f32 1.0, %v3266_v56  ;;  %v4437_v8 = vadd.f32 %v4234_v5, %v1058_v20 }
 0x1a0   :  { %v3270_v34 = vpop.eup %3269  ;;  %v1505_v38 = vmul.f32 %v3268_v32, %v4352_v50  ;;  %3275 = vpow2.f32 %v1284_v47  ;;  %v2078_v53 = vmul.f32 1.442695, %v2001_v16  ;;  %v4429_v0 = vpop.f32.mrf.mxu3  ;;  %v4448_v47 = vadd.f32 %v4234_v5, %v1059_v17 }
 0x1a1   :  { %v3272_v44 = vpop.eup %3271  ;;  %3277 = vpow2.f32 %v1288_v12  ;;  %v2192_v59 = vadd.f32 1.0, %v3270_v34  ;;  %v1727_v14 = vpop.f32.mrf.mxu1  ;;  %v1190_v2 = vsub.f32 0.0, %v4437_v8 }
 0x1a2   :  { %v2319_v55 = vmul.f32 %v3272_v44, %v4362_v41  ;;  %3279 = vpow2.f32 %v2078_v53  ;;  %v1870_v42 = vmul.f32 %v4141_v46, %v1727_v14  ;;  %v1553_v27 = vpack.c.bf16 %v1505_v38, %v1504_v37  ;;  %v3274_v10 = vpop.eup %3273  ;;  %v2755_v44 = vld [vmem:[%s5009_s0 + $0xf0] sm:$0xff] }
 0x1a3   :  { %3281 = vrcp.f32 %v2192_v59  ;;  %v1380_v11 = vadd.f32 1.0, %v3274_v10  ;;  %v2963_v37 = vunpack.i.h.bf16 %v3978_v57  ;;  %v1290_v38 = vmul.f32 1.442695, %v1190_v2 }
 0x1a4   :  { %v2383_v50 = vpack.c.bf16 %v2319_v55, %v2319_v55  ;;  %v4434_v9 = vadd.f32 %v4148_v51, %v1870_v42  ;;  %3283 = vrcp.f32 %v1378_v19  ;;  %v1191_v20 = vsub.f32 0.0, %v4448_v47 }
 0x1a5   :  { %2708 = vmatmul.msk.bf16.gmra.mxu1 %vm1586_vm1, %v1553_v27 }
 0x1a6   :  { %v3276_v41 = vpop.eup %3275  ;;  %2448 = vst.msk [vmem:[#allocation8 + $0x2c] sm:$0xf] %vm2436_vm2, %v2383_v50  ;;  %v2002_v58 = vsub.f32 0.0, %v4434_v9  ;;  %v993_v50 = vsel %vm304_vm0, %v4356_v28, %v2963_v37  ;;  %2683 = vmatmul.msk.bf16.gmra.mxu3 %vm304_vm0, %v2755_v44 }
 0x1a7   :  { %v3278_v61 = vpop.eup %3277  ;;  %v1379_v62 = vadd.f32 1.0, %v3276_v41 }
 0x1a8   :  { %v3280_v6 = vpop.eup %3279  ;;  %v2080_v52 = vmul.f32 1.442695, %v2002_v58  ;;  %v4450_v16 = vpop.f32.mrf.mxu3  ;;  %v1381_v32 = vadd.f32 1.0, %v3278_v61  ;;  %v1061_v61 = vmul.f32 %v4230_v63, %v993_v50 }
 0x1a9   :  { %v3282_v60 = vpop.eup %3281  ;;  %3285 = vrcp.f32 %v1379_v62  ;;  %v2193_v4 = vadd.f32 1.0, %v3280_v6  ;;  %v1729_v21 = vpop.f32.mrf.mxu1 }
 0x1aa   :  { %v2320_v12 = vmul.f32 %v3282_v60, %v4390_v39  ;;  %3287 = vpow2.f32 %v2080_v52  ;;  %v1871_v56 = vmul.f32 %v4141_v46, %v1729_v21  ;;  %v3284_v34 = vpop.eup %3283  ;;  %v992_v39 = vsel %vm304_vm0, %v4337_v3, %v2962_v18 }
 0x1ab   :  { %3289 = vrcp.f32 %v2193_v4  ;;  %v1506_v57 = vmul.f32 %v3284_v34, %v4380_v23  ;;  %v1060_v19 = vmul.f32 %v4230_v63, %v992_v39  ;;  %v4485_v4 = vadd.f32 %v4234_v5, %v1061_v61  ;;  %v4515_v61 = vld [vmem:[#allocation7] ss:$0 sm:$0xff] }
 0x1ac   :  { %v2384_v31 = vpack.c.bf16 %v2320_v12, %v2320_v12  ;;  %v4453_v26 = vadd.f32 %v4148_v51, %v1871_v56  ;;  %3291 = vrcp.f32 %v1380_v11 }
 0x1ad   :  { %3293 = vrcp.f32 %v1381_v32  ;;  %v4480_v6 = vadd.f32 %v4234_v5, %v1060_v19 }
 0x1ae   :  { %2449 = vst.msk [vmem:[#allocation8 + $0x30] sm:$0xf] %vm2436_vm2, %v2384_v31  ;;  %v2003_v53 = vsub.f32 0.0, %v4453_v26  ;;  %3295 = vpow2.f32 %v1290_v38 }
 0x1af   :  { %v3286_v59 = vpop.eup %3285  ;;  %v1192_v12 = vsub.f32 0.0, %v4480_v6 }
 0x1b0   :  { %v3288_v14 = vpop.eup %3287  ;;  %v2082_v55 = vmul.f32 1.442695, %v2003_v53  ;;  %v1507_v42 = vmul.f32 %v3286_v59, %v4406_v7  ;;  %v1292_v7 = vmul.f32 1.442695, %v1191_v20  ;;  %v4477_v28 = vpop.f32.mrf.mxu3  ;;  %v1193_v53 = vsub.f32 0.0, %v4485_v4 }
 0x1b1   :  { %v3290_v27 = vpop.eup %3289  ;;  %v2194_v3 = vadd.f32 1.0, %v3288_v14  ;;  %v1732_v43 = vpop.f32.mrf.mxu1  ;;  %v2972_v59 = vunpack.i.l.bf16 %v4002_v35  ;;  %v1294_v20 = vmul.f32 1.442695, %v1192_v12 }
 0x1b2   :  { %v2321_v10 = vmul.f32 %v3290_v27, %v4413_v25  ;;  %3297 = vpow2.f32 %v2082_v55  ;;  %v1872_v41 = vmul.f32 %v4141_v46, %v1732_v43  ;;  %v1554_v58 = vpack.c.bf16 %v1507_v42, %v1506_v57  ;;  %v3292_v17 = vpop.eup %3291 }
 0x1b3   :  { %3299 = vrcp.f32 %v2194_v3  ;;  %v3294_v25 = vpop.eup %3293  ;;  %v1508_v34 = vmul.f32 %v3292_v17, %v4384_v36 }
 0x1b4   :  { %v2385_v23 = vpack.c.bf16 %v2321_v10, %v2321_v10  ;;  %v4474_v62 = vadd.f32 %v4148_v51, %v1872_v41  ;;  %2709 = vmatmul.msk.bf16.vlgmr.msra.gmra.mxu2 %vm1586_vm1, %v1554_v58  ;;  %v3296_v60 = vpop.eup %3295  ;;  %3301 = vpow2.f32 %v1292_v7  ;;  %v1509_v37 = vmul.f32 %v3294_v25, %v4394_v40  ;;  %v2756_v40 = vld [vmem:[%s5009_s0 + $0xf8] sm:$0xff]  ;;  %v4511_v41 = vld [vmem:[#allocation5] ss:$0 sm:$0xff] }
 0x1b5   :  { %v1382_v38 = vadd.f32 1.0, %v3296_v60 }
 0x1b6   :  { %2450 = vst.msk [vmem:[#allocation8 + $0x34] sm:$0xf] %vm2436_vm2, %v2385_v23  ;;  %v2004_v52 = vsub.f32 0.0, %v4474_v62  ;;  %v1555_v42 = vpack.c.bf16 %v1509_v37, %v1508_v34  ;;  %2684 = vmatmul.msk.bf16.gmra.mxu3 %vm304_vm0, %v2756_v40 }
 0x1b8   :  { %v3298_v2 = vpop.eup %3297  ;;  %v2084_v21 = vmul.f32 1.442695, %v2004_v52  ;;  %v4497_v14 = vpop.f32.mrf.mxu3 }
 0x1b9   :  { %v3300_v18 = vpop.eup %3299  ;;  %v2195_v56 = vadd.f32 1.0, %v3298_v2  ;;  %v1734_v11 = vpop.f32.mrf.mxu1 }
 0x1ba   :  { %v2322_v32 = vmul.f32 %v3300_v18, %v4434_v9  ;;  %3303 = vpow2.f32 %v2084_v21  ;;  %v1873_v31 = vmul.f32 %v4141_v46, %v1734_v11  ;;  %v3302_v9 = vpop.eup %3301  ;;  %v2973_v46 = vunpack.i.h.bf16 %v4002_v35 }
 0x1bb   :  { %3305 = vrcp.f32 %v2195_v56  ;;  %v1383_v3 = vadd.f32 1.0, %v3302_v9  ;;  %v994_v35 = vsel %vm304_vm0, %v4386_v33, %v2972_v59 }
 0x1bc   :  { %v2386_v39 = vpack.c.bf16 %v2322_v32, %v2322_v32  ;;  %v4494_v44 = vadd.f32 %v4148_v51, %v1873_v31  ;;  %3307 = vrcp.f32 %v1382_v38  ;;  %v1296_v51 = vmul.f32 1.442695, %v1193_v53 }
 0x1bd   :  { %3309 = vpow2.f32 %v1294_v20  ;;  %v995_v10 = vsel %vm304_vm0, %v4409_v54, %v2973_v46  ;;  %v1062_v7 = vmul.f32 %v4230_v63, %v994_v35  ;;  %v2982_v20 = vunpack.i.l.bf16 %v4029_v1 }
 0x1be   :  { %2451 = vst.msk [vmem:[#allocation8 + $0x38] sm:$0xf] %vm2436_vm2, %v2386_v39  ;;  %v2005_v36 = vsub.f32 0.0, %v4494_v44 }
 0x1bf   :  { %v4527_v2 = vadd.f32 %v4234_v5, %v1062_v7  ;;  %v996_v35 = vsel %vm304_vm0, %v4429_v0, %v2982_v20 }
 0x1c0   :  { %v3304_v55 = vpop.eup %3303  ;;  %v2086_v57 = vmul.f32 1.442695, %v2005_v36  ;;  %v4524_v52 = vpop.f32.mrf.mxu3 }
 0x1c1   :  { %v3306_v27 = vpop.eup %3305  ;;  %v2196_v19 = vadd.f32 1.0, %v3304_v55  ;;  %v1737_v50 = vpop.f32.mrf.mxu1  ;;  %v1194_v53 = vsub.f32 0.0, %v4527_v2 }
 0x1c2   :  { %v2323_v43 = vmul.f32 %v3306_v27, %v4453_v26  ;;  %3311 = vpow2.f32 %v2086_v57  ;;  %v1874_v58 = vmul.f32 %v4511_v41, %v1737_v50  ;;  %v1063_v26 = vmul.f32 %v4230_v63, %v995_v10  ;;  %v3308_v54 = vpop.eup %3307  ;;  %v2918_v10 = vld [vmem:[%s5010_s1 + $0xf8] sm:$0xff]  }
 0x1c3   :  { %3313 = vrcp.f32 %v2196_v19  ;;  %v3310_v25 = vpop.eup %3309  ;;  %v1510_v36 = vmul.f32 %v3308_v54, %v4437_v8  ;;  %v1298_v57 = vmul.f32 1.442695, %v1194_v53  ;;  %v2886_v0 = vunpack.c.l.bf16 %v2918_v10 }
 0x1c4   :  { %v2387_v23 = vpack.c.bf16 %v2323_v43, %v2323_v43  ;;  %3315 = vpow2.f32 %v1296_v51  ;;  %v4518_v33 = vadd.f32 %v4515_v61, %v1874_v58  ;;  %2710 = vmatmul.msk.bf16.gmra.mxu2 %vm1586_vm1, %v1555_v42  ;;  %v4530_v56 = vadd.f32 %v4234_v5, %v1063_v26 }
 0x1c5   :  { %3317 = vrcp.f32 %v1383_v3  ;;  %v1384_v38 = vadd.f32 1.0, %v3310_v25  ;;  %v2983_v51 = vunpack.i.h.bf16 %v4029_v1  ;;  %v2887_v26 = vunpack.c.h.bf16 %v2918_v10 }
 0x1c6   :  { %2452 = vst.msk [vmem:[#allocation8 + $0x3c] sm:$0xf] %vm2436_vm2, %v2387_v23  ;;  %v2006_v17 = vsub.f32 0.0, %v4518_v33  ;;  %v1195_v46 = vsub.f32 0.0, %v4530_v56  ;;  %v1064_v23 = vmul.f32 %v4230_v63, %v996_v35 }
 0x1c8   :  { %v3312_v60 = vpop.eup %3311  ;;  %v2088_v21 = vmul.f32 1.442695, %v2006_v17  ;;  %v1300_v3 = vmul.f32 1.442695, %v1195_v46  ;;  %v4547_v50 = vpop.f32.mrf.mxu3 }
 0x1c9   :  { %v3314_v18 = vpop.eup %3313  ;;  %v2197_v12 = vadd.f32 1.0, %v3312_v60  ;;  %v1739_v11 = vpop.f32.mrf.mxu1  ;;  %v3079_v60 = vpack.i.bf16 %v2887_v26, %v2886_v0 }
 0x1ca   :  { %v3316_v32 = vpop.eup %3315  ;;  %v2324_v31 = vmul.f32 %v3314_v18, %v4474_v62  ;;  %3319 = vpow2.f32 %v2088_v21  ;;  %v1875_v34 = vmul.f32 %v4511_v41, %v1739_v11  ;;  %v4564_v18 = vadd.f32 %v4234_v5, %v1064_v23 }
 0x1cb   :  { %v3318_v37 = vpop.eup %3317  ;;  %3321 = vrcp.f32 %v2197_v12  ;;  %v1385_v9 = vadd.f32 1.0, %v3316_v32  ;;  %3080 = vrot.lane.b32.xlu0 %v3079_v60, %s3718_s28 }
 0x1cc   :  { %v2388_v39 = vpack.c.bf16 %v2324_v31, %v2324_v31  ;;  %v4536_v59 = vadd.f32 %v4515_v61, %v1875_v34  ;;  %v1511_v40 = vmul.f32 %v3318_v37, %v4448_v47  ;;  %3323 = vrcp.f32 %v1384_v38 }
 0x1cd   :  { %3325 = vrcp.f32 %v1385_v9  ;;  %v1196_v46 = vsub.f32 0.0, %v4564_v18 }
 0x1ce   :  { %2453 = vst.msk [vmem:[#allocation8 + $0x40] sm:$0xf] %vm2436_vm2, %v2388_v39  ;;  %v2007_v62 = vsub.f32 0.0, %v4536_v59  ;;  %v1556_v47 = vpack.c.bf16 %v1511_v40, %v1510_v36  ;;  %v2992_v39 = vunpack.i.l.bf16 %v4062_v45 }
 0x1d0   :  { %v3320_v55 = vpop.eup %3319  ;;  %v2090_v42 = vmul.f32 1.442695, %v2007_v62  ;;  %v4571_v20 = vpop.f32.mrf.mxu3 }
 0x1d1   :  { %v3322_v27 = vpop.eup %3321  ;;  %v2198_v19 = vadd.f32 1.0, %v3320_v55 }
 0x1d2   :  { %v2325_v43 = vmul.f32 %v3322_v27, %v4494_v44  ;;  %3327 = vpow2.f32 %v2090_v42  ;;  %v1742_v8 = vpop.f32.mrf.mxu1  ;;  %v997_v44 = vsel %vm304_vm0, %v4450_v16, %v2983_v51  ;;  %v3324_v54 = vpop.eup %3323  ;;  %v1302_v27 = vmul.f32 1.442695, %v1196_v46 }
 0x1d3   :  { %3329 = vrcp.f32 %v2198_v19  ;;  %v1876_v1 = vmul.f32 %v4511_v41, %v1742_v8  ;;  %v3326_v17 = vpop.eup %3325  ;;  %v1065_v12 = vmul.f32 %v4230_v63, %v997_v44  ;;  %v1512_v55 = vmul.f32 %v3324_v54, %v4480_v6 }
 0x1d4   :  { %3331 = vpow2.f32 %v1298_v57  ;;  %v2389_v58 = vpack.c.bf16 %v2325_v43, %v2325_v43  ;;  %2711 = vmatmul.msk.bf16.gmra.mxu2 %vm1586_vm1, %v1556_v47  ;;  %v1513_v51 = vmul.f32 %v3326_v17, %v4485_v4  ;;  %v998_v57 = vsel %vm304_vm0, %v4477_v28, %v2992_v39 }
 0x1d5   :  { %3333 = vpow2.f32 %v1300_v3  ;;  %v4559_v7 = vadd.f32 %v4515_v61, %v1876_v1  ;;  %v4575_v62 = vadd.f32 %v4234_v5, %v1065_v12  ;;  %v2993_v19 = vunpack.i.h.bf16 %v4062_v45 }
 0x1d6   :  { %2454 = vst.msk [vmem:[#allocation8 + $0x44] sm:$0xf] %vm2436_vm2, %v2389_v58  ;;  %v1066_v6 = vmul.f32 %v4230_v63, %v998_v57  ;;  %v1557_v47 = vpack.c.bf16 %v1513_v51, %v1512_v55  ;;  %v4600_v63 = vld [vmem:[#allocation2] ss:$0 sm:$0xff]  ;;  %v3002_v12 = vunpack.i.l.bf16 %v4085_v15 }
 0x1d7   :  { %v2008_v25 = vsub.f32 0.0, %v4559_v7  ;;  %v1197_v5 = vsub.f32 0.0, %v4575_v62  ;;  %v999_v45 = vsel %vm304_vm0, %v4497_v14, %v2993_v19  ;;  %v4609_v14 = vld [vmem:[%s5012_s3] ss:$0 sm:$0xff]  ;;  %s3719_s3 = smov [#allocation8]  }
 0x1d8   :  { %v3328_v21 = vpop.eup %3327  ;;  %v4603_v0 = vadd.f32 %v4600_v63, %v1066_v6  ;;  %v1067_v17 = vmul.f32 %v4609_v14, %v999_v45  ;;  %s2505_s26 = sshll.u32 %s3719_s3, 4  ;;  %s2506_s26 = int_to_ptr.vmem [resolvable:$true] %s2505_s26 }
 0x1d9   :  { %v3330_v11 = vpop.eup %3329  ;;  %v2199_v32 = vadd.f32 1.0, %v3328_v21  ;;  %v2092_v16 = vmul.f32 1.442695, %v2008_v25  ;;  %v1304_v58 = vmul.f32 1.442695, %v1197_v5 }
 0x1da   :  { %v3332_v31 = vpop.eup %3331  ;;  %v2326_v34 = vmul.f32 %v3330_v11, %v4518_v33  ;;  %v1744_v37 = vpop.f32.mrf.mxu1  ;;  %v1198_v11 = vsub.f32 0.0, %v4603_v0  ;;  %v4618_v39 = vadd.f32 %v4600_v63, %v1067_v17 }
 0x1db   :  { %v3334_v38 = vpop.eup %3333  ;;  %3335 = vrcp.f32 %v2199_v32  ;;  %v1877_v53 = vmul.f32 %v4511_v41, %v1744_v37  ;;  %v1386_v36 = vadd.f32 1.0, %v3332_v31 }
 0x1dc   :  { %v2390_v9 = vpack.c.bf16 %v2326_v34, %v2326_v34  ;;  %3337 = vpow2.f32 %v2092_v16  ;;  %v1387_v33 = vadd.f32 1.0, %v3334_v38  ;;  %v3003_v34 = vunpack.i.h.bf16 %v4085_v15 }
 0x1dd   :  { %v4578_v40 = vadd.f32 %v4515_v61, %v1877_v53  ;;  %3339 = vrcp.f32 %v1386_v36  ;;  %v1306_v55 = vmul.f32 1.442695, %v1198_v11  ;;  %v1000_v15 = vsel %vm304_vm0, %v4524_v52, %v3002_v12 }
 0x1de   :  { %2455 = vst.msk [vmem:[#allocation8 + $0x48] sm:$0xf] %vm2436_vm2, %v2390_v9  ;;  %3341 = vrcp.f32 %v1387_v33  ;;  %v1001_v57 = vsel %vm304_vm0, %v4547_v50, %v3003_v34 }
 0x1df   :  { %v2009_v42 = vsub.f32 0.0, %v4578_v40 }
 0x1e1   :  { %v3336_v3 = vpop.eup %3335  ;;  %v2094_v35 = vmul.f32 1.442695, %v2009_v42 }
 0x1e2   :  { %v3338_v43 = vpop.eup %3337  ;;  %v2327_v8 = vmul.f32 %v3336_v3, %v4536_v59  ;;  %v1747_v4 = vpop.f32.mrf.mxu1  ;;  %v1068_v3 = vmul.f32 %v4609_v14, %v1000_v15 }
 0x1e3   :  { %v2200_v1 = vadd.f32 1.0, %v3338_v43  ;;  %3343 = vpow2.f32 %v2094_v35  ;;  %v1878_v28 = vmul.f32 %v4511_v41, %v1747_v4  ;;  %v4597_v59 = vpop.f32.mrf.mxu3  ;;  %v3340_v44 = vpop.eup %3339  ;;  %v1069_v35 = vmul.f32 %v4609_v14, %v1001_v57 }
 0x1e4   :  { %3345 = vpow2.f32 %v1302_v27  ;;  %v2391_v10 = vpack.c.bf16 %v2327_v8, %v2327_v8  ;;  %2712 = vmatmul.msk.bf16.gmra.mxu2 %vm1586_vm1, %v1557_v47  ;;  %v3342_v54 = vpop.eup %3341  ;;  %v1514_v46 = vmul.f32 %v3340_v44, %v4527_v2  ;;  %v1199_v27 = vsub.f32 0.0, %v4618_v39 }
 0x1e5   :  { %3347 = vrcp.f32 %v2200_v1  ;;  %v4595_v23 = vadd.f32 %v4515_v61, %v1878_v28  ;;  %v1515_v51 = vmul.f32 %v3342_v54, %v4530_v56  ;;  %v4640_v1 = vadd.f32 %v4600_v63, %v1068_v3 }
 0x1e6   :  { %2456 = vst.msk [vmem:[#allocation8 + $0x4c] sm:$0xf] %vm2436_vm2, %v2391_v10  ;;  %3349 = vpow2.f32 %v1304_v58  ;;  %v1308_v4 = vmul.f32 1.442695, %v1199_v27  ;;  %v4646_v10 = vadd.f32 %v4600_v63, %v1069_v35 }
 0x1e7   :  { %v2010_v26 = vsub.f32 0.0, %v4595_v23  ;;  %v1558_v8 = vpack.c.bf16 %v1515_v51, %v1514_v46 }
 0x1e8   :  { %v1201_v12 = vsub.f32 0.0, %v4646_v10 }
 0x1e9   :  { %v3344_v25 = vpop.eup %3343  ;;  %v2096_v60 = vmul.f32 1.442695, %v2010_v26  ;;  %v1200_v26 = vsub.f32 0.0, %v4640_v1 }
 0x1ea   :  { %v3346_v21 = vpop.eup %3345  ;;  %v2201_v32 = vadd.f32 1.0, %v3344_v25  ;;  %v1749_v16 = vpop.f32.mrf.mxu1 }
 0x1eb   :  { %v3348_v31 = vpop.eup %3347  ;;  %3351 = vpow2.f32 %v2096_v60  ;;  %v1879_v37 = vmul.f32 %v4511_v41, %v1749_v16  ;;  %v1388_v53 = vadd.f32 1.0, %v3346_v21  ;;  %v4630_v42 = vpop.f32.mrf.mxu3  ;;  %v3012_v60 = vunpack.i.l.bf16 %v4106_v48 }
 0x1ec   :  { %v2328_v38 = vmul.f32 %v3348_v31, %v4559_v7  ;;  %3353 = vrcp.f32 %v2201_v32  ;;  %v3350_v36 = vpop.eup %3349  ;;  %v3013_v16 = vunpack.i.h.bf16 %v4106_v48 }
 0x1ed   :  { %v4621_v9 = vadd.f32 %v4515_v61, %v1879_v37  ;;  %3355 = vrcp.f32 %v1388_v53  ;;  %v1389_v5 = vadd.f32 1.0, %v3350_v36  ;;  %v1310_v53 = vmul.f32 1.442695, %v1200_v26 }
 0x1ee   :  { %v2392_v33 = vpack.c.bf16 %v2328_v38, %v2328_v38  ;;  %3357 = vpow2.f32 %v1306_v55  ;;  %v1002_v55 = vsel %vm304_vm0, %v4571_v20, %v3012_v60  ;;  %v1003_v51 = vsel %vm304_vm0, %v4597_v59, %v3013_v16 }
 0x1ef   :  { %v2011_v7 = vsub.f32 0.0, %v4621_v9  ;;  %v1070_v27 = vmul.f32 %v4609_v14, %v1002_v55  ;;  %v3023_v55 = vunpack.i.h.bf16 %v4124_v13 }
 0x1f0   :  { %2457 = vst.msk [vmem:[#allocation8 + $0x50] sm:$0xf] %vm2436_vm2, %v2392_v33  ;;  %v1312_v33 = vmul.f32 1.442695, %v1201_v12 }
 0x1f1   :  { %v3352_v2 = vpop.eup %3351  ;;  %v2098_v19 = vmul.f32 1.442695, %v2011_v7  ;;  %v4677_v35 = vadd.f32 %v4600_v63, %v1070_v27 }
 0x1f2   :  { %v3354_v52 = vpop.eup %3353  ;;  %v2202_v56 = vadd.f32 1.0, %v3352_v2  ;;  %v1752_v43 = vpop.f32.mrf.mxu1 }
 0x1f3   :  { %v2329_v50 = vmul.f32 %v3354_v52, %v4578_v40  ;;  %3359 = vpow2.f32 %v2098_v19  ;;  %v1880_v6 = vmul.f32 %v4511_v41, %v1752_v43  ;;  %v3356_v58 = vpop.eup %3355  ;;  %v4651_v17 = vpop.f32.mrf.mxu3 }
 0x1f4   :  { %3361 = vrcp.f32 %v2202_v56  ;;  %2713 = vmatmul.msk.bf16.gmra.mxu2 %vm1586_vm1, %v1558_v8  ;;  %v3358_v45 = vpop.eup %3357  ;;  %v1516_v15 = vmul.f32 %v3356_v58, %v4564_v18  ;;  %v1071_v18 = vmul.f32 %v4609_v14, %v1003_v51  ;;  %v1202_v58 = vsub.f32 0.0, %v4677_v35 }
 0x1f5   :  { %3363 = vrcp.f32 %v1389_v5  ;;  %v2393_v47 = vpack.c.bf16 %v2329_v50, %v2329_v50  ;;  %v4643_v28 = vadd.f32 %v4515_v61, %v1880_v6  ;;  %v1390_v37 = vadd.f32 1.0, %v3358_v45 }
 0x1f6   :  { %3365 = vpow2.f32 %v1308_v4  ;;  %v4683_v50 = vadd.f32 %v4600_v63, %v1071_v18  ;;  %v1314_v16 = vmul.f32 1.442695, %v1202_v58 }
 0x1f7   :  { %2458 = vst.msk [vmem:[#allocation8 + $0x54] sm:$0xf] %vm2436_vm2, %v2393_v47  ;;  %v2012_v40 = vsub.f32 0.0, %v4643_v28 }
 0x1f8   :  { %v1203_v26 = vsub.f32 0.0, %v4683_v50 }
 0x1f9   :  { %v3360_v44 = vpop.eup %3359  ;;  %v2100_v54 = vmul.f32 1.442695, %v2012_v40 }
 0x1fa   :  { %v3362_v25 = vpop.eup %3361  ;;  %v2203_v21 = vadd.f32 1.0, %v3360_v44  ;;  %v1754_v11 = vpop.f32.mrf.mxu1 }
 0x1fb   :  { %v3364_v32 = vpop.eup %3363  ;;  %v2330_v31 = vmul.f32 %v3362_v25, %v4595_v23  ;;  %3367 = vpow2.f32 %v2100_v54  ;;  %v1881_v34 = vmul.f32 %v4511_v41, %v1754_v11  ;;  %v4673_v59 = vpop.f32.mrf.mxu3 }
 0x1fc   :  { %3369 = vrcp.f32 %v2203_v21  ;;  %v3366_v36 = vpop.eup %3365  ;;  %v1517_v48 = vmul.f32 %v3364_v32, %v4575_v62 }
 0x1fd   :  { %v2394_v38 = vpack.c.bf16 %v2330_v31, %v2330_v31  ;;  %v4659_v46 = vadd.f32 %v4515_v61, %v1881_v34  ;;  %3371 = vrcp.f32 %v1390_v37  ;;  %v1391_v57 = vadd.f32 1.0, %v3366_v36 }
 0x1fe   :  { %3373 = vpow2.f32 %v1310_v53  ;;  %v1559_v3 = vpack.c.bf16 %v1517_v48, %v1516_v15  ;;  %v3022_v37 = vunpack.i.l.bf16 %v4124_v13 }
 0x1ff   :  { %2459 = vst.msk [vmem:[#allocation8 + $0x58] sm:$0xf] %vm2436_vm2, %v2394_v38  ;;  %v2013_v23 = vsub.f32 0.0, %v4659_v46  ;;  %3375 = vpow2.f32 %v1312_v33  ;;  %v1316_v38 = vmul.f32 1.442695, %v1203_v26 }
 0x200   :  { %v1004_v51 = vsel %vm304_vm0, %v4630_v42, %v3022_v37 }
 0x201   :  { %v3368_v7 = vpop.eup %3367  ;;  %v2102_v2 = vmul.f32 1.442695, %v2013_v23 }
 0x202   :  { %v3370_v5 = vpop.eup %3369  ;;  %v2204_v20 = vadd.f32 1.0, %v3368_v7  ;;  %v1757_v62 = vpop.f32.mrf.mxu1 }
 0x203   :  { %v2331_v19 = vmul.f32 %v3370_v5, %v4621_v9  ;;  %3377 = vpow2.f32 %v2102_v2  ;;  %v1882_v52 = vmul.f32 %v4511_v41, %v1757_v62  ;;  %v3372_v8 = vpop.eup %3371  ;;  %v4694_v34 = vpop.f32.mrf.mxu3  ;;  %v1072_v2 = vmul.f32 %v4609_v14, %v1004_v51 }
 0x204   :  { %3379 = vrcp.f32 %v2204_v20  ;;  %2714 = vmatmul.msk.bf16.gmra.mxu2 %vm1586_vm1, %v1559_v3  ;;  %v3374_v9 = vpop.eup %3373  ;;  %v1518_v53 = vmul.f32 %v3372_v8, %v4603_v0  ;;  %v1005_v5 = vsel %vm304_vm0, %v4651_v17, %v3023_v55 }
 0x205   :  { %3381 = vrcp.f32 %v1391_v57  ;;  %v2395_v56 = vpack.c.bf16 %v2331_v19, %v2331_v19  ;;  %v4680_v43 = vadd.f32 %v4515_v61, %v1882_v52  ;;  %v3376_v4 = vpop.eup %3375  ;;  %v1392_v60 = vadd.f32 1.0, %v3374_v9 }
 0x206   :  { %v1393_v11 = vadd.f32 1.0, %v3376_v4  ;;  %v1073_v19 = vmul.f32 %v4609_v14, %v1005_v5 }
 0x207   :  { %2460 = vst.msk [vmem:[#allocation8 + $0x5c] sm:$0xf] %vm2436_vm2, %v2395_v56  ;;  %v2014_v6 = vsub.f32 0.0, %v4680_v43  ;;  %v4719_v56 = vadd.f32 %v4600_v63, %v1072_v2 }
 0x208   :  { %v4724_v58 = vadd.f32 %v4600_v63, %v1073_v19 }
 0x209   :  { %v3378_v47 = vpop.eup %3377  ;;  %v2104_v40 = vmul.f32 1.442695, %v2014_v6 }
 0x20a   :  { %v3380_v45 = vpop.eup %3379  ;;  %v2205_v44 = vadd.f32 1.0, %v3378_v47  ;;  %v1759_v54 = vpop.f32.mrf.mxu1 }
 0x20b   :  { %v3382_v25 = vpop.eup %3381  ;;  %v2332_v21 = vmul.f32 %v3380_v45, %v4643_v28  ;;  %3383 = vpow2.f32 %v2104_v40  ;;  %v1883_v12 = vmul.f32 %v4511_v41, %v1759_v54  ;;  %v4715_v62 = vpop.f32.mrf.mxu3 }
 0x20c   :  { %3385 = vrcp.f32 %v2205_v44  ;;  %v1519_v36 = vmul.f32 %v3382_v25, %v4618_v39  ;;  %v1204_v44 = vsub.f32 0.0, %v4719_v56 }
 0x20d   :  { %v2396_v32 = vpack.c.bf16 %v2332_v21, %v2332_v21  ;;  %v4692_v31 = vadd.f32 %v4515_v61, %v1883_v12  ;;  %3387 = vrcp.f32 %v1392_v60  ;;  %v3032_v21 = vunpack.i.l.bf16 %v4143_v49 }
 0x20e   :  { %3389 = vrcp.f32 %v1393_v11  ;;  %v1560_v7 = vpack.c.bf16 %v1519_v36, %v1518_v53  ;;  %v1205_v12 = vsub.f32 0.0, %v4724_v58 }
 0x20f   :  { %2461 = vst.msk [vmem:[#allocation8 + $0x60] sm:$0xf] %vm2436_vm2, %v2396_v32  ;;  %v2015_v28 = vsub.f32 0.0, %v4692_v31  ;;  %3391 = vpow2.f32 %v1314_v16  ;;  %v3033_v32 = vunpack.i.h.bf16 %v4143_v49  ;;  %v1318_v16 = vmul.f32 1.442695, %v1204_v44 }
 0x210   :  { %3393 = vpow2.f32 %v1316_v38  ;;  %v1320_v55 = vmul.f32 1.442695, %v1205_v12  ;;  %v1006_v49 = vsel %vm304_vm0, %v4673_v59, %v3032_v21 }
 0x211   :  { %v3384_v33 = vpop.eup %3383  ;;  %v2106_v15 = vmul.f32 1.442695, %v2015_v28 }
 0x212   :  { %v3386_v48 = vpop.eup %3385  ;;  %v2206_v23 = vadd.f32 1.0, %v3384_v33  ;;  %v1762_v0 = vpop.f32.mrf.mxu1 }
 0x213   :  { %v2333_v39 = vmul.f32 %v3386_v48, %v4659_v46  ;;  %3395 = vpow2.f32 %v2106_v15  ;;  %v1884_v57 = vmul.f32 %v4511_v41, %v1762_v0  ;;  %v3388_v27 = vpop.eup %3387  ;;  %v4737_v38 = vpop.f32.mrf.mxu3  ;;  %v1007_v48 = vsel %vm304_vm0, %v4694_v34, %v3033_v32 }
 0x214   :  { %3397 = vrcp.f32 %v2206_v23  ;;  %2715 = vmatmul.msk.bf16.gmra.mxu2 %vm1586_vm1, %v1560_v7  ;;  %v3390_v42 = vpop.eup %3389  ;;  %v1520_v25 = vmul.f32 %v3388_v27, %v4640_v1  ;;  %v1075_v59 = vmul.f32 %v4609_v14, %v1007_v48 }
 0x215   :  { %v2397_v13 = vpack.c.bf16 %v2333_v39, %v2333_v39  ;;  %v4711_v20 = vadd.f32 %v4515_v61, %v1884_v57  ;;  %v3392_v18 = vpop.eup %3391  ;;  %v1521_v60 = vmul.f32 %v3390_v42, %v4646_v10 }
 0x216   :  { %v3394_v3 = vpop.eup %3393  ;;  %v1394_v40 = vadd.f32 1.0, %v3392_v18 }
 0x217   :  { %2462 = vst.msk [vmem:[#allocation8 + $0x64] sm:$0xf] %vm2436_vm2, %v2397_v13  ;;  %v2016_v46 = vsub.f32 0.0, %v4711_v20  ;;  %v1395_v54 = vadd.f32 1.0, %v3394_v3  ;;  %v1561_v36 = vpack.c.bf16 %v1521_v60, %v1520_v25  ;;  %v4761_v3 = vadd.f32 %v4600_v63, %v1075_v59 }
 0x219   :  { %v3396_v52 = vpop.eup %3395  ;;  %v2108_v8 = vmul.f32 1.442695, %v2016_v46 }
 0x21a   :  { %v3398_v17 = vpop.eup %3397  ;;  %v2207_v9 = vadd.f32 1.0, %v3396_v52  ;;  %v1764_v6 = vpop.f32.mrf.mxu1 }
 0x21b   :  { %v2334_v4 = vmul.f32 %v3398_v17, %v4680_v43  ;;  %3399 = vpow2.f32 %v2108_v8  ;;  %v1885_v47 = vmul.f32 %v4511_v41, %v1764_v6  ;;  %v4758_v46 = vpop.f32.mrf.mxu3  ;;  %v3042_v6 = vunpack.i.l.bf16 %v4172_v30 }
 0x21c   :  { %3401 = vrcp.f32 %v2207_v9 }
 0x21d   :  { %v2398_v45 = vpack.c.bf16 %v2334_v4, %v2334_v4  ;;  %v4728_v26 = vadd.f32 %v4515_v61, %v1885_v47  ;;  %3403 = vrcp.f32 %v1394_v40  ;;  %v3043_v40 = vunpack.i.h.bf16 %v4172_v30 }
 0x21e   :  { %3405 = vrcp.f32 %v1395_v54  ;;  %v1008_v12 = vsel %vm304_vm0, %v4715_v62, %v3042_v6 }
 0x21f   :  { %2463 = vst.msk [vmem:[#allocation8 + $0x68] sm:$0xf] %vm2436_vm2, %v2398_v45  ;;  %v2017_v43 = vsub.f32 0.0, %v4728_v26  ;;  %v1207_v45 = vsub.f32 0.0, %v4761_v3  ;;  %v1009_v30 = vsel %vm304_vm0, %v4737_v38, %v3043_v40 }
 0x221   :  { %v3400_v11 = vpop.eup %3399  ;;  %v2110_v37 = vmul.f32 1.442695, %v2017_v43 }
 0x222   :  { %v3402_v53 = vpop.eup %3401  ;;  %v2208_v1 = vadd.f32 1.0, %v3400_v11  ;;  %v1767_v10 = vpop.f32.mrf.mxu1  ;;  %v1324_v11 = vmul.f32 1.442695, %v1207_v45 }
 0x223   :  { %v2335_v28 = vmul.f32 %v3402_v53, %v4692_v31  ;;  %3407 = vpow2.f32 %v2110_v37  ;;  %v1886_v33 = vmul.f32 %v4511_v41, %v1767_v10  ;;  %v3404_v51 = vpop.eup %3403  ;;  %v1074_v31 = vmul.f32 %v4609_v14, %v1006_v49 }
 0x224   :  { %3409 = vrcp.f32 %v2208_v1  ;;  %2716 = vmatmul.msk.bf16.gmra.mxu2 %vm1586_vm1, %v1561_v36  ;;  %v3406_v7 = vpop.eup %3405  ;;  %v1076_v37 = vmul.f32 %v4609_v14, %v1008_v12 }
 0x225   :  { %3411 = vpow2.f32 %v1318_v16  ;;  %v2399_v15 = vpack.c.bf16 %v2335_v28, %v2335_v28  ;;  %v4747_v23 = vadd.f32 %v4515_v61, %v1886_v33  ;;  %v4755_v42 = vadd.f32 %v4600_v63, %v1074_v31  ;;  %v552_v16 = vpop.f32.mrf.mxu3 }
 0x226   :  { %3413 = vpow2.f32 %v1320_v55  ;;  %v1523_v9 = vmul.f32 %v3406_v7, %v4683_v50  ;;  %v4785_v38 = vadd.f32 %v4600_v63, %v1076_v37 }
 0x227   :  { %2464 = vst.msk [vmem:[#allocation8 + $0x6c] sm:$0xf] %vm2436_vm2, %v2399_v15  ;;  %v2018_v0 = vsub.f32 0.0, %v4747_v23  ;;  %v1206_v4 = vsub.f32 0.0, %v4755_v42 }
 0x228   :  { %v1208_v7 = vsub.f32 0.0, %v4785_v38 }
 0x229   :  { %v3408_v39 = vpop.eup %3407  ;;  %v2112_v57 = vmul.f32 1.442695, %v2018_v0  ;;  %v1322_v50 = vmul.f32 1.442695, %v1206_v4 }
 0x22a   :  { %v3410_v27 = vpop.eup %3409  ;;  %v2209_v13 = vadd.f32 1.0, %v3408_v39  ;;  %v1769_v2 = vpop.f32.mrf.mxu1 }
 0x22b   :  { %v3412_v34 = vpop.eup %3411  ;;  %v2336_v5 = vmul.f32 %v3410_v27, %v4711_v20  ;;  %3415 = vpow2.f32 %v2112_v57  ;;  %v1887_v18 = vmul.f32 %v4511_v41, %v1769_v2  ;;  %v1522_v20 = vmul.f32 %v3404_v51, %v4677_v35 }
 0x22c   :  { %3417 = vrcp.f32 %v2209_v13  ;;  %v3414_v8 = vpop.eup %3413  ;;  %v1396_v17 = vadd.f32 1.0, %v3412_v34  ;;  %v3052_v27 = vunpack.i.l.bf16 %v4204_v24  ;;  %v3053_v34 = vunpack.i.h.bf16 %v4204_v24 }
 0x22d   :  { %v2400_v19 = vpack.c.bf16 %v2336_v5, %v2336_v5  ;;  %v4764_v52 = vadd.f32 %v4515_v61, %v1887_v18  ;;  %v1397_v54 = vadd.f32 1.0, %v3414_v8  ;;  %v1562_v43 = vpack.c.bf16 %v1523_v9, %v1522_v20  ;;  %v4801_v2 = vpop.f32.mrf.mxu3 }
 0x22e   :  { %3419 = vrcp.f32 %v1396_v17  ;;  %v1010_v6 = vsel %vm304_vm0, %v4758_v46, %v3052_v27  ;;  %v1011_v24 = vsel %vm304_vm0, %v552_v16, %v3053_v34 }
 0x22f   :  { %2465 = vst.msk [vmem:[#allocation8 + $0x70] sm:$0xf] %vm2436_vm2, %v2400_v19  ;;  %v2019_v47 = vsub.f32 0.0, %v4764_v52  ;;  %v1078_v45 = vmul.f32 %v4609_v14, %v1010_v6  ;;  %v1079_v46 = vmul.f32 %v4609_v14, %v1011_v24 }
 0x231   :  { %v3416_v44 = vpop.eup %3415  ;;  %v2114_v25 = vmul.f32 1.442695, %v2019_v47  ;;  %v4825_v12 = vadd.f32 %v4600_v63, %v1079_v46 }
 0x232   :  { %v3418_v60 = vpop.eup %3417  ;;  %v2210_v35 = vadd.f32 1.0, %v3416_v44 }
 0x233   :  { %v2337_v21 = vmul.f32 %v3418_v60, %v4728_v26  ;;  %3421 = vpow2.f32 %v2114_v25  ;;  %v1077_v26 = vmul.f32 %v4609_v14, %v1009_v30 }
 0x234   :  { %3423 = vrcp.f32 %v2210_v35  ;;  %2717 = vmatmul.msk.bf16.gmra.mxu2 %vm1586_vm1, %v1562_v43  ;;  %v3420_v62 = vpop.eup %3419  ;;  %v4819_v43 = vadd.f32 %v4600_v63, %v1078_v45 }
 0x235   :  { %3425 = vrcp.f32 %v1397_v54  ;;  %v2401_v32 = vpack.c.bf16 %v2337_v21, %v2337_v21  ;;  %v4792_v15 = vadd.f32 %v4600_v63, %v1077_v26  ;;  %v1524_v39 = vmul.f32 %v3420_v62, %v4719_v56  ;;  %v557_v60 = vpop.f32.mrf.mxu3 }
 0x236   :  { %3427 = vpow2.f32 %v1322_v50  ;;  %v1326_v56 = vmul.f32 1.442695, %v1208_v7  ;;  %v1210_v37 = vsub.f32 0.0, %v4819_v43 }
 0x237   :  { %2466 = vst.msk [vmem:[#allocation8 + $0x74] sm:$0xf] %vm2436_vm2, %v2401_v32  ;;  %v1772_v53 = vpop.f32.mrf.mxu2  ;;  %3429 = vpow2.f32 %v1324_v11 }
 0x238   :  { %v1888_v1 = vmul.f32 %v4511_v41, %v1772_v53 }
 0x239   :  { %v3422_v10 = vpop.eup %3421 }
 0x23a   :  { %v3424_v36 = vpop.eup %3423  ;;  %v2211_v28 = vadd.f32 1.0, %v3422_v10  ;;  %v4788_v33 = vadd.f32 %v4515_v61, %v1888_v1  ;;  %v3063_v10 = vunpack.i.h.bf16 %v4246_v29 }
 0x23b   :  { %v3426_v55 = vpop.eup %3425  ;;  %v2338_v49 = vmul.f32 %v3424_v36, %v4747_v23  ;;  %v1209_v23 = vsub.f32 0.0, %v4792_v15  ;;  %v3062_v36 = vunpack.i.l.bf16 %v4246_v29 }
 0x23c   :  { %3431 = vrcp.f32 %v2211_v28  ;;  %v2020_v48 = vsub.f32 0.0, %v4788_v33  ;;  %v3428_v51 = vpop.eup %3427  ;;  %v1525_v57 = vmul.f32 %v3426_v55, %v4724_v58  ;;  %v1211_v28 = vsub.f32 0.0, %v4825_v12 }
 0x23d   :  { %v2402_v31 = vpack.c.bf16 %v2338_v49, %v2338_v49  ;;  %v3430_v0 = vpop.eup %3429  ;;  %v1398_v5 = vadd.f32 1.0, %v3428_v51  ;;  %v1328_v9 = vmul.f32 1.442695, %v1209_v23  ;;  %v1012_v29 = vsel %vm304_vm0, %v4801_v2, %v3062_v36 }
 0x23e   :  { %v2116_v59 = vmul.f32 1.442695, %v2020_v48  ;;  %v1399_v19 = vadd.f32 1.0, %v3430_v0  ;;  %v1563_v17 = vpack.c.bf16 %v1525_v57, %v1524_v39  ;;  %v1332_v39 = vmul.f32 1.442695, %v1211_v28  ;;  %v560_v57 = vpop.f32.mrf.mxu3 }
 0x23f   :  { %2467 = vst.msk [vmem:[#allocation8 + $0x78] sm:$0xf] %vm2436_vm2, %v2402_v31  ;;  %v1774_v13 = vpop.f32.mrf.mxu2 }
 0x240   :  { %3433 = vpow2.f32 %v2116_v59  ;;  %v1889_v18 = vmul.f32 %v4511_v41, %v1774_v13  ;;  %v1080_v13 = vmul.f32 %v4609_v14, %v1012_v29 }
 0x241   :  { %3435 = vrcp.f32 %v1398_v5 }
 0x242   :  { %v3432_v8 = vpop.eup %3431  ;;  %v4806_v58 = vadd.f32 %v4515_v61, %v1889_v18  ;;  %3437 = vrcp.f32 %v1399_v19 }
 0x243   :  { %v2339_v20 = vmul.f32 %v3432_v8, %v4764_v52  ;;  %3439 = vpow2.f32 %v1326_v56 }
 0x244   :  { %v2021_v4 = vsub.f32 0.0, %v4806_v58  ;;  %2718 = vmatmul.msk.bf16.gmra.mxu2 %vm1586_vm1, %v1563_v17  ;;  %3441 = vpow2.f32 %v1328_v9  ;;  %v4850_v9 = vadd.f32 %v4600_v63, %v1080_v13 }
 0x245   :  { %v2403_v47 = vpack.c.bf16 %v2339_v20, %v2339_v20 }
 0x246   :  { %v3434_v40 = vpop.eup %3433  ;;  %v2118_v44 = vmul.f32 1.442695, %v2021_v4 }
 0x247   :  { %2468 = vst.msk [vmem:[#allocation8 + $0x7c] sm:$0xf] %vm2436_vm2, %v2403_v47  ;;  %v2212_v52 = vadd.f32 1.0, %v3434_v40  ;;  %v1777_v54 = vpop.f32.mrf.mxu2  ;;  %v3436_v35 = vpop.eup %3435 }
 0x248   :  { %3443 = vpow2.f32 %v2118_v44  ;;  %v1890_v25 = vmul.f32 %v4511_v41, %v1777_v54  ;;  %v3438_v21 = vpop.eup %3437  ;;  %v1526_v53 = vmul.f32 %v3436_v35, %v4755_v42  ;;  %v1330_v42 = vmul.f32 1.442695, %v1210_v37 }
 0x249   :  { %3445 = vrcp.f32 %v2212_v52  ;;  %v3440_v11 = vpop.eup %3439  ;;  %v1527_v62 = vmul.f32 %v3438_v21, %v4761_v3  ;;  %v1212_v44 = vsub.f32 0.0, %v4850_v9 }
 0x24a   :  { %v4822_v50 = vadd.f32 %v4515_v61, %v1890_v25  ;;  %v3442_v32 = vpop.eup %3441  ;;  %v1400_v48 = vadd.f32 1.0, %v3440_v11  ;;  %v3073_v25 = vunpack.i.h.bf16 %v4285_v22 }
 0x24b   :  { %v1401_v0 = vadd.f32 1.0, %v3442_v32  ;;  %v1564_v59 = vpack.c.bf16 %v1527_v62, %v1526_v53  ;;  %v4870_v53 = vld [vmem:[#allocation7] ss:$0 sm:$0xff] }
 0x24c   :  { %v2022_v30 = vsub.f32 0.0, %v4822_v50 }
 0x24e   :  { %v3444_v16 = vpop.eup %3443  ;;  %v2120_v26 = vmul.f32 1.442695, %v2022_v30 }
 0x24f   :  { %v3446_v1 = vpop.eup %3445  ;;  %v2213_v55 = vadd.f32 1.0, %v3444_v16  ;;  %v1779_v49 = vpop.f32.mrf.mxu2  ;;  %v4867_v16 = vld [vmem:[#allocation5] ss:$0 sm:$0xff] }
 0x250   :  { %v2340_v51 = vmul.f32 %v3446_v1, %v4788_v33  ;;  %3447 = vpow2.f32 %v2120_v26  ;;  %v1891_v31 = vmul.f32 %v4511_v41, %v1779_v49  ;;  %v1013_v33 = vsel %vm304_vm0, %v557_v60, %v3063_v10 }
 0x251   :  { %3449 = vrcp.f32 %v2213_v55  ;;  %v1081_v2 = vmul.f32 %v4609_v14, %v1013_v33  ;;  %v3072_v60 = vunpack.i.l.bf16 %v4285_v22 }
 0x252   :  { %v2404_v7 = vpack.c.bf16 %v2340_v51, %v2340_v51  ;;  %v4837_v3 = vadd.f32 %v4515_v61, %v1891_v31  ;;  %3451 = vrcp.f32 %v1400_v48 }
 0x253   :  { %3453 = vrcp.f32 %v1401_v0  ;;  %v4856_v4 = vadd.f32 %v4600_v63, %v1081_v2  ;;  %v1014_v10 = vsel %vm304_vm0, %v560_v57, %v3072_v60 }
 0x254   :  { %2469 = vst.msk [vmem:[#allocation8 + $0x80] sm:$0xf] %vm2436_vm2, %v2404_v7  ;;  %v2023_v27 = vsub.f32 0.0, %v4837_v3  ;;  %2719 = vmatmul.msk.bf16.gmra.mxu2 %vm1586_vm1, %v1564_v59  ;;  %3455 = vpow2.f32 %v1330_v42  ;;  %v1082_v55 = vmul.f32 %v4609_v14, %v1014_v10 }
 0x255   :  { %3457 = vpow2.f32 %v1332_v39  ;;  %v1213_v35 = vsub.f32 0.0, %v4856_v4 }
 0x256   :  { %v3448_v23 = vpop.eup %3447  ;;  %v2122_v34 = vmul.f32 1.442695, %v2023_v27  ;;  %v4885_v57 = vadd.f32 %v4600_v63, %v1082_v55 }
 0x257   :  { %v3450_v5 = vpop.eup %3449  ;;  %v2214_v18 = vadd.f32 1.0, %v3448_v23  ;;  %v1782_v19 = vpop.f32.mrf.mxu2  ;;  %v1336_v1 = vmul.f32 1.442695, %v1213_v35 }
 0x258   :  { %v2341_v8 = vmul.f32 %v3450_v5, %v4806_v58  ;;  %3459 = vpow2.f32 %v2122_v34  ;;  %v1892_v56 = vmul.f32 %v4511_v41, %v1782_v19  ;;  %v3452_v17 = vpop.eup %3451  ;;  %v562_v41 = vpop.f32.mrf.mxu3 }
 0x259   :  { %3461 = vrcp.f32 %v2214_v18  ;;  %v3454_v24 = vpop.eup %3453  ;;  %v1528_v46 = vmul.f32 %v3452_v17, %v4785_v38  ;;  %v3081_v34 = vpop.permute.xlu0 %3080 }
 0x25a   :  { %v2405_v20 = vpack.c.bf16 %v2341_v8, %v2341_v8  ;;  %v4853_v6 = vadd.f32 %v4515_v61, %v1892_v56  ;;  %v3456_v47 = vpop.eup %3455  ;;  %v1529_v61 = vmul.f32 %v3454_v24, %v4792_v15  ;;  %v1334_v15 = vmul.f32 1.442695, %v1212_v44 }
 0x25b   :  { %v3458_v40 = vpop.eup %3457  ;;  %v1402_v30 = vadd.f32 1.0, %v3456_v47  ;;  %v1214_v8 = vsub.f32 0.0, %v4885_v57 }
 0x25c   :  { %2470 = vst.msk [vmem:[#allocation8 + $0x84] sm:$0xf] %vm2436_vm2, %v2405_v20  ;;  %v2024_v58 = vsub.f32 0.0, %v4853_v6  ;;  %v1403_v38 = vadd.f32 1.0, %v3458_v40  ;;  %v1565_v62 = vpack.c.bf16 %v1529_v61, %v1528_v46 }
 0x25e   :  { %v3460_v45 = vpop.eup %3459  ;;  %v2124_v52 = vmul.f32 1.442695, %v2024_v58  ;;  %v3082_v58 = vunpack.i.l.bf16 %v3081_v34 }
 0x25f   :  { %v3462_v54 = vpop.eup %3461  ;;  %v2215_v21 = vadd.f32 1.0, %v3460_v45  ;;  %v1784_v11 = vpop.f32.mrf.mxu2  ;;  %v3083_v45 = vunpack.i.h.bf16 %v3081_v34 }
 0x260   :  { %v2342_v32 = vmul.f32 %v3462_v54, %v4822_v50  ;;  %3463 = vpow2.f32 %v2124_v52  ;;  %v1893_v37 = vmul.f32 %v4867_v16, %v1784_v11  ;;  %v1015_v50 = vsel %vm304_vm0, %v562_v41, %v3073_v25  ;;  %v565_v0 = vpop.f32.mrf.mxu3 }
 0x261   :  { %3465 = vrcp.f32 %v2215_v21  ;;  %v1083_v31 = vmul.f32 %v4609_v14, %v1015_v50  ;;  %v1016_v60 = vsel %vm304_vm0, %v565_v0, %v3082_v58 }
 0x262   :  { %v2406_v26 = vpack.c.bf16 %v2342_v32, %v2342_v32  ;;  %v4873_v22 = vadd.f32 %v4870_v53, %v1893_v37  ;;  %3467 = vrcp.f32 %v1402_v30  ;;  %v1084_v11 = vmul.f32 %v4609_v14, %v1016_v60 }
 0x263   :  { %3469 = vrcp.f32 %v1403_v38  ;;  %v4891_v23 = vadd.f32 %v4600_v63, %v1083_v31 }
 0x264   :  { %2471 = vst.msk [vmem:[#allocation8 + $0x88] sm:$0xf] %vm2436_vm2, %v2406_v26  ;;  %v2025_v36 = vsub.f32 0.0, %v4873_v22  ;;  %2720 = vmatmul.msk.bf16.gmra.mxu2 %vm1586_vm1, %v1565_v62  ;;  %3471 = vpow2.f32 %v1334_v15  ;;  %v4914_v50 = vadd.f32 %v4600_v63, %v1084_v11 }
 0x265   :  { %3473 = vpow2.f32 %v1336_v1  ;;  %v1215_v24 = vsub.f32 0.0, %v4891_v23 }
 0x266   :  { %v3464_v28 = vpop.eup %3463  ;;  %v2126_v49 = vmul.f32 1.442695, %v2025_v36  ;;  %v1216_v0 = vsub.f32 0.0, %v4914_v50 }
 0x267   :  { %v3466_v48 = vpop.eup %3465  ;;  %v2216_v51 = vadd.f32 1.0, %v3464_v28  ;;  %v1787_v42 = vpop.f32.mrf.mxu2  ;;  %v1340_v25 = vmul.f32 1.442695, %v1215_v24 }
 0x268   :  { %v2343_v7 = vmul.f32 %v3466_v48, %v4837_v3  ;;  %3475 = vpow2.f32 %v2126_v49  ;;  %v1894_v59 = vmul.f32 %v4867_v16, %v1787_v42  ;;  %v3468_v39 = vpop.eup %3467 }
 0x269   :  { %3477 = vrcp.f32 %v2216_v51  ;;  %v3470_v27 = vpop.eup %3469  ;;  %v1530_v2 = vmul.f32 %v3468_v39, %v4819_v43  ;;  %v567_v43 = vpop.f32.mrf.mxu3 }
 0x26a   :  { %v2407_v29 = vpack.c.bf16 %v2343_v7, %v2343_v7  ;;  %v4888_v33 = vadd.f32 %v4870_v53, %v1894_v59  ;;  %v3472_v13 = vpop.eup %3471  ;;  %v1531_v19 = vmul.f32 %v3470_v27, %v4825_v12  ;;  %v1338_v12 = vmul.f32 1.442695, %v1214_v8 }
 0x26b   :  { %v3474_v5 = vpop.eup %3473  ;;  %v1404_v20 = vadd.f32 1.0, %v3472_v13 }
 0x26c   :  { %2472 = vst.msk [vmem:[#allocation8 + $0x8c] sm:$0xf] %vm2436_vm2, %v2407_v29  ;;  %v2026_v3 = vsub.f32 0.0, %v4888_v33  ;;  %v1405_v52 = vadd.f32 1.0, %v3474_v5  ;;  %v1566_v54 = vpack.c.bf16 %v1531_v19, %v1530_v2 }
 0x26e   :  { %v3476_v18 = vpop.eup %3475  ;;  %v2128_v56 = vmul.f32 1.442695, %v2026_v3 }
 0x26f   :  { %v3478_v17 = vpop.eup %3477  ;;  %v2217_v47 = vadd.f32 1.0, %v3476_v18  ;;  %v1789_v40 = vpop.f32.mrf.mxu2 }
 0x270   :  { %v2344_v41 = vmul.f32 %v3478_v17, %v4853_v6  ;;  %3479 = vpow2.f32 %v2128_v56  ;;  %v1895_v44 = vmul.f32 %v4867_v16, %v1789_v40  ;;  %v1017_v6 = vsel %vm304_vm0, %v567_v43, %v3083_v45 }
 0x271   :  { %3481 = vrcp.f32 %v2217_v47  ;;  %v1085_v38 = vmul.f32 %v4609_v14, %v1017_v6 }
 0x272   :  { %v2408_v46 = vpack.c.bf16 %v2344_v41, %v2344_v41  ;;  %v4902_v61 = vadd.f32 %v4870_v53, %v1895_v44  ;;  %3483 = vrcp.f32 %v1404_v20 }
 0x273   :  { %3485 = vrcp.f32 %v1405_v52  ;;  %v4918_v55 = vadd.f32 %v4600_v63, %v1085_v38 }
 0x274   :  { %2473 = vst.msk [vmem:[#allocation8 + $0x90] sm:$0xf] %vm2436_vm2, %v2408_v46  ;;  %v2027_v35 = vsub.f32 0.0, %v4902_v61  ;;  %2721 = vmatmul.msk.bf16.gmra.mxu2 %vm1586_vm1, %v1566_v54  ;;  %3487 = vpow2.f32 %v1338_v12 }
 0x275   :  { %3489 = vpow2.f32 %v1340_v25  ;;  %v1217_v59 = vsub.f32 0.0, %v4918_v55 }
 0x276   :  { %v3480_v21 = vpop.eup %3479  ;;  %v2130_v30 = vmul.f32 1.442695, %v2027_v35 }
 0x277   :  { %v3482_v32 = vpop.eup %3481  ;;  %v2218_v37 = vadd.f32 1.0, %v3480_v21  ;;  %v1792_v15 = vpop.f32.mrf.mxu2  ;;  %v1344_v18 = vmul.f32 1.442695, %v1217_v59 }
 0x278   :  { %v2345_v26 = vmul.f32 %v3482_v32, %v4873_v22  ;;  %3491 = vpow2.f32 %v2130_v30  ;;  %v1896_v62 = vmul.f32 %v4867_v16, %v1792_v15  ;;  %v3484_v1 = vpop.eup %3483 }
 0x279   :  { %3493 = vrcp.f32 %v2218_v37  ;;  %v3486_v28 = vpop.eup %3485  ;;  %v1532_v51 = vmul.f32 %v3484_v1, %v4850_v9  ;;  %v1342_v9 = vmul.f32 1.442695, %v1216_v0 }
 0x27a   :  { %v2409_v10 = vpack.c.bf16 %v2345_v26, %v2345_v26  ;;  %v1964_v36 = vadd.f32 %v4870_v53, %v1896_v62  ;;  %v3488_v49 = vpop.eup %3487  ;;  %v1533_v31 = vmul.f32 %v3486_v28, %v4856_v4 }
 0x27b   :  { %v3490_v22 = vpop.eup %3489  ;;  %v1406_v63 = vadd.f32 1.0, %v3488_v49 }
 0x27c   :  { %2474 = vst.msk [vmem:[#allocation8 + $0x94] sm:$0xf] %vm2436_vm2, %v2409_v10  ;;  %v2028_v14 = vsub.f32 0.0, %v1964_v36  ;;  %v1407_v3 = vadd.f32 1.0, %v3490_v22  ;;  %v1567_v5 = vpack.c.bf16 %v1533_v31, %v1532_v51 }
 0x27e   :  { %v3492_v48 = vpop.eup %3491  ;;  %v2132_v42 = vmul.f32 1.442695, %v2028_v14 }
 0x27f   :  { %v3494_v7 = vpop.eup %3493  ;;  %v2219_v39 = vadd.f32 1.0, %v3492_v48  ;;  %v1794_v29 = vpop.f32.mrf.mxu2 }
 0x280   :  { %v2346_v27 = vmul.f32 %v3494_v7, %v4888_v33  ;;  %3495 = vpow2.f32 %v2132_v42  ;;  %v1897_v13 = vmul.f32 %v4867_v16, %v1794_v29 }
 0x281   :  { %3497 = vrcp.f32 %v2219_v39 }
 0x282   :  { %v2410_v34 = vpack.c.bf16 %v2346_v27, %v2346_v27  ;;  %v1965_v4 = vadd.f32 %v4870_v53, %v1897_v13  ;;  %3499 = vrcp.f32 %v1406_v63 }
 0x283   :  { %3501 = vrcp.f32 %v1407_v3 }
 0x284   :  { %2475 = vst.msk [vmem:[#allocation8 + $0x98] sm:$0xf] %vm2436_vm2, %v2410_v34  ;;  %v2029_v2 = vsub.f32 0.0, %v1965_v4  ;;  %2722 = vmatmul.msk.bf16.gmra.mxu2 %vm1586_vm1, %v1567_v5  ;;  %3503 = vpow2.f32 %v1342_v9 }
 0x285   :  { %3505 = vpow2.f32 %v1344_v18 }
 0x286   :  { %v3496_v19 = vpop.eup %3495  ;;  %v2134_v33 = vmul.f32 1.442695, %v2029_v2 }
 0x287   :  { %v3498_v8 = vpop.eup %3497  ;;  %v2220_v56 = vadd.f32 1.0, %v3496_v19  ;;  %v1797_v17 = vpop.f32.mrf.mxu2 }
 0x288   :  { %v2347_v20 = vmul.f32 %v3498_v8, %v4902_v61  ;;  %3507 = vpow2.f32 %v2134_v33  ;;  %v1898_v24 = vmul.f32 %v4867_v16, %v1797_v17  ;;  %v3500_v47 = vpop.eup %3499 }
 0x289   :  { %3509 = vrcp.f32 %v2220_v56  ;;  %v3502_v41 = vpop.eup %3501  ;;  %v1534_v12 = vmul.f32 %v3500_v47, %v4885_v57 }
 0x28a   :  { %v2411_v58 = vpack.c.bf16 %v2347_v20, %v2347_v20  ;;  %v1966_v40 = vadd.f32 %v4870_v53, %v1898_v24  ;;  %v3504_v45 = vpop.eup %3503  ;;  %v1535_v46 = vmul.f32 %v3502_v41, %v4891_v23 }
 0x28b   :  { %v3506_v52 = vpop.eup %3505  ;;  %v1408_v6 = vadd.f32 1.0, %v3504_v45 }
 0x28c   :  { %2476 = vst.msk [vmem:[#allocation8 + $0x9c] sm:$0xf] %vm2436_vm2, %v2411_v58  ;;  %v2030_v44 = vsub.f32 0.0, %v1966_v40  ;;  %v1409_v11 = vadd.f32 1.0, %v3506_v52  ;;  %v1568_v37 = vpack.c.bf16 %v1535_v46, %v1534_v12 }
 0x28e   :  { %v3508_v43 = vpop.eup %3507  ;;  %v2136_v61 = vmul.f32 1.442695, %v2030_v44 }
 0x28f   :  { %v3510_v54 = vpop.eup %3509  ;;  %v2221_v25 = vadd.f32 1.0, %v3508_v43  ;;  %v1799_v60 = vpop.f32.mrf.mxu2 }
 0x290   :  { %v2348_v35 = vmul.f32 %v3510_v54, %v1964_v36  ;;  %3511 = vpow2.f32 %v2136_v61  ;;  %v1899_v21 = vmul.f32 %v4867_v16, %v1799_v60 }
 0x291   :  { %3513 = vrcp.f32 %v2221_v25 }
 0x292   :  { %v2412_v30 = vpack.c.bf16 %v2348_v35, %v2348_v35  ;;  %v1967_v32 = vadd.f32 %v4870_v53, %v1899_v21  ;;  %3515 = vrcp.f32 %v1408_v6 }
 0x293   :  { %3517 = vrcp.f32 %v1409_v11 }
 0x294   :  { %2477 = vst.msk [vmem:[#allocation8 + $0xa0] sm:$0xf] %vm2436_vm2, %v2412_v30  ;;  %v2031_v57 = vsub.f32 0.0, %v1967_v32  ;;  %2723 = vmatmul.msk.bf16.gmra.mxu2 %vm1586_vm1, %v1568_v37 }
 0x296   :  { %v3512_v23 = vpop.eup %3511  ;;  %v2138_v38 = vmul.f32 1.442695, %v2031_v57 }
 0x297   :  { %v3514_v15 = vpop.eup %3513  ;;  %v2222_v26 = vadd.f32 1.0, %v3512_v23  ;;  %v1802_v62 = vpop.f32.mrf.mxu2 }
 0x298   :  { %v2349_v1 = vmul.f32 %v3514_v15, %v1965_v4  ;;  %3519 = vpow2.f32 %v2138_v38  ;;  %v1900_v10 = vmul.f32 %v4867_v16, %v1802_v62  ;;  %v3516_v36 = vpop.eup %3515 }
 0x299   :  { %3521 = vrcp.f32 %v2222_v26  ;;  %v3518_v14 = vpop.eup %3517  ;;  %v1536_v0 = vmul.f32 %v3516_v36, %v4914_v50 }
 0x29a   :  { %v2413_v28 = vpack.c.bf16 %v2349_v1, %v2349_v1  ;;  %v1968_v49 = vadd.f32 %v4870_v53, %v1900_v10  ;;  %v1537_v51 = vmul.f32 %v3518_v14, %v4918_v55 }
 0x29c   :  { %2478 = vst.msk [vmem:[#allocation8 + $0xa4] sm:$0xf] %vm2436_vm2, %v2413_v28  ;;  %v2032_v22 = vsub.f32 0.0, %v1968_v49  ;;  %v1569_v13 = vpack.c.bf16 %v1537_v51, %v1536_v0 }
 0x29e   :  { %v3520_v48 = vpop.eup %3519  ;;  %v2140_v31 = vmul.f32 1.442695, %v2032_v22 }
 0x29f   :  { %v3522_v42 = vpop.eup %3521  ;;  %v2223_v7 = vadd.f32 1.0, %v3520_v48  ;;  %v1804_v59 = vpop.f32.mrf.mxu2 }
 0x2a0   :  { %v2350_v39 = vmul.f32 %v3522_v42, %v1966_v40  ;;  %3523 = vpow2.f32 %v2140_v31  ;;  %v1901_v29 = vmul.f32 %v4867_v16, %v1804_v59 }
 0x2a1   :  { %3525 = vrcp.f32 %v2223_v7 }
 0x2a2   :  { %v2414_v63 = vpack.c.bf16 %v2350_v39, %v2350_v39  ;;  %v1969_v27 = vadd.f32 %v4870_v53, %v1901_v29 }
 0x2a4   :  { %2479 = vst.msk [vmem:[#allocation8 + $0xa8] sm:$0xf] %vm2436_vm2, %v2414_v63  ;;  %v2033_v3 = vsub.f32 0.0, %v1969_v27  ;;  %2724 = vmatmul.msk.bf16.gmra.mxu2 %vm1586_vm1, %v1569_v13 }
 0x2a6   :  { %v3524_v55 = vpop.eup %3523  ;;  %v2142_v34 = vmul.f32 1.442695, %v2033_v3 }
 0x2a7   :  { %v3526_v50 = vpop.eup %3525  ;;  %v2224_v9 = vadd.f32 1.0, %v3524_v55  ;;  %v1807_v4 = vpop.f32.mrf.mxu2 }
 0x2a8   :  { %v2351_v5 = vmul.f32 %v3526_v50, %v1967_v32  ;;  %3527 = vpow2.f32 %v2142_v34  ;;  %v1902_v18 = vmul.f32 %v4867_v16, %v1807_v4 }
 0x2a9   :  { %3529 = vrcp.f32 %v2224_v9 }
 0x2aa   :  { %v2415_v2 = vpack.c.bf16 %v2351_v5, %v2351_v5  ;;  %v1970_v19 = vadd.f32 %v4870_v53, %v1902_v18 }
 0x2ac   :  { %2480 = vst.msk [vmem:[#allocation8 + $0xac] sm:$0xf] %vm2436_vm2, %v2415_v2  ;;  %v2034_v33 = vsub.f32 0.0, %v1970_v19 }
 0x2ae   :  { %v3528_v8 = vpop.eup %3527  ;;  %v2144_v56 = vmul.f32 1.442695, %v2034_v33 }
 0x2af   :  { %v3530_v17 = vpop.eup %3529  ;;  %v2225_v20 = vadd.f32 1.0, %v3528_v8  ;;  %v1809_v24 = vpop.f32.mrf.mxu2 }
 0x2b0   :  { %v2352_v47 = vmul.f32 %v3530_v17, %v1968_v49  ;;  %3531 = vpow2.f32 %v2144_v56  ;;  %v1903_v58 = vmul.f32 %v4867_v16, %v1809_v24 }
 0x2b1   :  { %3533 = vrcp.f32 %v2225_v20 }
 0x2b2   :  { %v2416_v40 = vpack.c.bf16 %v2352_v47, %v2352_v47  ;;  %v1971_v41 = vadd.f32 %v4870_v53, %v1903_v58 }
 0x2b4   :  { %2481 = vst.msk [vmem:[#allocation8 + $0xb0] sm:$0xf] %vm2436_vm2, %v2416_v40  ;;  %v2035_v45 = vsub.f32 0.0, %v1971_v41 }
 0x2b6   :  { %v3532_v44 = vpop.eup %3531  ;;  %v2146_v52 = vmul.f32 1.442695, %v2035_v45 }
 0x2b7   :  { %v3534_v43 = vpop.eup %3533  ;;  %v2226_v12 = vadd.f32 1.0, %v3532_v44  ;;  %v1812_v46 = vpop.f32.mrf.mxu2 }
 0x2b8   :  { %v2353_v61 = vmul.f32 %v3534_v43, %v1969_v27  ;;  %3535 = vpow2.f32 %v2146_v52  ;;  %v1904_v54 = vmul.f32 %v4867_v16, %v1812_v46 }
 0x2b9   :  { %3537 = vrcp.f32 %v2226_v12 }
 0x2ba   :  { %v2417_v25 = vpack.c.bf16 %v2353_v61, %v2353_v61  ;;  %v1972_v60 = vadd.f32 %v4870_v53, %v1904_v54 }
 0x2bc   :  { %2482 = vst.msk [vmem:[#allocation8 + $0xb4] sm:$0xf] %vm2436_vm2, %v2417_v25  ;;  %v2036_v6 = vsub.f32 0.0, %v1972_v60 }
 0x2be   :  { %v3536_v35 = vpop.eup %3535  ;;  %v2148_v21 = vmul.f32 1.442695, %v2036_v6 }
 0x2bf   :  { %v3538_v11 = vpop.eup %3537  ;;  %v2227_v30 = vadd.f32 1.0, %v3536_v35  ;;  %v1814_v32 = vpop.f32.mrf.mxu2 }
 0x2c0   :  { %v2354_v37 = vmul.f32 %v3538_v11, %v1970_v19  ;;  %3539 = vpow2.f32 %v2148_v21  ;;  %v1905_v57 = vmul.f32 %v4867_v16, %v1814_v32 }
 0x2c1   :  { %3541 = vrcp.f32 %v2227_v30 }
 0x2c2   :  { %v2418_v23 = vpack.c.bf16 %v2354_v37, %v2354_v37  ;;  %v1973_v38 = vadd.f32 %v4870_v53, %v1905_v57 }
 0x2c4   :  { %2483 = vst.msk [vmem:[#allocation8 + $0xb8] sm:$0xf] %vm2436_vm2, %v2418_v23  ;;  %v2037_v15 = vsub.f32 0.0, %v1973_v38 }
 0x2c6   :  { %v3540_v26 = vpop.eup %3539  ;;  %v2150_v62 = vmul.f32 1.442695, %v2037_v15 }
 0x2c7   :  { %v3542_v1 = vpop.eup %3541  ;;  %v2228_v10 = vadd.f32 1.0, %v3540_v26  ;;  %v1817_v36 = vpop.f32.mrf.mxu2 }
 0x2c8   :  { %v2355_v28 = vmul.f32 %v3542_v1, %v1971_v41  ;;  %3543 = vpow2.f32 %v2150_v62  ;;  %v1906_v49 = vmul.f32 %v4867_v16, %v1817_v36 }
 0x2c9   :  { %3545 = vrcp.f32 %v2228_v10 }
 0x2ca   :  { %v2419_v14 = vpack.c.bf16 %v2355_v28, %v2355_v28  ;;  %v1974_v22 = vadd.f32 %v4870_v53, %v1906_v49 }
 0x2cc   :  { %2484 = vst.msk [vmem:[#allocation8 + $0xbc] sm:$0xf] %vm2436_vm2, %v2419_v14  ;;  %v2038_v48 = vsub.f32 0.0, %v1974_v22 }
 0x2ce   :  { %v3544_v51 = vpop.eup %3543  ;;  %v2152_v31 = vmul.f32 1.442695, %v2038_v48 }
 0x2cf   :  { %v3546_v0 = vpop.eup %3545  ;;  %v2229_v42 = vadd.f32 1.0, %v3544_v51  ;;  %v1819_v7 = vpop.f32.mrf.mxu2 }
 0x2d0   :  { %v2356_v59 = vmul.f32 %v3546_v0, %v1972_v60  ;;  %3547 = vpow2.f32 %v2152_v31  ;;  %v1907_v39 = vmul.f32 %v4867_v16, %v1819_v7 }
 0x2d1   :  { %3549 = vrcp.f32 %v2229_v42 }
 0x2d2   :  { %v2420_v29 = vpack.c.bf16 %v2356_v59, %v2356_v59  ;;  %v1975_v63 = vadd.f32 %v4870_v53, %v1907_v39 }
 0x2d4   :  { %2485 = vst.msk [vmem:[#allocation8 + $0xc0] sm:$0xf] %vm2436_vm2, %v2420_v29  ;;  %v2039_v27 = vsub.f32 0.0, %v1975_v63 }
 0x2d6   :  { %v3548_v13 = vpop.eup %3547  ;;  %v2154_v3 = vmul.f32 1.442695, %v2039_v27 }
 0x2d7   :  { %v3550_v55 = vpop.eup %3549  ;;  %v2230_v34 = vadd.f32 1.0, %v3548_v13  ;;  %v1822_v50 = vpop.f32.mrf.mxu2 }
 0x2d8   :  { %v2357_v9 = vmul.f32 %v3550_v55, %v1973_v38  ;;  %3551 = vpow2.f32 %v2154_v3  ;;  %v1908_v4 = vmul.f32 %v4867_v16, %v1822_v50 }
 0x2d9   :  { %3553 = vrcp.f32 %v2230_v34 }
 0x2da   :  { %v2421_v5 = vpack.c.bf16 %v2357_v9, %v2357_v9  ;;  %v1976_v18 = vadd.f32 %v4870_v53, %v1908_v4 }
 0x2dc   :  { %2486 = vst.msk [vmem:[#allocation8 + $0xc4] sm:$0xf] %vm2436_vm2, %v2421_v5  ;;  %v2040_v2 = vsub.f32 0.0, %v1976_v18 }
 0x2de   :  { %v3552_v19 = vpop.eup %3551  ;;  %v2156_v33 = vmul.f32 1.442695, %v2040_v2 }
 0x2df   :  { %v3554_v8 = vpop.eup %3553  ;;  %v2231_v56 = vadd.f32 1.0, %v3552_v19  ;;  %v1824_v17 = vpop.f32.mrf.mxu2 }
 0x2e0   :  { %v2358_v20 = vmul.f32 %v3554_v8, %v1974_v22  ;;  %3555 = vpow2.f32 %v2156_v33  ;;  %v1909_v24 = vmul.f32 %v4867_v16, %v1824_v17 }
 0x2e1   :  { %3557 = vrcp.f32 %v2231_v56 }
 0x2e2   :  { %v2422_v47 = vpack.c.bf16 %v2358_v20, %v2358_v20  ;;  %v1977_v58 = vadd.f32 %v4870_v53, %v1909_v24 }
 0x2e4   :  { %2487 = vst.msk [vmem:[#allocation8 + $0xc8] sm:$0xf] %vm2436_vm2, %v2422_v47  ;;  %v2041_v40 = vsub.f32 0.0, %v1977_v58 }
 0x2e6   :  { %v3556_v41 = vpop.eup %3555  ;;  %v2158_v45 = vmul.f32 1.442695, %v2041_v40 }
 0x2e7   :  { %v3558_v44 = vpop.eup %3557  ;;  %v2232_v52 = vadd.f32 1.0, %v3556_v41  ;;  %v1827_v43 = vpop.f32.mrf.mxu2 }
 0x2e8   :  { %v2359_v12 = vmul.f32 %v3558_v44, %v1975_v63  ;;  %3559 = vpow2.f32 %v2158_v45  ;;  %v1910_v46 = vmul.f32 %v4867_v16, %v1827_v43 }
 0x2e9   :  { %3561 = vrcp.f32 %v2232_v52 }
 0x2ea   :  { %v2423_v61 = vpack.c.bf16 %v2359_v12, %v2359_v12  ;;  %v1978_v54 = vadd.f32 %v4870_v53, %v1910_v46 }
 0x2ec   :  { %2488 = vst.msk [vmem:[#allocation8 + $0xcc] sm:$0xf] %vm2436_vm2, %v2423_v61  ;;  %v2042_v25 = vsub.f32 0.0, %v1978_v54 }
 0x2ee   :  { %v3560_v60 = vpop.eup %3559  ;;  %v2160_v6 = vmul.f32 1.442695, %v2042_v25 }
 0x2ef   :  { %v3562_v35 = vpop.eup %3561  ;;  %v2233_v21 = vadd.f32 1.0, %v3560_v60  ;;  %v1829_v11 = vpop.f32.mrf.mxu2 }
 0x2f0   :  { %v2360_v30 = vmul.f32 %v3562_v35, %v1976_v18  ;;  %3563 = vpow2.f32 %v2160_v6  ;;  %v1911_v32 = vmul.f32 %v4867_v16, %v1829_v11 }
 0x2f1   :  { %3565 = vrcp.f32 %v2233_v21 }
 0x2f2   :  { %v2424_v37 = vpack.c.bf16 %v2360_v30, %v2360_v30  ;;  %v1979_v57 = vadd.f32 %v4870_v53, %v1911_v32 }
 0x2f4   :  { %2489 = vst.msk [vmem:[#allocation8 + $0xd0] sm:$0xf] %vm2436_vm2, %v2424_v37  ;;  %v2043_v23 = vsub.f32 0.0, %v1979_v57 }
 0x2f6   :  { %v3564_v38 = vpop.eup %3563  ;;  %v2162_v15 = vmul.f32 1.442695, %v2043_v23 }
 0x2f7   :  { %v3566_v26 = vpop.eup %3565  ;;  %v2234_v62 = vadd.f32 1.0, %v3564_v38  ;;  %v1832_v1 = vpop.f32.mrf.mxu2 }
 0x2f8   :  { %v2361_v10 = vmul.f32 %v3566_v26, %v1977_v58  ;;  %3567 = vpow2.f32 %v2162_v15  ;;  %v1912_v36 = vmul.f32 %v4867_v16, %v1832_v1 }
 0x2f9   :  { %3569 = vrcp.f32 %v2234_v62 }
 0x2fa   :  { %v2425_v28 = vpack.c.bf16 %v2361_v10, %v2361_v10  ;;  %v1980_v49 = vadd.f32 %v4870_v53, %v1912_v36 }
 0x2fc   :  { %2490 = vst.msk [vmem:[#allocation8 + $0xd4] sm:$0xf] %vm2436_vm2, %v2425_v28  ;;  %v2044_v14 = vsub.f32 0.0, %v1980_v49 }
 0x2fe   :  { %v3568_v22 = vpop.eup %3567  ;;  %v2164_v48 = vmul.f32 1.442695, %v2044_v14 }
 0x2ff   :  { %v3570_v51 = vpop.eup %3569  ;;  %v2235_v31 = vadd.f32 1.0, %v3568_v22  ;;  %v1834_v0 = vpop.f32.mrf.mxu2 }
 0x300   :  { %v2362_v42 = vmul.f32 %v3570_v51, %v1978_v54  ;;  %3571 = vpow2.f32 %v2164_v48  ;;  %v1913_v7 = vmul.f32 %v4867_v16, %v1834_v0 }
 0x301   :  { %3573 = vrcp.f32 %v2235_v31 }
 0x302   :  { %v2426_v59 = vpack.c.bf16 %v2362_v42, %v2362_v42  ;;  %v1981_v39 = vadd.f32 %v4870_v53, %v1913_v7 }
 0x304   :  { %2491 = vst.msk [vmem:[#allocation8 + $0xd8] sm:$0xf] %vm2436_vm2, %v2426_v59  ;;  %v2045_v29 = vsub.f32 0.0, %v1981_v39 }
 0x306   :  { %v3572_v63 = vpop.eup %3571  ;;  %v2166_v27 = vmul.f32 1.442695, %v2045_v29 }
 0x307   :  { %v3574_v13 = vpop.eup %3573  ;;  %v2236_v3 = vadd.f32 1.0, %v3572_v63  ;;  %v1837_v55 = vpop.f32.mrf.mxu2 }
 0x308   :  { %v2363_v34 = vmul.f32 %v3574_v13, %v1979_v57  ;;  %3575 = vpow2.f32 %v2166_v27  ;;  %v1914_v50 = vmul.f32 %v4867_v16, %v1837_v55 }
 0x309   :  { %3577 = vrcp.f32 %v2236_v3 }
 0x30a   :  { %v2427_v9 = vpack.c.bf16 %v2363_v34, %v2363_v34  ;;  %v1982_v4 = vadd.f32 %v4870_v53, %v1914_v50 }
 0x30c   :  { %2492 = vst.msk [vmem:[#allocation8 + $0xdc] sm:$0xf] %vm2436_vm2, %v2427_v9  ;;  %v2046_v5 = vsub.f32 0.0, %v1982_v4 }
 0x30e   :  { %v3576_v18 = vpop.eup %3575  ;;  %v2168_v2 = vmul.f32 1.442695, %v2046_v5 }
 0x30f   :  { %v3578_v19 = vpop.eup %3577  ;;  %v2237_v33 = vadd.f32 1.0, %v3576_v18  ;;  %v1839_v8 = vpop.f32.mrf.mxu2 }
 0x310   :  { %v2364_v56 = vmul.f32 %v3578_v19, %v1980_v49  ;;  %3579 = vpow2.f32 %v2168_v2  ;;  %v1915_v17 = vmul.f32 %v4867_v16, %v1839_v8 }
 0x311   :  { %3581 = vrcp.f32 %v2237_v33 }
 0x312   :  { %v2428_v20 = vpack.c.bf16 %v2364_v56, %v2364_v56  ;;  %v1983_v24 = vadd.f32 %v4870_v53, %v1915_v17 }
 0x314   :  { %2493 = vst.msk [vmem:[#allocation8 + $0xe0] sm:$0xf] %vm2436_vm2, %v2428_v20  ;;  %v2047_v47 = vsub.f32 0.0, %v1983_v24 }
 0x316   :  { %v3580_v58 = vpop.eup %3579  ;;  %v2170_v40 = vmul.f32 1.442695, %v2047_v47 }
 0x317   :  { %v3582_v41 = vpop.eup %3581  ;;  %v2238_v45 = vadd.f32 1.0, %v3580_v58  ;;  %v1842_v44 = vpop.f32.mrf.mxu2 }
 0x318   :  { %v2365_v52 = vmul.f32 %v3582_v41, %v1981_v39  ;;  %3583 = vpow2.f32 %v2170_v40  ;;  %v1916_v43 = vmul.f32 %v4867_v16, %v1842_v44 }
 0x319   :  { %3585 = vrcp.f32 %v2238_v45 }
 0x31a   :  { %v2429_v12 = vpack.c.bf16 %v2365_v52, %v2365_v52  ;;  %v1984_v46 = vadd.f32 %v4870_v53, %v1916_v43 }
 0x31c   :  { %2494 = vst.msk [vmem:[#allocation8 + $0xe4] sm:$0xf] %vm2436_vm2, %v2429_v12  ;;  %v2048_v61 = vsub.f32 0.0, %v1984_v46 }
 0x31e   :  { %v3584_v54 = vpop.eup %3583  ;;  %v2172_v25 = vmul.f32 1.442695, %v2048_v61 }
 0x31f   :  { %v3586_v60 = vpop.eup %3585  ;;  %v2239_v6 = vadd.f32 1.0, %v3584_v54  ;;  %v1844_v35 = vpop.f32.mrf.mxu2 }
 0x320   :  { %v2366_v21 = vmul.f32 %v3586_v60, %v1982_v4  ;;  %3587 = vpow2.f32 %v2172_v25  ;;  %v1917_v11 = vmul.f32 %v4867_v16, %v1844_v35 }
 0x321   :  { %3589 = vrcp.f32 %v2239_v6 }
 0x322   :  { %v2430_v30 = vpack.c.bf16 %v2366_v21, %v2366_v21  ;;  %v1985_v32 = vadd.f32 %v4870_v53, %v1917_v11 }
 0x324   :  { %2495 = vst.msk [vmem:[#allocation8 + $0xe8] sm:$0xf] %vm2436_vm2, %v2430_v30  ;;  %v2049_v37 = vsub.f32 0.0, %v1985_v32 }
 0x326   :  { %v3588_v57 = vpop.eup %3587  ;;  %v2174_v23 = vmul.f32 1.442695, %v2049_v37 }
 0x327   :  { %v3590_v38 = vpop.eup %3589  ;;  %v2240_v15 = vadd.f32 1.0, %v3588_v57  ;;  %v1847_v26 = vpop.f32.mrf.mxu2 }
 0x328   :  { %v2367_v62 = vmul.f32 %v3590_v38, %v1983_v24  ;;  %3591 = vpow2.f32 %v2174_v23  ;;  %v1918_v1 = vmul.f32 %v4867_v16, %v1847_v26 }
 0x329   :  { %3593 = vrcp.f32 %v2240_v15 }
 0x32a   :  { %v2431_v10 = vpack.c.bf16 %v2367_v62, %v2367_v62  ;;  %v1986_v36 = vadd.f32 %v4870_v53, %v1918_v1 }
 0x32c   :  { %2496 = vst.msk [vmem:[#allocation8 + $0xec] sm:$0xf] %vm2436_vm2, %v2431_v10  ;;  %v2050_v28 = vsub.f32 0.0, %v1986_v36 }
 0x32e   :  { %v3592_v49 = vpop.eup %3591  ;;  %v2176_v14 = vmul.f32 1.442695, %v2050_v28 }
 0x32f   :  { %v3594_v22 = vpop.eup %3593  ;;  %v2241_v48 = vadd.f32 1.0, %v3592_v49  ;;  %v1849_v51 = vpop.f32.mrf.mxu2 }
 0x330   :  { %v2368_v31 = vmul.f32 %v3594_v22, %v1984_v46  ;;  %3595 = vpow2.f32 %v2176_v14  ;;  %v1919_v0 = vmul.f32 %v4867_v16, %v1849_v51 }
 0x331   :  { %3597 = vrcp.f32 %v2241_v48 }
 0x332   :  { %v2432_v42 = vpack.c.bf16 %v2368_v31, %v2368_v31  ;;  %v1987_v7 = vadd.f32 %v4870_v53, %v1919_v0 }
 0x334   :  { %2497 = vst.msk [vmem:[#allocation8 + $0xf0] sm:$0xf] %vm2436_vm2, %v2432_v42  ;;  %v2051_v59 = vsub.f32 0.0, %v1987_v7 }
 0x336   :  { %v3596_v39 = vpop.eup %3595  ;;  %v2178_v29 = vmul.f32 1.442695, %v2051_v59 }
 0x337   :  { %v3598_v63 = vpop.eup %3597  ;;  %v2242_v27 = vadd.f32 1.0, %v3596_v39 }
 0x338   :  { %v2369_v13 = vmul.f32 %v3598_v63, %v1985_v32  ;;  %3599 = vpow2.f32 %v2178_v29 }
 0x339   :  { %3601 = vrcp.f32 %v2242_v27 }
 0x33a   :  { %v2433_v3 = vpack.c.bf16 %v2369_v13, %v2369_v13 }
 0x33c   :  { %2498 = vst.msk [vmem:[#allocation8 + $0xf4] sm:$0xf] %vm2436_vm2, %v2433_v3 }
 0x33e   :  { %v3600_v55 = vpop.eup %3599 }
 0x33f   :  { %v3602_v34 = vpop.eup %3601  ;;  %v2243_v16 = vadd.f32 1.0, %v3600_v55 }
 0x340   :  { %v2370_v50 = vmul.f32 %v3602_v34, %v1986_v36 }
 0x341   :  { %3603 = vrcp.f32 %v2243_v16 }
 0x342   :  { %v2434_v9 = vpack.c.bf16 %v2370_v50, %v2370_v50 }
 0x344   :  { %2499 = vst.msk [vmem:[#allocation8 + $0xf8] sm:$0xf] %vm2436_vm2, %v2434_v9 }
 0x347   :  { %v3604_v53 = vpop.eup %3603 }
 0x348   :  { %v2371_v4 = vmul.f32 %v3604_v53, %v1987_v7 }
 0x34a   :  { %v2435_v5 = vpack.c.bf16 %v2371_v4, %v2371_v4 }
 0x34c   :  { %2500 = vst.msk [vmem:[#allocation8 + $0xfc] sm:$0xf] %vm2436_vm2, %v2435_v5 }
 0x34d   :  { %2513 = dma.vmem_to_hbm [thread:$0]  %s2506_s26, 4096, %s2508_s29, [#allocation4], %s3720_s30, %s3720_s30, %s3721_s9  }
 0x34e   :  { %3713 = dma.done.wait [#allocation4], 4096  }
 0x34f   :  { %3714 = vsyncadd [#allocation4], 4294963200 }
 0x350   :  { %2518 = vsyncpa [#allocation3], 1 }
 0x351   :  { %2519 = vsyncpa [#allocation6], 1 }
 0x352   :  { %2520 = vsyncpa [#allocation4], 1 }

// kernel: bottleneck_csp_forward.4
= control target key start
LH: loop header
LB: loop body
LE: loop exit
PB: predicated region body
PF: predicated region fallthrough
CT: control target
= control target key end

     0   :  { %12 = vsyncpa [#allocation3], 0  ;;  %s7049_s24 = smov 0   ;;  %s11113_s0 = inlined_call_operand.vmem [shape: bf16[2,256,16], index: 0, kind: input, shape index: {}]   ;;  %s11114_s1 = inlined_call_operand.vmem [shape: bf16[144,16], index: 1, kind: input, shape index: {}]   ;;  %s11115_s2 = inlined_call_operand.vmem [shape: f32[1,16], index: 2, kind: input, shape index: {}]   ;;  %s11116_s3 = inlined_call_operand.vmem [shape: f32[1,16], index: 3, kind: input, shape index: {}]   ;;  %s11117_s4 = inlined_call_operand.hbm [shape: bf16[144,16], index: 4, kind: input, shape index: {}]   ;;  %s11118_s5 = inlined_call_operand.vmem [shape: f32[1,16], index: 5, kind: input, shape index: {}]   ;;  %s11119_s6 = inlined_call_operand.vmem [shape: f32[1,16], index: 6, kind: input, shape index: {}]   ;;  %s11120_s7 = inlined_call_operand.vmem [shape: bf16[2,256,16], index: 7, kind: output, shape index: {}]  }
   0x1 LB: > { %s221_s27 = sshll.u32 %s11117_s4, 4  ;;  %s5345_s28 = sadd.s32 4294967295, %s6996_s24   ;;  %s6996_s24 = sphi %s7049_s24, %s18_s24   ;;  %s222_s27 = int_to_ptr.hbm [resolvable:$true] %s221_s27 }
   0x2   : > { %p5347_p0 = scmp.ge.s32.totalorder %s6996_s24, 1  ;;  %p201_p1 = scmp.lt.s32.totalorder %s6996_s24, 3 }
   0x3   : > { %p5569_p2 = scmp.eq.s32.totalorder %s5345_s28, 0  ;;  %s6998_s29 = smov [#allocation2]  }
   0x4   : > { %p202_p3 = pnand %p5347_p0, %p201_p1  ;;  %s223_s30 = sshll.u32 %s6998_s29, 4  ;;  %s224_s30 = int_to_ptr.vmem [resolvable:$true] %s223_s30 }
   0x5   : > { %s6999_s8 = smov 64   ;;  %s7000_s9 = smov 4  }
   0x6   : > { %p5565_p4 = pneg %p202_p3  ;;  %253 = sbr.rel (%p202_p3) target bundleno = 1201 (0x4b1), region = 48 }
   0x8   : > { %p5566_p5 = pnand %p5569_p2, %p5565_p4 }
   0xa   : > { %5568 = dma.hbm_to_vmem [thread:$0]  (!%p5566_p5), %s222_s27, 1152, %s224_s30, [#allocation3], %s6999_s8, %s6999_s8, %s7000_s9  }
   0xb   : > { %6991 = dma.done.wait (%p5569_p2), [#allocation3], 1152  }
   0xc   : > { %6993 = vsyncadd (%p5569_p2), [#allocation3], 4294966144  ;;  %p286_p6 = scmp.lt.s32.totalorder %s5345_s28, 1  ;;  %vm11266_vm0 = vcmask 1040384   ;;  %vm11257_vm1 = vcmask 1046528   ;;  %v11143_v3 = vmov 0.0  }
   0xd   : > { %v7080_v4 = vrot.slane %v11143_v3, 1  ;;  %s7002_s14 = smov 16   ;;  %vm11271_vm2 = vcmask 1045504   ;;  %s7003_s15 = smov 32  }
   0xe   : > { %s12766_s28 = smov (!%p286_p6, %s5345_s28), 1  ;;  %s7004_s16 = smov 48  }
   0xf   : > { %s5462_s10 = sshll.u32 %s12766_s28, 7  ;;  %11531 = vst [vmem:[#allocation8_spill] sm:$0xff] %v7080_v4  ;;  %s7005_s17 = smov 64  }
  0x10   : > { %s7068_s13 = scalar_lea.vmem %s11113_s0, %s5462_s10  ;;  %s7006_s18 = smov 80  }
  0x11   : > { %v7071_v0 = vld [vmem:[%s7068_s13 + $0x10] sm:$0xff]   ;;  %v7074_v1 = vld [vmem:[%s7068_s13 + $0x18] sm:$0xff]   ;;  %v7077_v2 = vld [vmem:[%s7068_s13 + $0x20] sm:$0xff]   ;;  %s7007_s19 = smov 96   ;;  %s7008_s20 = smov 112  }
  0x12   : > { %11528 = vst [vmem:[#allocation5_spill] sm:$0xff] %v7071_v0  ;;  %v11136_v5 = vunpack.c.h.bf16 %v7071_v0  ;;  %v11134_v6 = vunpack.c.l.bf16 %v7074_v1  ;;  %v11133_v7 = vunpack.c.h.bf16 %v7074_v1  ;;  %v11132_v8 = vunpack.c.l.bf16 %v7077_v2  ;;  %v7087_v9 = vld [vmem:[%s7068_s13] sm:$0xff]   ;;  %v7090_v10 = vld [vmem:[%s7068_s13 + $0x8] sm:$0xff]   ;;  %v7143_v40 = vld [vmem:[%s7068_s13 + $0x30] sm:$0xff]  }
  0x13   : > { %11529 = vst [vmem:[#allocation6_spill] sm:$0xff] %v7074_v1  ;;  %v11131_v11 = vunpack.c.h.bf16 %v7077_v2  ;;  %v11140_v12 = vunpack.c.h.bf16 %v7087_v9  ;;  %v11139_v13 = vunpack.c.l.bf16 %v7090_v10  ;;  %v11138_v14 = vunpack.c.h.bf16 %v7090_v10  ;;  %v7122_v27 = vld [vmem:[%s7068_s13 + $0x28] sm:$0xff]   ;;  %v7173_v53 = vld [vmem:[%s7068_s13 + $0x38] sm:$0xff]   ;;  %v7183_v58 = vld [vmem:[%s7068_s13 + $0x40] sm:$0xff]  }
  0x14   : > { %11530 = vst [vmem:[#allocation7_spill] sm:$0xff] %v7077_v2  ;;  %v904_v15 = vrot.slane %v11136_v5, 7  ;;  %v906_v16 = vrot.slane %v11134_v6, 7  ;;  %v908_v17 = vrot.slane %v11133_v7, 7  ;;  %v910_v18 = vrot.slane %v11132_v8, 7 }
  0x15   : > { %11532 = vst [vmem:[#allocation9_spill] sm:$0xff] %v7087_v9  ;;  %v11137_v19 = vunpack.c.l.bf16 %v7071_v0  ;;  %v896_v20 = vrot.slane %v11140_v12, 7  ;;  %v898_v21 = vrot.slane %v11139_v13, 7  ;;  %v900_v22 = vrot.slane %v11138_v14, 7 }
  0x16   : > { %11533 = vst [vmem:[#allocation10_spill] sm:$0xff] %v7090_v10  ;;  %v7112_v23 = vsel %vm11266_vm0, %v904_v15, %v906_v16  ;;  %v7115_v24 = vsel %vm11266_vm0, %v906_v16, %v908_v17  ;;  %v7118_v25 = vsel %vm11266_vm0, %v908_v17, %v910_v18  ;;  %v11141_v26 = vunpack.c.l.bf16 %v7087_v9 }
  0x17   : > { %11534 = vst [vmem:[#allocation11_spill] sm:$0xff] %v7112_v23  ;;  %v1433_v28 = vrot.slane %v7112_v23, 1  ;;  %v1435_v29 = vrot.slane %v7115_v24, 1  ;;  %v1437_v30 = vrot.slane %v7118_v25, 1  ;;  %v7128_v31 = vsel %vm11266_vm0, %v896_v20, %v898_v21 }
  0x18   : > { %11535 = vst [vmem:[#allocation12_spill] sm:$0xff] %v7115_v24  ;;  %v7131_v32 = vsel %vm11266_vm0, %v898_v21, %v900_v22  ;;  %v902_v33 = vrot.slane %v11137_v19, 7  ;;  %v1425_v34 = vrot.slane %v7128_v31, 1  ;;  %v895_v35 = vrot.slane %v11141_v26, 7 }
  0x19   : > { %11536 = vst [vmem:[#allocation13_spill] sm:$0xff] %v7118_v25  ;;  %v1436_v36 = vsel %vm11257_vm1, %v1433_v28, %v1435_v29  ;;  %v1438_v37 = vsel %vm11257_vm1, %v1435_v29, %v1437_v30  ;;  %v1427_v38 = vrot.slane %v7131_v32, 1  ;;  %v11130_v39 = vunpack.c.l.bf16 %v7122_v27  ;;  %v7202_v29 = vld [vmem:[%s7068_s13 + $0x48] sm:$0xff]  }
  0x1a   : > { %11537 = vst [vmem:[#allocation14_spill] sm:$0xff] %v7122_v27  ;;  %v7145_v41 = vpack.i.bf16 %v1438_v37, %v1436_v36  ;;  %v7148_v42 = vsel %vm11266_vm0, %v900_v22, %v902_v33  ;;  %v7151_v43 = vsel %vm11266_vm0, 0.0, %v895_v35  ;;  %v912_v44 = vrot.slane %v11131_v11, 7  ;;  %v7211_v37 = vld [vmem:[%s7068_s13 + $0x50] sm:$0xff]  }
  0x1b   : > { %11538 = vst [vmem:[#allocation15_spill] sm:$0xff] %v7143_v40  ;;  %v1428_v45 = vsel %vm11257_vm1, %v1425_v34, %v1427_v38  ;;  %v1429_v46 = vrot.slane %v7148_v42, 1  ;;  %v1421_v47 = vrot.slane %v7151_v43, 1  ;;  %v914_v48 = vrot.slane %v11130_v39, 7 }
  0x1c   : > { %11539 = vst [vmem:[#allocation16_spill] sm:$0xff] %v7151_v43  ;;  %5611 = vrot.lane.b32.xlu2 %v7145_v41, %s7002_s14  ;;  %v7163_v49 = vsel %vm11266_vm0, %v910_v18, %v912_v44  ;;  %v7166_v50 = vsel %vm11266_vm0, %v902_v33, %v904_v15  ;;  %v7169_v51 = vsel %vm11266_vm0, %v895_v35, %v896_v20  ;;  %v11124_v52 = vunpack.c.h.bf16 %v7143_v40 }
  0x1d   : > { %11540 = vst [vmem:[#allocation17_spill] sm:$0xff] %v7163_v49  ;;  %v1430_v54 = vsel %vm11257_vm1, %v1427_v38, %v1429_v46  ;;  %v1422_v55 = vsel %vm11257_vm1, %v7080_v4, %v1421_v47  ;;  %v7179_v56 = vsel %vm11266_vm0, %v912_v44, %v914_v48  ;;  %v1439_v57 = vrot.slane %v7163_v49, 1 }
  0x1e   : > { %11541 = vst [vmem:[#allocation18_spill] sm:$0xff] %v7169_v51  ;;  %v7185_v59 = vpack.i.bf16 %v1430_v54, %v1428_v45  ;;  %v5590_v60 = vpack.i.bf16 %v1422_v55, %v7080_v4  ;;  %v1441_v61 = vrot.slane %v7179_v56, 1  ;;  %v1431_v62 = vrot.slane %v7166_v50, 1  ;;  %v7229_v55 = vld [vmem:[%s7068_s13 + $0x58] sm:$0xff]  }
  0x1f   : > { %11542 = vst [vmem:[#allocation19_spill] sm:$0xff] %v7173_v53  ;;  %v1440_v63 = vsel %vm11257_vm1, %v1437_v30, %v1439_v57  ;;  %v1423_v15 = vrot.slane %v7169_v51, 1  ;;  %v11123_v16 = vunpack.c.l.bf16 %v7173_v53  ;;  %v11122_v17 = vunpack.c.h.bf16 %v7173_v53 }
  0x20   : > { %11543 = vst [vmem:[#allocation20_spill] sm:$0xff] %v7179_v56  ;;  %5601 = vrot.lane.b32.xlu1 %v7185_v59, %s7002_s14  ;;  %5591 = vrot.lane.b32.xlu0 %v5590_v60, %s7002_s14  ;;  %v1442_v18 = vsel %vm11257_vm1, %v1439_v57, %v1441_v61  ;;  %v1432_v20 = vsel %vm11257_vm1, %v1429_v46, %v1431_v62  ;;  %v11121_v22 = vunpack.c.l.bf16 %v7183_v58  ;;  %v11125_v54 = vunpack.c.h.bf16 %v7202_v29 }
  0x21   : > { %11544 = vst [vmem:[#allocation21_spill] sm:$0xff] %v7183_v58  ;;  %v1434_v21 = vsel %vm11257_vm1, %v1431_v62, %v1433_v28  ;;  %v7204_v30 = vpack.i.bf16 %v1442_v18, %v1440_v63  ;;  %v1424_v35 = vsel %vm11257_vm1, %v1421_v47, %v1423_v15  ;;  %v1426_v36 = vsel %vm11257_vm1, %v1423_v15, %v1425_v34 }
  0x22   : > { %11545 = vst [vmem:[#allocation22_spill] sm:$0xff] %v7185_v59  ;;  %v7206_v33 = vpack.i.bf16 %v1434_v21, %v1432_v20  ;;  %v7213_v38 = vpack.i.bf16 %v1426_v36, %v1424_v35  ;;  %v920_v28 = vrot.slane %v11124_v52, 7  ;;  %v922_v44 = vrot.slane %v11123_v16, 7 }
  0x23   : > { %11546 = vst [vmem:[#allocation23_spill] sm:$0xff] %v7202_v29  ;;  %v924_v45 = vrot.slane %v11122_v17, 7  ;;  %v7223_v46 = vrot.slane %v11121_v22, 7  ;;  %v11128_v47 = vunpack.c.h.bf16 %v7122_v27  ;;  %v11126_v34 = vunpack.c.l.bf16 %v7143_v40  ;;  %v7380_v27 = vld [vmem:[%s7068_s13 + $0x78] sm:$0xff]  }
  0x24   : > { %11547 = vst [vmem:[#allocation24_spill] sm:$0xff] %v7204_v30  ;;  %5616 = vrot.lane.b32.xlu2 %v7204_v30, %s7002_s14  ;;  %v7234_v57 = vsel %vm11266_vm0, %v920_v28, %v922_v44  ;;  %v11127_v62 = vunpack.c.l.bf16 %v7211_v37  ;;  %v11129_v63 = vunpack.c.h.bf16 %v7211_v37  ;;  %v932_v22 = vrot.slane %v11125_v54, 7 }
  0x25   : > { %11548 = vst [vmem:[#allocation25_spill] sm:$0xff] %v7206_v33  ;;  %v7237_v60 = vsel %vm11266_vm0, %v922_v44, %v924_v45  ;;  %v7243_v15 = vsel %vm11266_vm0, %v924_v45, %v7223_v46  ;;  %v1449_v18 = vrot.slane %v7234_v57, 1  ;;  %v916_v21 = vrot.slane %v11128_v47, 7 }
  0x26   : > { %11549 = vst [vmem:[#allocation26_spill] sm:$0xff] %v7211_v37  ;;  %v1451_v20 = vrot.slane %v7237_v60, 1  ;;  %v1453_v35 = vrot.slane %v7243_v15, 1  ;;  %v918_v36 = vrot.slane %v11126_v34, 7  ;;  %v11135_v44 = vunpack.c.l.bf16 %v7229_v55 }
  0x27   : > { %11550 = vst [vmem:[#allocation27_spill] sm:$0xff] %v7229_v55  ;;  %v7257_v17 = vsel %vm11266_vm0, %v914_v48, %v916_v21  ;;  %v934_v16 = vrot.slane %v11127_v62, 7  ;;  %v936_v52 = vrot.slane %v11129_v63, 7  ;;  %v11574_v1 = vunpack.c.h.bf16 %v7229_v55 }
  0x28   : > { %11551 = vst [vmem:[#allocation28_spill] sm:$0xff] %v7234_v57  ;;  %v1452_v45 = vsel %vm11257_vm1, %v1449_v18, %v1451_v20  ;;  %5606 = vrot.lane.b32.xlu1 %v7206_v33, %s7002_s14  ;;  %5596 = vrot.lane.b32.xlu0 %v7213_v38, %s7002_s14  ;;  %v1454_v54 = vsel %vm11257_vm1, %v1451_v20, %v1453_v35  ;;  %v1443_v62 = vrot.slane %v7257_v17, 1  ;;  %v11580_v55 = vunpack.c.l.bf16 %v7380_v27 }
  0x29   : > { %11552 = vst [vmem:[#allocation29_spill] sm:$0xff] %v7237_v60  ;;  %v7269_v34 = vsel %vm11266_vm0, %v916_v21, %v918_v36  ;;  %v7272_v48 = vsel %vm11266_vm0, %v918_v36, %v920_v28  ;;  %v7275_v47 = vpack.i.bf16 %v1454_v54, %v1452_v45  ;;  %v7280_v11 = vsel %vm11266_vm0, %v932_v22, %v934_v16  ;;  %v7292_v54 = vld [vmem:[%s7068_s13 + $0x60] sm:$0xff]  }
  0x2a   : > { %11553 = vst [vmem:[#allocation30_spill] sm:$0xff] %v7243_v15  ;;  %v1445_v63 = vrot.slane %v7269_v34, 1  ;;  %v1447_v39 = vrot.slane %v7272_v48, 1  ;;  %v1444_v20 = vsel %vm11257_vm1, %v1441_v61, %v1443_v62  ;;  %v7284_v21 = vsel %vm11266_vm0, %v934_v16, %v936_v52  ;;  %v7299_v61 = vld [vmem:[%s7068_s13 + $0x68] sm:$0xff]   ;;  %v7302_v16 = vld [vmem:[%s7068_s13 + $0x70] sm:$0xff]  }
  0x2b   : > { %11554 = vst [vmem:[#allocation31_spill] sm:$0xff] %v7257_v17  ;;  %v7288_v28 = vrot.slane %v11135_v44, 7  ;;  %v1461_v36 = vrot.slane %v7280_v11, 1  ;;  %v1463_v6 = vrot.slane %v7284_v21, 1  ;;  %v11144_v14 = vunpack.c.h.bf16 %v7292_v54 }
  0x2c   : > { %11555 = vst [vmem:[#allocation32_spill] sm:$0xff] %v7269_v34  ;;  %v1448_v45 = vsel %vm11257_vm1, %v1445_v63, %v1447_v39  ;;  %v1450_v8 = vsel %vm11257_vm1, %v1447_v39, %v1449_v18  ;;  %v1446_v7 = vsel %vm11257_vm1, %v1443_v62, %v1445_v63  ;;  %5631 = vrot.lane.b32.xlu2 %v7275_v47, %s7002_s14  ;;  %v11142_v39 = vunpack.c.h.bf16 %v7183_v58 }
  0x2d   : > { %11556 = vst [vmem:[#allocation33_spill] sm:$0xff] %v7272_v48  ;;  %v7306_v44 = vpack.i.bf16 %v1450_v8, %v1448_v45  ;;  %v7308_v5 = vpack.i.bf16 %v1446_v7, %v1444_v20  ;;  %v7312_v19 = vsel %vm11266_vm0, %v936_v52, %v7288_v28  ;;  %v1464_v62 = vsel %vm11257_vm1, %v1461_v36, %v1463_v6 }
  0x2e   : > { %11557 = vst [vmem:[#allocation34_spill] sm:$0xff] %v7275_v47  ;;  %v1465_v63 = vrot.slane %v7312_v19, 1  ;;  %v11145_v18 = vunpack.c.l.bf16 %v7202_v29  ;;  %v928_v8 = vrot.slane %v11142_v39, 7  ;;  %v11148_v7 = vunpack.c.l.bf16 %v7299_v61 }
  0x2f   : > { %11558 = vst [vmem:[#allocation35_spill] sm:$0xff] %v7280_v11  ;;  %v11149_v20 = vunpack.c.h.bf16 %v7299_v61  ;;  %v944_v12 = vrot.slane %v11144_v14, 7  ;;  %v11168_v40 = vunpack.c.l.bf16 %v7292_v54  ;;  %v940_v0 = vrot.slane %v11574_v1, 7 }
  0x30   : > { %11559 = vst [vmem:[#allocation36_spill] sm:$0xff] %v7284_v21  ;;  %v1466_v45 = vsel %vm11257_vm1, %v1463_v6, %v1465_v63  ;;  %v930_v13 = vrot.slane %v11145_v18, 7  ;;  %5626 = vrot.lane.b32.xlu1 %v7306_v44, %s7002_s14  ;;  %5621 = vrot.lane.b32.xlu0 %v7308_v5, %s7002_s14  ;;  %v7338_v3 = vsel %vm11266_vm0, %v7223_v46, %v928_v8  ;;  %v946_v6 = vrot.slane %v11148_v7, 7 }
  0x31   : > { %11560 = vst [vmem:[#allocation37_spill] sm:$0xff] %v7292_v54  ;;  %v7334_v39 = vpack.i.bf16 %v1466_v45, %v1464_v62  ;;  %v948_v14 = vrot.slane %v11149_v20, 7  ;;  %v1455_v52 = vrot.slane %v7338_v3, 1  ;;  %v11570_v62 = vunpack.c.l.bf16 %v7302_v16 }
  0x32   : > { %11561 = vst [vmem:[#allocation38_spill] sm:$0xff] %v7299_v61  ;;  %v7345_v18 = vsel %vm11266_vm0, %v928_v8, %v930_v13  ;;  %v7348_v26 = vsel %vm11266_vm0, %v930_v13, %v932_v22  ;;  %v7356_v7 = vsel %vm11266_vm0, %v944_v12, %v946_v6  ;;  %v7399_v1 = vsel %vm11266_vm0, %v7288_v28, %v940_v0 }
  0x33   : > { %11562 = vst [vmem:[#allocation39_spill] sm:$0xff] %v7302_v16  ;;  %v950_v45 = vrot.slane %v11570_v62, 7  ;;  %v1457_v46 = vrot.slane %v7345_v18, 1  ;;  %v1459_v37 = vrot.slane %v7348_v26, 1  ;;  %v7359_v20 = vsel %vm11266_vm0, %v946_v6, %v948_v14 }
  0x34   : > { %11563 = vst [vmem:[#allocation40_spill] sm:$0xff] %v7306_v44  ;;  %v1456_v8 = vsel %vm11257_vm1, %v1453_v35, %v1455_v52  ;;  %v1473_v22 = vrot.slane %v7356_v7, 1  ;;  %v1475_v62 = vrot.slane %v7359_v20, 1  ;;  %5646 = vrot.lane.b32.xlu2 %v7334_v39, %s7002_s14  ;;  %v1158_v10 = vrot.slane %v7169_v51, 2 }
  0x35   : > { %11564 = vst [vmem:[#allocation41_spill] sm:$0xff] %v7308_v5  ;;  %v7363_v13 = vsel %vm11266_vm0, %v948_v14, %v950_v45  ;;  %v1460_v61 = vsel %vm11257_vm1, %v1457_v46, %v1459_v37  ;;  %v1462_v29 = vsel %vm11257_vm1, %v1459_v37, %v1461_v36  ;;  %v1458_v58 = vsel %vm11257_vm1, %v1455_v52, %v1457_v46 }
  0x36   : > { %11565 = vst [vmem:[#allocation42_spill] sm:$0xff] %v7312_v19  ;;  %v1477_v6 = vrot.slane %v7363_v13, 1  ;;  %v7373_v53 = vpack.i.bf16 %v1462_v29, %v1460_v61  ;;  %v7375_v35 = vpack.i.bf16 %v1458_v58, %v1456_v8  ;;  %v1476_v14 = vsel %vm11257_vm1, %v1473_v22, %v1475_v62 }
  0x37   : > { %11566 = vst [vmem:[#allocation43_spill] sm:$0xff] %v7334_v39  ;;  %v297_v37 = vlaneseq  ;;  %v942_v29 = vrot.slane %v11168_v40, 7  ;;  %v11576_v58 = vmov 0.0   ;;  %v1156_v52 = vrot.slane %v7151_v43, 2 }
  0x38   : > { %11567 = vst [vmem:[#allocation44_spill] sm:$0xff] %v7338_v3  ;;  %v1478_v2 = vsel %vm11257_vm1, %v1475_v62, %v1477_v6  ;;  %v7390_v61 = vrot.slane %v11576_v58, 2  ;;  %5641 = vrot.lane.b32.xlu1 %v7373_v53, %s7002_s14  ;;  %5636 = vrot.lane.b32.xlu0 %v7375_v35, %s7002_s14  ;;  %v11181_v46 = vunpack.c.h.bf16 %v7302_v16  ;;  %v1467_v58 = vrot.slane %v7399_v1, 1 }
  0x39   : > { %11568 = vst [vmem:[#allocation45_spill] sm:$0xff] %v7345_v18  ;;  %v7385_v36 = vpack.i.bf16 %v1478_v2, %v1476_v14  ;;  %v7401_v2 = vshrl.u32 %v297_v37, 7  ;;  %v7406_v62 = vsel %vm11266_vm0, %v940_v0, %v942_v29  ;;  %v7409_v14 = vsel %vm11266_vm0, %v942_v29, %v944_v12 }
  0x3a   : > { %11569 = vst [vmem:[#allocation46_spill] sm:$0xff] %v7348_v26  ;;  %v1157_v40 = vsel %vm11271_vm2, %v7390_v61, %v1156_v52  ;;  %v1469_v28 = vrot.slane %v7406_v62, 1  ;;  %v1471_v37 = vrot.slane %v7409_v14, 1  ;;  %v952_v8 = vrot.slane %v11181_v46, 7 }
  0x3b   : > { %11571 = vst [vmem:[#allocation47_spill] sm:$0xff] %v7373_v53  ;;  %v299_v54 = vadd.s32 8, %v7401_v2  ;;  %v1468_v0 = vsel %vm11257_vm1, %v1465_v63, %v1467_v58  ;;  %v7422_v12 = vrot.slane %v11580_v55, 7  ;;  %v301_v29 = vadd.s32 24, %v7401_v2 }
  0x3c   : > { %11572 = vst [vmem:[#allocation48_spill] sm:$0xff] %v7375_v35  ;;  %5661 = vrot.lane.b32.xlu2 %v7385_v36, %s7002_s14  ;;  %v1472_v9 = vsel %vm11257_vm1, %v1469_v28, %v1471_v37  ;;  %v1474_v4 = vsel %vm11257_vm1, %v1471_v37, %v1473_v22  ;;  %v1470_v16 = vsel %vm11257_vm1, %v1467_v58, %v1469_v28  ;;  %v1184_v47 = vrot.slane %v7234_v57, 2 }
  0x3d   : > { %11573 = vst [vmem:[#allocation49_spill] sm:$0xff] %v7380_v27  ;;  %v341_v46 = vand.u32 15, %v299_v54  ;;  %v7431_v53 = vpack.i.bf16 %v1474_v4, %v1472_v9  ;;  %v7433_v63 = vpack.i.bf16 %v1470_v16, %v1468_v0  ;;  %v7436_v55 = vsel %vm11266_vm0, %v950_v45, %v952_v8 }
  0x3e   : > { %11575 = vst [vmem:[#allocation50_spill] sm:$0xff] %v7385_v36  ;;  %v7440_v39 = vsel %vm11266_vm0, %v952_v8, %v7422_v12  ;;  %v11583_v36 = vmov 0  ;;  %v1479_v22 = vrot.slane %v7436_v55, 1  ;;  %v355_v54 = vand.u32 15, %v301_v29 }
  0x3f   : > { %11577 = vst [vmem:[#allocation51_spill] sm:$0xff] %v7390_v61  ;;  %vm7442_vm3 = vcmp.ne.s32.totalorder %v341_v46, 15  ;;  %v11190_v58 = vrot.slane %v7440_v39, 1  ;;  %v1160_v9 = vrot.slane %v7128_v31, 2  ;;  %v305_v16 = vadd.s32 56, %v7401_v2 }
  0x40   : > { %11578 = vst [vmem:[#allocation52_spill] sm:$0xff] %v7399_v1  ;;  %v11584_v36 = vsel %vm7442_vm3, 4294967295, %v11583_v36  ;;  %v1251_v4 = vsel %vm7442_vm3, %v1157_v40, 0.0  ;;  %5656 = vrot.lane.b32.xlu1 %v7431_v53, %s7002_s14  ;;  %5651 = vrot.lane.b32.xlu0 %v7433_v63, %s7002_s14  ;;  %v1480_v46 = vsel %vm11257_vm1, %v1477_v6, %v1479_v22  ;;  %vm7458_vm4 = vcmp.ne.s32.totalorder %v355_v54, 15 }
  0x41   : > { %11579 = vst [vmem:[#allocation53_spill] sm:$0xff] %v7406_v62  ;;  %v5670_v45 = vpack.i.bf16 %v1251_v4, %v7390_v61  ;;  %v11586_v8 = vmov 0  ;;  %v7463_v40 = vsel %vm11271_vm2, %v1156_v52, %v1158_v10  ;;  %v1482_v28 = vsel %vm11257_vm1, %v1479_v22, %v11190_v58 }
  0x42   : > { %11581 = vst [vmem:[#allocation54_spill] sm:$0xff] %v7431_v53  ;;  %v11587_v8 = vsel %vm7458_vm4, 4294967295, %v11586_v8  ;;  %v7469_v37 = vsel %vm11271_vm2, %v1158_v10, %v1160_v9  ;;  %v383_v0 = vand.u32 15, %v305_v16  ;;  %v1164_v29 = vrot.slane %v7148_v42, 2 }
  0x43   : > { %11582 = vst [vmem:[#allocation55_spill] sm:$0xff] %v7433_v63  ;;  %v1253_v6 = vsel %vm7458_vm4, %v7469_v37, 0.0  ;;  %v1166_v54 = vrot.slane %v7166_v50, 2  ;;  %v1168_v4 = vrot.slane %v7112_v23, 2  ;;  %v303_v52 = vadd.s32 40, %v7401_v2 }
  0x44   : > { %11585 = vst [vmem:[#allocation56_spill] sm:$0xff] %v11584_v36  ;;  %v5675_v61 = vpack.i.bf16 %v1253_v6, %v7463_v40  ;;  %vm7479_vm5 = vcmp.ne.s32.totalorder %v383_v0, 15  ;;  %v11591_v22 = vmov 0  ;;  %v1162_v10 = vrot.slane %v7131_v32, 2 }
  0x45   : > { %11588 = vst [vmem:[#allocation57_spill] sm:$0xff] %v11587_v8  ;;  %v11592_v22 = vsel %vm7479_vm5, 4294967295, %v11591_v22  ;;  %v307_v16 = vadd.s32 72, %v7401_v2  ;;  %v7485_v58 = vpack.i.bf16 %v1482_v28, %v1480_v46  ;;  %v7488_v36 = vsel %vm11271_vm2, %v1166_v54, %v1168_v4 }
  0x46   : > { %11589 = vst [vmem:[#allocation58_spill] sm:$0xff] %v7463_v40  ;;  %v1170_v53 = vrot.slane %v7115_v24, 2  ;;  %5676 = vrot.lane.b32.xlu2 %v5675_v61, %s7003_s15  ;;  %v7493_v0 = vsel %vm11271_vm2, %v1164_v29, %v1166_v54  ;;  %v7496_v6 = vsel %vm11271_vm2, %v1162_v10, %v1164_v29  ;;  %v1257_v46 = vsel %vm7479_vm5, %v7488_v36, 0.0 }
  0x47   : > { %11590 = vst [vmem:[#allocation59_spill] sm:$0xff] %v7469_v37  ;;  %v369_v37 = vand.u32 15, %v303_v52  ;;  %v397_v40 = vand.u32 15, %v307_v16  ;;  %v11598_v28 = vmov 0  ;;  %v7506_v52 = vsel %vm11271_vm2, %v1160_v9, %v1162_v10 }
  0x48   : > { %11593 = vst [vmem:[#allocation60_spill] sm:$0xff] %v11592_v22  ;;  %v1172_v61 = vrot.slane %v7118_v25, 2  ;;  %v11602_v29 = vmov 0  ;;  %v7517_v16 = vsel %vm11271_vm2, %v1168_v4, %v1170_v53  ;;  %5671 = vrot.lane.b32.xlu1 %v5670_v45, %s7003_s15  ;;  %5666 = vrot.lane.b32.xlu0 %v7485_v58, %s7002_s14  ;;  %v1176_v10 = vrot.slane %v7179_v56, 2 }
  0x49   : > { %11594 = vst [vmem:[#allocation61_spill] sm:$0xff] %v7485_v58  ;;  %vm7501_vm6 = vcmp.ne.s32.totalorder %v369_v37, 15  ;;  %vm7512_vm7 = vcmp.ne.s32.totalorder %v397_v40, 15  ;;  %v311_v37 = vadd.s32 104, %v7401_v2  ;;  %v1178_v40 = vrot.slane %v7257_v17, 2 }
  0x4a   : > { %11595 = vst [vmem:[#allocation62_spill] sm:$0xff] %v7488_v36  ;;  %v11599_v28 = vsel %vm7501_vm6, 4294967295, %v11598_v28  ;;  %v1255_v54 = vsel %vm7501_vm6, %v7496_v6, 0.0  ;;  %v11603_v29 = vsel %vm7512_vm7, 4294967295, %v11602_v29  ;;  %v7524_v9 = vsel %vm11271_vm2, %v1170_v53, %v1172_v61 }
  0x4b   : > { %11596 = vst [vmem:[#allocation63_spill] sm:$0xff] %v7493_v0  ;;  %v1180_v22 = vrot.slane %v7269_v34, 2  ;;  %v1259_v4 = vsel %vm7512_vm7, %v7524_v9, 0.0  ;;  %v309_v36 = vadd.s32 88, %v7401_v2  ;;  %v1174_v45 = vrot.slane %v7163_v49, 2 }
  0x4c   : > { %11597 = vst [vmem:[#allocation64_spill] sm:$0xff] %v7496_v6  ;;  %v5690_v8 = vpack.i.bf16 %v1259_v4, %v7517_v16  ;;  %v313_v53 = vadd.s32 120, %v7401_v2  ;;  %v5685_v6 = vpack.i.bf16 %v1257_v46, %v7493_v0  ;;  %v5680_v58 = vpack.i.bf16 %v1255_v54, %v7506_v52 }
  0x4d   : > { %11600 = vst [vmem:[#allocation65_spill] sm:$0xff] %v11599_v28  ;;  %v425_v28 = vand.u32 15, %v311_v37  ;;  %v7539_v63 = vsel %vm11271_vm2, %v1178_v40, %v1180_v22  ;;  %v411_v44 = vand.u32 15, %v309_v36  ;;  %v7549_v4 = vsel %vm11271_vm2, %v1176_v10, %v1178_v40 }
  0x4e   : > { %11601 = vst [vmem:[#allocation66_spill] sm:$0xff] %v7506_v52  ;;  %v439_v37 = vand.u32 15, %v313_v53  ;;  %5691 = vrot.lane.b32.xlu2 %v5690_v8, %s7003_s15  ;;  %v7552_v46 = vsel %vm11271_vm2, %v1172_v61, %v1174_v45  ;;  %v7555_v54 = vsel %vm11271_vm2, %v1174_v45, %v1176_v10  ;;  %v317_v36 = vadd.s32 152, %v7401_v2 }
  0x4f   : > { %11604 = vst [vmem:[#allocation67_spill] sm:$0xff] %v11603_v29  ;;  %vm7541_vm8 = vcmp.ne.s32.totalorder %v425_v28, 15  ;;  %v11608_v29 = vmov 0  ;;  %vm7558_vm9 = vcmp.ne.s32.totalorder %v411_v44, 15  ;;  %v11614_v28 = vmov 0 }
  0x50   : > { %11605 = vst [vmem:[#allocation68_spill] sm:$0xff] %v7517_v16  ;;  %v11609_v29 = vsel %vm7541_vm8, 4294967295, %v11608_v29  ;;  %v11615_v28 = vsel %vm7558_vm9, 4294967295, %v11614_v28  ;;  %vm7562_vm10 = vcmp.ne.s32.totalorder %v439_v37, 15  ;;  %v11617_v53 = vmov 0  ;;  %5686 = vrot.lane.b32.xlu1 %v5685_v6, %s7003_s15  ;;  %5681 = vrot.lane.b32.xlu0 %v5680_v58, %s7003_s15 }
  0x51   : > { %11606 = vst [vmem:[#allocation69_spill] sm:$0xff] %v7524_v9  ;;  %v1182_v9 = vrot.slane %v7272_v48, 2  ;;  %v11618_v53 = vsel %vm7562_vm10, 4294967295, %v11617_v53  ;;  %v1263_v61 = vsel %vm7541_vm8, %v7539_v63, 0.0  ;;  %v467_v10 = vand.u32 15, %v317_v36 }
  0x52   : > { %11607 = vst [vmem:[#allocation70_spill] sm:$0xff] %v7539_v63  ;;  %v1188_v45 = vrot.slane %v7243_v15, 2  ;;  %v315_v37 = vadd.s32 136, %v7401_v2  ;;  %v1261_v63 = vsel %vm7558_vm9, %v7555_v54, 0.0  ;;  %v1194_v6 = vrot.slane %v7348_v26, 2 }
  0x53   : > { %11610 = vst [vmem:[#allocation71_spill] sm:$0xff] %v11609_v29  ;;  %v7567_v8 = vsel %vm11271_vm2, %v1180_v22, %v1182_v9  ;;  %v7570_v40 = vsel %vm11271_vm2, %v1182_v9, %v1184_v47  ;;  %v1190_v22 = vrot.slane %v7338_v3, 2  ;;  %v1192_v9 = vrot.slane %v7345_v18, 2 }
  0x54   : > { %11611 = vst [vmem:[#allocation72_spill] sm:$0xff] %v7549_v4  ;;  %v1265_v44 = vsel %vm7562_vm10, %v7570_v40, 0.0  ;;  %v1186_v29 = vrot.slane %v7237_v60, 2  ;;  %v5700_v58 = vpack.i.bf16 %v1263_v61, %v7549_v4  ;;  %v1196_v0 = vrot.slane %v7280_v11, 2 }
  0x55   : > { %11612 = vst [vmem:[#allocation73_spill] sm:$0xff] %v7552_v46  ;;  %v5705_v36 = vpack.i.bf16 %v1265_v44, %v7567_v8  ;;  %v5695_v52 = vpack.i.bf16 %v1261_v63, %v7552_v46  ;;  %vm7594_vm11 = vcmp.ne.s32.totalorder %v467_v10, 15  ;;  %v11622_v35 = vmov 0 }
  0x56   : > { %11613 = vst [vmem:[#allocation74_spill] sm:$0xff] %v7555_v54  ;;  %v11623_v35 = vsel %vm7594_vm11, 4294967295, %v11622_v35  ;;  %v7602_v44 = vsel %vm11271_vm2, %v1186_v29, %v1188_v45  ;;  %v7614_v63 = vsel %vm11271_vm2, %v1194_v6, %v1196_v0  ;;  %v323_v61 = vadd.s32 200, %v7401_v2 }
  0x57   : > { %11616 = vst [vmem:[#allocation75_spill] sm:$0xff] %v11615_v28  ;;  %v7599_v28 = vsel %vm11271_vm2, %v1190_v22, %v1192_v9  ;;  %5706 = vrot.lane.b32.xlu2 %v5705_v36, %s7003_s15  ;;  %v7618_v10 = vsel %vm11271_vm2, %v1188_v45, %v1190_v22  ;;  %v7630_v36 = vsel %vm11271_vm2, %v1184_v47, %v1186_v29  ;;  %v1200_v4 = vrot.slane %v7312_v19, 2 }
  0x58   : > { %11619 = vst [vmem:[#allocation76_spill] sm:$0xff] %v11618_v53  ;;  %v453_v53 = vand.u32 15, %v315_v37  ;;  %v11627_v37 = vmov 0  ;;  %v321_v46 = vadd.s32 184, %v7401_v2  ;;  %5701 = vrot.lane.b32.xlu1 %v5700_v58, %s7003_s15  ;;  %5696 = vrot.lane.b32.xlu0 %v5695_v52, %s7003_s15  ;;  %v1202_v22 = vrot.slane %v7399_v1, 2 }
  0x59   : > { %11620 = vst [vmem:[#allocation77_spill] sm:$0xff] %v7567_v8  ;;  %v7621_v8 = vsel %vm11271_vm2, %v1192_v9, %v1194_v6  ;;  %v325_v9 = vadd.s32 216, %v7401_v2  ;;  %v1206_v6 = vrot.slane %v7409_v14, 2  ;;  %v509_v29 = vand.u32 15, %v323_v61 }
  0x5a   : > { %11621 = vst [vmem:[#allocation78_spill] sm:$0xff] %v7570_v40  ;;  %v319_v40 = vadd.s32 168, %v7401_v2  ;;  %vm7605_vm12 = vcmp.ne.s32.totalorder %v453_v53, 15  ;;  %v495_v58 = vand.u32 15, %v321_v46  ;;  %v1208_v52 = vrot.slane %v7356_v7, 2 }
  0x5b   : > { %11624 = vst [vmem:[#allocation79_spill] sm:$0xff] %v11623_v35  ;;  %v11628_v37 = vsel %vm7605_vm12, 4294967295, %v11627_v37  ;;  %v1267_v45 = vsel %vm7605_vm12, %v7602_v44, 0.0  ;;  %v1204_v35 = vrot.slane %v7406_v62, 2  ;;  %vm7656_vm15 = vcmp.ne.s32.totalorder %v509_v29, 15 }
  0x5c   : > { %v481_v16 = vand.u32 15, %v319_v40  ;;  %11625 = vst [vmem:[#allocation80_spill] sm:$0xff] %v7599_v28  ;;  %v11630_v40 = vmov 0  ;;  %v7653_v54 = vsel %vm11271_vm2, %v1206_v6, %v1208_v52  ;;  %v11641_v61 = vmov 0 }
  0x5d   : > { %11626 = vst [vmem:[#allocation81_spill] sm:$0xff] %v7602_v44  ;;  %v11637_v44 = vmov 0  ;;  %v11642_v61 = vsel %vm7656_vm15, 4294967295, %v11641_v61  ;;  %v7661_v46 = vsel %vm11271_vm2, %v1202_v22, %v1204_v35  ;;  %vm7667_vm1 = vcmp.ne.s32.totalorder %v495_v58, 15 }
  0x5e   : > { %11629 = vst [vmem:[#allocation82_spill] sm:$0xff] %v11628_v37  ;;  %vm7609_vm13 = vcmp.ne.s32.totalorder %v481_v16, 15  ;;  %v1269_v16 = vsel %vm7594_vm11, %v7599_v28, 0.0  ;;  %v523_v28 = vand.u32 15, %v325_v9  ;;  %v334_v29 = vand.u32 15, %v7401_v2 }
  0x5f   : > { %v11631_v40 = vsel %vm7609_vm13, 4294967295, %v11630_v40  ;;  %11633 = vst [vmem:[#allocation84_spill] sm:$0xff] %v7614_v63  ;;  %v1271_v53 = vsel %vm7609_vm13, %v7614_v63, 0.0  ;;  %v1198_v63 = vrot.slane %v7284_v21, 2  ;;  %v5715_v37 = vpack.i.bf16 %v1269_v16, %v7618_v10 }
  0x60   : > { %11632 = vst [vmem:[#allocation83_spill] sm:$0xff] %v11631_v40  ;;  %v5720_v47 = vpack.i.bf16 %v1271_v53, %v7621_v8  ;;  %v5710_v40 = vpack.i.bf16 %v1267_v45, %v7630_v36  ;;  %vm7648_vm14 = vcmp.ne.s32.totalorder %v523_v28, 15  ;;  %v329_v28 = vadd.s32 248, %v7401_v2 }
  0x61   : > { %11634 = vst [vmem:[#allocation85_spill] sm:$0xff] %v7618_v10  ;;  %v11638_v44 = vsel %vm7648_vm14, 4294967295, %v11637_v44  ;;  %v7664_v53 = vsel %vm11271_vm2, %v1198_v63, %v1200_v4  ;;  %v11646_v16 = vmov 0  ;;  %v7672_v45 = vsel %vm11271_vm2, %v1204_v35, %v1206_v6  ;;  %5716 = vrot.lane.b32.xlu1 %v5715_v37, %s7003_s15 }
  0x62   : > { %11635 = vst [vmem:[#allocation86_spill] sm:$0xff] %v7621_v8  ;;  %5721 = vrot.lane.b32.xlu2 %v5720_v47, %s7003_s15  ;;  %v11647_v16 = vsel %vm7667_vm1, 4294967295, %v11646_v16  ;;  %v1277_v9 = vsel %vm7648_vm14, %v7653_v54, 0.0  ;;  %v327_v47 = vadd.s32 232, %v7401_v2  ;;  %5711 = vrot.lane.b32.xlu0 %v5710_v40, %s7003_s15  ;;  %v7682_v58 = vsel %vm11271_vm2, %v1200_v4, %v1202_v22 }
  0x63   : > { %11636 = vst [vmem:[#allocation87_spill] sm:$0xff] %v7630_v36  ;;  %v1275_v35 = vsel %vm7656_vm15, %v7661_v46, 0.0  ;;  %v7688_v6 = vsel %vm11271_vm2, %v1196_v0, %v1198_v63  ;;  %v5735_v37 = vpack.i.bf16 %v1277_v9, %v7672_v45  ;;  %v551_v8 = vand.u32 15, %v329_v28 }
  0x64   : > { %11639 = vst [vmem:[#allocation88_spill] sm:$0xff] %v11638_v44  ;;  %v1273_v44 = vsel %vm7667_vm1, %v7664_v53, 0.0  ;;  %v11278_v40 = vrot.slane %v7440_v39, 2  ;;  %v1212_v4 = vrot.slane %v7363_v13, 2  ;;  %v537_v22 = vand.u32 15, %v327_v47 }
  0x65   : > { %11640 = vst [vmem:[#allocation89_spill] sm:$0xff] %v7653_v54  ;;  %v1214_v54 = vrot.slane %v7436_v55, 2  ;;  %vm7698_vm0 = vcmp.ne.s32.totalorder %v334_v29, 0  ;;  %v304_v0 = vadd.s32 48, %v7401_v2  ;;  %v5730_v63 = vpack.i.bf16 %v1275_v35, %v7682_v58 }
  0x66   : > { %11643 = vst [vmem:[#allocation90_spill] sm:$0xff] %v11642_v61  ;;  %v1210_v61 = vrot.slane %v7359_v20, 2  ;;  %vm7706_vm2 = vcmp.ne.s32.totalorder %v551_v8, 15  ;;  %v11655_v28 = vmov 0  ;;  %vm11658_vm15 = vcmask 1045504  }
  0x67   : > { %11644 = vst [vmem:[#allocation91_spill] sm:$0xff] %v7661_v46  ;;  %v11652_v46 = vmov 0  ;;  %v11656_v28 = vsel %vm7706_vm2, 4294967295, %v11655_v28  ;;  %v7713_v9 = vsel %vm11658_vm15, %v1214_v54, %v11278_v40  ;;  %v302_v47 = vadd.s32 32, %v7401_v2  ;;  %vm11663_vm14 = vmmov %vm11658_vm15 }
  0x68   : > { %11645 = vst [vmem:[#allocation92_spill] sm:$0xff] %v7664_v53  ;;  %v11653_v46 = vsel %vm7698_vm0, 4294967295, %v11652_v46  ;;  %vm7716_vm1 = vcmp.ne.s32.totalorder %v537_v22, 15  ;;  %v11660_v29 = vmov 0  ;;  %v7721_v35 = vsel %vm11663_vm14, %v1210_v61, %v1212_v4  ;;  %vm11665_vm15 = vmmov %vm11663_vm14 }
  0x69   : > { %11648 = vst [vmem:[#allocation93_spill] sm:$0xff] %v11647_v16  ;;  %v5725_v16 = vpack.i.bf16 %v1273_v44, %v7688_v6  ;;  %v11661_v29 = vsel %vm7716_vm1, 4294967295, %v11660_v29  ;;  %v1282_v8 = vsel %vm7698_vm0, %v7151_v43, 0.0  ;;  %v300_v44 = vadd.s32 16, %v7401_v2  ;;  %5731 = vrot.lane.b32.xlu1 %v5730_v63, %s7003_s15 }
  0x6a   : > { %11649 = vst [vmem:[#allocation94_spill] sm:$0xff] %v7672_v45  ;;  %5736 = vrot.lane.b32.xlu2 %v5735_v37, %s7003_s15  ;;  %v376_v37 = vand.u32 15, %v304_v0  ;;  %v7730_v40 = vsel %vm11665_vm15, %v1212_v4, %v1214_v54  ;;  %v1281_v22 = vsel %vm7706_vm2, %v7713_v9, 0.0  ;;  %v7736_v45 = vsel %vm11663_vm14, %v1208_v52, %v1210_v61 }
  0x6b   : > { %11650 = vst [vmem:[#allocation95_spill] sm:$0xff] %v7682_v58  ;;  %5726 = vrot.lane.b32.xlu0 %v5725_v16, %s7003_s15  ;;  %v1279_v43 = vsel %vm7716_vm1, %v7721_v35, 0.0  ;;  %v5750_v0 = vpack.i.bf16 %v7169_v51, %v1282_v8  ;;  %v348_v63 = vand.u32 15, %v300_v44  ;;  %v11668_v16 = vmov 0 }
  0x6c   : > { %11651 = vst [vmem:[#allocation96_spill] sm:$0xff] %v7688_v6  ;;  %vm7742_vm0 = vcmp.ne.s32.totalorder %v376_v37, 0  ;;  %v310_v54 = vadd.s32 96, %v7401_v2  ;;  %v5745_v4 = vpack.i.bf16 %v1281_v22, %v7730_v40  ;;  %v306_v52 = vadd.s32 64, %v7401_v2 }
  0x6d   : > { %11654 = vst [vmem:[#allocation97_spill] sm:$0xff] %v11653_v46  ;;  %v362_v46 = vand.u32 15, %v302_v47  ;;  %v11669_v16 = vsel %vm7742_vm0, 4294967295, %v11668_v16  ;;  %v11670_v61 = vmov 0  ;;  %vm7755_vm14 = vcmp.ne.s32.totalorder %v348_v63, 0 }
  0x6e   : > { %11657 = vst [vmem:[#allocation98_spill] sm:$0xff] %v11656_v28  ;;  %v5740_v28 = vpack.i.bf16 %v1279_v43, %v7736_v45  ;;  %v11673_v47 = vmov 0  ;;  %v1288_v8 = vsel %vm7742_vm0, %v7112_v23, 0.0  ;;  %v308_v44 = vadd.s32 80, %v7401_v2 }
  0x6f   : > { %11659 = vst [vmem:[#allocation99_spill] sm:$0xff] %v7713_v9  ;;  %vm7751_vm15 = vcmp.ne.s32.totalorder %v362_v46, 0  ;;  %v11674_v47 = vsel %vm7755_vm14, 4294967295, %v11673_v47  ;;  %v418_v43 = vand.u32 15, %v310_v54  ;;  %v1284_v37 = vsel %vm7755_vm14, %v7128_v31, 0.0 }
  0x70   : > { %11662 = vst [vmem:[#allocation100_spill] sm:$0xff] %v11661_v29  ;;  %v11671_v61 = vsel %vm7751_vm15, 4294967295, %v11670_v61  ;;  %v1286_v46 = vsel %vm7751_vm15, %v7148_v42, 0.0  ;;  %v5765_v22 = vpack.i.bf16 %v7115_v24, %v1288_v8  ;;  %v404_v63 = vand.u32 15, %v308_v44 }
  0x71   : > { %11664 = vst [vmem:[#allocation101_spill] sm:$0xff] %v7721_v35  ;;  %5746 = vrot.lane.b32.xlu1 %v5745_v4, %s7003_s15  ;;  %vm7772_vm0 = vcmp.ne.s32.totalorder %v418_v43, 0  ;;  %v11675_v51 = vmov 0  ;;  %v316_v54 = vadd.s32 144, %v7401_v2  ;;  %v5755_v4 = vpack.i.bf16 %v7131_v32, %v1284_v37 }
  0x72   : > { %11666 = vst [vmem:[#allocation102_spill] sm:$0xff] %v7730_v40  ;;  %5751 = vrot.lane.b32.xlu2 %v5750_v0, %s7004_s16  ;;  %v390_v0 = vand.u32 15, %v306_v52  ;;  %v11676_v51 = vsel %vm7772_vm0, 4294967295, %v11675_v51  ;;  %v11678_v23 = vmov 0  ;;  %vm7787_vm14 = vcmp.ne.s32.totalorder %v404_v63, 0 }
  0x73   : > { %11667 = vst [vmem:[#allocation103_spill] sm:$0xff] %v7736_v45  ;;  %5741 = vrot.lane.b32.xlu0 %v5740_v28, %s7003_s15  ;;  %v5760_v28 = vpack.i.bf16 %v7166_v50, %v1286_v46  ;;  %v11682_v8 = vmov 0  ;;  %v1294_v44 = vsel %vm7772_vm0, %v7269_v34, 0.0  ;;  %v312_v43 = vadd.s32 112, %v7401_v2 }
  0x74   : > { %11672 = vst [vmem:[#allocation104_spill] sm:$0xff] %v11671_v61  ;;  %v314_v61 = vadd.s32 128, %v7401_v2  ;;  %vm7781_vm15 = vcmp.ne.s32.totalorder %v390_v0, 0  ;;  %v11683_v8 = vsel %vm7787_vm14, 4294967295, %v11682_v8  ;;  %v460_v46 = vand.u32 15, %v316_v54 }
  0x75   : > { %11677 = vst [vmem:[#allocation105_spill] sm:$0xff] %v11676_v51  ;;  %v11679_v23 = vsel %vm7781_vm15, 4294967295, %v11678_v23  ;;  %v1292_v37 = vsel %vm7787_vm14, %v7179_v56, 0.0  ;;  %v5780_v0 = vpack.i.bf16 %v7272_v48, %v1294_v44  ;;  %v11685_v34 = vmov 0 }
  0x76   : > { %11680 = vst [vmem:[#allocation106_spill] sm:$0xff] %v11679_v23  ;;  %v7785_v52 = vpop.permute.xlu2 %5611  ;;  %v446_v63 = vand.u32 15, %v314_v61  ;;  %vm7804_vm0 = vcmp.ne.s32.totalorder %v460_v46, 0  ;;  %v322_v54 = vadd.s32 192, %v7401_v2  ;;  %v11689_v44 = vmov 0 }
  0x77   : > { %11681 = vst [vmem:[#allocation107_spill] sm:$0xff] %v7785_v52  ;;  %v432_v52 = vand.u32 15, %v312_v43  ;;  %v11686_v34 = vsel %vm7804_vm0, 4294967295, %v11685_v34  ;;  %v11692_v61 = vmov 0  ;;  %v1300_v43 = vsel %vm7804_vm0, %v7345_v18, 0.0 }
  0x78   : > { %11684 = vst [vmem:[#allocation108_spill] sm:$0xff] %v11683_v8  ;;  %v320_v8 = vadd.s32 176, %v7401_v2  ;;  %vm7815_vm14 = vcmp.ne.s32.totalorder %v446_v63, 0  ;;  %v318_v46 = vadd.s32 160, %v7401_v2  ;;  %v11695_v18 = vmov 0 }
  0x79   : > { %5761 = vrot.lane.b32.xlu1 %v5760_v28, %s7004_s16  ;;  %11687 = vst [vmem:[#allocation109_spill] sm:$0xff] %v11686_v34  ;;  %v5775_v28 = vpack.i.bf16 %v7257_v17, %v1292_v37  ;;  %v11690_v44 = vsel %vm7815_vm14, 4294967295, %v11689_v44  ;;  %v502_v37 = vand.u32 15, %v322_v54  ;;  %v328_v54 = vadd.s32 240, %v7401_v2 }
  0x7a   : > { %5766 = vrot.lane.b32.xlu2 %v5765_v22, %s7004_s16  ;;  %v1290_v22 = vsel %vm7781_vm15, %v7118_v25, 0.0  ;;  %11691 = vst [vmem:[#allocation111_spill] sm:$0xff] %v11690_v44  ;;  %vm7819_vm15 = vcmp.ne.s32.totalorder %v432_v52, 0  ;;  %v488_v63 = vand.u32 15, %v320_v8  ;;  %v11698_v44 = vmov 0 }
  0x7b   : > { %5756 = vrot.lane.b32.xlu0 %v5755_v4, %s7004_s16  ;;  %v5770_v4 = vpack.i.bf16 %v7163_v49, %v1290_v22  ;;  %v11693_v61 = vsel %vm7819_vm15, 4294967295, %v11692_v61  ;;  %v1298_v22 = vsel %vm7815_vm14, %v7243_v15, 0.0  ;;  %v1296_v52 = vsel %vm7819_vm15, %v7234_v57, 0.0 }
  0x7c   : > { %11694 = vst [vmem:[#allocation112_spill] sm:$0xff] %v11693_v61  ;;  %vm7836_vm0 = vcmp.ne.s32.totalorder %v502_v37, 0  ;;  %vm7844_vm14 = vcmp.ne.s32.totalorder %v488_v63, 0  ;;  %vm11715_vm2 = vcmask 1040384  }
  0x7d   : > { %v11696_v18 = vsel %vm7836_vm0, 4294967295, %v11695_v18  ;;  %v11699_v44 = vsel %vm7844_vm14, 4294967295, %v11698_v44  ;;  %v1306_v37 = vsel %vm7836_vm0, %v7406_v62, 0.0 }
  0x7e   : > { %v7813_v23 = vpop.permute.xlu2 %5616  ;;  %11697 = vst [vmem:[#allocation113_spill] sm:$0xff] %v11696_v18 }
  0x7f   : > { %11688 = vst [vmem:[#allocation110_spill] sm:$0xff] %v7813_v23  ;;  %v474_v23 = vand.u32 15, %v318_v46  ;;  %v11702_v46 = vmov 0 }
  0x80   : > { %11700 = vst [vmem:[#allocation114_spill] sm:$0xff] %v11699_v44 }
  0x81   : > { %5776 = vrot.lane.b32.xlu1 %v5775_v28, %s7004_s16  ;;  %v5790_v28 = vpack.i.bf16 %v7338_v3, %v1298_v22  ;;  %vm7851_vm15 = vcmp.ne.s32.totalorder %v474_v23, 0  ;;  %v324_v22 = vadd.s32 208, %v7401_v2  ;;  %v1304_v23 = vsel %vm7844_vm14, %v7312_v19, 0.0 }
  0x82   : > { %5781 = vrot.lane.b32.xlu2 %v5780_v0, %s7004_s16  ;;  %v5795_v0 = vpack.i.bf16 %v7348_v26, %v1300_v43  ;;  %v326_v43 = vadd.s32 224, %v7401_v2  ;;  %v11703_v46 = vsel %vm7851_vm15, 4294967295, %v11702_v46  ;;  %v1302_v63 = vsel %vm7851_vm15, %v7280_v11, 0.0 }
  0x83   : > { %5771 = vrot.lane.b32.xlu0 %v5770_v4, %s7004_s16  ;;  %v5785_v4 = vpack.i.bf16 %v7237_v60, %v1296_v52  ;;  %11704 = vst [vmem:[#allocation116_spill] sm:$0xff] %v11703_v46  ;;  %v11340_v52 = vunpack.c.h.bf16 %v7380_v27  ;;  %v516_v18 = vand.u32 15, %v324_v22  ;;  %v11709_v46 = vmov 0 }
  0x84   : > { %v530_v62 = vand.u32 15, %v326_v43  ;;  %v11712_v43 = vmov 0 }
  0x85   : > { %v956_v2 = vrot.slane %v11340_v52, 7  ;;  %vm7884_vm15 = vcmp.ne.s32.totalorder %v516_v18, 0 }
  0x86   : > { %v7849_v8 = vpop.permute.xlu2 %5631  ;;  %vm7880_vm14 = vcmp.ne.s32.totalorder %v530_v62, 0  ;;  %v11713_v43 = vsel %vm7884_vm15, 4294967295, %v11712_v43  ;;  %v1308_v18 = vsel %vm7884_vm15, %v7356_v7, 0.0 }
  0x87   : > { %11701 = vst [vmem:[#allocation115_spill] sm:$0xff] %v7849_v8  ;;  %v5810_v8 = vpack.i.bf16 %v7409_v14, %v1306_v37  ;;  %v11710_v46 = vsel %vm7880_vm14, 4294967295, %v11709_v46  ;;  %v7890_v37 = vsel %vm11715_vm2, %v7422_v12, %v956_v2  ;;  %v1310_v62 = vsel %vm7880_vm14, %v7363_v13, 0.0 }
  0x88   : > { %11711 = vst [vmem:[#allocation119_spill] sm:$0xff] %v11710_v46 }
  0x89   : > { %5791 = vrot.lane.b32.xlu1 %v5790_v28, %s7004_s16  ;;  %v5805_v28 = vpack.i.bf16 %v7399_v1, %v1304_v23  ;;  %11714 = vst [vmem:[#allocation120_spill] sm:$0xff] %v11713_v43  ;;  %v5820_v23 = vpack.i.bf16 %v7436_v55, %v1310_v62 }
  0x8a   : > { %5796 = vrot.lane.b32.xlu2 %v5795_v0, %s7004_s16  ;;  %v544_v0 = vand.u32 15, %v328_v54  ;;  %v11705_v54 = vmov 0 }
  0x8b   : > { %5786 = vrot.lane.b32.xlu0 %v5785_v4, %s7004_s16  ;;  %v5800_v4 = vpack.i.bf16 %v7284_v21, %v1302_v63  ;;  %v5815_v63 = vpack.i.bf16 %v7359_v20, %v1308_v18 }
  0x8c   : > { %vm7871_vm0 = vcmp.ne.s32.totalorder %v544_v0, 0 }
  0x8d   : > { %v11706_v54 = vsel %vm7871_vm0, 4294967295, %v11705_v54  ;;  %v1312_v22 = vsel %vm7871_vm0, %v7440_v39, 0.0 }
  0x8e   : > { %11707 = vst [vmem:[#allocation117_spill] sm:$0xff] %v11706_v54  ;;  %v7878_v44 = vpop.permute.xlu2 %5646 }
  0x8f   : > { %11708 = vst [vmem:[#allocation118_spill] sm:$0xff] %v7878_v44  ;;  %v11729_v44 = vld [vmem:[#allocation34_spill] sm:$0xff] }
  0x91   : > { %5806 = vrot.lane.b32.xlu1 %v5805_v28, %s7004_s16 }
  0x92   : > { %5811 = vrot.lane.b32.xlu2 %v5810_v8, %s7004_s16  ;;  %v5825_v8 = vpack.i.bf16 %v7890_v37, %v1312_v22  ;;  %v7904_v12 = vpop.permute.xlu1 %5601  ;;  %v7906_v0 = vpop.permute.xlu0 %5591 }
  0x93   : > { %5801 = vrot.lane.b32.xlu0 %v5800_v4, %s7004_s16  ;;  %11716 = vst [vmem:[#allocation121_spill] sm:$0xff] %v7904_v12 }
  0x94   : > { %11717 = vst [vmem:[#allocation122_spill] sm:$0xff] %v7906_v0  ;;  %v1835_v0 = vrot.slane %v7890_v37, 1 }
  0x96   : > { %v7911_v28 = vpop.permute.xlu2 %5661 }
  0x97   : > { %11718 = vst [vmem:[#allocation123_spill] sm:$0xff] %v7911_v28  ;;  %v11741_v28 = vld [vmem:[#allocation64_spill] sm:$0xff] }
  0x99   : > { %5821 = vrot.lane.b32.xlu1 %v5820_v23, %s7004_s16 }
  0x9a   : > { %5826 = vrot.lane.b32.xlu2 %v5825_v8, %s7004_s16  ;;  %v7915_v4 = vpop.permute.xlu1 %5606  ;;  %v7917_v52 = vpop.permute.xlu0 %5596 }
  0x9b   : > { %5816 = vrot.lane.b32.xlu0 %v5815_v63, %s7004_s16  ;;  %11719 = vst [vmem:[#allocation124_spill] sm:$0xff] %v7915_v4  ;;  %v11733_v4 = vld [vmem:[#allocation55_spill] sm:$0xff] }
  0x9c   : > { %11720 = vst [vmem:[#allocation125_spill] sm:$0xff] %v7917_v52  ;;  %v7968_v52 = vsel %vm11715_vm2, %v956_v2, 0.0  ;;  %v11746_v2 = vrot.slane %v7440_v39, 1  ;;  %vm11747_vm2 = vcmask 1046528  }
  0x9d   : > { %11739 = vst [vmem:[#allocation138_spill] sm:$0xff] %v7968_v52  ;;  %vm11748_vm14 = vmmov %vm11747_vm2 }
  0xa0   : > { %v7921_v22 = vpop.permute.xlu2 %5676 }
  0xa1   : > { %11721 = vst [vmem:[#allocation126_spill] sm:$0xff] %v7921_v22  ;;  %5836 = vrot.lane.b32.xlu1 %v7185_v59, %s7005_s17 }
  0xa2   : > { %5841 = vrot.lane.b32.xlu2 %v7206_v33, %s7005_s17  ;;  %v7927_v62 = vpop.permute.xlu1 %5626  ;;  %v7929_v18 = vpop.permute.xlu0 %5621 }
  0xa3   : > { %5831 = vrot.lane.b32.xlu0 %v7213_v38, %s7005_s17  ;;  %11722 = vst [vmem:[#allocation127_spill] sm:$0xff] %v7927_v62  ;;  %v11727_v38 = vld [vmem:[#allocation48_spill] sm:$0xff] }
  0xa4   : > { %11723 = vst [vmem:[#allocation128_spill] sm:$0xff] %v7929_v18  ;;  %v11730_v62 = vld [vmem:[#allocation40_spill] sm:$0xff] }
  0xa8   : > { %v7933_v8 = vpop.permute.xlu2 %5691 }
  0xa9   : > { %11724 = vst [vmem:[#allocation129_spill] sm:$0xff] %v7933_v8  ;;  %5851 = vrot.lane.b32.xlu1 %v7204_v30, %s7005_s17 }
  0xaa   : > { %5856 = vrot.lane.b32.xlu2 %v7308_v5, %s7005_s17  ;;  %v7939_v23 = vpop.permute.xlu1 %5641  ;;  %v7941_v63 = vpop.permute.xlu0 %5636 }
  0xab   : > { %5846 = vrot.lane.b32.xlu0 %v7145_v41, %s7005_s17  ;;  %11725 = vst [vmem:[#allocation130_spill] sm:$0xff] %v7939_v23 }
  0xac   : > { %11726 = vst [vmem:[#allocation131_spill] sm:$0xff] %v7941_v63  ;;  %v11735_v63 = vld [vmem:[#allocation43_spill] sm:$0xff] }
  0xb1   : > { %v7945_v27 = vpop.permute.xlu2 %5706  ;;  %5866 = vrot.lane.b32.xlu1 %v11729_v44, %s7005_s17  ;;  %v11749_v44 = vld [vmem:[#allocation59_spill] sm:$0xff] }
  0xb2   : > { %5871 = vrot.lane.b32.xlu2 %v11727_v38, %s7005_s17  ;;  %11728 = vst [vmem:[#allocation132_spill] sm:$0xff] %v7945_v27  ;;  %v7951_v18 = vpop.permute.xlu1 %5656  ;;  %v7953_v8 = vpop.permute.xlu0 %5651  ;;  %v11736_v27 = vld [vmem:[#allocation47_spill] sm:$0xff] }
  0xb3   : > { %5861 = vrot.lane.b32.xlu0 %v11730_v62, %s7005_s17  ;;  %11731 = vst [vmem:[#allocation133_spill] sm:$0xff] %v7951_v18  ;;  %v1322_v18 = vsel %vm7442_vm3, %v11749_v44, 0.0  ;;  %v11759_v44 = vld [vmem:[#allocation62_spill] sm:$0xff] }
  0xb4   : > { %11732 = vst [vmem:[#allocation134_spill] sm:$0xff] %v7953_v8  ;;  %v11740_v8 = vld [vmem:[#allocation61_spill] sm:$0xff] }
  0xb9   : > { %5881 = vrot.lane.b32.xlu1 %v11735_v63, %s7005_s17 }
  0xba   : > { %5886 = vrot.lane.b32.xlu2 %v11733_v4, %s7005_s17  ;;  %v7963_v12 = vpop.permute.xlu1 %5671  ;;  %v7965_v22 = vpop.permute.xlu0 %5666  ;;  %v1324_v4 = vsel %vm7458_vm4, %v11741_v28, 0.0  ;;  %v11751_v28 = vld [vmem:[#allocation66_spill] sm:$0xff] }
  0xbb   : > { %5876 = vrot.lane.b32.xlu0 %v11736_v27, %s7005_s17  ;;  %11737 = vst [vmem:[#allocation136_spill] sm:$0xff] %v7963_v12  ;;  %v11744_v12 = vld [vmem:[#allocation50_spill] sm:$0xff]  ;;  %v11767_v27 = vld [vmem:[#allocation68_spill] sm:$0xff] }
  0xbc   : > { %v7957_v23 = vpop.permute.xlu2 %5721  ;;  %11738 = vst [vmem:[#allocation137_spill] sm:$0xff] %v7965_v22  ;;  %v11745_v22 = vld [vmem:[#allocation54_spill] sm:$0xff] }
  0xbd   : > { %11734 = vst [vmem:[#allocation135_spill] sm:$0xff] %v7957_v23  ;;  %v11367_v23 = vrot.slane %v7968_v52, 1 }
  0xbf   : > { %v1838_v38 = vsel %vm11748_vm14, %v1835_v0, %v11367_v23  ;;  %vm11771_vm14 = vcmask 1045504  }
  0xc1   : > { %5896 = vrot.lane.b32.xlu1 %v11744_v12, %s7005_s17 }
  0xc2   : > { %5901 = vrot.lane.b32.xlu2 %v11740_v8, %s7005_s17  ;;  %v1836_v8 = vsel %vm11747_vm2, %v11746_v2, %v1835_v0  ;;  %v7993_v5 = vpop.permute.xlu1 %5686  ;;  %v7995_v12 = vpop.permute.xlu0 %5681  ;;  %v11756_v2 = vld [vmem:[#allocation74_spill] sm:$0xff]  ;;  %vm11773_vm2 = vmmov %vm11771_vm14 }
  0xc3   : > { %5891 = vrot.lane.b32.xlu0 %v11745_v22, %s7005_s17  ;;  %11752 = vst [vmem:[#allocation59_spill] sm:$0xff] %v7993_v5  ;;  %v7997_v30 = vpack.i.bf16 %v1838_v38, %v1836_v8  ;;  %v11755_v22 = vld [vmem:[#allocation58_spill] sm:$0xff]  ;;  %v1330_v0 = vsel %vm7512_vm7, %v11756_v2, 0.0  ;;  %v1326_v8 = vsel %vm7501_vm6, %v11759_v44, 0.0  ;;  %v11761_v38 = vld [vmem:[#allocation69_spill] sm:$0xff]  ;;  %v1315_v2 = vrot.slane %v7890_v37, 2 }
  0xc4   : > { %v7977_v63 = vpop.permute.xlu2 %5736  ;;  %11753 = vst [vmem:[#allocation140_spill] sm:$0xff] %v7995_v12  ;;  %v5910_v62 = vpack.i.bf16 %v1322_v18, %v11755_v22  ;;  %v1328_v18 = vsel %vm7479_vm5, %v11761_v38, 0.0 }
  0xc5   : > { %11743 = vst [vmem:[#allocation139_spill] sm:$0xff] %v7977_v63  ;;  %v5915_v63 = vpack.i.bf16 %v1324_v4, %v11751_v28  ;;  %v11766_v28 = vld [vmem:[#allocation63_spill] sm:$0xff]  ;;  %v11768_v4 = vld [vmem:[#allocation81_spill] sm:$0xff] }
  0xc6   : > { %11754 = vst [vmem:[#allocation141_spill] sm:$0xff] %v7997_v30  ;;  %v1336_v22 = vsel %vm7562_vm10, %v11768_v4, 0.0  ;;  %v11776_v4 = vld [vmem:[#allocation78_spill] sm:$0xff] }
  0xc9   : > { %5911 = vrot.lane.b32.xlu1 %v5910_v62, %s7006_s18  ;;  %v5920_v62 = vpack.i.bf16 %v1326_v8, %v11766_v28  ;;  %v11772_v8 = vrot.slane %v7440_v39, 2  ;;  %v11782_v28 = vld [vmem:[#allocation77_spill] sm:$0xff] }
  0xca   : > { %5916 = vrot.lane.b32.xlu2 %v5915_v63, %s7006_s18  ;;  %v11763_v63 = vld [vmem:[#allocation73_spill] sm:$0xff]  ;;  %v8016_v12 = vpop.permute.xlu1 %5701  ;;  %v8018_v33 = vpop.permute.xlu0 %5696 }
  0xcb   : > { %5906 = vrot.lane.b32.xlu0 %v7997_v30, %s7005_s17  ;;  %v5930_v5 = vpack.i.bf16 %v1330_v0, %v11763_v63  ;;  %11764 = vst [vmem:[#allocation142_spill] sm:$0xff] %v8016_v12  ;;  %v5925_v30 = vpack.i.bf16 %v1328_v18, %v11767_v27  ;;  %v1316_v18 = vsel %vm11773_vm2, %v11772_v8, %v1315_v2  ;;  %v11774_v12 = vld [vmem:[#allocation70_spill] sm:$0xff]  ;;  %v1334_v63 = vsel %vm7541_vm8, %v11776_v4, 0.0 }
  0xcc   : > { %v8004_v23 = vpop.permute.xlu2 %5751  ;;  %11765 = vst [vmem:[#allocation143_spill] sm:$0xff] %v8018_v33  ;;  %v1332_v44 = vsel %vm7558_vm9, %v11774_v12, 0.0  ;;  %v5940_v59 = vpack.i.bf16 %v1334_v63, %v11782_v28  ;;  %v1342_v12 = vsel %vm7609_vm13, %v7664_v53, 0.0  ;;  %vm11467_vm8 = vcmask 654336  }
  0xcd   : > { %11758 = vst [vmem:[#allocation58_spill] sm:$0xff] %v8004_v23  ;;  %v11375_v23 = vrot.slane %v7968_v52, 2 }
  0xcf   : > { %v1318_v0 = vsel %vm11771_vm14, %v1315_v2, %v11375_v23  ;;  %v5945_v23 = vpack.i.bf16 %v1336_v22, %v7630_v36  ;;  %v11781_v2 = vld [vmem:[#allocation72_spill] sm:$0xff] }
  0xd0   : > { %v5935_v8 = vpack.i.bf16 %v1332_v44, %v11781_v2  ;;  %v11785_v22 = vld [vmem:[#allocation80_spill] sm:$0xff] }
  0xd1   : > { %5926 = vrot.lane.b32.xlu1 %v5925_v30, %s7006_s18 }
  0xd2   : > { %5931 = vrot.lane.b32.xlu2 %v5930_v5, %s7006_s18  ;;  %v1415_v5 = vsel %vm7716_vm1, %v1318_v0, 0.0 }
  0xd3   : > { %5921 = vrot.lane.b32.xlu0 %v5920_v62, %s7006_s18  ;;  %v8047_v62 = vpack.c.bf16 %v1415_v5, %v1316_v18  ;;  %v8049_v30 = vpop.permute.xlu1 %5716 }
  0xd4   : > { %v8028_v38 = vpop.permute.xlu2 %5766  ;;  %11779 = vst [vmem:[#allocation145_spill] sm:$0xff] %v8049_v30  ;;  %v8051_v27 = vpop.permute.xlu0 %5711  ;;  %v11787_v30 = vld [vmem:[#allocation84_spill] sm:$0xff] }
  0xd5   : > { %11770 = vst [vmem:[#allocation144_spill] sm:$0xff] %v8028_v38  ;;  %v1340_v63 = vsel %vm7594_vm11, %v11787_v30, 0.0 }
  0xd6   : > { %11778 = vst [vmem:[#allocation78_spill] sm:$0xff] %v8047_v62  ;;  %v1338_v62 = vsel %vm7605_vm12, %v11785_v22, 0.0 }
  0xd7   : > { %11780 = vst [vmem:[#allocation146_spill] sm:$0xff] %v8051_v27  ;;  %v5950_v53 = vpack.i.bf16 %v1338_v62, %v7618_v10  ;;  %v11799_v62 = vld [vmem:[#allocation90_spill] sm:$0xff]  ;;  %v11878_v10 = vld [vmem:[#allocation64_spill] sm:$0xff] }
  0xd8   : > { %vm11800_vm13 = vnez %v11799_v62 }
  0xd9   : > { %5941 = vrot.lane.b32.xlu1 %v5940_v59, %s7006_s18  ;;  %v11792_v59 = vld [vmem:[#allocation88_spill] sm:$0xff] }
  0xda   : > { %5946 = vrot.lane.b32.xlu2 %v5945_v23, %s7006_s18  ;;  %v5960_v23 = vpack.i.bf16 %v1342_v12, %v7688_v6  ;;  %vm11793_vm14 = vnez %v11792_v59  ;;  %v11795_v12 = vld [vmem:[#allocation91_spill] sm:$0xff]  ;;  %v11798_v6 = vld [vmem:[#allocation89_spill] sm:$0xff] }
  0xdb   : > { %5936 = vrot.lane.b32.xlu0 %v5935_v8, %s7006_s18  ;;  %v8070_v27 = vpop.permute.xlu1 %5731  ;;  %v1348_v5 = vsel %vm11793_vm14, %v7721_v35, 0.0 }
  0xdc   : > { %v8059_v38 = vpop.permute.xlu2 %5781  ;;  %11789 = vst [vmem:[#allocation77_spill] sm:$0xff] %v8070_v27  ;;  %v11796_v27 = vld [vmem:[#allocation93_spill] sm:$0xff] }
  0xdd   : > { %11784 = vst [vmem:[#allocation72_spill] sm:$0xff] %v8059_v38  ;;  %v8072_v33 = vpop.permute.xlu0 %5726  ;;  %v11791_v38 = vld [vmem:[#allocation86_spill] sm:$0xff]  ;;  %vm11797_vm2 = vnez %v11796_v27 }
  0xde   : > { %11790 = vst [vmem:[#allocation147_spill] sm:$0xff] %v8072_v33  ;;  %v5955_v8 = vpack.i.bf16 %v1340_v63, %v11791_v38  ;;  %v1344_v33 = vsel %vm11797_vm2, %v11795_v12, 0.0  ;;  %v1346_v63 = vsel %vm11800_vm13, %v11798_v6, 0.0  ;;  %vm11814_vm2 = vnez %v11676_v51 }
  0xdf   : > { %v5965_v35 = vpack.i.bf16 %v1344_v33, %v7682_v58 }
  0xe1   : > { %5956 = vrot.lane.b32.xlu1 %v5955_v8, %s7006_s18  ;;  %v11802_v8 = vld [vmem:[#allocation97_spill] sm:$0xff] }
  0xe2   : > { %5961 = vrot.lane.b32.xlu2 %v5960_v23, %s7006_s18  ;;  %v5975_v23 = vpack.i.bf16 %v1348_v5, %v7736_v45  ;;  %vm11803_vm14 = vnez %v11802_v8  ;;  %v1350_v5 = vsel %vm7716_vm1, %v7713_v9, 0.0  ;;  %v11805_v45 = vld [vmem:[#allocation98_spill] sm:$0xff]  ;;  %vm11808_vm1 = vnez %v11674_v47 }
  0xe3   : > { %5951 = vrot.lane.b32.xlu0 %v5950_v53, %s7006_s18  ;;  %v8091_v44 = vpop.permute.xlu1 %5746  ;;  %v1353_v27 = vsel %vm11803_vm14, %v7128_v31, 0.0  ;;  %vm11806_vm13 = vnez %v11805_v45  ;;  %v5980_v8 = vpack.i.bf16 %v1350_v5, %v7730_v40  ;;  %vm11807_vm14 = vnez %v11669_v16  ;;  %v11810_v5 = vld [vmem:[#allocation104_spill] sm:$0xff] }
  0xe4   : > { %v8080_v22 = vpop.permute.xlu2 %5796  ;;  %v1352_v33 = vsel %vm11806_vm13, %v1318_v0, 0.0  ;;  %v11809_v0 = vld [vmem:[#allocation11_spill] sm:$0xff]  ;;  %vm11811_vm13 = vnez %v11810_v5 }
  0xe5   : > { %11794 = vst [vmem:[#allocation148_spill] sm:$0xff] %v8080_v22  ;;  %v8093_v59 = vpop.permute.xlu0 %5741  ;;  %v11801_v22 = vld [vmem:[#allocation94_spill] sm:$0xff] }
  0xe6   : > { %v5970_v53 = vpack.i.bf16 %v1346_v63, %v11801_v22  ;;  %v5990_v63 = vpack.i.bf16 %v7131_v32, %v1353_v27  ;;  %v1355_v27 = vsel %vm11808_vm1, %v7148_v42, 0.0  ;;  %v11817_v22 = vld [vmem:[#allocation32_spill] sm:$0xff] }
  0xe7   : > { %v5995_v45 = vpack.i.bf16 %v7166_v50, %v1355_v27  ;;  %v11818_v27 = vld [vmem:[#allocation108_spill] sm:$0xff] }
  0xe8   : > { %vm11819_vm12 = vnez %v11818_v27  ;;  %v5465_v27 = vld [vmem:[%s11114_s1 + $0x8] sm:$0xff] }
  0xe9   : > { %5971 = vrot.lane.b32.xlu1 %v5970_v53, %s7006_s18 }
  0xea   : > { %5976 = vrot.lane.b32.xlu2 %v5975_v23, %s7006_s18 }
  0xeb   : > { %5966 = vrot.lane.b32.xlu0 %v5965_v35, %s7006_s18  ;;  %v8111_v23 = vpop.permute.xlu1 %5761  ;;  %v1359_v35 = vsel %vm11807_vm14, %v7118_v25, 0.0 }
  0xec   : > { %v8101_v12 = vpop.permute.xlu2 %5811 }
  0xed   : > { %11804 = vst [vmem:[#allocation149_spill] sm:$0xff] %v8101_v12  ;;  %v8113_v62 = vpop.permute.xlu0 %5756  ;;  %v5985_v12 = vpack.i.bf16 %v1352_v33, %v1316_v18  ;;  %v1357_v18 = vsel %vm11811_vm13, %v11809_v0, 0.0  ;;  %v6005_v33 = vpack.i.bf16 %v7163_v49, %v1359_v35  ;;  %v11815_v35 = vld [vmem:[#allocation106_spill] sm:$0xff] }
  0xee   : > { %vm11816_vm11 = vnez %v11815_v35  ;;  %v5466_v49 = vld [vmem:[%s11114_s1 + $0x10] sm:$0xff] }
  0xef   : > { %v1361_v9 = vsel %vm11816_vm11, %v7179_v56, 0.0  ;;  %vm11466_vm11 = vcmask 785408  }
  0xf1   : > { %5986 = vrot.lane.b32.xlu1 %v5985_v12, %s7006_s18  ;;  %v1365_v12 = vsel %vm11814_vm2, %v7234_v57, 0.0  ;;  %v6010_v57 = vpack.i.bf16 %v7257_v17, %v1361_v9  ;;  %vm11822_vm2 = vnez %v11686_v34  ;;  %v11826_v9 = vld [vmem:[#allocation111_spill] sm:$0xff] }
  0xf2   : > { %5991 = vrot.lane.b32.xlu2 %v5990_v63, %s7007_s19  ;;  %vm11827_vm10 = vnez %v11826_v9 }
  0xf3   : > { %5981 = vrot.lane.b32.xlu0 %v5980_v8, %s7006_s18  ;;  %v8131_v63 = vpop.permute.xlu1 %5776  ;;  %v6000_v8 = vpack.i.bf16 %v7115_v24, %v1357_v18  ;;  %v1363_v18 = vsel %vm11819_vm12, %v11817_v22, 0.0  ;;  %vm11824_vm12 = vnez %v11693_v61  ;;  %v5744_v24 = vunpack.i.h.bf16 %v8093_v59 }
  0xf4   : > { %v8120_v53 = vpop.permute.xlu2 %5826  ;;  %11812 = vst [vmem:[#allocation104_spill] sm:$0xff] %v8131_v63  ;;  %v1387_v63 = vsel %vm7442_vm3, %v11878_v10, 0.0  ;;  %vm11882_vm3 = vcmask 130048  }
  0xf5   : > { %v8133_v29 = vpop.permute.xlu0 %5771 }
  0xf6   : > { %11813 = vst [vmem:[#allocation150_spill] sm:$0xff] %v8133_v29  ;;  %v11902_v29 = vld [vmem:[#allocation136_spill] sm:$0xff] }
  0xf9   : > { %6001 = vrot.lane.b32.xlu1 %v6000_v8, %s7007_s19  ;;  %v1371_v8 = vsel %vm11822_vm2, %v7280_v11, 0.0 }
  0xfa   : > { %6006 = vrot.lane.b32.xlu2 %v6005_v33, %s7007_s19  ;;  %v6020_v33 = vpack.i.bf16 %v7237_v60, %v1365_v12  ;;  %v1367_v12 = vsel %vm11824_vm12, %v7243_v15, 0.0  ;;  %v11825_v60 = vld [vmem:[#allocation45_spill] sm:$0xff] }
  0xfb   : > { %5996 = vrot.lane.b32.xlu0 %v5995_v45, %s7007_s19  ;;  %v8152_v6 = vpop.permute.xlu1 %5791  ;;  %v6015_v45 = vpack.i.bf16 %v7272_v48, %v1363_v18  ;;  %v1369_v18 = vsel %vm11827_vm10, %v11825_v60, 0.0  ;;  %v6025_v11 = vpack.i.bf16 %v7338_v3, %v1367_v12  ;;  %v11836_v12 = vld [vmem:[#allocation114_spill] sm:$0xff]  ;;  %v11847_v60 = vld [vmem:[#allocation24_spill] sm:$0xff] }
  0xfc   : > { %v8141_v40 = vpop.permute.xlu2 %5841  ;;  %11820 = vst [vmem:[#allocation151_spill] sm:$0xff] %v8152_v6  ;;  %vm11837_vm12 = vnez %v11836_v12 }
  0xfd   : > { %v8154_v58 = vpop.permute.xlu0 %5786 }
  0xfe   : > { %11821 = vst [vmem:[#allocation152_spill] sm:$0xff] %v8154_v58 }
 0x101   : > { %6016 = vrot.lane.b32.xlu1 %v6015_v45, %s7007_s19  ;;  %v11830_v45 = vld [vmem:[#allocation113_spill] sm:$0xff] }
 0x102   : > { %6021 = vrot.lane.b32.xlu2 %v6020_v33, %s7007_s19  ;;  %v6035_v33 = vpack.i.bf16 %v7284_v21, %v1371_v8  ;;  %vm11831_vm2 = vnez %v11830_v45  ;;  %v11833_v8 = vld [vmem:[#allocation116_spill] sm:$0xff]  ;;  %v11835_v21 = vld [vmem:[#allocation53_spill] sm:$0xff] }
 0x103   : > { %6011 = vrot.lane.b32.xlu0 %v6010_v57, %s7007_s19  ;;  %v8173_v6 = vpop.permute.xlu1 %5806  ;;  %v6030_v57 = vpack.i.bf16 %v7348_v26, %v1369_v18  ;;  %v1377_v15 = vsel %vm11831_vm2, %v7356_v7, 0.0  ;;  %vm11834_vm10 = vnez %v11833_v8  ;;  %v1375_v18 = vsel %vm11837_vm12, %v11835_v21, 0.0 }
 0x104   : > { %v8162_v38 = vpop.permute.xlu2 %5856  ;;  %11828 = vst [vmem:[#allocation154_spill] sm:$0xff] %v8173_v6  ;;  %v1373_v6 = vsel %vm11834_vm10, %v7312_v19, 0.0  ;;  %vm11839_vm2 = vnez %v11710_v46  ;;  %vm11865_vm10 = vcmask 1046528   ;;  %vm11474_vm12 = vcmask 392192  }
 0x105   : > { %11823 = vst [vmem:[#allocation153_spill] sm:$0xff] %v8162_v38  ;;  %v8175_v34 = vpop.permute.xlu0 %5801  ;;  %v6040_v45 = vpack.i.bf16 %v7399_v1, %v1373_v6  ;;  %v1381_v6 = vsel %vm11839_vm2, %v7440_v39, 0.0  ;;  %v11892_v38 = vld [vmem:[#allocation123_spill] sm:$0xff] }
 0x106   : > { %11829 = vst [vmem:[#allocation155_spill] sm:$0xff] %v8175_v34 }
 0x109   : > { %6031 = vrot.lane.b32.xlu1 %v6030_v57, %s7007_s19  ;;  %v1383_v57 = vsel %vm7871_vm0, %v7968_v52, 0.0 }
 0x10a   : > { %6036 = vrot.lane.b32.xlu2 %v6035_v33, %s7007_s19  ;;  %v6050_v33 = vpack.i.bf16 %v7359_v20, %v1377_v15  ;;  %v1379_v15 = vsel %vm7884_vm15, %v7363_v13, 0.0 }
 0x10b   : > { %6026 = vrot.lane.b32.xlu0 %v6025_v11, %s7007_s19  ;;  %v8194_v34 = vpop.permute.xlu1 %5821  ;;  %v6045_v11 = vpack.i.bf16 %v7409_v14, %v1375_v18  ;;  %v6065_v18 = vpack.i.bf16 0.0, %v1383_v57  ;;  %v6055_v8 = vpack.i.bf16 %v7436_v55, %v1379_v15  ;;  %v11842_v15 = vld [vmem:[#allocation25_spill] sm:$0xff] }
 0x10c   : > { %v8183_v58 = vpop.permute.xlu2 %5871 }
 0x10d   : > { %11832 = vst [vmem:[#allocation156_spill] sm:$0xff] %v8183_v58  ;;  %v8196_v26 = vpop.permute.xlu0 %5816  ;;  %v11853_v58 = vld [vmem:[#allocation34_spill] sm:$0xff] }
 0x111   : > { %6046 = vrot.lane.b32.xlu1 %v6045_v11, %s7007_s19 }
 0x112   : > { %6051 = vrot.lane.b32.xlu2 %v6050_v33, %s7007_s19 }
 0x113   : > { %6041 = vrot.lane.b32.xlu0 %v6040_v45, %s7007_s19  ;;  %v8214_v33 = vpop.permute.xlu1 %5836 }
 0x114   : > { %v8204_v19 = vpop.permute.xlu2 %5886 }
 0x115   : > { %11838 = vst [vmem:[#allocation53_spill] sm:$0xff] %v8204_v19  ;;  %v8216_v1 = vpop.permute.xlu0 %5831  ;;  %v6060_v19 = vpack.i.bf16 %v7890_v37, %v1381_v6  ;;  %v11841_v37 = vld [vmem:[#allocation22_spill] sm:$0xff] }
 0x119   : > { %6061 = vrot.lane.b32.xlu1 %v6060_v19, %s7007_s19  ;;  %v11845_v19 = vld [vmem:[#allocation40_spill] sm:$0xff] }
 0x11a   : > { %6066 = vrot.lane.b32.xlu2 %v6065_v18, %s7007_s19 }
 0x11b   : > { %6056 = vrot.lane.b32.xlu0 %v6055_v8, %s7007_s19  ;;  %v8225_v11 = vpop.permute.xlu1 %5851 }
 0x11c   : > { %v8221_v45 = vpop.permute.xlu2 %5901  ;;  %11840 = vst [vmem:[#allocation157_spill] sm:$0xff] %v8225_v11 }
 0x11d   : > { %v8227_v39 = vpop.permute.xlu0 %5846 }
 0x121   : > { %6076 = vrot.lane.b32.xlu1 %v11842_v15, %s7008_s20  ;;  %v11851_v15 = vld [vmem:[#allocation47_spill] sm:$0xff] }
 0x122   : > { %6081 = vrot.lane.b32.xlu2 %v7145_v41, %s7008_s20  ;;  %v11848_v41 = vld [vmem:[#allocation41_spill] sm:$0xff] }
 0x123   : > { %6071 = vrot.lane.b32.xlu0 %v11841_v37, %s7008_s20  ;;  %v8237_v6 = vpop.permute.xlu1 %5866 }
 0x124   : > { %v8231_v57 = vpop.permute.xlu2 %5916  ;;  %11843 = vst [vmem:[#allocation22_spill] sm:$0xff] %v8237_v6 }
 0x125   : > { %v8239_v8 = vpop.permute.xlu0 %5861 }
 0x126   : > { %11844 = vst [vmem:[#allocation25_spill] sm:$0xff] %v8239_v8 }
 0x129   : > { %6091 = vrot.lane.b32.xlu1 %v11848_v41, %s7008_s20  ;;  %v11856_v41 = vld [vmem:[#allocation54_spill] sm:$0xff] }
 0x12a   : > { %6096 = vrot.lane.b32.xlu2 %v11845_v19, %s7008_s20  ;;  %v11854_v19 = vld [vmem:[#allocation48_spill] sm:$0xff] }
 0x12b   : > { %6086 = vrot.lane.b32.xlu0 %v11847_v60, %s7008_s20  ;;  %v8249_v12 = vpop.permute.xlu1 %5881 }
 0x12c   : > { %v8243_v18 = vpop.permute.xlu2 %5931  ;;  %11849 = vst [vmem:[#allocation24_spill] sm:$0xff] %v8249_v12 }
 0x12d   : > { %11846 = vst [vmem:[#allocation40_spill] sm:$0xff] %v8243_v18  ;;  %v8251_v37 = vpop.permute.xlu0 %5876  ;;  %v11880_v18 = vld [vmem:[#allocation66_spill] sm:$0xff] }
 0x12e   : > { %11850 = vst [vmem:[#allocation41_spill] sm:$0xff] %v8251_v37  ;;  %v11858_v37 = vld [vmem:[#allocation43_spill] sm:$0xff]  ;;  %v2519_v36 = vpack.c.bf16 %v1387_v63, %v11880_v18 }
 0x131   : > { %6106 = vrot.lane.b32.xlu1 %v11854_v19, %s7008_s20  ;;  %v11860_v19 = vld [vmem:[#allocation141_spill] sm:$0xff] }
 0x132   : > { %6111 = vrot.lane.b32.xlu2 %v11851_v15, %s7008_s20  ;;  %v11859_v15 = vld [vmem:[#allocation55_spill] sm:$0xff] }
 0x133   : > { %6101 = vrot.lane.b32.xlu0 %v11853_v58, %s7008_s20  ;;  %v8261_v9 = vpop.permute.xlu1 %5896 }
 0x134   : > { %v8255_v3 = vpop.permute.xlu2 %5946 }
 0x135   : > { %11852 = vst [vmem:[#allocation47_spill] sm:$0xff] %v8255_v3  ;;  %v8263_v60 = vpop.permute.xlu0 %5891 }
 0x136   : > { %11855 = vst [vmem:[#allocation34_spill] sm:$0xff] %v8263_v60  ;;  %v11861_v60 = vld [vmem:[#allocation50_spill] sm:$0xff] }
 0x139   : > { %6121 = vrot.lane.b32.xlu1 %v11859_v15, %s7008_s20 }
 0x13a   : > { %6126 = vrot.lane.b32.xlu2 %v11856_v41, %s7008_s20  ;;  %v11862_v41 = vld [vmem:[#allocation61_spill] sm:$0xff] }
 0x13b   : > { %6116 = vrot.lane.b32.xlu0 %v11858_v37, %s7008_s20  ;;  %v8275_v58 = vpop.permute.xlu1 %5911  ;;  %v11864_v37 = vrot.slane %v7968_v52, 1 }
 0x13c   : > { %v8267_v12 = vpop.permute.xlu2 %5961 }
 0x13d   : > { %11857 = vst [vmem:[#allocation48_spill] sm:$0xff] %v8267_v12  ;;  %v8273_v3 = vpop.permute.xlu0 %5906  ;;  %v11863_v12 = vld [vmem:[#allocation8_spill] sm:$0xff] }
 0x13e   : > { %v2190_v15 = vsel %vm11865_vm10, %v11864_v37, %v11863_v12  ;;  %v5471_v37 = vld [vmem:[%s11114_s1 + $0x38] sm:$0xff]  ;;  %vm11457_vm10 = vcmask 130048   ;;  %v5908_v54 = vunpack.i.l.bf16 %v8273_v3 }
 0x13f   : > { %v6145_v22 = vpack.i.bf16 %v11863_v12, %v2190_v15  ;;  %2652 = vmatpush.bf16.msra.mxu0 %v5471_v37 }
 0x141   : > { %6136 = vrot.lane.b32.xlu1 %v11862_v41, %s7008_s20 }
 0x142   : > { %6141 = vrot.lane.b32.xlu2 %v11860_v19, %s7008_s20 }
 0x143   : > { %6131 = vrot.lane.b32.xlu0 %v11861_v60, %s7008_s20  ;;  %v8291_v61 = vpop.permute.xlu1 %5926 }
 0x144   : > { %v8279_v6 = vpop.permute.xlu2 %5976  ;;  %11866 = vst [vmem:[#allocation54_spill] sm:$0xff] %v8291_v61 }
 0x145   : > { %v8289_v48 = vpop.permute.xlu0 %5921  ;;  %v5979_v0 = vunpack.i.h.bf16 %v8279_v6 }
 0x14b   : > { %6146 = vrot.lane.b32.xlu0 %v6145_v22, %s7008_s20  ;;  %v8299_v60 = vpop.permute.xlu1 %5941 }
 0x14c   : > { %v8294_v19 = vpop.permute.xlu2 %5991  ;;  %11868 = vst [vmem:[#allocation55_spill] sm:$0xff] %v8299_v60  ;;  %v5470_v60 = vld [vmem:[%s11114_s1 + $0x30] sm:$0xff] }
 0x14d   : > { %v8297_v30 = vpop.permute.xlu0 %5936  ;;  %2653 = vmatpush.bf16.msra.mxu0 %v5470_v60  ;;  %v5467_v60 = vld [vmem:[%s11114_s1 + $0x18] sm:$0xff] }
 0x14e   : > { %11867 = vst [vmem:[#allocation43_spill] sm:$0xff] %v8297_v30 }
 0x153   : > { %v8305_v52 = vpop.permute.xlu1 %5956 }
 0x154   : > { %v8301_v41 = vpop.permute.xlu2 %6006  ;;  %11871 = vst [vmem:[#allocation61_spill] sm:$0xff] %v8305_v52  ;;  %v5469_v52 = vld [vmem:[%s11114_s1 + $0x28] sm:$0xff] }
 0x155   : > { %11869 = vst [vmem:[#allocation141_spill] sm:$0xff] %v8301_v41  ;;  %v8303_v17 = vpop.permute.xlu0 %5951  ;;  %2654 = vmatpush.bf16.msra.mxu0 %v5469_v52  ;;  %v1085_v52 = vsel %vm7871_vm0, %v7363_v13, 0.0  ;;  %vm11481_vm0 = vcmask 261120  }
 0x156   : > { %11870 = vst [vmem:[#allocation50_spill] sm:$0xff] %v8303_v17 }
 0x15b   : > { %v8314_v22 = vpop.permute.xlu1 %5971 }
 0x15c   : > { %v8310_v15 = vpop.permute.xlu2 %6021  ;;  %11874 = vst [vmem:[#allocation160_spill] sm:$0xff] %v8314_v22  ;;  %v5468_v22 = vld [vmem:[%s11114_s1 + $0x20] sm:$0xff] }
 0x15d   : > { %11872 = vst [vmem:[#allocation158_spill] sm:$0xff] %v8310_v15  ;;  %v8312_v12 = vpop.permute.xlu0 %5966  ;;  %2655 = vmatpush.bf16.msra.mxu0 %v5468_v22  ;;  %v11877_v15 = vld [vmem:[#allocation137_spill] sm:$0xff]  ;;  %v5828_v22 = vunpack.i.l.bf16 %v8120_v53 }
 0x15e   : > { %11873 = vst [vmem:[#allocation159_spill] sm:$0xff] %v8312_v12  ;;  %v5668_v51 = vunpack.i.l.bf16 %v11877_v15 }
 0x160   : > { %v2318_v13 = vsel %vm11457_vm10, %v1085_v52, %v5668_v51  ;;  %vm11470_vm10 = vcmask 523264  }
 0x161   : > { %2656 = vmatpush.bf16.msra.mxu0 %v5467_v60  ;;  %v5472_v60 = vld [vmem:[%s11114_s1 + $0x40] sm:$0xff] }
 0x162   : > { %2748 = vmatpush.bf16.msra.mxu1 %v5472_v60 }
 0x163   : > { %v8326_v37 = vpop.permute.xlu1 %5986 }
 0x164   : > { %v8322_v17 = vpop.permute.xlu2 %6036 }
 0x165   : > { %11875 = vst [vmem:[#allocation161_spill] sm:$0xff] %v8322_v17  ;;  %v8324_v8 = vpop.permute.xlu0 %5981  ;;  %v5748_v17 = vunpack.i.l.bf16 %v8091_v44  ;;  %2657 = vmatpush.bf16.msra.mxu0 %v5466_v49  ;;  %5392 = vmatmul.msk.bf16.vlgmr.msra.gmra.mxu1 %vm11882_vm3, %v2519_v36 }
 0x167   : > { %v2351_v25 = vsel %vm11481_vm0, %v2318_v13, %v5748_v17 }
 0x168   : > { %v2384_v11 = vsel %vm11474_vm12, %v2351_v25, %v5828_v22  ;;  %v11890_v22 = vld [vmem:[#allocation133_spill] sm:$0xff]  ;;  %vm11901_vm12 = vmmov %vm11882_vm3 }
 0x169   : > { %v2417_v49 = vsel %vm11470_vm10, %v2384_v11, %v5908_v54  ;;  %2658 = vmatpush.bf16.msra.mxu0 %v5465_v27  ;;  %v5464_v54 = vld [vmem:[%s11114_s1] sm:$0xff]  ;;  %v5659_v13 = vunpack.i.h.bf16 %v11890_v22  ;;  %v11894_v27 = vld [vmem:[#allocation139_spill] sm:$0xff]  ;;  %vm11898_vm10 = vmmov %vm11882_vm3 }
 0x16b   : > { %v8343_v30 = vpop.permute.xlu1 %6001 }
 0x16c   : > { %v8334_v12 = vpop.permute.xlu2 %6051 }
 0x16d   : > { %11876 = vst [vmem:[#allocation162_spill] sm:$0xff] %v8334_v12  ;;  %v8341_v56 = vpop.permute.xlu0 %5996  ;;  %v5988_v12 = vunpack.i.l.bf16 %v8326_v37  ;;  %2659 = vmatpush.bf16.msra.mxu0 %v5464_v54  ;;  %v1081_v54 = vsel %vm7884_vm15, %v11835_v21, 0.0  ;;  %v11897_v21 = vld [vmem:[#allocation122_spill] sm:$0xff] }
 0x16e   : > { %v5594_v43 = vunpack.i.h.bf16 %v11897_v21 }
 0x16f   : > { %v2450_v10 = vsel %vm11467_vm8, %v2417_v49, %v5988_v12  ;;  %v11888_v12 = vld [vmem:[#allocation62_spill] sm:$0xff]  ;;  %v5658_v49 = vunpack.i.l.bf16 %v11890_v22  ;;  %v5738_v22 = vunpack.i.l.bf16 %v11894_v27  ;;  %vm11896_vm8 = vmmov %vm11882_vm3 }
 0x170   : > { %v1389_v18 = vsel %vm7458_vm4, %v11888_v12, 0.0  ;;  %v1083_v12 = vsel %vm11839_vm2, %v7356_v7, 0.0 }
 0x173   : > { %v8372_v17 = vpop.permute.xlu1 %6016 }
 0x174   : > { %v8364_v51 = vpop.permute.xlu2 %6066  ;;  %11884 = vst [vmem:[#allocation66_spill] sm:$0xff] %v8372_v17  ;;  %v5664_v17 = vunpack.i.h.bf16 %v11892_v38 }
 0x175   : > { %11881 = vst [vmem:[#allocation137_spill] sm:$0xff] %v8364_v51  ;;  %v6068_v52 = vunpack.i.l.bf16 %v8364_v51  ;;  %v8370_v60 = vpop.permute.xlu0 %6011 }
 0x176   : > { %11883 = vst [vmem:[#allocation64_spill] sm:$0xff] %v8370_v60 }
 0x177   : > { %v8375_v25 = vsel %vm11466_vm11, %v2450_v10, %v6068_v52  ;;  %v11891_v52 = vld [vmem:[#allocation63_spill] sm:$0xff]  ;;  %vm11895_vm11 = vmmov %vm11882_vm3 }
 0x178   : > { %11885 = vst [vmem:[#allocation163_spill] sm:$0xff] %v8375_v25  ;;  %v2521_v10 = vpack.c.bf16 %v1389_v18, %v11891_v52  ;;  %v2315_v18 = vsel %vm11895_vm11, %v7409_v14, %v5659_v13  ;;  %v2314_v52 = vsel %vm11896_vm8, %v1081_v54, %v5658_v49  ;;  %v5743_v14 = vunpack.i.l.bf16 %v8093_v59 }
 0x179   : > { %v5673_v13 = vunpack.i.l.bf16 %v11902_v29  ;;  %v2347_v54 = vsel %vm11481_vm0, %v2314_v52, %v5738_v22  ;;  %v5903_v59 = vunpack.i.l.bf16 %v8221_v45  ;;  %vm11905_vm8 = vcmask 392192  }
 0x17a   : > { %5393 = vmatmul.msk.bf16.gmra.mxu1 %vm11882_vm3, %v2521_v10  ;;  %v5674_v10 = vunpack.i.h.bf16 %v11902_v29  ;;  %v5899_v29 = vunpack.i.h.bf16 %v8261_v9  ;;  %vm11906_vm11 = vmmov %vm11905_vm8  ;;  %vm11909_vm3 = vcmask 523264  }
 0x17b   : > { %v8384_v36 = vpop.permute.xlu1 %6031  ;;  %vm11910_vm2 = vmmov %vm11909_vm3 }
 0x17c   : > { %v8380_v63 = vpop.permute.xlu2 %6081  ;;  %11887 = vst [vmem:[#allocation165_spill] sm:$0xff] %v8384_v36  ;;  %v5739_v36 = vunpack.i.h.bf16 %v11894_v27 }
 0x17d   : > { %v8382_v11 = vpop.permute.xlu0 %6026 }
 0x17e   : > { %11886 = vst [vmem:[#allocation164_spill] sm:$0xff] %v8382_v11  ;;  %v5663_v11 = vunpack.i.l.bf16 %v11892_v38  ;;  %v5593_v38 = vunpack.i.l.bf16 %v11897_v21  ;;  %v2348_v49 = vsel %vm11481_vm0, %v2315_v18, %v5739_v36  ;;  %v5823_v21 = vunpack.i.l.bf16 %v8194_v34  ;;  %v11903_v18 = vld [vmem:[#allocation58_spill] sm:$0xff] }
 0x17f   : > { %v5978_v36 = vunpack.i.l.bf16 %v8279_v6  ;;  %v5754_v22 = vunpack.i.h.bf16 %v11903_v18  ;;  %v5753_v52 = vunpack.i.l.bf16 %v11903_v18 }
 0x180   : > { %v2316_v27 = vsel %vm11901_vm12, %v1083_v12, %v5663_v11  ;;  %v5819_v11 = vunpack.i.h.bf16 %v8196_v26  ;;  %v5898_v12 = vunpack.i.l.bf16 %v8261_v9  ;;  %v5983_v9 = vunpack.i.l.bf16 %v8324_v8  ;;  %vm11907_vm12 = vmmov %vm11905_vm8 }
 0x183   : > { %v8414_v7 = vpop.permute.xlu1 %6046 }
 0x184   : > { %v8397_v60 = vpop.permute.xlu2 %6096  ;;  %11900 = vst [vmem:[#allocation63_spill] sm:$0xff] %v8414_v7  ;;  %v5904_v7 = vunpack.i.h.bf16 %v8221_v45  ;;  %v5984_v45 = vunpack.i.h.bf16 %v8324_v8 }
 0x185   : > { %11893 = vst [vmem:[#allocation62_spill] sm:$0xff] %v8397_v60  ;;  %v2317_v60 = vsel %vm11898_vm10, %v7359_v20, %v5664_v17  ;;  %v8412_v46 = vpop.permute.xlu0 %6041  ;;  %v5818_v20 = vunpack.i.l.bf16 %v8196_v26  ;;  %v5824_v17 = vunpack.i.h.bf16 %v8194_v34  ;;  %v2349_v34 = vsel %vm11481_vm0, %v2316_v27, %v5743_v14  ;;  %vm11908_vm10 = vmmov %vm11905_vm8 }
 0x186   : > { %11899 = vst [vmem:[#allocation133_spill] sm:$0xff] %v8412_v46  ;;  %v2350_v46 = vsel %vm11481_vm0, %v2317_v60, %v5744_v24  ;;  %v2382_v41 = vsel %vm11906_vm11, %v2349_v34, %v5823_v21  ;;  %v2381_v18 = vsel %vm11908_vm10, %v2348_v49, %v5819_v11  ;;  %vm11911_vm0 = vmmov %vm11910_vm2  ;;  %v11917_v11 = vld [vmem:[#allocation69_spill] sm:$0xff]  ;;  %v11923_v34 = vld [vmem:[#allocation68_spill] sm:$0xff] }
 0x187   : > { %v2380_v26 = vsel %vm11905_vm8, %v2347_v54, %v5818_v20  ;;  %v2383_v25 = vsel %vm11907_vm12, %v2350_v46, %v5824_v17  ;;  %v2415_v27 = vsel %vm11911_vm0, %v2382_v41, %v5903_v59  ;;  %vm11912_vm15 = vmmov %vm11911_vm0  ;;  %vm11913_vm8 = vcmask 654336  }
 0x188   : > { %v2413_v24 = vsel %vm11909_vm3, %v2380_v26, %v5898_v12  ;;  %v2416_v60 = vsel %vm11910_vm2, %v2383_v25, %v5904_v7  ;;  %v2414_v14 = vsel %vm11912_vm15, %v2381_v18, %v5899_v29  ;;  %vm11914_vm11 = vmmov %vm11913_vm8  ;;  %v1391_v41 = vsel %vm7501_vm6, %v11917_v11, 0.0 }
 0x189   : > { %v2446_v6 = vsel %vm11913_vm8, %v2413_v24, %v5978_v36  ;;  %v2447_v46 = vsel %vm11914_vm11, %v2414_v14, %v5979_v0  ;;  %vm11915_vm12 = vmmov %vm11913_vm8  ;;  %vm11919_vm0 = vcmask 785408   ;;  %v5834_v0 = vunpack.i.h.bf16 %v8216_v1 }
 0x18a   : > { %v2448_v49 = vsel %vm11915_vm12, %v2415_v27, %v5983_v9  ;;  %vm11916_vm10 = vmmov %vm11913_vm8  ;;  %v5833_v36 = vunpack.i.l.bf16 %v8216_v1  ;;  %v2523_v26 = vpack.c.bf16 %v1391_v41, %v11923_v34  ;;  %vm11924_vm8 = vcmask 130048  }
 0x18b   : > { %v6062_v20 = vpop.permute.xlu1 %6061  ;;  %v2449_v17 = vsel %vm11916_vm10, %v2416_v60, %v5984_v45  ;;  %vm11920_vm15 = vmmov %vm11919_vm0  ;;  %v2289_v45 = vsel %vm11924_vm8, 0.0, %v5594_v43  ;;  %v5914_v18 = vunpack.i.h.bf16 %v8275_v58  ;;  %v5913_v24 = vunpack.i.l.bf16 %v8275_v58 }
 0x18c   : > { %v8436_v35 = vpop.permute.xlu2 %6111  ;;  %v6064_v61 = vunpack.i.h.bf16 %v6062_v20  ;;  %v6063_v21 = vunpack.i.l.bf16 %v6062_v20  ;;  %vm11921_vm2 = vmmov %vm11919_vm0  ;;  %vm11926_vm12 = vcmask 261120   ;;  %v5994_v27 = vunpack.i.h.bf16 %v8294_v19 }
 0x18d   : > { %11904 = vst [vmem:[#allocation123_spill] sm:$0xff] %v8436_v35  ;;  %v6057_v54 = vpop.permute.xlu0 %6056  ;;  %vm11922_vm3 = vmmov %vm11919_vm0  ;;  %v2322_v60 = vsel %vm11926_vm12, %v2289_v45, %v5674_v10  ;;  %v5993_v1 = vunpack.i.l.bf16 %v8294_v19  ;;  %v11940_v45 = vld [vmem:[#allocation126_spill] sm:$0xff] }
 0x18e   : > { %v6059_v35 = vunpack.i.h.bf16 %v6057_v54  ;;  %v6058_v8 = vunpack.i.l.bf16 %v6057_v54  ;;  %v2481_v59 = vsel %vm11921_vm2, %v2448_v49, %v6063_v21  ;;  %v2482_v29 = vsel %vm11922_vm3, %v2449_v17, %v6064_v61  ;;  %vm11925_vm11 = vmmov %vm11924_vm8  ;;  %v11938_v49 = vld [vmem:[#allocation125_spill] sm:$0xff] }
 0x18f   : > { %v2288_v9 = vsel %vm11925_vm11, 0.0, %v5593_v38  ;;  %vm11927_vm10 = vmmov %vm11926_vm12  ;;  %vm11932_vm3 = vcmask 523264   ;;  %vm11934_vm11 = vcmask 654336   ;;  %v5599_v17 = vunpack.i.h.bf16 %v11938_v49 }
 0x190   : > { %v8457_v7 = vsel %vm11919_vm0, %v2446_v6, %v6058_v8  ;;  %v8460_v12 = vsel %vm11920_vm15, %v2447_v46, %v6059_v35  ;;  %v8475_v61 = vsel %vm11927_vm10, %v2288_v9, %v5673_v13  ;;  %vm11929_vm0 = vmmov %vm11924_vm8  ;;  %vm11930_vm15 = vcmask 392192  }
 0x191   : > { %11928 = vst [vmem:[#allocation139_spill] sm:$0xff] %v8475_v61  ;;  %5394 = vmatmul.msk.bf16.gmra.mxu1 %vm11929_vm0, %v2523_v26  ;;  %v2355_v43 = vsel %vm11930_vm15, %v2322_v60, %v5754_v22  ;;  %vm11931_vm2 = vmmov %vm11930_vm15  ;;  %vm11936_vm10 = vcmask 785408   ;;  %vm11486_vm15 = vcmask 916480   ;;  %v5598_v26 = vunpack.i.l.bf16 %v11938_v49 }
 0x192   : > { %v2354_v38 = vsel %vm11931_vm2, %v8475_v61, %v5753_v52  ;;  %vm11933_vm8 = vmmov %vm11932_vm3  ;;  %v5679_v9 = vunpack.i.h.bf16 %v11940_v45  ;;  %vm11942_vm2 = vcmask 130048   ;;  %v5998_v49 = vunpack.i.l.bf16 %v8341_v56 }
 0x193   : > { %v2387_v58 = vsel %vm11932_vm3, %v2354_v38, %v5833_v36  ;;  %v2388_v14 = vsel %vm11933_vm8, %v2355_v43, %v5834_v0  ;;  %v6077_v10 = vpop.permute.xlu1 %6076  ;;  %vm11935_vm12 = vmmov %vm11934_vm11  ;;  %v11939_v36 = vld [vmem:[#allocation16_spill] sm:$0xff]  ;;  %v11941_v43 = vld [vmem:[#allocation18_spill] sm:$0xff]  ;;  %vm11947_vm8 = vcmask 261120  }
 0x194   : > { %v8471_v35 = vpop.permute.xlu2 %6126  ;;  %v2420_v20 = vsel %vm11934_vm11, %v2387_v58, %v5913_v24  ;;  %v2421_v8 = vsel %vm11935_vm12, %v2388_v14, %v5914_v18  ;;  %vm11937_vm0 = vmmov %vm11936_vm10  ;;  %v1057_v34 = vsel %vm11808_vm1, %v11939_v36, 0.0  ;;  %v5678_v18 = vunpack.i.l.bf16 %v11940_v45 }
 0x195   : > { %v6072_v6 = vpop.permute.xlu0 %6071  ;;  %v2453_v19 = vsel %vm11936_vm10, %v2420_v20, %v5993_v1  ;;  %v2454_v21 = vsel %vm11937_vm0, %v2421_v8, %v5994_v27  ;;  %v2291_v38 = vsel %vm11942_vm2, %v11941_v43, %v5599_v17  ;;  %v5759_v58 = vunpack.i.h.bf16 %v8113_v62  ;;  %v11944_v20 = vld [vmem:[#allocation60_spill] sm:$0xff]  ;;  %vm11945_vm3 = vmmov %vm11942_vm2 }
 0x196   : > { %v6074_v54 = vunpack.i.h.bf16 %v6072_v6  ;;  %v6073_v13 = vunpack.i.l.bf16 %v6072_v6  ;;  %v5758_v14 = vunpack.i.l.bf16 %v8113_v62  ;;  %v5839_v6 = vunpack.i.h.bf16 %v8214_v33  ;;  %vm11948_vm11 = vmmov %vm11947_vm8 }
 0x197   : > { %v2324_v62 = vsel %vm11947_vm8, %v2291_v38, %v5679_v9  ;;  %vm11949_vm12 = vcmask 392192   ;;  %vm11951_vm0 = vcmask 523264  }
 0x198   : > { %v2486_v22 = vsel %vm11486_vm15, %v2453_v19, %v6073_v13  ;;  %v2487_v52 = vsel %vm11486_vm15, %v2454_v21, %v6074_v54  ;;  %v5838_v54 = vunpack.i.l.bf16 %v8214_v33  ;;  %v11943_v13 = vld [vmem:[#allocation74_spill] sm:$0xff]  ;;  %v5919_v19 = vunpack.i.h.bf16 %v8231_v57  ;;  %vm11950_vm10 = vmmov %vm11949_vm12 }
 0x199   : > { %v2518_v46 = vpack.c.bf16 %v2487_v52, %v2486_v22  ;;  %v1393_v8 = vsel %vm7479_vm5, %v11943_v13, 0.0  ;;  %v5918_v21 = vunpack.i.l.bf16 %v8231_v57  ;;  %v11946_v22 = vld [vmem:[#allocation73_spill] sm:$0xff]  ;;  %v5999_v33 = vunpack.i.h.bf16 %v8341_v56  ;;  %vm11952_vm2 = vmmov %vm11951_vm0 }
 0x19a   : > { %v2525_v52 = vpack.c.bf16 %v1393_v8, %v11946_v22 }
 0x19b   : > { %2660 = vmatmul.bf16.vlgmr.msra.gmra.mxu0 %v2518_v46  ;;  %v8500_v60 = vpop.permute.xlu1 %6091 }
 0x19c   : > { %v6142_v11 = vpop.permute.xlu2 %6141 }
 0x19d   : > { %v6144_v41 = vunpack.i.h.bf16 %v6142_v11  ;;  %v6143_v0 = vunpack.i.l.bf16 %v6142_v11  ;;  %v8498_v24 = vpop.permute.xlu0 %6086  ;;  %v2357_v11 = vsel %vm11950_vm10, %v2324_v62, %v5759_v58  ;;  %vm11957_vm10 = vcmask 916480   ;;  %v11959_v58 = vld [vmem:[#allocation121_spill] sm:$0xff] }
 0x19e   : > { %v2390_v57 = vsel %vm11952_vm2, %v2357_v11, %v5839_v6  ;;  %vm11958_vm5 = vmmov %vm11957_vm10  ;;  %v5603_v6 = vunpack.i.l.bf16 %v11959_v58 }
 0x19f   : > { %v8503_v27 = vsel %vm11486_vm15, %v2481_v59, %v6143_v0  ;;  %v8506_v1 = vsel %vm11486_vm15, %v2482_v29, %v6144_v41  ;;  %v2290_v29 = vsel %vm11945_vm3, %v1057_v34, %v5598_v26  ;;  %v6079_v41 = vunpack.i.h.bf16 %v6077_v10 }
 0x1a0   : > { %v2323_v46 = vsel %vm11948_vm11, %v2290_v29, %v5678_v18  ;;  %v6078_v0 = vunpack.i.l.bf16 %v6077_v10  ;;  %vm11953_vm15 = vcmask 654336   ;;  %vm11955_vm11 = vcmask 785408  }
 0x1a1   : > { %v2356_v17 = vsel %vm11949_vm12, %v2323_v46, %v5758_v14  ;;  %5395 = vmatmul.msk.bf16.gmra.mxu1 %vm11945_vm3, %v2525_v52  ;;  %vm11954_vm8 = vmmov %vm11953_vm15  ;;  %v5604_v14 = vunpack.i.h.bf16 %v11959_v58  ;;  %v1059_v29 = vsel %vm11811_vm13, %v7128_v31, 0.0  ;;  %v5764_v46 = vunpack.i.h.bf16 %v8111_v23 }
 0x1a2   : > { %v2389_v36 = vsel %vm11951_vm0, %v2356_v17, %v5838_v54  ;;  %v2423_v26 = vsel %vm11954_vm8, %v2390_v57, %v5919_v19  ;;  %vm11956_vm12 = vmmov %vm11955_vm11  ;;  %v11960_v54 = vld [vmem:[#allocation70_spill] sm:$0xff]  ;;  %v11962_v19 = vld [vmem:[#allocation140_spill] sm:$0xff]  ;;  %v5843_v17 = vunpack.i.l.bf16 %v8141_v40  ;;  %vm11965_vm0 = vcmask 261120  }
 0x1a3   : > { %v2422_v34 = vsel %vm11953_vm15, %v2389_v36, %v5918_v21  ;;  %v8536_v9 = vpop.permute.xlu1 %6106  ;;  %v2456_v18 = vsel %vm11956_vm12, %v2423_v26, %v5999_v33  ;;  %v1395_v8 = vsel %vm7512_vm7, %v11960_v54, 0.0  ;;  %v5684_v21 = vunpack.i.h.bf16 %v11962_v19  ;;  %vm11964_vm15 = vmmov %vm11945_vm3 }
 0x1a4   : > { %v2455_v56 = vsel %vm11955_vm11, %v2422_v34, %v5998_v49  ;;  %v2489_v43 = vsel %vm11958_vm5, %v2456_v18, %v6079_v41  ;;  %v5683_v22 = vunpack.i.l.bf16 %v11962_v19  ;;  %v5763_v33 = vunpack.i.l.bf16 %v8111_v23  ;;  %vm11963_vm5 = vmmov %vm11945_vm3 }
 0x1a5   : > { %v8534_v45 = vpop.permute.xlu0 %6101  ;;  %v2488_v10 = vsel %vm11957_vm10, %v2455_v56, %v6078_v0  ;;  %v5844_v49 = vunpack.i.h.bf16 %v8141_v40  ;;  %v2527_v11 = vpack.c.bf16 %v1395_v8, %v11781_v2  ;;  %v2293_v31 = vsel %vm11963_vm5, %v7131_v32, %v5604_v14  ;;  %vm11966_vm2 = vmmov %vm11965_vm0 }
 0x1a6   : > { %v2520_v38 = vpack.c.bf16 %v2489_v43, %v2488_v10  ;;  %v2292_v41 = vsel %vm11964_vm15, %v1059_v29, %v5603_v6  ;;  %v5924_v0 = vunpack.i.h.bf16 %v8289_v48  ;;  %v5923_v36 = vunpack.i.l.bf16 %v8289_v48  ;;  %vm11971_vm10 = vmmov %vm11963_vm5 }
 0x1a7   : > { %v2326_v57 = vsel %vm11965_vm0, %v2293_v31, %v5684_v21  ;;  %v2325_v34 = vsel %vm11966_vm2, %v2292_v41, %v5683_v22  ;;  %v6004_v23 = vunpack.i.h.bf16 %v8343_v30  ;;  %v6003_v26 = vunpack.i.l.bf16 %v8343_v30  ;;  %v11978_v21 = vld [vmem:[#allocation124_spill] sm:$0xff] }
 0x1a8   : > { %vm11967_vm3 = vcmask 392192   ;;  %v6084_v32 = vunpack.i.h.bf16 %v8380_v63  ;;  %v6083_v56 = vunpack.i.l.bf16 %v8380_v63  ;;  %vm11969_vm11 = vcmask 523264  }
 0x1a9   : > { %v2358_v40 = vsel %vm11967_vm3, %v2325_v34, %v5763_v33  ;;  %vm11968_vm8 = vmmov %vm11967_vm3  ;;  %vm11972_vm5 = vcmask 654336   ;;  %v5669_v30 = vunpack.i.h.bf16 %v11877_v15  ;;  %vm11974_vm0 = vcmask 785408   ;;  %v11986_v34 = vld [vmem:[#allocation75_spill] sm:$0xff] }
 0x1aa   : > { %v2359_v2 = vsel %vm11968_vm8, %v2326_v57, %v5764_v46  ;;  %vm11970_vm12 = vmmov %vm11969_vm11  ;;  %vm11976_vm3 = vcmask 916480   ;;  %v1061_v19 = vsel %vm11807_vm14, %v7148_v42, 0.0  ;;  %v5609_v22 = vunpack.i.h.bf16 %v11978_v21 }
 0x1ab   : > { %2665 = vmatmul.bf16.gmra.mxu0 %v2520_v38  ;;  %v8554_v62 = vpop.permute.xlu1 %6121  ;;  %v2392_v18 = vsel %vm11969_vm11, %v2359_v2, %v5844_v49  ;;  %v2391_v48 = vsel %vm11970_vm12, %v2358_v40, %v5843_v17  ;;  %vm11973_vm15 = vmmov %vm11972_vm5  ;;  %v5749_v15 = vunpack.i.h.bf16 %v8091_v44  ;;  %v5608_v46 = vunpack.i.l.bf16 %v11978_v21  ;;  %v12192_v44 = vld [vmem:[#allocation94_spill] sm:$0xff] }
 0x1ac   : > { %v2424_v10 = vsel %vm11972_vm5, %v2391_v48, %v5923_v36  ;;  %v2425_v43 = vsel %vm11973_vm15, %v2392_v18, %v5924_v0  ;;  %vm11975_vm2 = vmmov %vm11974_vm0  ;;  %v5829_v33 = vunpack.i.h.bf16 %v8120_v53  ;;  %v5909_v42 = vunpack.i.h.bf16 %v8273_v3 }
 0x1ad   : > { %v8552_v52 = vpop.permute.xlu0 %6116  ;;  %v2457_v14 = vsel %vm11974_vm0, %v2424_v10, %v6003_v26  ;;  %v2458_v6 = vsel %vm11975_vm2, %v2425_v43, %v6004_v23  ;;  %vm11977_vm8 = vmmov %vm11976_vm3  ;;  %v2319_v0 = vsel %vm11971_vm10, %v7436_v55, %v5669_v30  ;;  %v5989_v53 = vunpack.i.h.bf16 %v8326_v37  ;;  %v11988_v26 = vld [vmem:[#allocation144_spill] sm:$0xff] }
 0x1ae   : > { %v2490_v8 = vsel %vm11976_vm3, %v2457_v14, %v6083_v56  ;;  %v2491_v29 = vsel %vm11977_vm8, %v2458_v6, %v6084_v32  ;;  %vm11979_vm11 = vmmov %vm11976_vm3  ;;  %vm11982_vm5 = vcmask 261120   ;;  %v11492_v36 = vunpack.i.h.bf16 %v8364_v51  ;;  %v12193_v51 = vld [vmem:[#allocation134_spill] sm:$0xff] }
 0x1af   : > { %vm11980_vm12 = vmmov %vm11976_vm3  ;;  %v2522_v41 = vpack.c.bf16 %v2491_v29, %v2490_v8  ;;  %vm11985_vm2 = vcmask 392192   ;;  %v1397_v23 = vsel %vm7558_vm9, %v11776_v4, 0.0  ;;  %v5769_v40 = vunpack.i.h.bf16 %v11988_v26  ;;  %v11998_v29 = vld [vmem:[#allocation141_spill] sm:$0xff] }
 0x1b0   : > { %vm11983_vm15 = vmmov %vm11971_vm10  ;;  %vm11989_vm8 = vcmask 523264   ;;  %v5849_v4 = vunpack.i.h.bf16 %v8227_v39  ;;  %v5848_v10 = vunpack.i.l.bf16 %v8227_v39  ;;  %v2529_v30 = vpack.c.bf16 %v1397_v23, %v11782_v28 }
 0x1b1   : > { %5396 = vmatmul.msk.bf16.gmra.mxu1 %vm11971_vm10, %v2527_v11  ;;  %v11981_v11 = vld [vmem:[#allocation59_spill] sm:$0xff]  ;;  %vm11984_vm0 = vmmov %vm11971_vm10  ;;  %vm11995_vm10 = vcmask 916480   ;;  %v6008_v21 = vunpack.i.l.bf16 %v11998_v29 }
 0x1b2   : > { %v5689_v31 = vunpack.i.h.bf16 %v11981_v11  ;;  %v2294_v57 = vsel %vm11984_vm0, %v1061_v19, %v5608_v46  ;;  %vm11987_vm3 = vmmov %vm11982_vm5  ;;  %v5688_v37 = vunpack.i.l.bf16 %v11981_v11  ;;  %v6009_v19 = vunpack.i.h.bf16 %v11998_v29 }
 0x1b3   : > { %v6137_v58 = vpop.permute.xlu1 %6136  ;;  %vm11999_vm0 = vmmov %vm11985_vm2  ;;  %v6089_v46 = vunpack.i.h.bf16 %v8498_v24 }
 0x1b4   : > { %v6139_v63 = vunpack.i.h.bf16 %v6137_v58  ;;  %v6138_v54 = vunpack.i.l.bf16 %v6137_v58  ;;  %v11993_v58 = vld [vmem:[#allocation54_spill] sm:$0xff] }
 0x1b5   : > { %v8580_v38 = vpop.permute.xlu0 %6131  ;;  %v5929_v14 = vunpack.i.h.bf16 %v11993_v58  ;;  %v5928_v6 = vunpack.i.l.bf16 %v11993_v58  ;;  %v12020_v58 = vld [vmem:[#allocation150_spill] sm:$0xff] }
 0x1b6   : > { %v8595_v49 = vsel %vm11979_vm11, %v8457_v7, %v6138_v54  ;;  %v8599_v17 = vsel %vm11980_vm12, %v8460_v12, %v6139_v63  ;;  %v2352_v7 = vsel %vm11982_vm5, %v2319_v0, %v5749_v15  ;;  %v2295_v12 = vsel %vm11983_vm15, %v7166_v50, %v5609_v22  ;;  %v11994_v63 = vld [vmem:[#allocation163_spill] sm:$0xff]  ;;  %vm11996_vm5 = vmmov %vm11995_vm10 }
 0x1b7   : > { %v2385_v3 = vsel %vm11985_vm2, %v2352_v7, %v5829_v33  ;;  %v2328_v55 = vsel %vm11987_vm3, %v2295_v12, %v5689_v31  ;;  %v5768_v50 = vunpack.i.l.bf16 %v11988_v26  ;;  %vm11991_vm11 = vcmask 654336   ;;  %vm11997_vm15 = vmmov %vm11987_vm3 }
 0x1b8   : > { %v2418_v2 = vsel %vm11989_vm8, %v2385_v3, %v5909_v42  ;;  %vm11992_vm12 = vcmask 785408   ;;  %v2327_v39 = vsel %vm11997_vm15, %v2294_v57, %v5688_v37  ;;  %v2361_v22 = vsel %vm11999_vm0, %v2328_v55, %v5769_v40  ;;  %vm12000_vm2 = vmmov %vm11999_vm0  ;;  %v12011_v55 = vld [vmem:[#allocation11_spill] sm:$0xff]  ;;  %v12012_v37 = vld [vmem:[#allocation106_spill] sm:$0xff] }
 0x1b9   : > { %v2451_v56 = vsel %vm11991_vm11, %v2418_v2, %v5989_v53  ;;  %v2360_v15 = vsel %vm12000_vm2, %v2327_v39, %v5768_v50  ;;  %v6088_v33 = vunpack.i.l.bf16 %v8498_v24  ;;  %vm12001_vm3 = vmmov %vm11989_vm8  ;;  %vm12003_vm11 = vcmask 130048   ;;  %v12010_v24 = vld [vmem:[#allocation107_spill] sm:$0xff]  ;;  %v12014_v40 = vld [vmem:[#allocation81_spill] sm:$0xff] }
 0x1ba   : > { %v2484_v43 = vsel %vm11992_vm12, %v2451_v56, %v11492_v36  ;;  %v2393_v11 = vsel %vm12001_vm3, %v2360_v15, %v5848_v10  ;;  %vm12002_vm8 = vmmov %vm12001_vm3  ;;  %vm12004_vm12 = vcmask 654336   ;;  %vm12008_vm0 = vcmask 916480   ;;  %v12015_v2 = vld [vmem:[#allocation71_spill] sm:$0xff]  ;;  %v12017_v56 = vld [vmem:[#allocation129_spill] sm:$0xff] }
 0x1bb   : > { %2670 = vmatmul.bf16.gmra.mxu0 %v2522_v41  ;;  %v2394_v31 = vsel %vm12002_vm8, %v2361_v22, %v5849_v4  ;;  %v2426_v42 = vsel %vm12004_vm12, %v2393_v11, %v5928_v6  ;;  %vm12009_vm2 = vmmov %vm12008_vm0  ;;  %v5614_v3 = vunpack.i.h.bf16 %v12010_v24  ;;  %v5613_v23 = vunpack.i.l.bf16 %v12010_v24  ;;  %v12018_v10 = vld [vmem:[#allocation12_spill] sm:$0xff] }
 0x1bc   : > { %vm12013_vm3 = vnez %v12012_v37  ;;  %vm12016_vm8 = vnez %v12015_v2  ;;  %v5693_v4 = vunpack.i.l.bf16 %v12017_v56  ;;  %v5773_v6 = vunpack.i.l.bf16 %v12020_v58  ;;  %v12023_v22 = vld [vmem:[#allocation40_spill] sm:$0xff] }
 0x1bd   : > { %v8621_v32 = vpop.permute.xlu0 %6146  ;;  %v1063_v26 = vsel %vm12013_vm3, %v12011_v55, 0.0  ;;  %v1399_v50 = vsel %vm12016_vm8, %v12014_v40, 0.0  ;;  %v5934_v15 = vunpack.i.h.bf16 %v12023_v22  ;;  %vm12033_vm8 = vcmask 785408  }
 0x1be   : > { %11990 = vst [vmem:[#allocation122_spill] sm:$0xff] %v8621_v32  ;;  %v11491_v18 = vunpack.i.h.bf16 %v8621_v32  ;;  %v6148_v48 = vunpack.i.l.bf16 %v8621_v32  ;;  %vm12034_vm9 = vmmov %vm12033_vm8 }
 0x1c0   : > { %v8637_v54 = vsel %vm11995_vm10, %v11994_v63, %v6148_v48  ;;  %v8642_v8 = vsel %vm11996_vm5, %v2484_v43, %v11491_v18  ;;  %vm12005_vm10 = vmmov %vm12004_vm12  ;;  %vm12006_vm5 = vcmask 785408   ;;  %v5694_v48 = vunpack.i.h.bf16 %v12017_v56  ;;  %v12021_v63 = vld [vmem:[#allocation157_spill] sm:$0xff] }
 0x1c1   : > { %5397 = vmatmul.msk.bf16.gmra.mxu1 %vm12003_vm11, %v2529_v30  ;;  %v2427_v41 = vsel %vm12005_vm10, %v2394_v31, %v5929_v14  ;;  %v2459_v0 = vsel %vm12006_vm5, %v2426_v42, %v6008_v21  ;;  %vm12007_vm15 = vmmov %vm12006_vm5  ;;  %v2297_v43 = vsel %vm12003_vm11, %v12018_v10, %v5614_v3  ;;  %v5774_v14 = vunpack.i.h.bf16 %v12020_v58  ;;  %v12026_v31 = vld [vmem:[#allocation64_spill] sm:$0xff]  ;;  %v12041_v58 = vld [vmem:[#allocation13_spill] sm:$0xff] }
 0x1c2   : > { %v2460_v53 = vsel %vm12007_vm15, %v2427_v41, %v6009_v19  ;;  %v2492_v7 = vsel %vm12008_vm0, %v2459_v0, %v6088_v33  ;;  %vm12019_vm12 = vmmov %vm12003_vm11  ;;  %v5854_v39 = vunpack.i.h.bf16 %v12021_v63  ;;  %v5853_v29 = vunpack.i.l.bf16 %v12021_v63  ;;  %v12022_v19 = vld [vmem:[#allocation87_spill] sm:$0xff]  ;;  %v12038_v10 = vld [vmem:[#allocation80_spill] sm:$0xff] }
 0x1c3   : > { %v2493_v12 = vsel %vm12009_vm2, %v2460_v53, %v6089_v46  ;;  %v2296_v30 = vsel %vm12019_vm12, %v1063_v26, %v5613_v23  ;;  %v2531_v21 = vpack.c.bf16 %v1399_v50, %v12022_v19  ;;  %v5933_v46 = vunpack.i.l.bf16 %v12023_v22  ;;  %v12044_v63 = vld [vmem:[#allocation143_spill] sm:$0xff]  ;;  %v12045_v19 = vld [vmem:[#allocation104_spill] sm:$0xff] }
 0x1c4   : > { %v2524_v57 = vpack.c.bf16 %v2493_v12, %v2492_v7  ;;  %vm12024_vm10 = vcmask 261120   ;;  %v6014_v42 = vunpack.i.h.bf16 %v12026_v31  ;;  %v6013_v41 = vunpack.i.l.bf16 %v12026_v31 }
 0x1c5   : > { %v2330_v33 = vsel %vm12024_vm10, %v2297_v43, %v5694_v48  ;;  %vm12025_vm5 = vmmov %vm12024_vm10  ;;  %vm12027_vm15 = vcmask 392192   ;;  %v6094_v7 = vunpack.i.h.bf16 %v8500_v60  ;;  %v6093_v12 = vunpack.i.l.bf16 %v8500_v60  ;;  %v12037_v60 = vld [vmem:[#allocation110_spill] sm:$0xff]  ;;  %v12039_v43 = vld [vmem:[#allocation76_spill] sm:$0xff] }
 0x1c6   : > { %v2329_v11 = vsel %vm12025_vm5, %v2296_v30, %v5693_v4  ;;  %vm12028_vm0 = vmmov %vm12027_vm15  ;;  %vm12029_vm2 = vcmask 523264   ;;  %vm12031_vm10 = vcmask 654336   ;;  %v5619_v48 = vunpack.i.h.bf16 %v12037_v60 }
 0x1c7   : > { %v2362_v0 = vsel %vm12027_vm15, %v2329_v11, %v5773_v6  ;;  %v2363_v53 = vsel %vm12028_vm0, %v2330_v33, %v5774_v14  ;;  %vm12030_vm11 = vmmov %vm12029_vm2  ;;  %vm12035_vm15 = vcmask 916480   ;;  %v5618_v4 = vunpack.i.l.bf16 %v12037_v60  ;;  %v12042_v14 = vld [vmem:[#allocation108_spill] sm:$0xff]  ;;  %v12047_v11 = vld [vmem:[#allocation85_spill] sm:$0xff] }
 0x1c8   : > { %v2396_v24 = vsel %vm12030_vm11, %v2363_v53, %v5854_v39  ;;  %vm12032_vm5 = vmmov %vm12031_vm10  ;;  %vm12043_vm11 = vnez %v12042_v14  ;;  %v5699_v39 = vunpack.i.h.bf16 %v12044_v63  ;;  %v5778_v22 = vunpack.i.l.bf16 %v12045_v19  ;;  %v12051_v53 = vld [vmem:[#allocation43_spill] sm:$0xff] }
 0x1c9   : > { %v2429_v23 = vsel %vm12032_vm5, %v2396_v24, %v5934_v15  ;;  %vm12036_vm0 = vmmov %vm12035_vm15  ;;  %v1065_v6 = vsel %vm12043_vm11, %v12041_v58, 0.0  ;;  %v12046_v15 = vld [vmem:[#allocation153_spill] sm:$0xff]  ;;  %vm12055_vm5 = vcmask 392192  }
 0x1ca   : > { %v2462_v26 = vsel %vm12034_vm9, %v2429_v23, %v6014_v42  ;;  %v5858_v33 = vunpack.i.l.bf16 %v12046_v15  ;;  %v12048_v42 = vld [vmem:[#allocation17_spill] sm:$0xff]  ;;  %vm12049_vm9 = vmmov %vm12019_vm12 }
 0x1cb   : > { %2675 = vmatmul.bf16.gmra.mxu0 %v2524_v57  ;;  %v2395_v57 = vsel %vm12029_vm2, %v2362_v0, %v5853_v29  ;;  %v2495_v50 = vsel %vm12036_vm0, %v2462_v26, %v6094_v7  ;;  %vm12040_vm2 = vnez %v12039_v43  ;;  %v5698_v29 = vunpack.i.l.bf16 %v12044_v63 }
 0x1cc   : > { %v2428_v3 = vsel %vm12031_vm10, %v2395_v57, %v5933_v46  ;;  %v1401_v30 = vsel %vm12040_vm2, %v12038_v10, 0.0  ;;  %v5859_v46 = vunpack.i.h.bf16 %v12046_v15  ;;  %v5939_v7 = vunpack.i.h.bf16 %v12051_v53  ;;  %v12067_v15 = vld [vmem:[#allocation20_spill] sm:$0xff] }
 0x1cd   : > { %v2461_v55 = vsel %vm12033_vm8, %v2428_v3, %v6013_v41  ;;  %v2533_v31 = vpack.c.bf16 %v1401_v30, %v12047_v11  ;;  %v2299_v41 = vsel %vm12049_vm9, %v12048_v42, %v5619_v48  ;;  %vm12050_vm8 = vmmov %vm12049_vm9  ;;  %v12054_v3 = vld [vmem:[#allocation66_spill] sm:$0xff]  ;;  %vm12058_vm0 = vcmask 523264  }
 0x1ce   : > { %v2494_v40 = vsel %vm12035_vm15, %v2461_v55, %v6093_v12  ;;  %v2298_v0 = vsel %vm12050_vm8, %v1065_v6, %v5618_v4  ;;  %v5938_v12 = vunpack.i.l.bf16 %v12051_v53  ;;  %v6019_v23 = vunpack.i.h.bf16 %v12054_v3  ;;  %vm12056_vm15 = vmmov %vm12055_vm5  ;;  %v12070_v11 = vld [vmem:[#allocation142_spill] sm:$0xff] }
 0x1cf   : > { %v2526_v56 = vpack.c.bf16 %v2495_v50, %v2494_v40  ;;  %v6018_v55 = vunpack.i.l.bf16 %v12054_v3  ;;  %v12057_v50 = vld [vmem:[#allocation62_spill] sm:$0xff]  ;;  %vm12059_vm9 = vmmov %vm12058_vm0  ;;  %vm12062_vm2 = vcmask 785408   ;;  %v5703_v42 = vunpack.i.l.bf16 %v12070_v11 }
 0x1d0   : > { %v6098_v60 = vunpack.i.l.bf16 %v12057_v50  ;;  %vm12063_vm11 = vmmov %vm12062_vm2 }
 0x1d1   : > { %5398 = vmatmul.msk.bf16.gmra.mxu1 %vm12019_vm12, %v2531_v21  ;;  %v5779_v21 = vunpack.i.h.bf16 %v12045_v19  ;;  %vm12052_vm12 = vcmask 261120   ;;  %v12066_v19 = vld [vmem:[#allocation128_spill] sm:$0xff] }
 0x1d2   : > { %v2332_v57 = vsel %vm12052_vm12, %v2299_v41, %v5699_v39  ;;  %vm12053_vm10 = vmmov %vm12052_vm12  ;;  %vm12060_vm12 = vcmask 654336   ;;  %v12071_v41 = vld [vmem:[#allocation72_spill] sm:$0xff] }
 0x1d3   : > { %v2331_v24 = vsel %vm12053_vm10, %v2298_v0, %v5698_v29  ;;  %v2365_v40 = vsel %vm12056_vm15, %v2332_v57, %v5779_v21  ;;  %vm12061_vm10 = vmmov %vm12060_vm12  ;;  %v5624_v21 = vunpack.i.h.bf16 %v12066_v19  ;;  %v5784_v0 = vunpack.i.h.bf16 %v12071_v41 }
 0x1d4   : > { %v2364_v26 = vsel %vm12055_vm5, %v2331_v24, %v5778_v22  ;;  %v2398_v48 = vsel %vm12058_vm0, %v2365_v40, %v5859_v46  ;;  %vm12064_vm5 = vcmask 916480   ;;  %v5623_v22 = vunpack.i.l.bf16 %v12066_v19  ;;  %v12068_v46 = vld [vmem:[#allocation105_spill] sm:$0xff]  ;;  %v12073_v24 = vld [vmem:[#allocation31_spill] sm:$0xff] }
 0x1d5   : > { %v2397_v4 = vsel %vm12059_vm9, %v2364_v26, %v5858_v33  ;;  %v2431_v30 = vsel %vm12061_vm10, %v2398_v48, %v5939_v7  ;;  %vm12065_vm15 = vmmov %vm12064_vm5  ;;  %vm12069_vm0 = vnez %v12068_v46  ;;  %v5783_v53 = vunpack.i.l.bf16 %v12071_v41  ;;  %v12072_v7 = vld [vmem:[#allocation25_spill] sm:$0xff]  ;;  %v12079_v48 = vld [vmem:[#allocation158_spill] sm:$0xff] }
 0x1d6   : > { %v2430_v10 = vsel %vm12060_vm12, %v2397_v4, %v5938_v12  ;;  %v2464_v6 = vsel %vm12063_vm11, %v2431_v30, %v6019_v23  ;;  %v1067_v33 = vsel %vm12069_vm0, %v12067_v15, 0.0  ;;  %v5864_v12 = vunpack.i.h.bf16 %v12072_v7 }
 0x1d7   : > { %v2463_v58 = vsel %vm12062_vm2, %v2430_v10, %v6018_v55  ;;  %v5863_v57 = vunpack.i.l.bf16 %v12072_v7  ;;  %vm12074_vm2 = vmmov %vm12050_vm8  ;;  %v12076_v55 = vld [vmem:[#allocation55_spill] sm:$0xff]  ;;  %vm12077_vm9 = vcmask 261120   ;;  %v6024_v4 = vunpack.i.h.bf16 %v12079_v48 }
 0x1d8   : > { %v2496_v63 = vsel %vm12064_vm5, %v2463_v58, %v6098_v60  ;;  %v2301_v3 = vsel %vm12074_vm2, %v12073_v24, %v5624_v21  ;;  %vm12075_vm11 = vmmov %vm12074_vm2  ;;  %v5944_v26 = vunpack.i.h.bf16 %v12076_v55  ;;  %v5943_v40 = vunpack.i.l.bf16 %v12076_v55 }
 0x1d9   : > { %v2300_v23 = vsel %vm12075_vm11, %v1067_v33, %v5623_v22  ;;  %v6023_v10 = vunpack.i.l.bf16 %v12079_v48  ;;  %vm12080_vm12 = vcmask 392192   ;;  %vm12082_vm5 = vcmask 523264  }
 0x1da   : > { %vm12081_vm10 = vmmov %vm12080_vm12  ;;  %vm12084_vm2 = vcmask 654336   ;;  %vm12088_vm0 = vcmask 916480  }
 0x1db   : > { %2680 = vmatmul.bf16.gmra.mxu0 %v2526_v56  ;;  %v6099_v56 = vunpack.i.h.bf16 %v12057_v50  ;;  %vm12085_vm11 = vmmov %vm12084_vm2 }
 0x1dd   : > { %v2497_v39 = vsel %vm12065_vm15, %v2464_v6, %v6099_v56  ;;  %v2333_v56 = vsel %vm12077_vm9, %v2300_v23, %v5703_v42  ;;  %v6104_v6 = vunpack.i.h.bf16 %v8534_v45  ;;  %vm12083_vm15 = vmmov %vm12082_vm5  ;;  %v12091_v42 = vld [vmem:[#allocation82_spill] sm:$0xff]  ;;  %v12096_v23 = vld [vmem:[#allocation112_spill] sm:$0xff] }
 0x1de   : > { %v2528_v29 = vpack.c.bf16 %v2497_v39, %v2496_v63  ;;  %v2366_v58 = vsel %vm12081_vm10, %v2333_v56, %v5783_v53  ;;  %v6103_v63 = vunpack.i.l.bf16 %v8534_v45  ;;  %vm12092_vm10 = vnez %v12091_v42  ;;  %v12093_v53 = vld [vmem:[#allocation86_spill] sm:$0xff]  ;;  %v5481_v42 = vld [vmem:[#allocation2 + $0x40] sm:$0xff] }
 0x1df   : > { %v2399_v39 = vsel %vm12082_vm5, %v2366_v58, %v5863_v57  ;;  %vm12097_vm5 = vnez %v12096_v23  ;;  %4837 = vmatpush.bf16.msra.mxu3 %v5481_v42 }
 0x1e0   : > { %v2432_v19 = vsel %vm12084_vm2, %v2399_v39, %v5943_v40 }
 0x1e1   : > { %5399 = vmatmul.msk.bf16.gmra.mxu1 %vm12050_vm8, %v2533_v31  ;;  %v5704_v31 = vunpack.i.h.bf16 %v12070_v11  ;;  %vm12078_vm8 = vmmov %vm12077_vm9  ;;  %vm12086_vm9 = vcmask 785408  }
 0x1e2   : > { %v8752_v50 = vpop.f32.mrf.mxu1  ;;  %v2465_v22 = vsel %vm12086_vm9, %v2432_v19, %v6023_v10  ;;  %v12103_v10 = vld [vmem:[#allocation152_spill] sm:$0xff] }
 0x1e3   : > { %v2334_v60 = vsel %vm12078_vm8, %v2301_v3, %v5704_v31  ;;  %vm12087_vm8 = vmmov %vm12086_vm9  ;;  %v2498_v33 = vsel %vm12088_vm0, %v2465_v22, %v6103_v63  ;;  %v12090_v31 = vld [vmem:[#allocation84_spill] sm:$0xff]  ;;  %v5788_v58 = vunpack.i.l.bf16 %v12103_v10 }
 0x1e4   : > { %v2367_v30 = vsel %vm12080_vm12, %v2334_v60, %v5784_v0  ;;  %vm12089_vm12 = vmmov %vm12088_vm0  ;;  %v1403_v45 = vsel %vm12092_vm10, %v12090_v31, 0.0  ;;  %v12095_v3 = vld [vmem:[#allocation32_spill] sm:$0xff]  ;;  %vm12098_vm0 = vcmask 130048   ;;  %v12100_v60 = vld [vmem:[#allocation33_spill] sm:$0xff] }
 0x1e5   : > { %v2535_v7 = vpack.c.bf16 %v1403_v45, %v12093_v53  ;;  %v1069_v55 = vsel %vm12097_vm5, %v12095_v3, 0.0  ;;  %vm12102_vm2 = vmmov %vm12098_vm0  ;;  %vm12117_vm5 = vcmask 916480  }
 0x1ea   : > { %v8773_v0 = vpop.f32.mrf.mxu1 }
 0x1eb   : > { %2685 = vmatmul.bf16.gmra.mxu0 %v2528_v29  ;;  %v2400_v29 = vsel %vm12083_vm15, %v2367_v30, %v5864_v12  ;;  %v12094_v12 = vld [vmem:[#allocation127_spill] sm:$0xff]  ;;  %vm12101_vm15 = vmmov %vm12098_vm0  ;;  %v5789_v30 = vunpack.i.h.bf16 %v12103_v10 }
 0x1ec   : > { %v2433_v21 = vsel %vm12085_vm11, %v2400_v29, %v5944_v26  ;;  %v5629_v57 = vunpack.i.h.bf16 %v12094_v12  ;;  %v5628_v24 = vunpack.i.l.bf16 %v12094_v12  ;;  %v12099_v26 = vld [vmem:[#allocation132_spill] sm:$0xff]  ;;  %v12105_v29 = vld [vmem:[#allocation47_spill] sm:$0xff]  ;;  %vm12106_vm11 = vcmask 261120  }
 0x1ed   : > { %v2466_v15 = vsel %vm12087_vm8, %v2433_v21, %v6024_v4  ;;  %v5709_v40 = vunpack.i.h.bf16 %v12099_v26  ;;  %v5708_v56 = vunpack.i.l.bf16 %v12099_v26  ;;  %v5949_v19 = vunpack.i.h.bf16 %v12105_v29  ;;  %vm12107_vm9 = vmmov %vm12106_vm11 }
 0x1ee   : > { %v2499_v11 = vsel %vm12089_vm12, %v2466_v15, %v6104_v6  ;;  %v2303_v48 = vsel %vm12101_vm15, %v12100_v60, %v5629_v57  ;;  %v2302_v4 = vsel %vm12102_vm2, %v1069_v55, %v5628_v24  ;;  %v12104_v6 = vld [vmem:[#allocation22_spill] sm:$0xff]  ;;  %v5948_v21 = vunpack.i.l.bf16 %v12105_v29 }
 0x1ef   : > { %v2530_v41 = vpack.c.bf16 %v2499_v11, %v2498_v33  ;;  %v5869_v63 = vunpack.i.h.bf16 %v12104_v6  ;;  %v5868_v39 = vunpack.i.l.bf16 %v12104_v6  ;;  %v2336_v22 = vsel %vm12106_vm11, %v2303_v48, %v5709_v40  ;;  %v12108_v33 = vld [vmem:[#allocation164_spill] sm:$0xff] }
 0x1f0   : > { %v2335_v15 = vsel %vm12107_vm9, %v2302_v4, %v5708_v56  ;;  %v6029_v11 = vunpack.i.h.bf16 %v12108_v33  ;;  %v6028_v31 = vunpack.i.l.bf16 %v12108_v33  ;;  %vm12109_vm8 = vcmask 392192   ;;  %v12119_v48 = vld [vmem:[#allocation92_spill] sm:$0xff]  ;;  %v12120_v4 = vld [vmem:[#allocation79_spill] sm:$0xff] }
 0x1f1   : > { %5400 = vmatmul.msk.bf16.gmra.mxu1 %vm12098_vm0, %v2535_v7  ;;  %vm12110_vm12 = vmmov %vm12109_vm8  ;;  %v6109_v7 = vunpack.i.h.bf16 %v8536_v9  ;;  %v6108_v12 = vunpack.i.l.bf16 %v8536_v9  ;;  %vm12111_vm0 = vcmask 523264   ;;  %vm12113_vm2 = vcmask 654336  }
 0x1f2   : > { %v2369_v53 = vsel %vm12110_vm12, %v2336_v22, %v5789_v30  ;;  %vm12112_vm15 = vmmov %vm12111_vm0  ;;  %vm12115_vm9 = vcmask 785408   ;;  %vm12121_vm12 = vnez %v12120_v4  ;;  %v12216_v4 = vld [vmem:[#allocation77_spill] sm:$0xff] }
 0x1f3   : > { %v2402_v24 = vsel %vm12112_vm15, %v2369_v53, %v5869_v63  ;;  %vm12114_vm11 = vmmov %vm12113_vm2  ;;  %v1405_v9 = vsel %vm12121_vm12, %v12119_v48, 0.0  ;;  %v12124_v63 = vld [vmem:[#allocation115_spill] sm:$0xff] }
 0x1f4   : > { %v2435_v55 = vsel %vm12114_vm11, %v2402_v24, %v5949_v19  ;;  %vm12116_vm10 = vmmov %vm12115_vm9  ;;  %v5633_v29 = vunpack.i.l.bf16 %v12124_v63  ;;  %v12125_v19 = vld [vmem:[#allocation28_spill] sm:$0xff]  ;;  %v12131_v24 = vld [vmem:[#allocation29_spill] sm:$0xff] }
 0x1f5   : > { %v2468_v40 = vsel %vm12116_vm10, %v2435_v55, %v6029_v11 }
 0x1f7   : > { %v8797_v45 = vpop.f32.mrf.mxu1 }
 0x1fb   : > { %2690 = vmatmul.bf16.gmra.mxu0 %v2530_v41  ;;  %v2368_v41 = vsel %vm12109_vm8, %v2335_v15, %v5788_v58  ;;  %vm12118_vm8 = vmmov %vm12117_vm5  ;;  %v12122_v58 = vld [vmem:[#allocation96_spill] sm:$0xff]  ;;  %v12128_v15 = vld [vmem:[#allocation146_spill] sm:$0xff] }
 0x1fc   : > { %v2401_v57 = vsel %vm12111_vm0, %v2368_v41, %v5868_v39  ;;  %v2501_v60 = vsel %vm12118_vm8, %v2468_v40, %v6109_v7  ;;  %v2537_v6 = vpack.c.bf16 %v1405_v9, %v12122_v58  ;;  %vm12123_vm0 = vcmask 130048   ;;  %v12130_v7 = vld [vmem:[#allocation156_spill] sm:$0xff]  ;;  %v12137_v9 = vld [vmem:[#allocation165_spill] sm:$0xff] }
 0x1fd   : > { %v2434_v3 = vsel %vm12113_vm2, %v2401_v57, %v5948_v21  ;;  %v5634_v39 = vunpack.i.h.bf16 %v12124_v63  ;;  %v12126_v21 = vld [vmem:[#allocation111_spill] sm:$0xff]  ;;  %v5714_v33 = vunpack.i.h.bf16 %v12128_v15  ;;  %v5713_v11 = vunpack.i.l.bf16 %v12128_v15  ;;  %vm12133_vm15 = vmmov %vm12123_vm0 }
 0x1fe   : > { %v2467_v26 = vsel %vm12115_vm9, %v2434_v3, %v6028_v31  ;;  %vm12127_vm10 = vnez %v12126_v21  ;;  %v12129_v31 = vld [vmem:[#allocation151_spill] sm:$0xff]  ;;  %v5873_v57 = vunpack.i.l.bf16 %v12130_v7  ;;  %vm12135_vm2 = vcmask 261120  }
 0x1ff   : > { %v2500_v56 = vsel %vm12117_vm5, %v2467_v26, %v6108_v12  ;;  %v8814_v30 = vpop.f32.mrf.mxu1  ;;  %v1071_v22 = vsel %vm12127_vm10, %v12125_v19, 0.0  ;;  %v5794_v41 = vunpack.i.h.bf16 %v12129_v31  ;;  %v5793_v53 = vunpack.i.l.bf16 %v12129_v31  ;;  %vm12132_vm5 = vmmov %vm12123_vm0  ;;  %v12134_v26 = vld [vmem:[#allocation50_spill] sm:$0xff]  ;;  %v12140_v19 = vld [vmem:[#allocation123_spill] sm:$0xff] }
 0x200   : > { %v2532_v10 = vpack.c.bf16 %v2501_v60, %v2500_v56  ;;  %v5874_v12 = vunpack.i.h.bf16 %v12130_v7  ;;  %v2305_v3 = vsel %vm12132_vm5, %v12131_v24, %v5634_v39  ;;  %v2304_v55 = vsel %vm12133_vm15, %v1071_v22, %v5633_v29  ;;  %vm12136_vm11 = vmmov %vm12135_vm2 }
 0x201   : > { %5401 = vmatmul.msk.bf16.gmra.mxu1 %vm12123_vm0, %v2537_v6  ;;  %v5954_v40 = vunpack.i.h.bf16 %v12134_v26  ;;  %v5953_v56 = vunpack.i.l.bf16 %v12134_v26  ;;  %v2338_v60 = vsel %vm12135_vm2, %v2305_v3, %v5714_v33  ;;  %v2337_v48 = vsel %vm12136_vm11, %v2304_v55, %v5713_v11  ;;  %v8855_v3 = vld [vmem:[%s11115_s2] ss:$0 sm:$0xff]  ;;  %v12149_v55 = vld [vmem:[#allocation91_spill] sm:$0xff] }
 0x202   : > { %v6033_v58 = vunpack.i.l.bf16 %v12137_v9  ;;  %vm12138_vm9 = vcmask 392192   ;;  %v6114_v39 = vunpack.i.h.bf16 %v12140_v19  ;;  %v6113_v29 = vunpack.i.l.bf16 %v12140_v19 }
 0x203   : > { %v2370_v6 = vsel %vm12138_vm9, %v2337_v48, %v5793_v53  ;;  %vm12139_vm8 = vmmov %vm12138_vm9  ;;  %vm12141_vm0 = vcmask 523264   ;;  %vm12143_vm15 = vcmask 654336   ;;  %vm12145_vm11 = vcmask 785408   ;;  %v12152_v48 = vld [vmem:[#allocation95_spill] sm:$0xff] }
 0x204   : > { %v2371_v63 = vsel %vm12139_vm8, %v2338_v60, %v5794_v41  ;;  %vm12142_vm5 = vmmov %vm12141_vm0  ;;  %vm12147_vm9 = vcmask 916480  }
 0x205   : > { %v2404_v15 = vsel %vm12141_vm0, %v2371_v63, %v5874_v12  ;;  %v2403_v33 = vsel %vm12142_vm5, %v2370_v6, %v5873_v57  ;;  %vm12144_vm2 = vmmov %vm12143_vm15  ;;  %v12150_v57 = vld [vmem:[#allocation83_spill] sm:$0xff] }
 0x206   : > { %v2436_v11 = vsel %vm12143_vm15, %v2403_v33, %v5953_v56  ;;  %v2437_v31 = vsel %vm12144_vm2, %v2404_v15, %v5954_v40  ;;  %vm12146_vm12 = vmmov %vm12145_vm11  ;;  %vm12151_vm0 = vnez %v12150_v57  ;;  %v8864_v56 = vld [vmem:[%s11116_s3] ss:$0 sm:$0xff]  ;;  %v12158_v15 = vld [vmem:[#allocation145_spill] sm:$0xff] }
 0x207   : > { %v2469_v7 = vsel %vm12145_vm11, %v2436_v11, %v6033_v58  ;;  %vm12148_vm8 = vmmov %vm12147_vm9  ;;  %v1407_v26 = vsel %vm12151_vm0, %v12149_v55, 0.0  ;;  %v5719_v33 = vunpack.i.h.bf16 %v12158_v15  ;;  %v5718_v11 = vunpack.i.l.bf16 %v12158_v15 }
 0x208   : > { %v2502_v41 = vsel %vm12147_vm9, %v2469_v7, %v6113_v29  ;;  %v12159_v7 = vld [vmem:[#allocation44_spill] sm:$0xff]  ;;  %vm12164_vm11 = vcmask 261120   ;;  %vm12262_vm0 = vcmask 392192  }
 0x209   : > { %vm12165_vm9 = vmmov %vm12164_vm11 }
 0x20b   : > { %2695 = vmatmul.bf16.gmra.mxu0 %v2532_v10  ;;  %v6034_v10 = vunpack.i.h.bf16 %v12137_v9  ;;  %v2539_v9 = vpack.c.bf16 %v1407_v26, %v12152_v48  ;;  %v12163_v26 = vld [vmem:[#allocation41_spill] sm:$0xff] }
 0x20d   : > { %v2470_v53 = vsel %vm12146_vm12, %v2437_v31, %v6034_v10  ;;  %v12153_v10 = vld [vmem:[#allocation131_spill] sm:$0xff]  ;;  %vm12154_vm12 = vcmask 130048  }
 0x20e   : > { %v8842_v22 = vpop.f32.mrf.mxu1  ;;  %v2503_v24 = vsel %vm12148_vm8, %v2470_v53, %v6114_v39  ;;  %v5639_v58 = vunpack.i.h.bf16 %v12153_v10  ;;  %v5638_v63 = vunpack.i.l.bf16 %v12153_v10  ;;  %v12156_v39 = vld [vmem:[#allocation109_spill] sm:$0xff]  ;;  %vm12160_vm15 = vmmov %vm12154_vm12  ;;  %vm12168_vm8 = vcmask 392192  }
 0x20f   : > { %v2534_v60 = vpack.c.bf16 %v2503_v24, %v2502_v41  ;;  %vm12157_vm5 = vnez %v12156_v39  ;;  %v12161_v41 = vld [vmem:[#allocation148_spill] sm:$0xff]  ;;  %vm12162_vm2 = vmmov %vm12154_vm12  ;;  %v12195_v39 = vld [vmem:[#allocation46_spill] sm:$0xff] }
 0x210   : > { %v2307_v53 = vsel %vm12160_vm15, %v12159_v7, %v5639_v58  ;;  %v5799_v24 = vunpack.i.h.bf16 %v12161_v41  ;;  %v12167_v7 = vld [vmem:[#allocation161_spill] sm:$0xff]  ;;  %vm12170_vm15 = vcmask 523264  }
 0x211   : > { %5402 = vmatmul.msk.bf16.gmra.mxu1 %vm12154_vm12, %v2539_v9  ;;  %v2340_v10 = vsel %vm12165_vm9, %v2307_v53, %v5719_v33  ;;  %v6039_v18 = vunpack.i.h.bf16 %v12167_v7  ;;  %vm12169_vm12 = vmmov %vm12168_vm8  ;;  %v6118_v33 = vunpack.i.l.bf16 %v8552_v52 }
 0x216   : > { %v8868_v6 = vpop.f32.mrf.mxu1 }
 0x218   : > { %v2661_v12 = vpop.f32.mrf.mxu0 }
 0x219   : > { %v2751_v40 = vadd.f32 %v8752_v50, %v2661_v12  ;;  %v12155_v50 = vld [vmem:[#allocation30_spill] sm:$0xff]  ;;  %v5798_v12 = vunpack.i.l.bf16 %v12161_v41  ;;  %v6038_v41 = vunpack.i.l.bf16 %v12167_v7 }
 0x21a   : > { %v1073_v29 = vsel %vm12157_vm5, %v12155_v50, 0.0 }
 0x21b   : > { %v2833_v19 = vmul.f32 %v8855_v3, %v2751_v40  ;;  %2700 = vmatmul.bf16.gmra.mxu0 %v2534_v60  ;;  %v2306_v55 = vsel %vm12162_vm2, %v1073_v29, %v5638_v63  ;;  %v5879_v40 = vunpack.i.h.bf16 %v12163_v26  ;;  %v5878_v60 = vunpack.i.l.bf16 %v12163_v26  ;;  %vm12171_vm2 = vmmov %vm12170_vm15 }
 0x21c   : > { %v2339_v9 = vsel %vm12164_vm11, %v2306_v55, %v5718_v11  ;;  %v2373_v26 = vsel %vm12168_vm8, %v2340_v10, %v5799_v24  ;;  %v6119_v11 = vunpack.i.h.bf16 %v8552_v52  ;;  %vm12172_vm11 = vcmask 654336   ;;  %v12177_v10 = vld [vmem:[#allocation114_spill] sm:$0xff] }
 0x21d   : > { %v8879_v31 = vadd.f32 %v8864_v56, %v2833_v19  ;;  %v12166_v19 = vld [vmem:[#allocation61_spill] sm:$0xff]  ;;  %v2372_v36 = vsel %vm12169_vm12, %v2339_v9, %v5798_v12  ;;  %vm12173_vm9 = vmmov %vm12172_vm11  ;;  %vm12174_vm8 = vcmask 785408   ;;  %v12176_v9 = vld [vmem:[#allocation35_spill] sm:$0xff]  ;;  %vm12178_vm5 = vnez %v12177_v10 }
 0x21e   : > { %v5959_v50 = vunpack.i.h.bf16 %v12166_v19  ;;  %v5958_v58 = vunpack.i.l.bf16 %v12166_v19  ;;  %v8900_v53 = vpop.f32.mrf.mxu1  ;;  %v2405_v55 = vsel %vm12170_vm15, %v2372_v36, %v5878_v60  ;;  %v2406_v19 = vsel %vm12171_vm2, %v2373_v26, %v5879_v40  ;;  %vm12175_vm12 = vmmov %vm12174_vm8  ;;  %v12185_v26 = vld [vmem:[#allocation130_spill] sm:$0xff]  ;;  %v12194_v10 = vld [vmem:[#allocation135_spill] sm:$0xff] }
 0x21f   : > { %v2900_v48 = vsub.f32 0.0, %v8879_v31  ;;  %v1077_v36 = vsel %vm12178_vm5, %v12176_v9, 0.0  ;;  %vm12179_vm15 = vcmask 916480  }
 0x220   : > { %v2663_v15 = vpop.f32.mrf.mxu0  ;;  %vm12180_vm2 = vmmov %vm12179_vm15 }
 0x221   : > { %v2932_v63 = vmul.f32 1.442695, %v2900_v48  ;;  %v2753_v29 = vadd.f32 %v8773_v0, %v2663_v15  ;;  %v2438_v48 = vsel %vm12172_vm11, %v2405_v55, %v5958_v58  ;;  %v2439_v0 = vsel %vm12173_vm9, %v2406_v19, %v5959_v50  ;;  %v12181_v15 = vld [vmem:[#allocation118_spill] sm:$0xff]  ;;  %v12182_v58 = vld [vmem:[#allocation45_spill] sm:$0xff] }
 0x222   : > { %v2471_v12 = vsel %vm12174_vm8, %v2438_v48, %v6038_v41  ;;  %v2472_v52 = vsel %vm12175_vm12, %v2439_v0, %v6039_v18  ;;  %v5644_v55 = vunpack.i.h.bf16 %v12185_v26  ;;  %v5648_v18 = vunpack.i.l.bf16 %v12181_v15  ;;  %v12187_v48 = vld [vmem:[#allocation113_spill] sm:$0xff] }
 0x223   : > { %6694 = vpow2.f32 %v2932_v63  ;;  %v2834_v7 = vmul.f32 %v8855_v3, %v2753_v29  ;;  %v2504_v40 = vsel %vm12179_vm15, %v2471_v12, %v6118_v33  ;;  %v2505_v60 = vsel %vm12180_vm2, %v2472_v52, %v6119_v11  ;;  %v12183_v29 = vld [vmem:[#allocation116_spill] sm:$0xff]  ;;  %v12189_v11 = vld [vmem:[#allocation89_spill] sm:$0xff] }
 0x224   : > { %v5649_v63 = vunpack.i.h.bf16 %v12181_v15  ;;  %vm12184_vm11 = vnez %v12183_v29  ;;  %v5643_v19 = vunpack.i.l.bf16 %v12185_v26  ;;  %vm12188_vm9 = vnez %v12187_v48  ;;  %v12190_v12 = vld [vmem:[#allocation93_spill] sm:$0xff] }
 0x225   : > { %v8908_v24 = vadd.f32 %v8864_v56, %v2834_v7  ;;  %v1075_v50 = vsel %vm12184_vm11, %v12182_v58, 0.0  ;;  %v12186_v7 = vld [vmem:[#allocation42_spill] sm:$0xff]  ;;  %vm12191_vm8 = vnez %v12190_v12  ;;  %v2536_v59 = vpack.c.bf16 %v2505_v60, %v2504_v40  ;;  %v12199_v40 = vld [vmem:[#allocation155_spill] sm:$0xff] }
 0x226   : > { %v1079_v33 = vsel %vm12188_vm9, %v12186_v7, 0.0  ;;  %v1409_v52 = vsel %vm12191_vm8, %v12189_v11, 0.0  ;;  %v5654_v15 = vunpack.i.h.bf16 %v12193_v51  ;;  %v5653_v26 = vunpack.i.l.bf16 %v12193_v51  ;;  %v8936_v7 = vpop.f32.mrf.mxu1 }
 0x227   : > { %v2901_v41 = vsub.f32 0.0, %v8908_v24  ;;  %v2541_v32 = vpack.c.bf16 %v1409_v52, %v12192_v44  ;;  %v5724_v29 = vunpack.i.h.bf16 %v12194_v10  ;;  %vm12196_vm12 = vcmask 130048   ;;  %v12209_v52 = vld [vmem:[#allocation147_spill] sm:$0xff] }
 0x228   : > { %v2666_v0 = vpop.f32.mrf.mxu0  ;;  %v2309_v12 = vsel %vm12196_vm12, %v12195_v39, %v5644_v55  ;;  %v5723_v11 = vunpack.i.l.bf16 %v12194_v10  ;;  %vm12197_vm15 = vmmov %vm12196_vm12  ;;  %v5804_v51 = vunpack.i.h.bf16 %v12199_v40  ;;  %v5803_v60 = vunpack.i.l.bf16 %v12199_v40  ;;  %v12207_v55 = vld [vmem:[#allocation24_spill] sm:$0xff] }
 0x229   : > { %v6695_v9 = vpop.eup %6694  ;;  %v2934_v28 = vmul.f32 1.442695, %v2901_v41  ;;  %v2756_v58 = vadd.f32 %v8797_v45, %v2666_v0  ;;  %5403 = vmatmul.msk.bf16.gmra.mxu1 %vm12197_vm15, %v2541_v32  ;;  %vm12198_vm2 = vmmov %vm12196_vm12  ;;  %v12200_v41 = vld [vmem:[#allocation36_spill] sm:$0xff]  ;;  %vm12259_vm8 = vcmask 261120  }
 0x22a   : > { %v2996_v48 = vadd.f32 1.0, %v6695_v9  ;;  %v2308_v44 = vsel %vm12198_vm2, %v1075_v50, %v5643_v19  ;;  %vm12201_vm9 = vmmov %vm12198_vm2  ;;  %v5883_v19 = vunpack.i.l.bf16 %v12207_v55  ;;  %v5729_v9 = vunpack.i.h.bf16 %v12209_v52 }
 0x22b   : > { %6696 = vpow2.f32 %v2934_v28  ;;  %v2835_v45 = vmul.f32 %v8855_v3, %v2756_v58  ;;  %2705 = vmatmul.bf16.gmra.mxu0 %v2536_v59  ;;  %v2311_v0 = vsel %vm12201_vm9, %v12200_v41, %v5649_v63  ;;  %vm12202_vm5 = vmmov %vm12198_vm2  ;;  %v12203_v28 = vld [vmem:[#allocation52_spill] sm:$0xff]  ;;  %v5884_v63 = vunpack.i.h.bf16 %v12207_v55 }
 0x22c   : > { %6698 = vrcp.f32 %v2996_v48  ;;  %v2310_v39 = vsel %vm12202_vm5, %v1077_v36, %v5648_v18  ;;  %vm12204_vm12 = vmmov %vm12198_vm2  ;;  %vm12210_vm5 = vcmask 392192  }
 0x22d   : > { %v8950_v10 = vadd.f32 %v8864_v56, %v2835_v45  ;;  %v8954_v59 = vsel %vm12204_vm12, %v12203_v28, %v5654_v15  ;;  %vm12205_vm15 = vmmov %vm12198_vm2  ;;  %vm12206_vm2 = vcmask 261120   ;;  %v12212_v15 = vld [vmem:[#allocation48_spill] sm:$0xff] }
 0x22e   : > { %v2312_v32 = vsel %vm12205_vm15, %v1079_v33, %v5653_v26  ;;  %v2342_v50 = vsel %vm12206_vm2, %v2309_v12, %v5724_v29  ;;  %vm12208_vm11 = vmmov %vm12206_vm2  ;;  %v5964_v45 = vunpack.i.h.bf16 %v12212_v15  ;;  %v5963_v33 = vunpack.i.l.bf16 %v12212_v15  ;;  %v12213_v12 = vld [vmem:[#allocation133_spill] sm:$0xff] }
 0x22f   : > { %v2341_v48 = vsel %vm12208_vm11, %v2308_v44, %v5723_v11  ;;  %v2902_v36 = vsub.f32 0.0, %v8950_v10  ;;  %vm12211_vm9 = vmmov %vm12210_vm5  ;;  %v6044_v40 = vunpack.i.h.bf16 %v12213_v12  ;;  %v6043_v11 = vunpack.i.l.bf16 %v12213_v12 }
 0x230   : > { %v2374_v18 = vsel %vm12210_vm5, %v2341_v48, %v5803_v60  ;;  %v2375_v58 = vsel %vm12211_vm9, %v2342_v50, %v5804_v51  ;;  %v2668_v26 = vpop.f32.mrf.mxu0  ;;  %vm12214_vm11 = vcmask 523264   ;;  %v6124_v60 = vunpack.i.h.bf16 %v8554_v62 }
 0x231   : > { %v6697_v29 = vpop.eup %6696  ;;  %v2936_v44 = vmul.f32 1.442695, %v2902_v36  ;;  %v2758_v41 = vadd.f32 %v8814_v30, %v2668_v26  ;;  %v2407_v55 = vsel %vm12214_vm11, %v2374_v18, %v5883_v19  ;;  %v6123_v51 = vunpack.i.l.bf16 %v8554_v62  ;;  %vm12215_vm12 = vmmov %vm12214_vm11  ;;  %v8979_v19 = vpop.f32.mrf.mxu1  ;;  %v12221_v26 = vld [vmem:[#allocation154_spill] sm:$0xff] }
 0x232   : > { %v6699_v28 = vpop.eup %6698  ;;  %v2997_v50 = vadd.f32 1.0, %v6697_v29  ;;  %v2408_v48 = vsel %vm12215_vm12, %v2375_v58, %v5884_v63  ;;  %v5733_v12 = vunpack.i.l.bf16 %v12216_v4  ;;  %vm12217_vm15 = vcmask 654336  }
 0x233   : > { %v3060_v15 = vmul.f32 %v6699_v28, %v8879_v31  ;;  %6700 = vpow2.f32 %v2936_v44  ;;  %v2836_v57 = vmul.f32 %v8855_v3, %v2758_v41  ;;  %v2440_v30 = vsel %vm12217_vm15, %v2407_v55, %v5963_v33  ;;  %vm12218_vm2 = vmmov %vm12217_vm15  ;;  %v12225_v55 = vld [vmem:[#allocation53_spill] sm:$0xff] }
 0x234   : > { %6702 = vrcp.f32 %v2997_v50  ;;  %v2441_v36 = vsel %vm12218_vm2, %v2408_v48, %v5964_v45  ;;  %vm12219_vm5 = vcmask 785408   ;;  %v5728_v58 = vunpack.i.l.bf16 %v12209_v52  ;;  %v12228_v48 = vld [vmem:[#allocation101_spill] sm:$0xff] }
 0x235   : > { %v3144_v18 = vrot.slane %v3060_v15, 7  ;;  %v8982_v62 = vadd.f32 %v8864_v56, %v2836_v57  ;;  %v2473_v63 = vsel %vm12219_vm5, %v2440_v30, %v6043_v11  ;;  %vm12220_vm9 = vmmov %vm12219_vm5  ;;  %v5809_v29 = vunpack.i.h.bf16 %v12221_v26 }
 0x236   : > { %v2474_v31 = vsel %vm12220_vm9, %v2441_v36, %v6044_v40  ;;  %vm12222_vm11 = vcmask 916480   ;;  %vm12224_vm15 = vcmask 261120   ;;  %v5808_v28 = vunpack.i.l.bf16 %v12221_v26  ;;  %v12231_v36 = vld [vmem:[#allocation103_spill] sm:$0xff] }
 0x237   : > { %v2506_v44 = vsel %vm12222_vm11, %v2473_v63, %v6123_v51  ;;  %vm12223_vm12 = vmmov %vm12222_vm11  ;;  %v2344_v41 = vsel %vm12224_vm15, %v2311_v0, %v5729_v9  ;;  %v2903_v57 = vsub.f32 0.0, %v8982_v62  ;;  %v5889_v11 = vunpack.i.h.bf16 %v12225_v55  ;;  %v12229_v51 = vld [vmem:[#allocation90_spill] sm:$0xff] }
 0x238   : > { %v2507_v33 = vsel %vm12223_vm12, %v2474_v31, %v6124_v60  ;;  %v5888_v40 = vunpack.i.l.bf16 %v12225_v55  ;;  %v2671_v50 = vpop.f32.mrf.mxu0  ;;  %vm12226_vm2 = vcmask 1040384   ;;  %vm12230_vm5 = vnez %v12229_v51  ;;  %vm12232_vm9 = vmmov %vm12224_vm15 }
 0x239   : > { %v8997_v52 = vsel %vm12226_vm2, 0.0, %v3144_v18  ;;  %v1411_v60 = vsel %vm12230_vm5, %v12228_v48, 0.0  ;;  %v6701_v15 = vpop.eup %6700  ;;  %v2938_v30 = vmul.f32 1.442695, %v2903_v57  ;;  %v2761_v0 = vadd.f32 %v8842_v22, %v2671_v50  ;;  %vm12233_vm11 = vmmov %vm12232_vm9 }
 0x23a   : > { %12227 = vst [vmem:[#allocation136_spill] sm:$0xff] %v8997_v52  ;;  %v2538_v9 = vpack.c.bf16 %v2507_v33, %v2506_v44  ;;  %v2543_v63 = vpack.c.bf16 %v1411_v60, %v12231_v36  ;;  %v6703_v31 = vpop.eup %6702  ;;  %v9005_v26 = vsel %vm12232_vm9, %v2312_v32, %v5733_v12  ;;  %v2343_v55 = vsel %vm12233_vm11, %v2310_v39, %v5728_v58  ;;  %v12236_v44 = vld [vmem:[#allocation149_spill] sm:$0xff]  ;;  %v12241_v60 = vld [vmem:[#allocation63_spill] sm:$0xff] }
 0x23b   : > { %vm12234_vm12 = vcmask 392192   ;;  %v2998_v21 = vadd.f32 1.0, %v6701_v15  ;;  %v3061_v51 = vmul.f32 %v6703_v31, %v8908_v24  ;;  %6704 = vpow2.f32 %v2938_v30  ;;  %v9025_v30 = vpop.f32.mrf.mxu1 }
 0x23c   : > { %v2377_v45 = vsel %vm12234_vm12, %v2344_v41, %v5809_v29  ;;  %v2837_v57 = vmul.f32 %v8855_v3, %v2761_v0  ;;  %2710 = vmatmul.bf16.gmra.mxu0 %v2538_v9  ;;  %v3273_v22 = vrot.slane %v8997_v52, 2  ;;  %vm12235_vm15 = vcmask 130048   ;;  %vm12237_vm2 = vmmov %vm12234_vm12  ;;  %v12240_v41 = vld [vmem:[#allocation159_spill] sm:$0xff] }
 0x23d   : > { %5404 = vmatmul.msk.bf16.gmra.mxu1 %vm12235_vm15, %v2543_v63  ;;  %v5814_v33 = vunpack.i.h.bf16 %v12236_v44  ;;  %v2376_v32 = vsel %vm12237_vm2, %v2343_v55, %v5808_v28  ;;  %vm12238_vm9 = vcmask 523264   ;;  %6706 = vrcp.f32 %v2998_v21 }
 0x23e   : > { %v2410_v39 = vsel %vm12238_vm9, %v2377_v45, %v5889_v11  ;;  %vm12239_vm11 = vmmov %vm12238_vm9  ;;  %v3145_v58 = vrot.slane %v3061_v51, 7  ;;  %v9018_v24 = vadd.f32 %v8864_v56, %v2837_v57  ;;  %v3532_v29 = vrot.slane %v8997_v52, 1  ;;  %v12244_v45 = vld [vmem:[#allocation97_spill] sm:$0xff] }
 0x23f   : > { %v2409_v12 = vsel %vm12239_vm11, %v2376_v32, %v5888_v40  ;;  %v5969_v50 = vunpack.i.h.bf16 %v12240_v41  ;;  %v5968_v48 = vunpack.i.l.bf16 %v12240_v41  ;;  %v6049_v15 = vunpack.i.h.bf16 %v12241_v60  ;;  %v12246_v40 = vld [vmem:[#allocation51_spill] sm:$0xff]  ;;  %v12248_v41 = vld [vmem:[#allocation8_spill] sm:$0xff] }
 0x240   : > { %v6048_v28 = vunpack.i.l.bf16 %v12241_v60  ;;  %v2904_v42 = vsub.f32 0.0, %v9018_v24  ;;  %vm12242_vm12 = vcmask 1040384   ;;  %vm12245_vm15 = vnez %v12244_v45  ;;  %v2673_v9 = vpop.f32.mrf.mxu0 }
 0x241   : > { %v9029_v21 = vsel %vm12242_vm12, %v3144_v18, %v3145_v58  ;;  %v3397_v11 = vsel %vm12245_vm15, %v8997_v52, 0.0  ;;  %vm12247_vm2 = vcmask 1045504   ;;  %v6129_v0 = vunpack.i.h.bf16 %v8471_v35  ;;  %v6705_v55 = vpop.eup %6704  ;;  %v12252_v52 = vld [vmem:[#allocation56_spill] sm:$0xff] }
 0x242   : > { %12243 = vst [vmem:[#allocation58_spill] sm:$0xff] %v9029_v21  ;;  %v3274_v51 = vsel %vm12247_vm2, %v12246_v40, %v3273_v22  ;;  %v6150_v36 = vpack.i.bf16 %v9029_v21, %v3397_v11  ;;  %v3534_v63 = vrot.slane %v9029_v21, 1  ;;  %v3275_v31 = vrot.slane %v9029_v21, 2  ;;  %vm12251_vm12 = vmmov %vm12247_vm2 }
 0x243   : > { %v6128_v18 = vunpack.i.l.bf16 %v8471_v35  ;;  %v2940_v57 = vmul.f32 1.442695, %v2904_v42  ;;  %v2763_v32 = vadd.f32 %v8868_v6, %v2673_v9  ;;  %vm12249_vm9 = vcmask 1046528   ;;  %v6707_v61 = vpop.eup %6706 }
 0x244   : > { %v3533_v60 = vsel %vm12249_vm9, %v12248_v41, %v3532_v29  ;;  %v2999_v23 = vadd.f32 1.0, %v6705_v55  ;;  %6151 = vrot.lane.b32.xlu0 %v6150_v36, %s7004_s16  ;;  %vm12250_vm11 = vmmov %vm12249_vm9  ;;  %v3276_v11 = vsel %vm12251_vm12, %v3273_v22, %v3275_v31  ;;  %vm12253_vm2 = vnez %v12252_v52 }
 0x245   : > { %v3535_v46 = vsel %vm12250_vm11, %v3532_v29, %v3534_v63  ;;  %v3366_v21 = vsel %vm12253_vm2, %v3274_v51, 0.0  ;;  %v3062_v43 = vmul.f32 %v6707_v61, %v8950_v10  ;;  %6708 = vpow2.f32 %v2940_v57 }
 0x246   : > { %v2838_v35 = vmul.f32 %v8855_v3, %v2763_v32  ;;  %v6155_v6 = vpack.i.bf16 %v3535_v46, %v3533_v60  ;;  %6710 = vrcp.f32 %v2999_v23  ;;  %v6160_v42 = vpack.i.bf16 %v3276_v11, %v3366_v21  ;;  %v9077_v32 = vpop.f32.mrf.mxu1 }
 0x247   : > { %vm12254_vm9 = vcmask 654336   ;;  %v3147_v36 = vrot.slane %v3062_v43, 7  ;;  %vm12256_vm11 = vcmask 785408   ;;  %v12258_v10 = vunpack.i.h.bf16 %v12216_v4 }
 0x248   : > { %v2442_v9 = vsel %vm12254_vm9, %v2409_v12, %v5968_v48  ;;  %vm12255_vm5 = vmmov %vm12254_vm9  ;;  %v9054_v29 = vadd.f32 %v8864_v56, %v2838_v35  ;;  %6156 = vrot.lane.b32.xlu1 %v6155_v6, %s7002_s14  ;;  %v5813_v21 = vunpack.i.l.bf16 %v12236_v44  ;;  %6161 = vrot.lane.b32.xlu2 %v6160_v42, %s7003_s15  ;;  %v2676_v44 = vpop.f32.mrf.mxu0  ;;  %v6133_v45 = vunpack.i.l.bf16 %v8580_v38 }
 0x249   : > { %v2443_v55 = vsel %vm12255_vm5, %v2410_v39, %v5969_v50  ;;  %v2475_v22 = vsel %vm12256_vm11, %v2442_v9, %v6048_v28  ;;  %vm12257_vm12 = vmmov %vm12256_vm11  ;;  %v2346_v23 = vsel %vm12259_vm8, %v8954_v59, %v12258_v10  ;;  %vm12260_vm5 = vcmask 916480   ;;  %v12263_v50 = vld [vmem:[#allocation34_spill] sm:$0xff]  ;;  %v12265_v59 = vld [vmem:[#allocation160_spill] sm:$0xff] }
 0x24a   : > { %v2476_v61 = vsel %vm12257_vm12, %v2443_v55, %v6049_v15  ;;  %v2508_v43 = vsel %vm12260_vm5, %v2475_v22, %v6128_v18  ;;  %vm12261_vm9 = vmmov %vm12260_vm5  ;;  %v2379_v12 = vsel %vm12262_vm0, %v2346_v23, %v5814_v33  ;;  %v5894_v48 = vunpack.i.h.bf16 %v12263_v50  ;;  %v12268_v22 = vld [vmem:[#allocation99_spill] sm:$0xff] }
 0x24b   : > { %v2509_v39 = vsel %vm12261_vm9, %v2476_v61, %v6129_v0  ;;  %vm12264_vm11 = vcmask 1040384   ;;  %v2905_v4 = vsub.f32 0.0, %v9054_v29  ;;  %v5893_v15 = vunpack.i.l.bf16 %v12263_v50  ;;  %v6709_v0 = vpop.eup %6708  ;;  %v12269_v61 = vld [vmem:[#allocation88_spill] sm:$0xff] }
 0x24c   : > { %v9070_v28 = vsel %vm12264_vm11, %v3145_v58, %v3147_v36  ;;  %v5974_v51 = vunpack.i.h.bf16 %v12265_v59  ;;  %v5973_v33 = vunpack.i.l.bf16 %v12265_v59  ;;  %v2766_v58 = vadd.f32 %v8900_v53, %v2676_v44  ;;  %v6711_v6 = vpop.eup %6710 }
 0x24d   : > { %v3536_v57 = vrot.slane %v9070_v28, 1  ;;  %v3277_v18 = vrot.slane %v9070_v28, 2  ;;  %v2942_v60 = vmul.f32 1.442695, %v2905_v4  ;;  %v2540_v35 = vpack.c.bf16 %v2509_v39, %v2508_v43 }
 0x24e   : > { %v3000_v42 = vadd.f32 1.0, %v6709_v0  ;;  %vm12266_vm0 = vcmask 1046528   ;;  %vm12267_vm8 = vcmask 1045504   ;;  %vm12270_vm12 = vnez %v12269_v61  ;;  %v12577_v61 = vld [vmem:[#allocation51_spill] sm:$0xff] }
 0x24f   : > { %v9084_v9 = vsel %vm12266_vm0, %v3534_v63, %v3536_v57  ;;  %v3278_v55 = vsel %vm12267_vm8, %v3275_v31, %v3277_v18  ;;  %v1413_v10 = vsel %vm12270_vm12, %v12268_v22, 0.0  ;;  %v3063_v23 = vmul.f32 %v6711_v6, %v8982_v62  ;;  %2715 = vmatmul.bf16.gmra.mxu0 %v2540_v35  ;;  %v12272_v31 = vld [vmem:[#allocation102_spill] sm:$0xff] }
 0x250   : > { %6712 = vpow2.f32 %v2942_v60  ;;  %v2839_v50 = vmul.f32 %v8855_v3, %v2766_v58  ;;  %v6165_v53 = vpack.i.bf16 %v9084_v9, %v3535_v46  ;;  %vm12271_vm5 = vcmask 392192  }
 0x251   : > { %v2378_v43 = vsel %vm12271_vm5, %v9005_v26, %v5813_v21  ;;  %6714 = vrcp.f32 %v3000_v42  ;;  %v3437_v63 = vsel %vm12253_vm2, %v3278_v55, 0.0  ;;  %v2545_v39 = vpack.c.bf16 %v1413_v10, %v12272_v31 }
 0x252   : > { %vm12273_vm9 = vcmask 523264   ;;  %v3149_v59 = vrot.slane %v3063_v23, 7  ;;  %v9100_v62 = vadd.f32 %v8864_v56, %v2839_v50  ;;  %6166 = vrot.lane.b32.xlu0 %v6165_v53, %s7005_s17  ;;  %v6170_v44 = vpack.i.bf16 %v3437_v63, %v3276_v11  ;;  %v12279_v11 = vld [vmem:[#allocation162_spill] sm:$0xff]  ;;  %v9127_v63 = vpop.f32.mrf.mxu1 }
 0x253   : > { %v2411_v4 = vsel %vm12273_vm9, %v2378_v43, %v5893_v15  ;;  %vm12274_vm11 = vmmov %vm12273_vm9  ;;  %vm12275_vm0 = vcmask 654336   ;;  %vm12276_vm8 = vcmask 130048   ;;  %vm12278_vm9 = vcmask 1040384  }
 0x254   : > { %v2412_v46 = vsel %vm12274_vm11, %v2379_v12, %v5894_v48  ;;  %v2444_v0 = vsel %vm12275_vm0, %v2411_v4, %v5973_v33  ;;  %5405 = vmatmul.msk.bf16.gmra.mxu1 %vm12276_vm8, %v2545_v39  ;;  %vm12277_vm5 = vmmov %vm12275_vm0  ;;  %v2906_v21 = vsub.f32 0.0, %v9100_v62  ;;  %6171 = vrot.lane.b32.xlu1 %v6170_v44, %s7006_s18  ;;  %v9110_v15 = vsel %vm12278_vm9, %v3147_v36, %v3149_v59  ;;  %v2678_v48 = vpop.f32.mrf.mxu0 }
 0x255   : > { %v2445_v26 = vsel %vm12277_vm5, %v2412_v46, %v5974_v51  ;;  %v3468_v60 = vsel %vm12245_vm15, %v9070_v28, 0.0  ;;  %v6054_v58 = vunpack.i.h.bf16 %v12279_v11  ;;  %v6053_v12 = vunpack.i.l.bf16 %v12279_v11 }
 0x256   : > { %v6180_v33 = vpack.i.bf16 %v9110_v15, %v3468_v60  ;;  %v3279_v51 = vrot.slane %v9110_v15, 2  ;;  %v6713_v35 = vpop.eup %6712  ;;  %v6134_v6 = vunpack.i.h.bf16 %v8580_v38  ;;  %v2944_v42 = vmul.f32 1.442695, %v2906_v21 }
 0x257   : > { %v2768_v36 = vadd.f32 %v8936_v7, %v2678_v48  ;;  %v3538_v22 = vrot.slane %v9110_v15, 1  ;;  %v6715_v10 = vpop.eup %6714  ;;  %v3001_v23 = vadd.f32 1.0, %v6713_v35  ;;  %vm12280_vm15 = vcmask 1045504  }
 0x258   : > { %6181 = vrot.lane.b32.xlu2 %v6180_v33, %s7007_s19  ;;  %v3280_v50 = vsel %vm12280_vm15, %v3277_v18, %v3279_v51  ;;  %v3368_v43 = vsel %vm7458_vm4, %v3278_v55, 0.0  ;;  %v3064_v31 = vmul.f32 %v6715_v10, %v9018_v24  ;;  %6716 = vpow2.f32 %v2944_v42 }
 0x259   : > { %v2840_v7 = vmul.f32 %v8855_v3, %v2768_v36  ;;  %v6190_v39 = vpack.i.bf16 %v3280_v50, %v3368_v43  ;;  %vm12282_vm11 = vcmask 785408   ;;  %6718 = vrcp.f32 %v3001_v23 }
 0x25a   : > { %v2477_v4 = vsel %vm12282_vm11, %v2444_v0, %v6053_v12  ;;  %vm12283_vm0 = vmmov %vm12282_vm11  ;;  %v3399_v18 = vsel %vm11808_vm1, %v9070_v28, 0.0  ;;  %v3151_v44 = vrot.slane %v3064_v31, 7  ;;  %vm12284_vm8 = vcmask 1046528  }
 0x25b   : > { %v2478_v38 = vsel %vm12283_vm0, %v2445_v26, %v6054_v58  ;;  %v9137_v55 = vadd.f32 %v8864_v56, %v2840_v7  ;;  %6191 = vrot.lane.b32.xlu0 %v6190_v39, %s7003_s15  ;;  %v6175_v24 = vpack.i.bf16 %v9110_v15, %v3399_v18  ;;  %v3539_v46 = vsel %vm12284_vm8, %v3536_v57, %v3538_v22  ;;  %vm12288_vm11 = vmmov %vm12284_vm8 }
 0x25c   : > { %vm12285_vm5 = vcmask 916480   ;;  %vm12287_vm15 = vcmask 1040384   ;;  %v2681_v11 = vpop.f32.mrf.mxu0  ;;  %v6185_v58 = vpack.i.bf16 %v3539_v46, %v9084_v9  ;;  %vm12289_vm0 = vcmask 1045504  }
 0x25d   : > { %v2510_v0 = vsel %vm12285_vm5, %v2477_v4, %v6133_v45  ;;  %vm12286_vm9 = vmmov %vm12285_vm5  ;;  %v9147_v21 = vsel %vm12287_vm15, %v3149_v59, %v3151_v44  ;;  %v2907_v60 = vsub.f32 0.0, %v9137_v55  ;;  %6176 = vrot.lane.b32.xlu1 %v6175_v24, %s7004_s16  ;;  %v2771_v35 = vadd.f32 %v8979_v19, %v2681_v11  ;;  %v9158_v45 = vpop.f32.mrf.mxu1 }
 0x25e   : > { %v2511_v26 = vsel %vm12286_vm9, %v2478_v38, %v6134_v6  ;;  %v3540_v12 = vrot.slane %v9147_v21, 1  ;;  %v3281_v48 = vrot.slane %v9147_v21, 2  ;;  %v6717_v33 = vpop.eup %6716  ;;  %vm12291_vm8 = vcmask 130048   ;;  %vm12292_vm5 = vmmov %vm12287_vm15 }
 0x25f   : > { %v2946_v57 = vmul.f32 1.442695, %v2907_v60  ;;  %v2542_v42 = vpack.c.bf16 %v2511_v26, %v2510_v0  ;;  %v6719_v6 = vpop.eup %6718  ;;  %v3002_v36 = vadd.f32 1.0, %v6717_v33  ;;  %v2841_v23 = vmul.f32 %v8855_v3, %v2771_v35  ;;  %vm12294_vm9 = vmmov %vm12288_vm11 }
 0x260   : > { %6186 = vrot.lane.b32.xlu2 %v6185_v58, %s7002_s14  ;;  %v3541_v59 = vsel %vm12288_vm11, %v3538_v22, %v3540_v12  ;;  %v3282_v10 = vsel %vm12289_vm0, %v3279_v51, %v3281_v48  ;;  %v3065_v9 = vmul.f32 %v6719_v6, %v9054_v29  ;;  %v12290_v29 = vld [vmem:[#allocation78_spill] sm:$0xff]  ;;  %vm12295_vm15 = vmmov %vm12289_vm0 }
 0x261   : > { %6720 = vpow2.f32 %v2946_v57  ;;  %2720 = vmatmul.bf16.gmra.mxu0 %v2542_v42  ;;  %v6195_v43 = vpack.i.bf16 %v3541_v59, %v3539_v46  ;;  %v3502_v19 = vsel %vm12253_vm2, %v3282_v10, 0.0  ;;  %v9165_v7 = vadd.f32 %v8864_v56, %v2841_v23  ;;  %vm12293_vm2 = vmmov %vm12291_vm8 }
 0x262   : > { %6722 = vrcp.f32 %v3002_v36  ;;  %v3153_v31 = vrot.slane %v3065_v9, 7  ;;  %v4608_v51 = vpack.c.bf16 %v3502_v19, %v3280_v50  ;;  %v3439_v22 = vsel %vm7458_vm4, %v3282_v10, 0.0  ;;  %vm12296_vm11 = vmmov %vm12292_vm5 }
 0x263   : > { %6196 = vrot.lane.b32.xlu0 %v6195_v43, %s7008_s20  ;;  %v2908_v4 = vsub.f32 0.0, %v9165_v7  ;;  %v6205_v38 = vpack.i.bf16 %v3439_v22, %v3280_v50  ;;  %v3370_v50 = vsel %vm7501_vm6, %v3282_v10, 0.0  ;;  %vm12297_vm0 = vmmov %vm12294_vm9 }
 0x264   : > { %5406 = vmatmul.msk.bf16.gmra.mxu1 %vm12291_vm8, %v12290_v29  ;;  %v9173_v39 = vsel %vm12292_vm5, %v3151_v44, %v3153_v31  ;;  %5444 = vmatmul.msk.bf16.vlgmr.msra.gmra.mxu3 %vm12293_vm2, %v4608_v51  ;;  %v2683_v52 = vpop.f32.mrf.mxu0  ;;  %v3470_v51 = vsel %vm11808_vm1, %v9147_v21, 0.0  ;;  %vm12298_vm8 = vmmov %vm12295_vm15 }
 0x265   : > { %6201 = vrot.lane.b32.xlu1 %v6195_v43, %s7005_s17  ;;  %v3542_v18 = vrot.slane %v9173_v39, 1  ;;  %v3283_v24 = vrot.slane %v9173_v39, 2  ;;  %v2948_v0 = vmul.f32 1.442695, %v2908_v4  ;;  %v2773_v26 = vadd.f32 %v9025_v30, %v2683_v52  ;;  %v9188_v33 = vpop.f32.mrf.mxu1  ;;  %vm12302_vm5 = vmmov %vm12298_vm8 }
 0x266   : > { %v6220_v4 = vpack.i.bf16 %v9173_v39, %v3470_v51 }
 0x267   : > { %v6721_v46 = vpop.eup %6720  ;;  %v3543_v44 = vsel %vm12294_vm9, %v3540_v12, %v3542_v18  ;;  %v9184_v58 = vsel %vm12295_vm15, %v3281_v48, %v3283_v24  ;;  %6724 = vpow2.f32 %v2948_v0  ;;  %v2842_v35 = vmul.f32 %v8855_v3, %v2773_v26  ;;  %vm12307_vm9 = vmmov %vm12296_vm11 }
 0x268   : > { %v6723_v60 = vpop.eup %6722  ;;  %v3003_v11 = vadd.f32 1.0, %v6721_v46  ;;  %6206 = vrot.lane.b32.xlu2 %v6205_v38, %s7006_s18  ;;  %v6215_v30 = vpack.i.bf16 %v3543_v44, %v3541_v59  ;;  %v6225_v42 = vpack.i.bf16 %v9184_v58, %v3370_v50  ;;  %v12299_v26 = vpack.c.bf16 %v8599_v17, %v8595_v49  ;;  %v12300_v50 = vld [vmem:[#allocation138_spill] sm:$0xff] }
 0x269   : > { %v3066_v57 = vmul.f32 %v6723_v60, %v9100_v62  ;;  %v9194_v12 = vadd.f32 %v8864_v56, %v2842_v35  ;;  %v3401_v62 = vsel %vm11811_vm13, %v9147_v21, 0.0  ;;  %v12303_v17 = vld [vmem:[#allocation98_spill] sm:$0xff] }
 0x26a   : > { %6726 = vrcp.f32 %v3003_v11  ;;  %v6210_v10 = vpack.i.bf16 %v9173_v39, %v3401_v62  ;;  %vm12304_vm2 = vnez %v12303_v17 }
 0x26b   : > { %v3155_v6 = vrot.slane %v3066_v57, 7  ;;  %6216 = vrot.lane.b32.xlu0 %v6215_v30, %s7002_s14  ;;  %v2909_v36 = vsub.f32 0.0, %v9194_v12  ;;  %v12301_v57 = vrot.slane %v12300_v50, 2 }
 0x26c   : > { %v2686_v59 = vpop.f32.mrf.mxu0 }
 0x26d   : > { %v9198_v48 = vsel %vm12296_vm11, %v3153_v31, %v3155_v6  ;;  %6226 = vrot.lane.b32.xlu1 %v6225_v42, %s7003_s15  ;;  %v6725_v43 = vpop.eup %6724  ;;  %v2950_v19 = vmul.f32 1.442695, %v2909_v36  ;;  %v2776_v31 = vadd.f32 %v9077_v32, %v2686_v59  ;;  %v9220_v46 = vpop.f32.mrf.mxu1  ;;  %v1384_v49 = vsel %vm12302_vm5, %v12301_v57, %v12246_v40  ;;  %vm12309_vm11 = vmmov %vm12302_vm5 }
 0x26e   : > { %v3544_v9 = vrot.slane %v9198_v48, 1  ;;  %v3285_v23 = vrot.slane %v9198_v48, 2  ;;  %v3004_v29 = vadd.f32 1.0, %v6725_v43  ;;  %vm12312_vm5 = vcmask 1046528  }
 0x26f   : > { %6728 = vpow2.f32 %v2950_v19  ;;  %v2843_v0 = vmul.f32 %v8855_v3, %v2776_v31 }
 0x270   : > { %v6727_v22 = vpop.eup %6726  ;;  %6211 = vrot.lane.b32.xlu2 %v6210_v10, %s7004_s16  ;;  %v9217_v52 = vsel %vm12297_vm0, %v3542_v18, %v3544_v9  ;;  %v3286_v38 = vsel %vm12298_vm8, %v3283_v24, %v3285_v23  ;;  %6730 = vrcp.f32 %v3004_v29  ;;  %vm12310_vm0 = vmmov %vm12307_vm9  ;;  %vm12311_vm8 = vnez %v11944_v20 }
 0x271   : > { %v3067_v32 = vmul.f32 %v6727_v22, %v9137_v55  ;;  %2725 = vmatmul.bf16.gmra.mxu0 %v12299_v26  ;;  %v6230_v60 = vpack.i.bf16 %v9217_v52, %v3543_v44  ;;  %v3504_v18 = vsel %vm7458_vm4, %v3286_v38, 0.0  ;;  %v9231_v24 = vadd.f32 %v8864_v56, %v2843_v0 }
 0x272   : > { %v4610_v55 = vpack.c.bf16 %v3504_v18, %v9184_v58  ;;  %v9242_v44 = vsel %vm12304_vm2, %v12246_v40, 0.0  ;;  %vm12306_vm4 = vcmask 130048   ;;  %v3441_v36 = vsel %vm7501_vm6, %v3286_v38, 0.0 }
 0x273   : > { %v3157_v11 = vrot.slane %v3067_v32, 7  ;;  %6221 = vrot.lane.b32.xlu0 %v6220_v4, %s7007_s19  ;;  %12305 = vst [vmem:[#allocation69_spill] sm:$0xff] %v9242_v44  ;;  %v2910_v53 = vsub.f32 0.0, %v9231_v24  ;;  %v2549_v30 = vpack.c.bf16 %v9242_v44, %v1384_v49  ;;  %vm12308_vm15 = vmmov %vm12306_vm4  ;;  %v6240_v29 = vpack.i.bf16 %v3441_v36, %v9184_v58 }
 0x274   : > { %5445 = vmatmul.msk.bf16.gmra.mxu3 %vm12306_vm4, %v4610_v55  ;;  %v2688_v42 = vpop.f32.mrf.mxu0  ;;  %v3372_v18 = vsel %vm12311_vm8, %v3286_v38, 0.0  ;;  %vm12313_vm4 = vmmov %vm12309_vm11 }
 0x275   : > { %6231 = vrot.lane.b32.xlu1 %v6230_v60, %s7008_s20  ;;  %v9248_v35 = vsel %vm12307_vm9, %v3155_v6, %v3157_v11  ;;  %v6729_v62 = vpop.eup %6728  ;;  %v2952_v59 = vmul.f32 1.442695, %v2910_v53  ;;  %v2778_v10 = vadd.f32 %v9127_v63, %v2688_v42  ;;  %5407 = vmatmul.msk.bf16.gmra.mxu1 %vm12308_vm15, %v2549_v30  ;;  %v9257_v6 = vpop.f32.mrf.mxu1  ;;  %v3472_v63 = vsel %vm11811_vm13, %v9198_v48, 0.0  ;;  %vm12315_vm9 = vmmov %vm12312_vm5 }
 0x276   : > { %v3287_v43 = vrot.slane %v9248_v35, 2  ;;  %v6731_v19 = vpop.eup %6730  ;;  %v3005_v31 = vadd.f32 1.0, %v6729_v62  ;;  %v6245_v0 = vpack.i.bf16 %v9248_v35, %v3472_v63  ;;  %v3546_v26 = vrot.slane %v9248_v35, 1  ;;  %vm12316_vm15 = vmmov %vm12310_vm0 }
 0x277   : > { %v3068_v51 = vmul.f32 %v6731_v19, %v9165_v7  ;;  %6732 = vpow2.f32 %v2952_v59  ;;  %v2844_v22 = vmul.f32 %v8855_v3, %v2778_v10 }
 0x278   : > { %6236 = vrot.lane.b32.xlu2 %v6230_v60, %s7005_s17  ;;  %6734 = vrcp.f32 %v3005_v31  ;;  %v9271_v7 = vsel %vm12309_vm11, %v3285_v23, %v3287_v43  ;;  %v3547_v62 = vsel %vm12312_vm5, %v3544_v9, %v3546_v26  ;;  %v12314_v31 = vpack.c.bf16 %v8506_v1, %v8503_v27  ;;  %vm12318_vm11 = vmmov %vm12313_vm4 }
 0x279   : > { %v3159_v4 = vrot.slane %v3068_v51, 7  ;;  %v9266_v32 = vadd.f32 %v8864_v56, %v2844_v22  ;;  %v6260_v50 = vpack.i.bf16 %v9271_v7, %v3372_v18 }
 0x27b   : > { %6241 = vrot.lane.b32.xlu0 %v6240_v29, %s7006_s18  ;;  %v9275_v58 = vsel %vm12310_vm0, %v3157_v11, %v3159_v4  ;;  %v2911_v60 = vsub.f32 0.0, %v9266_v32  ;;  %v3403_v11 = vsel %vm11807_vm14, %v9198_v48, 0.0 }
 0x27c   : > { %v2691_v55 = vpop.f32.mrf.mxu0  ;;  %v3289_v57 = vrot.slane %v9275_v58, 2  ;;  %v3548_v30 = vrot.slane %v9275_v58, 1  ;;  %v6250_v38 = vpack.i.bf16 %v9248_v35, %v3403_v11 }
 0x27d   : > { %6246 = vrot.lane.b32.xlu1 %v6245_v0, %s7007_s19  ;;  %v6733_v49 = vpop.eup %6732  ;;  %v2954_v23 = vmul.f32 1.442695, %v2911_v60  ;;  %v2781_v53 = vadd.f32 %v9158_v45, %v2691_v55  ;;  %v9294_v10 = vpop.f32.mrf.mxu1 }
 0x27e   : > { %v6735_v42 = vpop.eup %6734  ;;  %v3006_v36 = vadd.f32 1.0, %v6733_v49  ;;  %v3290_v59 = vsel %vm12313_vm4, %v3287_v43, %v3289_v57  ;;  %v9310_v29 = vsel %vm12315_vm9, %v3546_v26, %v3548_v30  ;;  %vm12320_vm4 = vmmov %vm12312_vm5 }
 0x27f   : > { %v3069_v45 = vmul.f32 %v6735_v42, %v9194_v12  ;;  %6736 = vpow2.f32 %v2954_v23  ;;  %v2845_v19 = vmul.f32 %v8855_v3, %v2781_v53  ;;  %v3506_v51 = vsel %vm7501_vm6, %v3290_v59, 0.0  ;;  %vm12321_vm9 = vmmov %vm12318_vm11 }
 0x280   : > { %6261 = vrot.lane.b32.xlu2 %v6260_v50, %s7003_s15  ;;  %6738 = vrcp.f32 %v3006_v36  ;;  %v4612_v22 = vpack.c.bf16 %v3506_v51, %v9271_v7  ;;  %v6255_v12 = vpack.i.bf16 %v3547_v62, %v9217_v52  ;;  %vm12317_vm6 = vcmask 130048  }
 0x281   : > { %2730 = vmatmul.bf16.gmra.mxu0 %v12314_v31  ;;  %v3161_v9 = vrot.slane %v3069_v45, 7  ;;  %v9305_v43 = vadd.f32 %v8864_v56, %v2845_v19  ;;  %v6265_v63 = vpack.i.bf16 %v9310_v29, %v3547_v62  ;;  %v3374_v50 = vsel %vm7512_vm7, %v3290_v59, 0.0 }
 0x282   : > { %v3474_v19 = vsel %vm11807_vm14, %v9275_v58, 0.0 }
 0x283   : > { %6251 = vrot.lane.b32.xlu0 %v6250_v38, %s7004_s16  ;;  %v9313_v27 = vsel %vm12316_vm15, %v3159_v4, %v3161_v9  ;;  %v2912_v25 = vsub.f32 0.0, %v9305_v43  ;;  %vm12323_vm15 = vmmov %vm12310_vm0 }
 0x284   : > { %5446 = vmatmul.msk.bf16.gmra.mxu3 %vm12317_vm6, %v4612_v22  ;;  %v2693_v1 = vpop.f32.mrf.mxu0  ;;  %v3291_v0 = vrot.slane %v9313_v27, 2  ;;  %v3550_v36 = vrot.slane %v9313_v27, 1 }
 0x285   : > { %6256 = vrot.lane.b32.xlu1 %v6255_v12, %s7002_s14  ;;  %v6737_v60 = vpop.eup %6736  ;;  %v2956_v18 = vmul.f32 1.442695, %v2912_v25  ;;  %v2783_v52 = vadd.f32 %v9188_v33, %v2693_v1  ;;  %v9327_v49 = vpop.f32.mrf.mxu1  ;;  %v6290_v12 = vpack.i.bf16 %v9313_v27, %v3474_v19 }
 0x286   : > { %v6739_v26 = vpop.eup %6738  ;;  %v3007_v55 = vadd.f32 1.0, %v6737_v60  ;;  %v9323_v4 = vsel %vm12318_vm11, %v3289_v57, %v3291_v0  ;;  %v3443_v57 = vsel %vm12311_vm8, %v3290_v59, 0.0  ;;  %vm12326_vm11 = vmmov %vm12310_vm0 }
 0x287   : > { %v3070_v23 = vmul.f32 %v6739_v26, %v9231_v24  ;;  %6740 = vpow2.f32 %v2956_v18  ;;  %v2846_v53 = vmul.f32 %v8855_v3, %v2783_v52  ;;  %v6285_v11 = vpack.i.bf16 %v9323_v4, %v3374_v50 }
 0x288   : > { %6266 = vrot.lane.b32.xlu2 %v6265_v63, %s7008_s20  ;;  %6742 = vrcp.f32 %v3007_v55  ;;  %v6275_v45 = vpack.i.bf16 %v3443_v57, %v9271_v7  ;;  %v3551_v7 = vsel %vm12312_vm5, %v3548_v30, %v3550_v36  ;;  %v12322_v52 = vpack.c.bf16 %v8642_v8, %v8637_v54 }
 0x289   : > { %v3163_v33 = vrot.slane %v3070_v23, 7  ;;  %v9333_v42 = vadd.f32 %v8864_v56, %v2846_v53  ;;  %v6280_v23 = vpack.i.bf16 %v3551_v7, %v9310_v29 }
 0x28b   : > { %6286 = vrot.lane.b32.xlu0 %v6285_v11, %s7003_s15  ;;  %v9340_v38 = vsel %vm12310_vm0, %v3161_v9, %v3163_v33  ;;  %v2913_v24 = vsub.f32 0.0, %v9333_v42  ;;  %vm12328_vm0 = vmmov %vm12321_vm9 }
 0x28c   : > { %12319 = vst [vmem:[#allocation65_spill] sm:$0xff] %v9340_v38  ;;  %v2696_v62 = vpop.f32.mrf.mxu0  ;;  %v3552_v31 = vrot.slane %v9340_v38, 1  ;;  %v3293_v59 = vrot.slane %v9340_v38, 2  ;;  %vm12329_vm5 = vmmov %vm12328_vm0 }
 0x28d   : > { %6271 = vrot.lane.b32.xlu1 %v6265_v63, %s7005_s17  ;;  %v6741_v51 = vpop.eup %6740  ;;  %v2958_v22 = vmul.f32 1.442695, %v2913_v24  ;;  %v2786_v9 = vadd.f32 %v9220_v46, %v2696_v62  ;;  %v9370_v55 = vpop.f32.mrf.mxu1 }
 0x28e   : > { %v6743_v25 = vpop.eup %6742  ;;  %v3008_v1 = vadd.f32 1.0, %v6741_v51  ;;  %v3553_v63 = vsel %vm12320_vm4, %v3550_v36, %v3552_v31  ;;  %v9358_v60 = vsel %vm12321_vm9, %v3291_v0, %v3293_v59 }
 0x28f   : > { %v3071_v18 = vmul.f32 %v6743_v25, %v9266_v32  ;;  %6744 = vpow2.f32 %v2958_v22  ;;  %v2847_v46 = vmul.f32 %v8855_v3, %v2786_v9  ;;  %v9365_v26 = vpack.i.bf16 %v3553_v63, %v3551_v7  ;;  %v5480_v25 = vld [vmem:[#allocation2 + $0x38] sm:$0xff] }
 0x290   : > { %6276 = vrot.lane.b32.xlu2 %v6275_v45, %s7006_s18  ;;  %6746 = vrcp.f32 %v3008_v1  ;;  %v3508_v30 = vsel %vm12311_vm8, %v9358_v60, 0.0  ;;  %vm12325_vm8 = vmmov %vm12320_vm4  ;;  %v3445_v45 = vsel %vm7512_vm7, %v9358_v60, 0.0  ;;  %4741 = vmatpush.bf16.msra.mxu2 %v5480_v25  ;;  %vm12330_vm4 = vnez %v11986_v34 }
 0x291   : > { %2735 = vmatmul.bf16.gmra.mxu0 %v12322_v52  ;;  %v3165_v0 = vrot.slane %v3071_v18, 7  ;;  %v9373_v50 = vadd.f32 %v8864_v56, %v2847_v46  ;;  %v4614_v32 = vpack.c.bf16 %v3508_v30, %v9323_v4  ;;  %vm12332_vm9 = vmmov %vm12325_vm8 }
 0x293   : > { %6291 = vrot.lane.b32.xlu0 %v6290_v12, %s7007_s19  ;;  %v9378_v54 = vsel %vm12323_vm15, %v3163_v33, %v3165_v0  ;;  %v2914_v8 = vsub.f32 0.0, %v9373_v50  ;;  %vm12333_vm15 = vmmov %vm12326_vm11 }
 0x294   : > { %12324 = vst [vmem:[#allocation68_spill] sm:$0xff] %v9378_v54  ;;  %5447 = vmatmul.msk.bf16.gmra.mxu3 %vm12317_vm6, %v4614_v32  ;;  %v2698_v20 = vpop.f32.mrf.mxu0  ;;  %v3554_v53 = vrot.slane %v9378_v54, 1  ;;  %v3295_v9 = vrot.slane %v9378_v54, 2 }
 0x295   : > { %6301 = vrot.lane.b32.xlu1 %v9365_v26, %s7008_s20  ;;  %v6745_v11 = vpop.eup %6744  ;;  %v2960_v57 = vmul.f32 1.442695, %v2914_v8  ;;  %v2788_v36 = vadd.f32 %v9257_v6, %v2698_v20  ;;  %v9403_v12 = vpop.f32.mrf.mxu1 }
 0x296   : > { %v6747_v24 = vpop.eup %6746  ;;  %v3009_v62 = vadd.f32 1.0, %v6745_v11  ;;  %v3555_v33 = vsel %vm12325_vm8, %v3552_v31, %v3554_v53  ;;  %v6315_v31 = vpack.i.bf16 %v3445_v45, %v9323_v4  ;;  %v5479_v11 = vld [vmem:[#allocation2 + $0x30] sm:$0xff]  ;;  %vm12336_vm8 = vmmov %vm12326_vm11 }
 0x297   : > { %v9393_v19 = vmul.f32 %v6747_v24, %v9305_v43  ;;  %6748 = vpow2.f32 %v2960_v57  ;;  %v2848_v29 = vmul.f32 %v8855_v3, %v2788_v36  ;;  %v6305_v51 = vpack.i.bf16 %v3555_v33, %v3553_v63  ;;  %4742 = vmatpush.bf16.msra.mxu2 %v5479_v11 }
 0x298   : > { %6281 = vrot.lane.b32.xlu2 %v6280_v23, %s7002_s14  ;;  %6750 = vrcp.f32 %v3009_v62  ;;  %v3376_v57 = vsel %vm12330_vm4, %v9358_v60, 0.0  ;;  %v3476_v60 = vsel %vm12013_vm3, %v9340_v38, 0.0 }
 0x299   : > { %v3167_v6 = vrot.slane %v9393_v19, 7  ;;  %v9398_v22 = vadd.f32 %v8864_v56, %v2848_v29  ;;  %v3405_v56 = vsel %vm12013_vm3, %v9275_v58, 0.0  ;;  %v5478_v29 = vld [vmem:[#allocation2 + $0x28] sm:$0xff] }
 0x29a   : > { %v6295_v7 = vpack.i.bf16 %v9313_v27, %v3405_v56 }
 0x29b   : > { %6306 = vrot.lane.b32.xlu0 %v6305_v51, %s7002_s14  ;;  %v9406_v43 = vsel %vm12326_vm11, %v3165_v0, %v3167_v6  ;;  %v2915_v3 = vsub.f32 0.0, %v9398_v22  ;;  %v3296_v0 = vsel %vm12328_vm0, %v3293_v59, %v3295_v9  ;;  %4743 = vmatpush.bf16.msra.mxu2 %v5478_v29  ;;  %vm12338_vm11 = vmmov %vm12332_vm9 }
 0x29c   : > { %12327 = vst [vmem:[#allocation125_spill] sm:$0xff] %v9406_v43  ;;  %v2701_v1 = vpop.f32.mrf.mxu0  ;;  %v3297_v4 = vrot.slane %v9406_v43, 2  ;;  %v3556_v8 = vrot.slane %v9406_v43, 1  ;;  %v6325_v13 = vpack.i.bf16 %v3296_v0, %v3376_v57  ;;  %v5476_v57 = vld [vmem:[#allocation2 + $0x18] sm:$0xff] }
 0x29d   : > { %6316 = vrot.lane.b32.xlu1 %v6315_v31, %s7006_s18  ;;  %v6749_v63 = vpop.eup %6748  ;;  %v2962_v18 = vmul.f32 1.442695, %v2915_v3  ;;  %v2791_v46 = vadd.f32 %v9294_v10, %v2701_v1  ;;  %v9430_v10 = vld [vmem:[%s11115_s2] ss:$0 sm:$0xff]  ;;  %v9459_v31 = vpop.f32.mrf.mxu1 }
 0x29e   : > { %v6751_v52 = vpop.eup %6750  ;;  %v3010_v30 = vadd.f32 1.0, %v6749_v63  ;;  %v9423_v32 = vsel %vm12329_vm5, %v3295_v9, %v3297_v4  ;;  %v3557_v19 = vsel %vm12332_vm9, %v3554_v53, %v3556_v8  ;;  %vm12339_vm5 = vmmov %vm12328_vm0  ;;  %vm12343_vm9 = vnez %v12015_v2 }
 0x29f   : > { %v3073_v20 = vmul.f32 %v6751_v52, %v9333_v42  ;;  %6752 = vpow2.f32 %v2962_v18  ;;  %v2849_v23 = vmul.f32 %v9430_v10, %v2791_v46  ;;  %v3510_v59 = vsel %vm7512_vm7, %v9423_v32, 0.0  ;;  %v9442_v42 = vld [vmem:[%s11116_s3] ss:$0 sm:$0xff]  ;;  %vm12331_vm7 = vmmov %vm12317_vm6 }
 0x2a0   : > { %6296 = vrot.lane.b32.xlu2 %v6295_v7, %s7004_s16  ;;  %6754 = vrcp.f32 %v3010_v30  ;;  %v4616_v36 = vpack.c.bf16 %v3510_v59, %v3296_v0  ;;  %v6330_v7 = vpack.i.bf16 %v3557_v19, %v3555_v33  ;;  %v5477_v46 = vld [vmem:[#allocation2 + $0x20] sm:$0xff]  ;;  %vm12335_vm6 = vnez %v12042_v14 }
 0x2a1   : > { %v9445_v24 = vadd.f32 %v9442_v42, %v2849_v23  ;;  %v3169_v62 = vrot.slane %v3073_v20, 7  ;;  %4744 = vmatpush.bf16.msra.mxu2 %v5477_v46 }
 0x2a2   : > { %v9468_v52 = vpop.permute.xlu2 %6161 }
 0x2a3   : > { %6311 = vrot.lane.b32.xlu0 %v9365_v26, %s7005_s17  ;;  %v2916_v45 = vsub.f32 0.0, %v9445_v24  ;;  %v6320_v26 = vpack.i.bf16 %v9378_v54, %v3476_v60  ;;  %v9464_v63 = vsel %vm12333_vm15, %v3167_v6, %v3169_v62  ;;  %vm12344_vm15 = vmmov %vm12328_vm0  ;;  %v12369_v5 = vunpack.i.l.bf16 %v9468_v52 }
 0x2a4   : > { %5448 = vmatmul.msk.bf16.gmra.mxu3 %vm12331_vm7, %v4616_v36  ;;  %v2703_v51 = vpop.f32.mrf.mxu0  ;;  %12334 = vst [vmem:[#allocation16_spill] sm:$0xff] %v9464_v63  ;;  %v3558_v6 = vrot.slane %v9464_v63, 1  ;;  %v3299_v23 = vrot.slane %v9464_v63, 2  ;;  %vm12340_vm7 = vmmov %vm12336_vm8 }
 0x2a5   : > { %6326 = vrot.lane.b32.xlu1 %v6325_v13, %s7003_s15  ;;  %v6753_v9 = vpop.eup %6752  ;;  %v2964_v3 = vmul.f32 1.442695, %v2916_v45  ;;  %v2793_v56 = vadd.f32 %v9327_v49, %v2703_v51  ;;  %v3407_v49 = vsel %vm12335_vm6, %v9340_v38, 0.0  ;;  %4745 = vmatpush.bf16.msra.mxu2 %v5476_v57 }
 0x2a6   : > { %v6755_v25 = vpop.eup %6754  ;;  %v3011_v1 = vadd.f32 1.0, %v6753_v9  ;;  %v6335_v33 = vpack.i.bf16 %v9378_v54, %v3407_v49  ;;  %v3378_v49 = vsel %vm12343_vm9, %v9423_v32, 0.0 }
 0x2a7   : > { %v3074_v53 = vmul.f32 %v6755_v25, %v9373_v50  ;;  %6756 = vpow2.f32 %v2964_v3  ;;  %v2850_v18 = vmul.f32 %v9430_v10, %v2793_v56  ;;  %v3447_v50 = vsel %vm12330_vm4, %v9423_v32, 0.0  ;;  %v12345_v32 = vld [vmem:[#allocation76_spill] sm:$0xff] }
 0x2a8   : > { %6321 = vrot.lane.b32.xlu2 %v6320_v26, %s7007_s19  ;;  %6758 = vrcp.f32 %v3011_v1  ;;  %v6345_v51 = vpack.i.bf16 %v3447_v50, %v3296_v0  ;;  %v9501_v3 = vsel %vm12328_vm0, %v3297_v4, %v3299_v23  ;;  %v9506_v0 = vpop.f32.mrf.mxu1  ;;  %v5475_v1 = vld [vmem:[#allocation2 + $0x10] sm:$0xff]  ;;  %vm12348_vm0 = vmmov %vm12340_vm7 }
 0x2a9   : > { %v3171_v30 = vrot.slane %v3074_v53, 7  ;;  %v9474_v20 = vadd.f32 %v9442_v42, %v2850_v18  ;;  %4746 = vmatpush.bf16.msra.mxu2 %v5475_v1 }
 0x2ab   : > { %6331 = vrot.lane.b32.xlu0 %v6330_v7, %s7008_s20  ;;  %v9484_v59 = vsel %vm12336_vm8, %v3169_v62, %v3171_v30  ;;  %v2917_v11 = vsub.f32 0.0, %v9474_v20  ;;  %v9496_v62 = vsel %vm12338_vm11, %v3556_v8, %v3558_v6  ;;  %vm12346_vm8 = vnez %v12345_v32 }
 0x2ac   : > { %12337 = vst [vmem:[#allocation126_spill] sm:$0xff] %v9484_v59  ;;  %v2706_v36 = vpop.f32.mrf.mxu0  ;;  %v3301_v13 = vrot.slane %v9484_v59, 2 }
 0x2ad   : > { %6336 = vrot.lane.b32.xlu1 %v6335_v33, %s7004_s16  ;;  %v6757_v45 = vpop.eup %6756  ;;  %v2966_v60 = vmul.f32 1.442695, %v2917_v11  ;;  %v2796_v29 = vadd.f32 %v9370_v55, %v2706_v36  ;;  %v5474_v33 = vld [vmem:[#allocation2 + $0x8] sm:$0xff]  ;;  %v3560_v36 = vrot.slane %v9484_v59, 1 }
 0x2ae   : > { %v6759_v26 = vpop.eup %6758  ;;  %v3012_v9 = vadd.f32 1.0, %v6757_v45  ;;  %v9504_v55 = vsel %vm12339_vm5, %v3299_v23, %v3301_v13  ;;  %v6360_v23 = vpack.i.bf16 %v9501_v3, %v3378_v49  ;;  %4747 = vmatpush.bf16.msra.mxu2 %v5474_v33  ;;  %v12347_v49 = vld [vmem:[#allocation136_spill] sm:$0xff] }
 0x2af   : > { %v3075_v56 = vmul.f32 %v6759_v26, %v9398_v22  ;;  %6760 = vpow2.f32 %v2966_v60  ;;  %v2851_v25 = vmul.f32 %v9430_v10, %v2796_v29  ;;  %v3512_v8 = vsel %vm12330_vm4, %v9504_v55, 0.0 }
 0x2b0   : > { %6341 = vrot.lane.b32.xlu2 %v6330_v7, %s7005_s17  ;;  %6762 = vrcp.f32 %v3012_v9  ;;  %v4618_v4 = vpack.c.bf16 %v3512_v8, %v9501_v3  ;;  %v6350_v22 = vpack.i.bf16 %v9496_v62, %v3557_v19  ;;  %vm12342_vm4 = vcmask 130048   ;;  %v9549_v8 = vpop.f32.mrf.mxu1 }
 0x2b1   : > { %v3173_v53 = vrot.slane %v3075_v56, 7  ;;  %v9517_v18 = vadd.f32 %v9442_v42, %v2851_v25  ;;  %v5473_v56 = vld [vmem:[#allocation2] sm:$0xff] }
 0x2b2   : > { %v9513_v7 = vpop.permute.xlu2 %6181  ;;  %4748 = vmatpush.bf16.msra.mxu2 %v5473_v56 }
 0x2b3   : > { %6346 = vrot.lane.b32.xlu0 %v6345_v51, %s7006_s18  ;;  %v9522_v46 = vsel %vm12340_vm7, %v3171_v30, %v3173_v53  ;;  %v2918_v34 = vsub.f32 0.0, %v9517_v18  ;;  %v3380_v51 = vsel %vm12346_vm8, %v9504_v55, 0.0 }
 0x2b4   : > { %12341 = vst [vmem:[#allocation18_spill] sm:$0xff] %v9522_v46  ;;  %5449 = vmatmul.msk.bf16.gmra.mxu3 %vm12342_vm4, %v4618_v4  ;;  %v2708_v50 = vpop.f32.mrf.mxu0  ;;  %v3303_v19 = vrot.slane %v9522_v46, 2  ;;  %v3562_v33 = vrot.slane %v9522_v46, 1  ;;  %vm12354_vm4 = vmmov %vm12344_vm15 }
 0x2b5   : > { %6351 = vrot.lane.b32.xlu1 %v6350_v22, %s7002_s14  ;;  %v6761_v11 = vpop.eup %6760  ;;  %v2968_v57 = vmul.f32 1.442695, %v2918_v34  ;;  %v2798_v30 = vadd.f32 %v9403_v12, %v2708_v50  ;;  %v9559_v22 = vsel %vm12338_vm11, %v3558_v6, %v3560_v36 }
 0x2b6   : > { %v6763_v45 = vpop.eup %6762  ;;  %v3013_v60 = vadd.f32 1.0, %v6761_v11  ;;  %v9536_v29 = vsel %vm12344_vm15, %v3301_v13, %v3303_v19  ;;  %v3478_v13 = vsel %vm12335_vm6, %v9406_v43, 0.0  ;;  %v9571_v11 = vpop.permute.xlu0 %6151  ;;  %vm12355_vm15 = vmmov %vm12338_vm11 }
 0x2b7   : > { %v3076_v26 = vmul.f32 %v6763_v45, %v9445_v24  ;;  %6764 = vpow2.f32 %v2968_v57  ;;  %v2852_v9 = vmul.f32 %v9430_v10, %v2798_v30  ;;  %v6375_v12 = vpack.i.bf16 %v9536_v29, %v3380_v51  ;;  %v12349_v57 = vld [vmem:[#allocation105_spill] sm:$0xff]  ;;  %vm12356_vm11 = vmmov %vm12348_vm0 }
 0x2b8   : > { %6361 = vrot.lane.b32.xlu2 %v6360_v23, %s7003_s15  ;;  %6766 = vrcp.f32 %v3013_v60  ;;  %v6355_v24 = vpack.i.bf16 %v9464_v63, %v3478_v13  ;;  %vm12350_vm5 = vnez %v12349_v57  ;;  %v3449_v60 = vsel %vm12343_vm9, %v9504_v55, 0.0 }
 0x2b9   : > { %v3175_v1 = vrot.slane %v3076_v26, 7  ;;  %v9552_v4 = vadd.f32 %v9442_v42, %v2852_v9  ;;  %v3409_v30 = vsel %vm12350_vm5, %v9406_v43, 0.0  ;;  %v6365_v26 = vpack.i.bf16 %v9559_v22, %v9496_v62 }
 0x2ba   : > { %v9544_v25 = vpop.permute.xlu2 %6186  ;;  %v9574_v6 = vpop.permute.xlu1 %6156  ;;  %v6380_v9 = vpack.i.bf16 %v9464_v63, %v3409_v30  ;;  %v3480_v62 = vsel %vm12350_vm5, %v9484_v59, 0.0  ;;  %v6154_v40 = vunpack.i.h.bf16 %v9571_v11 }
 0x2bb   : > { %6376 = vrot.lane.b32.xlu0 %v6375_v12, %s7003_s15  ;;  %v9568_v50 = vsel %vm12348_vm0, %v3173_v53, %v3175_v1  ;;  %v2919_v23 = vsub.f32 0.0, %v9552_v4  ;;  %v6159_v54 = vunpack.i.h.bf16 %v9574_v6 }
 0x2bc   : > { %v2711_v51 = vpop.f32.mrf.mxu0  ;;  %v12353_v55 = vrot.slane %v9568_v50, 2 }
 0x2bd   : > { %6356 = vrot.lane.b32.xlu1 %v6355_v24, %s7007_s19  ;;  %v6765_v12 = vpop.eup %6764  ;;  %v2970_v56 = vmul.f32 1.442695, %v2919_v23  ;;  %v2801_v13 = vadd.f32 %v9459_v31, %v2711_v51  ;;  %v12351_v23 = vld [vmem:[#allocation112_spill] sm:$0xff] }
 0x2be   : > { %v6767_v34 = vpop.eup %6766  ;;  %v3014_v45 = vadd.f32 1.0, %v6765_v12  ;;  %vm12352_vm7 = vnez %v12351_v23  ;;  %v9609_v41 = vsel %vm12354_vm4, %v3303_v19, %v12353_v55  ;;  %v3564_v19 = vrot.slane %v9568_v50, 1  ;;  %vm12360_vm4 = vmmov %vm12355_vm15 }
 0x2bf   : > { %v3411_v31 = vsel %vm12352_vm7, %v9484_v59, 0.0  ;;  %v3077_v30 = vmul.f32 %v6767_v34, %v9474_v20  ;;  %6768 = vpow2.f32 %v2970_v56  ;;  %v2853_v12 = vmul.f32 %v9430_v10, %v2801_v13 }
 0x2c0   : > { %6366 = vrot.lane.b32.xlu2 %v6365_v26, %s7008_s20  ;;  %6770 = vrcp.f32 %v3014_v45  ;;  %v3563_v20 = vsel %vm12355_vm15, %v3560_v36, %v3562_v33  ;;  %v9617_v34 = vpack.i.bf16 %v3449_v60, %v9501_v3  ;;  %v6158_v45 = vunpack.i.l.bf16 %v9574_v6 }
 0x2c1   : > { %v3177_v44 = vrot.slane %v3077_v30, 7  ;;  %v9612_v59 = vadd.f32 %v9442_v42, %v2853_v12  ;;  %v3514_v56 = vsel %vm12343_vm9, %v9609_v41, 0.0  ;;  %v9625_v13 = vpack.i.bf16 %v9522_v46, %v3480_v62  ;;  %v9627_v30 = vpop.f32.mrf.mxu1 }
 0x2c2   : > { %v9604_v24 = vpop.permute.xlu2 %6206  ;;  %v6153_v36 = vunpack.i.l.bf16 %v9571_v11  ;;  %v4620_v60 = vpack.c.bf16 %v3514_v56, %v9536_v29  ;;  %v6189_v12 = vunpack.i.h.bf16 %v9544_v25  ;;  %v6188_v62 = vunpack.i.l.bf16 %v9544_v25 }
 0x2c3   : > { %6381 = vrot.lane.b32.xlu0 %v6380_v9, %s7004_s16  ;;  %v9630_v9 = vsel %vm12356_vm11, %v3175_v1, %v3177_v44  ;;  %v2920_v3 = vsub.f32 0.0, %v9612_v59  ;;  %v6370_v51 = vpack.i.bf16 %v3563_v20, %v9559_v22  ;;  %vm12358_vm9 = vcmask 130048  }
 0x2c4   : > { %12357 = vst [vmem:[#allocation74_spill] sm:$0xff] %v9630_v9  ;;  %v9636_v2 = vpop.permute.xlu0 %6166  ;;  %v2713_v55 = vpop.f32.mrf.mxu0  ;;  %5450 = vmatmul.msk.bf16.gmra.mxu3 %vm12358_vm9, %v4620_v60  ;;  %v9648_v43 = vpack.i.bf16 %v9522_v46, %v3411_v31  ;;  %vm12359_vm0 = vmmov %vm12358_vm9  ;;  %v3565_v11 = vsel %vm12360_vm4, %v3562_v33, %v3564_v19  ;;  %v12361_v60 = vld [vmem:[#allocation139_spill] sm:$0xff]  ;;  %vm12362_vm15 = vcmask 392192   ;;  %v12363_v6 = vsel %vm11811_vm13, %v9070_v28, 0.0  ;;  %v12365_v31 = vld [vmem:[#allocation58_spill] sm:$0xff] }
 0x2c5   : > { %6386 = vrot.lane.b32.xlu1 %v6365_v26, %s7005_s17  ;;  %v6769_v53 = vpop.eup %6768  ;;  %v2972_v63 = vmul.f32 1.442695, %v2920_v3  ;;  %v2803_v56 = vadd.f32 %v9506_v0, %v2713_v55  ;;  %v4385_v22 = vsel %vm12359_vm0, 0.0, %v6158_v45  ;;  %v4447_v1 = vsel %vm12362_vm15, %v12361_v60, %v6153_v36  ;;  %vm12364_vm11 = vmmov %vm12359_vm0 }
 0x2c6   : > { %v9644_v26 = vpop.permute.xlu1 %6171  ;;  %v6771_v17 = vpop.eup %6770  ;;  %v3015_v25 = vadd.f32 1.0, %v6769_v53  ;;  %v9665_v53 = vsel %vm12364_vm11, %v12363_v6, %v6189_v12  ;;  %vm12366_vm9 = vmmov %vm12359_vm0  ;;  %v9685_v36 = vpack.i.bf16 %v3565_v11, %v3563_v20  ;;  %v12371_v12 = vsel %vm11808_vm1, %v12347_v49, 0.0 }
 0x2c7   : > { %v9655_v3 = vmul.f32 %v6771_v17, %v9517_v18  ;;  %6772 = vpow2.f32 %v2972_v63  ;;  %v2854_v0 = vmul.f32 %v9430_v10, %v2803_v56  ;;  %v9669_v33 = vsel %vm12366_vm9, %v12365_v31, %v6188_v62  ;;  %vm12368_vm0 = vmmov %vm12360_vm4 }
 0x2c8   : > { %6371 = vrot.lane.b32.xlu2 %v6370_v51, %s7002_s14  ;;  %6774 = vrcp.f32 %v3015_v25  ;;  %v12367_v18 = vrot.slane %v9630_v9, 1  ;;  %vm12370_vm4 = vcmask 261120   ;;  %vm12372_vm13 = vmmov %vm12366_vm9  ;;  %v3307_v56 = vrot.slane %v9630_v9, 2 }
 0x2c9   : > { %v11505_v51 = vrot.slane %v9655_v3, 7  ;;  %v4416_v28 = vsel %vm12370_vm4, %v4385_v22, %v12369_v5  ;;  %v9683_v45 = vadd.f32 %v9442_v42, %v2854_v0  ;;  %v4386_v62 = vsel %vm12372_vm13, %v12371_v12, %v6159_v54  ;;  %v9714_v0 = vpop.f32.mrf.mxu1  ;;  %vm12377_vm11 = vmmov %vm12370_vm4 }
 0x2ca   : > { %v9671_v17 = vpop.permute.xlu2 %6211  ;;  %v9676_v63 = vsel %vm12368_vm0, %v3564_v19, %v12367_v18  ;;  %v6168_v19 = vunpack.i.l.bf16 %v9636_v2  ;;  %vm12373_vm15 = vcmask 1040384   ;;  %v6169_v20 = vunpack.i.h.bf16 %v9636_v2 }
 0x2cb   : > { %v6395_v55 = vpack.i.bf16 %v9676_v63, %v3565_v11  ;;  %v9698_v25 = vsel %vm12373_vm15, %v3177_v44, %v11505_v51  ;;  %v2921_v22 = vsub.f32 0.0, %v9683_v45  ;;  %v3482_v54 = vsel %vm12352_vm7, %v9568_v50, 0.0 }
 0x2cc   : > { %12374 = vst [vmem:[#allocation60_spill] sm:$0xff] %v9698_v25  ;;  %vm12375_vm1 = vcmask 392192   ;;  %v2716_v2 = vpop.f32.mrf.mxu0  ;;  %v11506_v60 = vrot.slane %v9698_v25, 2  ;;  %v6173_v31 = vunpack.i.l.bf16 %v9644_v26  ;;  %v12376_v5 = vunpack.i.h.bf16 %v9468_v52 }
 0x2cd   : > { %6406 = vrot.lane.b32.xlu1 %v9685_v36, %s7008_s20  ;;  %v9704_v47 = vpop.permute.xlu0 %6191  ;;  %v4448_v49 = vsel %vm12375_vm1, %v4416_v28, %v6154_v40  ;;  %6396 = vrot.lane.b32.xlu0 %v6395_v55, %s7002_s14  ;;  %v6773_v6 = vpop.eup %6772  ;;  %v2974_v18 = vmul.f32 1.442695, %v2921_v22  ;;  %v2806_v28 = vadd.f32 %v9549_v8, %v2716_v2  ;;  %vm12378_vm9 = vcmask 523264  }
 0x2ce   : > { %v9720_v12 = vsel %vm12377_vm11, %v4386_v62, %v12376_v5  ;;  %v6775_v11 = vpop.eup %6774  ;;  %v3016_v55 = vadd.f32 1.0, %v6773_v6  ;;  %v4479_v44 = vsel %vm12378_vm9, %v4447_v1, %v6168_v19  ;;  %v6174_v51 = vunpack.i.h.bf16 %v9644_v26  ;;  %vm12381_vm4 = vmmov %vm12378_vm9  ;;  %v12382_v1 = vld [vmem:[#allocation82_spill] sm:$0xff] }
 0x2cf   : > { %v9722_v40 = vpop.permute.xlu1 %6176  ;;  %v12379_v22 = vrot.slane %v9568_v50, 2  ;;  %vm12380_vm0 = vcmask 1045504   ;;  %v3079_v62 = vmul.f32 %v6775_v11, %v9552_v4  ;;  %v4480_v5 = vsel %vm12381_vm4, %v4448_v49, %v6169_v20 }
 0x2d0   : > { %6391 = vrot.lane.b32.xlu2 %v9617_v34, %s7006_s18  ;;  %6776 = vpow2.f32 %v2974_v18  ;;  %v2855_v8 = vmul.f32 %v9430_v10, %v2806_v28  ;;  %vm12383_vm13 = vnez %v12382_v1  ;;  %vm12384_vm15 = vmmov %vm12380_vm0  ;;  %vm12385_vm1 = vcmask 654336  }
 0x2d1   : > { %v9732_v52 = vsel %vm12380_vm0, %v12379_v22, %v3307_v56  ;;  %6778 = vrcp.f32 %v3016_v55  ;;  %v3382_v26 = vsel %vm12383_vm13, %v9609_v41, 0.0  ;;  %v9745_v34 = vsel %vm12384_vm15, %v3307_v56, %v11506_v60  ;;  %vm12386_vm11 = vmmov %vm12385_vm1 }
 0x2d2   : > { %v9737_v2 = vpop.permute.xlu2 %6236  ;;  %v4511_v19 = vsel %vm12385_vm1, %v4479_v44, %v6173_v31  ;;  %v9749_v4 = vadd.f32 %v9442_v42, %v2855_v8  ;;  %v6420_v20 = vpack.i.bf16 %v9732_v52, %v3382_v26  ;;  %v3451_v49 = vsel %vm12346_vm8, %v9609_v41, 0.0 }
 0x2d3   : > { %v3181_v11 = vrot.slane %v3079_v62, 7  ;;  %v4512_v6 = vsel %vm12386_vm11, %v4480_v5, %v6174_v51  ;;  %v3516_v18 = vsel %vm12346_vm8, %v9745_v34, 0.0  ;;  %v9760_v56 = vpack.i.bf16 %v9630_v9, %v3482_v54 }
 0x2d4   : > { %v6213_v31 = vunpack.i.l.bf16 %v9671_v17  ;;  %v2922_v28 = vsub.f32 0.0, %v9749_v4  ;;  %v4622_v41 = vpack.c.bf16 %v3516_v18, %v9732_v52  ;;  %v6193_v51 = vunpack.i.l.bf16 %v9704_v47  ;;  %v2718_v54 = vpop.f32.mrf.mxu0 }
 0x2d5   : > { %6421 = vrot.lane.b32.xlu1 %v6420_v20, %s7003_s15  ;;  %v6197_v55 = vpop.permute.xlu0 %6196  ;;  %6401 = vrot.lane.b32.xlu0 %v9625_v13, %s7007_s19  ;;  %v12387_v62 = vunpack.i.l.bf16 %v9513_v7  ;;  %vm12388_vm8 = vcmask 785408   ;;  %v6194_v26 = vunpack.i.h.bf16 %v9704_v47  ;;  %vm12389_vm9 = vcmask 130048  }
 0x2d6   : > { %v6199_v32 = vunpack.i.h.bf16 %v6197_v55  ;;  %v6198_v22 = vunpack.i.l.bf16 %v6197_v55  ;;  %v6777_v8 = vpop.eup %6776  ;;  %v2976_v44 = vmul.f32 1.442695, %v2922_v28  ;;  %5451 = vmatmul.msk.bf16.gmra.mxu3 %vm12389_vm9, %v4622_v41  ;;  %v2808_v18 = vadd.f32 %v9627_v30, %v2718_v54  ;;  %vm12391_vm0 = vmmov %vm12388_vm8  ;;  %v9788_v28 = vpop.f32.mrf.mxu1 }
 0x2d7   : > { %v4543_v5 = vsel %vm12388_vm8, %v4511_v19, %v12387_v62  ;;  %v6202_v20 = vpop.permute.xlu1 %6201  ;;  %v12390_v60 = vunpack.i.h.bf16 %v9513_v7  ;;  %v6779_v46 = vpop.eup %6778  ;;  %v12392_v55 = vrot.slane %v9655_v3, 7  ;;  %vm12393_vm4 = vcmask 1040384  }
 0x2d8   : > { %v3017_v19 = vadd.f32 1.0, %v6777_v8  ;;  %v6179_v62 = vunpack.i.h.bf16 %v9722_v40  ;;  %6411 = vrot.lane.b32.xlu2 %v9648_v43, %s7004_s16  ;;  %vm12395_vm15 = vcmask 916480   ;;  %v3080_v7 = vmul.f32 %v6779_v46, %v9612_v59  ;;  %vm12400_vm9 = vmmov %vm12393_vm4 }
 0x2d9   : > { %v4544_v13 = vsel %vm12391_vm0, %v4512_v6, %v12390_v60  ;;  %v9782_v23 = vsel %vm12393_vm4, %v12392_v55, %v3181_v11  ;;  %v4575_v47 = vsel %vm12395_vm15, %v4543_v5, %v6198_v22  ;;  %6780 = vpow2.f32 %v2976_v44  ;;  %vm12396_vm1 = vmmov %vm12395_vm15 }
 0x2da   : > { %12394 = vst [vmem:[#allocation73_spill] sm:$0xff] %v9782_v23  ;;  %v2856_v30 = vmul.f32 %v9430_v10, %v2808_v18  ;;  %v4576_v3 = vsel %vm12396_vm1, %v4544_v13, %v6199_v32  ;;  %6782 = vrcp.f32 %v3017_v19  ;;  %vm12397_vm11 = vcmask 261120   ;;  %v9795_v6 = vpop.permute.xlu2 %6261 }
 0x2db   : > { %v4418_v60 = vsel %vm12397_vm11, %v9669_v33, %v6193_v51  ;;  %v4607_v41 = vpack.c.bf16 %v4576_v3, %v4575_v47  ;;  %v6425_v43 = vpack.i.bf16 %v3451_v49, %v9536_v29  ;;  %v3183_v54 = vrot.slane %v3080_v7, 7  ;;  %vm12398_vm8 = vmmov %vm12397_vm11 }
 0x2dc   : > { %v4419_v22 = vsel %vm12398_vm8, %v9665_v53, %v6194_v26  ;;  %v6178_v59 = vunpack.i.l.bf16 %v9722_v40  ;;  %v9802_v46 = vadd.f32 %v9442_v42, %v2856_v30  ;;  %v3568_v44 = vrot.slane %v9698_v25, 1 }
 0x2dd   : > { %4749 = vmatmul.bf16.vlgmr.msra.gmra.mxu2 %v4607_v41  ;;  %v11509_v32 = vrot.slane %v9782_v23, 1  ;;  %v9813_v53 = vsel %vm12400_vm9, %v3181_v11, %v3183_v54  ;;  %vm12401_vm0 = vcmask 392192   ;;  %v6203_v49 = vunpack.i.l.bf16 %v6202_v20  ;;  %6426 = vrot.lane.b32.xlu1 %v6425_v43, %s7006_s18  ;;  %v9818_v8 = vpop.permute.xlu0 %6216 }
 0x2de   : > { %v4450_v40 = vsel %vm12401_vm0, %v4418_v60, %v6179_v62  ;;  %v2923_v5 = vsub.f32 0.0, %v9802_v46  ;;  %vm12402_vm4 = vmmov %vm12401_vm0  ;;  %v6204_v18 = vunpack.i.h.bf16 %v6202_v20  ;;  %6416 = vrot.lane.b32.xlu0 %v9685_v36, %s7005_s17  ;;  %v2721_v13 = vpop.f32.mrf.mxu0  ;;  %v3311_v11 = vrot.slane %v9782_v23, 2 }
 0x2df   : > { %v9821_v26 = vsel %vm12402_vm4, %v4419_v22, %v6213_v31  ;;  %v3313_v55 = vrot.slane %v9813_v53, 2  ;;  %v6781_v19 = vpop.eup %6780  ;;  %vm12403_vm15 = vmmov %vm12401_vm0  ;;  %v9830_v30 = vpop.permute.xlu1 %6226  ;;  %v2811_v31 = vadd.f32 %v9714_v0, %v2721_v13  ;;  %v6238_v36 = vunpack.i.l.bf16 %v9737_v2 }
 0x2e0   : > { %v4449_v62 = vsel %vm12403_vm15, %v9720_v12, %v6178_v59  ;;  %v2978_v7 = vmul.f32 1.442695, %v2923_v5  ;;  %v6783_v20 = vpop.eup %6782  ;;  %v3018_v3 = vadd.f32 1.0, %v6781_v19  ;;  %6431 = vrot.lane.b32.xlu2 %v9760_v56, %s7007_s19  ;;  %v12404_v60 = vrot.slane %v9630_v9, 1 }
 0x2e1   : > { %vm12405_vm1 = vcmask 1046528   ;;  %v9845_v43 = vmul.f32 %v6783_v20, %v9683_v45  ;;  %vm12407_vm8 = vcmask 523264   ;;  %v2857_v22 = vmul.f32 %v9430_v10, %v2811_v31  ;;  %v9860_v45 = vpop.f32.mrf.mxu1 }
 0x2e2   : > { %v3569_v41 = vsel %vm12405_vm1, %v12404_v60, %v3568_v44  ;;  %vm12406_vm11 = vmmov %vm12405_vm1  ;;  %v4481_v0 = vsel %vm12407_vm8, %v4449_v62, %v6203_v49  ;;  %6784 = vpow2.f32 %v2978_v7  ;;  %v9850_v59 = vpop.permute.xlu2 %6266  ;;  %v12409_v5 = vrot.slane %v9698_v25, 2 }
 0x2e3   : > { %v9842_v12 = vsel %vm12406_vm11, %v3568_v44, %v11509_v32  ;;  %6786 = vrcp.f32 %v3018_v3  ;;  %vm12408_vm9 = vmmov %vm12407_vm8  ;;  %vm12410_vm0 = vcmask 1045504   ;;  %v3185_v49 = vrot.slane %v9845_v43, 7 }
 0x2e4   : > { %v4482_v56 = vsel %vm12408_vm9, %v4450_v40, %v6204_v18  ;;  %v9855_v13 = vsel %vm12410_vm0, %v12409_v5, %v3311_v11  ;;  %vm12411_vm4 = vmmov %vm12410_vm0  ;;  %v6218_v19 = vunpack.i.l.bf16 %v9818_v8  ;;  %v9865_v62 = vadd.f32 %v9442_v42, %v2857_v22 }
 0x2e5   : > { %v9858_v44 = vsel %vm12411_vm4, %v3311_v11, %v3313_v55  ;;  %v6440_v40 = vpack.i.bf16 %v9842_v12, %v3569_v41  ;;  %v9869_v18 = vpack.i.bf16 %v3569_v41, %v9676_v63  ;;  %v12412_v11 = vld [vmem:[#allocation79_spill] sm:$0xff]  ;;  %v12414_v20 = vunpack.i.l.bf16 %v9604_v24  ;;  %v6222_v41 = vpop.permute.xlu0 %6221 }
 0x2e6   : > { %v3518_v7 = vsel %vm12383_vm13, %v9858_v44, 0.0  ;;  %vm12413_vm15 = vnez %v12412_v11  ;;  %vm12415_vm1 = vcmask 654336   ;;  %vm12416_vm11 = vcmask 1040384  }
 0x2e7   : > { %v3384_v31 = vsel %vm12413_vm15, %v9745_v34, 0.0  ;;  %v4513_v3 = vsel %vm12415_vm1, %v4481_v0, %v12414_v20  ;;  %v9881_v60 = vsel %vm12416_vm11, %v3183_v54, %v3185_v49  ;;  %v2924_v43 = vsub.f32 0.0, %v9865_v62  ;;  %6441 = vrot.lane.b32.xlu1 %v6440_v40, %s7002_s14  ;;  %vm12419_vm8 = vmmov %vm12415_vm1  ;;  %6436 = vrot.lane.b32.xlu0 %v9869_v18, %s7008_s20  ;;  %v2723_v0 = vpop.f32.mrf.mxu0 }
 0x2e8   : > { %12417 = vst [vmem:[#allocation121_spill] sm:$0xff] %v9881_v60  ;;  %v4624_v63 = vpack.c.bf16 %v3518_v7, %v9855_v13  ;;  %v12418_v22 = vunpack.i.h.bf16 %v9604_v24  ;;  %v6224_v32 = vunpack.i.h.bf16 %v6222_v41  ;;  %v6223_v47 = vunpack.i.l.bf16 %v6222_v41  ;;  %v6785_v29 = vpop.eup %6784  ;;  %v6232_v24 = vpop.permute.xlu1 %6231 }
 0x2e9   : > { %v6450_v54 = vpack.i.bf16 %v9855_v13, %v3384_v31  ;;  %v3315_v20 = vrot.slane %v9881_v60, 2  ;;  %vm12420_vm9 = vcmask 130048   ;;  %v6228_v7 = vunpack.i.l.bf16 %v9830_v30 }
 0x2ea   : > { %v4514_v5 = vsel %vm12419_vm8, %v4482_v56, %v12418_v22  ;;  %v4389_v40 = vsel %vm12420_vm9, %v9110_v15, %v6218_v19  ;;  %v2980_v51 = vmul.f32 1.442695, %v2924_v43  ;;  %vm12421_vm0 = vmmov %vm12420_vm9  ;;  %v2813_v56 = vadd.f32 %v9788_v28, %v2723_v0  ;;  %v6787_v22 = vpop.eup %6786  ;;  %v12422_v43 = vld [vmem:[#allocation83_spill] sm:$0xff] }
 0x2eb   : > { %5452 = vmatmul.msk.bf16.gmra.mxu3 %vm12421_vm0, %v4624_v63  ;;  %v3019_v57 = vadd.f32 1.0, %v6785_v29  ;;  %v6234_v41 = vunpack.i.h.bf16 %v6232_v24  ;;  %v6233_v38 = vunpack.i.l.bf16 %v6232_v24  ;;  %6451 = vrot.lane.b32.xlu2 %v6450_v54, %s7003_s15  ;;  %v9902_v31 = vsel %vm12411_vm4, %v3313_v55, %v3315_v20  ;;  %v9909_v29 = vpop.permute.xlu2 %6276 }
 0x2ec   : > { %v3082_v15 = vmul.f32 %v6787_v22, %v9749_v4  ;;  %6788 = vpow2.f32 %v2980_v51  ;;  %v2858_v19 = vmul.f32 %v9430_v10, %v2813_v56  ;;  %vm12423_vm1 = vnez %v12422_v43 }
 0x2ed   : > { %v3386_v28 = vsel %vm12423_vm1, %v9858_v44, 0.0  ;;  %6790 = vrcp.f32 %v3019_v57  ;;  %vm12424_vm11 = vcmask 785408   ;;  %v6219_v24 = vunpack.i.h.bf16 %v9818_v8 }
 0x2ee   : > { %v6465_v63 = vpack.i.bf16 %v9902_v31, %v3386_v28  ;;  %v4545_v0 = vsel %vm12424_vm11, %v4513_v3, %v6223_v47  ;;  %vm12425_vm8 = vmmov %vm12424_vm11  ;;  %v3187_v55 = vrot.slane %v3082_v15, 7  ;;  %v9916_v4 = vadd.f32 %v9442_v42, %v2858_v19  ;;  %v2817_v3 = vpop.f32.mrf.mxu1  ;;  %v6242_v19 = vpop.permute.xlu0 %6241 }
 0x2ef   : > { %v4546_v54 = vsel %vm12425_vm8, %v4514_v5, %v6224_v32  ;;  %v12426_v51 = vsel %vm12127_vm10, %v9568_v50, 0.0  ;;  %vm12427_vm9 = vcmask 523264   ;;  %vm12428_vm0 = vcmask 261120   ;;  %v2726_v28 = vpop.f32.mrf.mxu0 }
 0x2f0   : > { %v6445_v57 = vpack.i.bf16 %v9630_v9, %v12426_v51  ;;  %v4483_v56 = vsel %vm12427_vm9, %v9821_v26, %v6238_v36  ;;  %v4420_v22 = vsel %vm12428_vm0, %v4389_v40, %v6228_v7  ;;  %vm12429_vm4 = vcmask 916480   ;;  %6466 = vrot.lane.b32.xlu0 %v6465_v63, %s7003_s15 }
 0x2f1   : > { %v4577_v47 = vsel %vm12429_vm4, %v4545_v0, %v6233_v38  ;;  %vm12430_vm11 = vmmov %vm12429_vm4  ;;  %vm12431_vm8 = vcmask 1040384   ;;  %v2925_v5 = vsub.f32 0.0, %v9916_v4  ;;  %v3453_v26 = vsel %vm12383_vm13, %v9745_v34, 0.0 }
 0x2f2   : > { %v4578_v32 = vsel %vm12430_vm11, %v4546_v54, %v6234_v41  ;;  %v9929_v8 = vsel %vm12431_vm8, %v3185_v49, %v3187_v55  ;;  %6446 = vrot.lane.b32.xlu1 %v6445_v57, %s7004_s16  ;;  %v12432_v38 = vsel %vm12127_vm10, %v9698_v25, 0.0  ;;  %v3574_v40 = vrot.slane %v9881_v60, 1  ;;  %v6789_v7 = vpop.eup %6788  ;;  %v6247_v54 = vpop.permute.xlu1 %6246 }
 0x2f3   : > { %v4609_v15 = vpack.c.bf16 %v4578_v32, %v4577_v47  ;;  %v6475_v36 = vpack.i.bf16 %v9782_v23, %v12432_v38  ;;  %v11512_v49 = vrot.slane %v9929_v8, 2  ;;  %v12433_v41 = vsel %vm11807_vm14, %v9147_v21, 0.0  ;;  %v6791_v57 = vpop.eup %6790  ;;  %6456 = vrot.lane.b32.xlu2 %v9869_v18, %s7005_s17 }
 0x2f4   : > { %vm12434_vm9 = vcmask 130048   ;;  %v12435_v1 = vunpack.i.h.bf16 %v9671_v17  ;;  %vm12436_vm13 = vcmask 392192   ;;  %v2982_v0 = vmul.f32 1.442695, %v2925_v5  ;;  %v9964_v5 = vpop.permute.xlu2 %6281 }
 0x2f5   : > { %v9949_v63 = vsel %vm12434_vm9, %v12433_v41, %v6219_v24  ;;  %4754 = vmatmul.bf16.gmra.mxu2 %v4609_v15  ;;  %v2816_v51 = vadd.f32 %v9860_v45, %v2726_v28  ;;  %v3020_v47 = vadd.f32 1.0, %v6789_v7  ;;  %v6244_v32 = vunpack.i.h.bf16 %v6242_v19 }
 0x2f6   : > { %v4452_v34 = vsel %vm12436_vm13, %v4420_v22, %v12435_v1  ;;  %v6243_v38 = vunpack.i.l.bf16 %v6242_v19  ;;  %v3572_v16 = vrot.slane %v9813_v53, 1  ;;  %v3083_v21 = vmul.f32 %v6791_v57, %v9802_v46 }
 0x2f7   : > { %6792 = vpow2.f32 %v2982_v0  ;;  %v2859_v17 = vmul.f32 %v9430_v10, %v2816_v51  ;;  %v6470_v24 = vpack.i.bf16 %v3453_v26, %v9732_v52  ;;  %v12437_v22 = vunpack.i.h.bf16 %v9737_v2  ;;  %v9991_v0 = vpop.permute.xlu0 %6251 }
 0x2f8   : > { %6794 = vrcp.f32 %v3020_v47  ;;  %vm12438_vm14 = vcmask 523264   ;;  %vm12439_vm0 = vcmask 1045504   ;;  %vm12440_vm4 = vcmask 1046528  }
 0x2f9   : > { %v4484_v45 = vsel %vm12438_vm14, %v4452_v34, %v12437_v22  ;;  %v9971_v18 = vsel %vm12439_vm0, %v3315_v20, %v11512_v49  ;;  %v9974_v46 = vsel %vm12440_vm4, %v3572_v16, %v3574_v40  ;;  %v3189_v15 = vrot.slane %v3083_v21, 7  ;;  %vm12446_vm13 = vmmov %vm12440_vm4  ;;  %6471 = vrot.lane.b32.xlu0 %v6470_v24, %s7006_s18 }
 0x2fa   : > { %v6249_v19 = vunpack.i.h.bf16 %v6247_v54  ;;  %v6248_v52 = vunpack.i.l.bf16 %v6247_v54  ;;  %v9977_v28 = vadd.f32 %v9442_v42, %v2859_v17  ;;  %vm12441_vm11 = vcmask 654336   ;;  %6476 = vrot.lane.b32.xlu1 %v6475_v36, %s7007_s19  ;;  %v10001_v21 = vpop.permute.xlu1 %6256 }
 0x2fb   : > { %v4516_v2 = vsel %vm12441_vm11, %v4484_v45, %v6244_v32  ;;  %vm12442_vm8 = vmmov %vm12441_vm11  ;;  %v3520_v7 = vsel %vm12413_vm15, %v9971_v18, 0.0  ;;  %v3576_v20 = vrot.slane %v9929_v8, 1  ;;  %vm12443_vm9 = vcmask 1040384   ;;  %v2820_v32 = vpop.f32.mrf.mxu1 }
 0x2fc   : > { %v4515_v26 = vsel %vm12442_vm8, %v4483_v56, %v6243_v38  ;;  %v9986_v41 = vsel %vm12443_vm9, %v3187_v55, %v3189_v15  ;;  %v6229_v1 = vunpack.i.h.bf16 %v9830_v30  ;;  %v2926_v34 = vsub.f32 0.0, %v9977_v28  ;;  %v2728_v55 = vpop.f32.mrf.mxu0  ;;  %vm12450_vm11 = vmmov %vm12446_vm13 }
 0x2fd   : > { %12444 = vst [vmem:[#allocation70_spill] sm:$0xff] %v9986_v41  ;;  %v12445_v54 = vrot.slane %v9782_v23, 1  ;;  %v6269_v51 = vunpack.i.h.bf16 %v9850_v59  ;;  %v4626_v57 = vpack.c.bf16 %v3520_v7, %v9902_v31  ;;  %v11513_v30 = vrot.slane %v9986_v41, 1  ;;  %v6793_v38 = vpop.eup %6792  ;;  %vm12451_vm8 = vmmov %vm12450_vm11 }
 0x2fe   : > { %v2984_v36 = vmul.f32 1.442695, %v2926_v34  ;;  %v2818_v17 = vadd.f32 %v2817_v3, %v2728_v55  ;;  %vm12447_vm14 = vcmask 785408   ;;  %v6795_v45 = vpop.eup %6794  ;;  %v6268_v24 = vunpack.i.l.bf16 %v9850_v59 }
 0x2ff   : > { %v3573_v56 = vsel %vm12446_vm13, %v12445_v54, %v3572_v16  ;;  %v4547_v22 = vsel %vm12447_vm14, %v4515_v26, %v6248_v52  ;;  %vm12448_vm0 = vmmov %vm12447_vm14  ;;  %v3021_v54 = vadd.f32 1.0, %v6793_v38  ;;  %vm12449_vm4 = vcmask 130048  }
 0x300   : > { %v6460_v47 = vpack.i.bf16 %v9974_v46, %v3573_v56  ;;  %v4548_v16 = vsel %vm12448_vm0, %v4516_v2, %v6249_v19  ;;  %5453 = vmatmul.msk.bf16.gmra.mxu3 %vm12449_vm4, %v4626_v57  ;;  %v6258_v7 = vunpack.i.l.bf16 %v10001_v21  ;;  %v10010_v49 = vsel %vm12450_vm11, %v3574_v40, %v3576_v20  ;;  %v10021_v19 = vpop.permute.xlu2 %6296 }
 0x301   : > { %v10013_v34 = vmul.f32 %v6795_v45, %v9865_v62  ;;  %6796 = vpow2.f32 %v2984_v36  ;;  %v2860_v3 = vmul.f32 %v9430_v10, %v2818_v17  ;;  %v10019_v59 = vsel %vm12451_vm8, %v3576_v20, %v11513_v30 }
 0x302   : > { %6461 = vrot.lane.b32.xlu2 %v6460_v47, %s7002_s14  ;;  %6798 = vrcp.f32 %v3021_v54  ;;  %v6485_v52 = vpack.i.bf16 %v10019_v59, %v10010_v49  ;;  %vm12452_vm9 = vcmask 916480   ;;  %v6495_v57 = vpack.i.bf16 %v3573_v56, %v9842_v12  ;;  %v10045_v12 = vpop.permute.xlu0 %6286  ;;  %v6272_v45 = vpop.permute.xlu1 %6271  ;;  %v12459_v54 = vld [vmem:[#allocation93_spill] sm:$0xff] }
 0x303   : > { %v4579_v40 = vsel %vm12452_vm9, %v4547_v22, %v6268_v24  ;;  %vm12453_vm13 = vmmov %vm12452_vm9  ;;  %v11514_v62 = vrot.slane %v10013_v34, 7  ;;  %v10029_v26 = vadd.f32 %v9442_v42, %v2860_v3  ;;  %v6263_v20 = vunpack.i.l.bf16 %v9795_v6 }
 0x304   : > { %v4580_v2 = vsel %vm12453_vm13, %v4548_v16, %v6269_v51  ;;  %vm12454_vm14 = vcmask 261120   ;;  %v3319_v47 = vrot.slane %v9986_v41, 2  ;;  %vm12455_vm0 = vcmask 1040384   ;;  %6496 = vrot.lane.b32.xlu1 %v6495_v57, %s7005_s17  ;;  %6486 = vrot.lane.b32.xlu0 %v6485_v52, %s7002_s14 }
 0x305   : > { %v4421_v55 = vsel %vm12454_vm14, %v9949_v63, %v6229_v1  ;;  %v10039_v38 = vsel %vm12455_vm0, %v3189_v15, %v11514_v62  ;;  %v4391_v51 = vsel %vm12449_vm4, %v9173_v39, %v6258_v7  ;;  %v2927_v36 = vsub.f32 0.0, %v10029_v26  ;;  %v2731_v1 = vpop.f32.mrf.mxu0  ;;  %v12457_v15 = vld [vmem:[#allocation109_spill] sm:$0xff]  ;;  %vm12461_vm9 = vmmov %vm12454_vm14 }
 0x306   : > { %12456 = vst [vmem:[#allocation67_spill] sm:$0xff] %v10039_v38  ;;  %v4611_v17 = vpack.c.bf16 %v4580_v2, %v4579_v40  ;;  %v6279_v56 = vunpack.i.h.bf16 %v9909_v29  ;;  %v6253_v63 = vunpack.i.l.bf16 %v9991_v0  ;;  %vm12458_vm11 = vnez %v12457_v15 }
 0x307   : > { %v3415_v22 = vsel %vm12458_vm11, %v9698_v25, 0.0  ;;  %v6797_v16 = vpop.eup %6796  ;;  %v2986_v39 = vmul.f32 1.442695, %v2927_v36  ;;  %v2821_v24 = vadd.f32 %v2820_v32, %v2731_v1  ;;  %vm12460_vm8 = vnez %v12459_v54  ;;  %v12532_v54 = vld [vmem:[#allocation100_spill] sm:$0xff] }
 0x308   : > { %4759 = vmatmul.bf16.gmra.mxu2 %v4611_v17  ;;  %v3388_v7 = vsel %vm12460_vm8, %v9971_v18, 0.0  ;;  %v6799_v40 = vpop.eup %6798  ;;  %v3022_v2 = vadd.f32 1.0, %v6797_v16  ;;  %v4422_v52 = vsel %vm12461_vm9, %v4391_v51, %v6263_v20  ;;  %v6274_v30 = vunpack.i.h.bf16 %v6272_v45  ;;  %v2822_v17 = vpop.f32.mrf.mxu1 }
 0x309   : > { %v12462_v62 = vrot.slane %v9929_v8, 2  ;;  %vm12463_vm13 = vcmask 1045504   ;;  %v6254_v32 = vunpack.i.h.bf16 %v9991_v0  ;;  %6800 = vpow2.f32 %v2986_v39  ;;  %v10068_v51 = vpop.permute.xlu2 %6321 }
 0x30a   : > { %6481 = vrot.lane.b32.xlu2 %v6495_v57, %s7008_s20  ;;  %v6273_v1 = vunpack.i.l.bf16 %v6272_v45  ;;  %v2861_v25 = vmul.f32 %v9430_v10, %v2821_v24  ;;  %v3085_v3 = vmul.f32 %v6799_v40, %v9916_v4  ;;  %6802 = vrcp.f32 %v3022_v2  ;;  %vm12466_vm0 = vmmov %vm12463_vm13  ;;  %v6292_v11 = vpop.permute.xlu0 %6291 }
 0x30b   : > { %v10062_v36 = vsel %vm12463_vm13, %v12462_v62, %v3319_v47  ;;  %vm12464_vm14 = vcmask 392192   ;;  %v12465_v57 = vrot.slane %v10039_v38, 2  ;;  %v3455_v10 = vsel %vm12413_vm15, %v9858_v44, 0.0 }
 0x30c   : > { %v4453_v20 = vsel %vm12464_vm14, %v4421_v55, %v6253_v63  ;;  %vm12467_vm4 = vmmov %vm12464_vm14  ;;  %v10077_v0 = vadd.f32 %v9442_v42, %v2861_v25  ;;  %v6510_v39 = vpack.i.bf16 %v10062_v36, %v3388_v7  ;;  %vm12468_vm9 = vcmask 523264  }
 0x30d   : > { %v10073_v16 = vsel %vm12466_vm0, %v3319_v47, %v12465_v57  ;;  %v4454_v62 = vsel %vm12467_vm4, %v4422_v52, %v6254_v32  ;;  %vm12469_vm13 = vmmov %vm12468_vm9  ;;  %v6490_v63 = vpack.i.bf16 %v9782_v23, %v3415_v22  ;;  %v6278_v45 = vunpack.i.l.bf16 %v9909_v29  ;;  %v2733_v7 = vpop.f32.mrf.mxu0  ;;  %v6302_v29 = vpop.permute.xlu1 %6301 }
 0x30e   : > { %v4486_v4 = vsel %vm12468_vm9, %v4454_v62, %v6274_v30  ;;  %v4485_v55 = vsel %vm12469_vm13, %v4453_v20, %v6273_v1  ;;  %v3522_v47 = vsel %vm12423_vm1, %v10073_v16, 0.0  ;;  %v6259_v42 = vunpack.i.h.bf16 %v10001_v21  ;;  %6511 = vrot.lane.b32.xlu1 %v6510_v39, %s7003_s15 }
 0x30f   : > { %v2928_v25 = vsub.f32 0.0, %v10077_v0  ;;  %v4628_v44 = vpack.c.bf16 %v3522_v47, %v10062_v36  ;;  %v3193_v30 = vrot.slane %v3085_v3, 7  ;;  %6491 = vrot.lane.b32.xlu0 %v6490_v63, %s7004_s16  ;;  %v6294_v24 = vunpack.i.h.bf16 %v6292_v11  ;;  %v6801_v2 = vpop.eup %6800 }
 0x310   : > { %v6293_v22 = vunpack.i.l.bf16 %v6292_v11  ;;  %v6500_v40 = vpack.i.bf16 %v3455_v10, %v9855_v13  ;;  %v2823_v32 = vadd.f32 %v2822_v17, %v2733_v7  ;;  %vm12470_vm15 = vcmask 654336   ;;  %v6803_v20 = vpop.eup %6802  ;;  %v10107_v17 = vld [vmem:[%s11115_s2] ss:$0 sm:$0xff] }
 0x311   : > { %v2988_v52 = vmul.f32 1.442695, %v2928_v25  ;;  %v4517_v21 = vsel %vm12470_vm15, %v4485_v55, %v6278_v45  ;;  %vm12471_vm14 = vmmov %vm12470_vm15  ;;  %v3023_v57 = vadd.f32 1.0, %v6801_v2  ;;  %vm12472_vm0 = vcmask 130048   ;;  %v10116_v63 = vpop.permute.xlu2 %6341  ;;  %v2825_v45 = vpop.f32.mrf.mxu1 }
 0x312   : > { %v4518_v1 = vsel %vm12471_vm14, %v4486_v4, %v6279_v56  ;;  %5454 = vmatmul.msk.bf16.gmra.mxu3 %vm12472_vm0, %v4628_v44  ;;  %v6304_v3 = vunpack.i.h.bf16 %v6302_v29  ;;  %v6303_v62 = vunpack.i.l.bf16 %v6302_v29  ;;  %6501 = vrot.lane.b32.xlu2 %v6500_v40, %s7006_s18  ;;  %vm12473_vm4 = vcmask 785408   ;;  %v10124_v44 = vld [vmem:[%s11116_s3] ss:$0 sm:$0xff] }
 0x313   : > { %v4549_v39 = vsel %vm12473_vm4, %v4517_v21, %v6293_v22  ;;  %v10102_v13 = vmul.f32 %v6803_v20, %v9977_v28  ;;  %6804 = vpow2.f32 %v2988_v52  ;;  %v2862_v56 = vmul.f32 %v10107_v17, %v2823_v32  ;;  %vm12474_vm9 = vmmov %vm12473_vm4  ;;  %v10144_v32 = vpop.permute.xlu0 %6306 }
 0x314   : > { %v4550_v10 = vsel %vm12474_vm9, %v4518_v1, %v6294_v24  ;;  %v12475_v4 = vrot.slane %v10013_v34, 7  ;;  %vm12476_vm13 = vcmask 1040384   ;;  %6806 = vrcp.f32 %v3023_v57 }
 0x315   : > { %vm12478_vm15 = vcmask 916480   ;;  %v3195_v25 = vrot.slane %v10102_v13, 7  ;;  %v10127_v34 = vadd.f32 %v10124_v44, %v2862_v56  ;;  %v3486_v11 = vsel %vm12458_vm11, %v9813_v53, 0.0  ;;  %vm12480_vm0 = vmmov %vm12476_vm13 }
 0x316   : > { %v10114_v55 = vsel %vm12476_vm13, %v12475_v4, %v3193_v30  ;;  %v4581_v28 = vsel %vm12478_vm15, %v4549_v39, %v6303_v62  ;;  %vm12479_vm14 = vmmov %vm12478_vm15  ;;  %v6515_v24 = vpack.i.bf16 %v10010_v49, %v9974_v46  ;;  %v6283_v22 = vunpack.i.l.bf16 %v9964_v5  ;;  %v12481_v49 = vld [vmem:[#allocation116_spill] sm:$0xff]  ;;  %v10156_v39 = vpop.permute.xlu1 %6316 }
 0x317   : > { %12477 = vst [vmem:[#allocation140_spill] sm:$0xff] %v10114_v55  ;;  %v4582_v47 = vsel %vm12479_vm14, %v4550_v10, %v6304_v3  ;;  %v3248_v7 = vsel %vm12013_vm3, %v9198_v48, 0.0  ;;  %v6505_v40 = vpack.i.bf16 %v9881_v60, %v3486_v11  ;;  %v10140_v52 = vsel %vm12480_vm0, %v3193_v30, %v3195_v25  ;;  %v2736_v48 = vpop.f32.mrf.mxu0 }
 0x318   : > { %v4613_v2 = vpack.c.bf16 %v4582_v47, %v4581_v28  ;;  %v2929_v29 = vsub.f32 0.0, %v10127_v34  ;;  %6516 = vrot.lane.b32.xlu1 %v6515_v24, %s7008_s20  ;;  %vm12482_vm4 = vnez %v12481_v49  ;;  %v11516_v21 = vrot.slane %v10114_v55, 1 }
 0x319   : > { %v3417_v46 = vsel %vm12482_vm4, %v9813_v53, 0.0  ;;  %vm12483_vm9 = vcmask 130048   ;;  %6506 = vrot.lane.b32.xlu0 %v6505_v40, %s7007_s19  ;;  %v3580_v1 = vrot.slane %v10039_v38, 1  ;;  %v11517_v20 = vrot.slane %v10140_v52, 2  ;;  %v6805_v57 = vpop.eup %6804 }
 0x31a   : > { %v4392_v37 = vsel %vm12483_vm9, %v3248_v7, %v6259_v42  ;;  %v6520_v30 = vpack.i.bf16 %v9881_v60, %v3417_v46  ;;  %v6264_v3 = vunpack.i.h.bf16 %v9795_v6  ;;  %v2990_v62 = vmul.f32 1.442695, %v2929_v29  ;;  %4764 = vmatmul.bf16.gmra.mxu2 %v4613_v2  ;;  %v6807_v42 = vpop.eup %6806  ;;  %vm12484_vm3 = vmmov %vm12483_vm9  ;;  %v10171_v7 = vpop.f32.mrf.mxu3 }
 0x31b   : > { %v2826_v13 = vadd.f32 %v2825_v45, %v2736_v48  ;;  %v3323_v56 = vrot.slane %v10114_v55, 2  ;;  %v4393_v10 = vsel %vm12484_vm3, %v9248_v35, %v6283_v22  ;;  %v6288_v4 = vunpack.i.l.bf16 %v10045_v12  ;;  %v10174_v22 = vpop.permute.xlu2 %6361 }
 0x31c   : > { %v3024_v28 = vadd.f32 1.0, %v6805_v57  ;;  %6521 = vrot.lane.b32.xlu2 %v6520_v30, %s7004_s16  ;;  %vm12485_vm13 = vcmask 1046528   ;;  %v3087_v47 = vmul.f32 %v6807_v42, %v10029_v26  ;;  %vm12486_vm15 = vcmask 261120  }
 0x31d   : > { %v10166_v6 = vsel %vm12485_vm13, %v3580_v1, %v11516_v21  ;;  %v4423_v45 = vsel %vm12486_vm15, %v4392_v37, %v6264_v3  ;;  %6808 = vpow2.f32 %v2990_v62  ;;  %v2863_v11 = vmul.f32 %v10107_v17, %v2826_v13  ;;  %vm12488_vm14 = vmmov %vm12485_vm13  ;;  %v2827_v62 = vpop.f32.mrf.mxu1 }
 0x31e   : > { %v6298_v35 = vunpack.i.l.bf16 %v10021_v19  ;;  %6810 = vrcp.f32 %v3024_v28  ;;  %v12487_v40 = vrot.slane %v9986_v41, 1  ;;  %vm12489_vm0 = vcmask 1045504   ;;  %vm12492_vm3 = vmmov %vm12486_vm15 }
 0x31f   : > { %v10184_v26 = vsel %vm12489_vm0, %v3323_v56, %v11517_v20  ;;  %v3197_v29 = vrot.slane %v3087_v47, 7  ;;  %v10187_v46 = vadd.f32 %v10124_v44, %v2863_v11  ;;  %v12490_v48 = vrot.slane %v10039_v38, 2  ;;  %vm12491_vm9 = vmmov %vm12489_vm0  ;;  %v12494_v47 = vld [vmem:[#allocation90_spill] sm:$0xff]  ;;  %v2738_v11 = vpop.f32.mrf.mxu0  ;;  %v10214_v20 = vpop.permute.xlu1 %6326 }
 0x320   : > { %v10179_v2 = vsel %vm12488_vm14, %v12487_v40, %v3580_v1  ;;  %v6299_v1 = vunpack.i.h.bf16 %v10021_v19  ;;  %v4424_v57 = vsel %vm12492_vm3, %v4393_v10, %v6288_v4  ;;  %v3524_v3 = vsel %vm12460_vm8, %v10184_v26, 0.0 }
 0x321   : > { %v6530_v37 = vpack.i.bf16 %v10166_v6, %v10179_v2  ;;  %v10194_v30 = vsel %vm12491_vm9, %v12490_v48, %v3323_v56  ;;  %vm12493_vm13 = vcmask 1040384   ;;  %v2930_v42 = vsub.f32 0.0, %v10187_v46  ;;  %v6312_v56 = vpop.permute.xlu0 %6311  ;;  %6526 = vrot.lane.b32.xlu0 %v6515_v24, %s7005_s17 }
 0x322   : > { %v10202_v13 = vsel %vm12493_vm13, %v3195_v25, %v3197_v29  ;;  %v4630_v28 = vpack.c.bf16 %v3524_v3, %v10194_v30  ;;  %vm12495_vm15 = vnez %v12494_v47  ;;  %v6314_v10 = vunpack.i.h.bf16 %v6312_v56 }
 0x323   : > { %6531 = vrot.lane.b32.xlu1 %v6530_v37, %s7002_s14  ;;  %v3390_v19 = vsel %vm12495_vm15, %v10073_v16, 0.0  ;;  %v6313_v4 = vunpack.i.l.bf16 %v6312_v56  ;;  %v3327_v25 = vrot.slane %v10202_v13, 2  ;;  %v6809_v48 = vpop.eup %6808  ;;  %vm12496_vm14 = vcmask 392192  }
 0x324   : > { %v6540_v40 = vpack.i.bf16 %v10194_v30, %v3390_v19  ;;  %v4455_v21 = vsel %vm12496_vm14, %v4423_v45, %v6298_v35  ;;  %v2992_v37 = vmul.f32 1.442695, %v2930_v42  ;;  %v2828_v3 = vadd.f32 %v2827_v62, %v2738_v11  ;;  %v6811_v60 = vpop.eup %6810  ;;  %vm12498_vm9 = vmmov %vm12496_vm14  ;;  %v10228_v19 = vpop.permute.xlu2 %6366 }
 0x325   : > { %v3025_v23 = vadd.f32 1.0, %v6809_v48  ;;  %v6319_v9 = vunpack.i.h.bf16 %v10156_v39  ;;  %vm12497_vm0 = vcmask 130048   ;;  %v4456_v24 = vsel %vm12498_vm9, %v4424_v57, %v6299_v1 }
 0x326   : > { %5455 = vmatmul.msk.bf16.gmra.mxu3 %vm12497_vm0, %v4630_v28  ;;  %6541 = vrot.lane.b32.xlu2 %v6540_v40, %s7003_s15  ;;  %v3457_v56 = vsel %vm12423_vm1, %v9971_v18, 0.0  ;;  %v3088_v45 = vmul.f32 %v6811_v60, %v10077_v0  ;;  %6812 = vpow2.f32 %v2992_v37  ;;  %vm12499_vm3 = vcmask 523264   ;;  %v10242_v0 = vpop.f32.mrf.mxu3 }
 0x327   : > { %v4487_v35 = vsel %vm12499_vm3, %v4455_v21, %v6313_v4  ;;  %v2864_v62 = vmul.f32 %v10107_v17, %v2828_v3  ;;  %6814 = vrcp.f32 %v3025_v23  ;;  %v6318_v42 = vunpack.i.l.bf16 %v10156_v39  ;;  %vm12500_vm13 = vmmov %vm12499_vm3 }
 0x328   : > { %v4488_v28 = vsel %vm12500_vm13, %v4456_v24, %v6314_v10  ;;  %v12501_v1 = vrot.slane %v10140_v52, 2  ;;  %vm12502_vm14 = vcmask 1045504   ;;  %v3199_v43 = vrot.slane %v3088_v45, 7 }
 0x329   : > { %v10236_v60 = vadd.f32 %v10124_v44, %v2864_v62  ;;  %v3392_v18 = vsel %vm12270_vm12, %v10184_v26, 0.0  ;;  %v6535_v23 = vpack.i.bf16 %v3457_v56, %v9902_v31  ;;  %v6324_v17 = vunpack.i.h.bf16 %v10068_v51  ;;  %v6332_v11 = vpop.permute.xlu0 %6331  ;;  %v10260_v56 = vpop.permute.xlu1 %6336 }
 0x32a   : > { %v10233_v57 = vsel %vm12502_vm14, %v12501_v1, %v3327_v25  ;;  %v6323_v21 = vunpack.i.l.bf16 %v10068_v51  ;;  %vm12503_vm1 = vcmask 654336   ;;  %vm12504_vm0 = vcmask 1040384  }
 0x32b   : > { %v6555_v39 = vpack.i.bf16 %v10233_v57, %v3392_v18  ;;  %v4519_v10 = vsel %vm12503_vm1, %v4487_v35, %v6318_v42  ;;  %v10249_v4 = vsel %vm12504_vm0, %v3197_v29, %v3199_v43  ;;  %v2931_v44 = vsub.f32 0.0, %v10236_v60  ;;  %6536 = vrot.lane.b32.xlu1 %v6535_v23, %s7006_s18  ;;  %vm12505_vm9 = vmmov %vm12503_vm1 }
 0x32c   : > { %v3488_v31 = vsel %vm12482_vm4, %v9929_v8, 0.0  ;;  %v4520_v40 = vsel %vm12505_vm9, %v4488_v28, %v6319_v9  ;;  %v6334_v51 = vunpack.i.h.bf16 %v6332_v11  ;;  %v6333_v48 = vunpack.i.l.bf16 %v6332_v11  ;;  %v6813_v3 = vpop.eup %6812 }
 0x32d   : > { %6556 = vrot.lane.b32.xlu0 %v6555_v39, %s7003_s15  ;;  %v6545_v37 = vpack.i.bf16 %v9986_v41, %v3488_v31  ;;  %v3329_v29 = vrot.slane %v10249_v4, 2  ;;  %v2994_v24 = vmul.f32 1.442695, %v2931_v44  ;;  %vm12506_vm3 = vcmask 785408   ;;  %v6815_v62 = vpop.eup %6814  ;;  %v10275_v39 = vpop.permute.xlu2 %6371 }
 0x32e   : > { %v4551_v45 = vsel %vm12506_vm3, %v4519_v10, %v6323_v21  ;;  %v3584_v35 = vrot.slane %v10140_v52, 1  ;;  %v3026_v42 = vadd.f32 1.0, %v6813_v3  ;;  %vm12507_vm13 = vmmov %vm12506_vm3  ;;  %vm12508_vm14 = vcmask 916480  }
 0x32f   : > { %6546 = vrot.lane.b32.xlu2 %v6545_v37, %s7007_s19  ;;  %v4552_v9 = vsel %vm12507_vm13, %v4520_v40, %v6324_v17  ;;  %v4583_v28 = vsel %vm12508_vm14, %v4551_v45, %v6333_v48  ;;  %v3586_v1 = vrot.slane %v10202_v13, 1  ;;  %v3089_v18 = vmul.f32 %v6815_v62, %v10127_v34  ;;  %vm12509_vm1 = vmmov %vm12508_vm14  ;;  %v12511_v17 = vld [vmem:[#allocation114_spill] sm:$0xff] }
 0x330   : > { %6816 = vpow2.f32 %v2994_v24  ;;  %v4584_v23 = vsel %vm12509_vm1, %v4552_v9, %v6334_v51  ;;  %vm12510_vm0 = vcmask 1045504   ;;  %vm12512_vm9 = vnez %v12511_v17 }
 0x331   : > { %v10273_v21 = vsel %vm12510_vm0, %v3327_v25, %v3329_v29  ;;  %6818 = vrcp.f32 %v3026_v42  ;;  %v4615_v10 = vpack.c.bf16 %v4584_v23, %v4583_v28  ;;  %v3419_v44 = vsel %vm12512_vm9, %v9929_v8, 0.0  ;;  %v6347_v3 = vpop.permute.xlu0 %6346 }
 0x332   : > { %v3201_v11 = vrot.slane %v3089_v18, 7  ;;  %v6565_v31 = vpack.i.bf16 %v9986_v41, %v3419_v44  ;;  %v3526_v34 = vsel %vm12495_vm15, %v10273_v21, 0.0  ;;  %v6560_v25 = vpack.i.bf16 %v10179_v2, %v10019_v59  ;;  %v10301_v2 = vpop.f32.mrf.mxu3 }
 0x333   : > { %4769 = vmatmul.bf16.gmra.mxu2 %v4615_v10  ;;  %v4632_v40 = vpack.c.bf16 %v3526_v34, %v10233_v57  ;;  %vm12513_vm3 = vcmask 1046528   ;;  %v6284_v48 = vunpack.i.h.bf16 %v9964_v5  ;;  %vm12514_vm13 = vcmask 1040384  }
 0x334   : > { %v10288_v51 = vsel %vm12513_vm3, %v3584_v35, %v3586_v1  ;;  %v10292_v37 = vsel %vm12514_vm13, %v3199_v43, %v3201_v11  ;;  %6566 = vrot.lane.b32.xlu1 %v6565_v31, %s7004_s16  ;;  %v12515_v24 = vrot.slane %v10114_v55, 1  ;;  %vm12516_vm14 = vmmov %vm12513_vm3  ;;  %v3588_v59 = vrot.slane %v10249_v4, 1 }
 0x335   : > { %v6308_v62 = vunpack.i.l.bf16 %v10144_v32  ;;  %6561 = vrot.lane.b32.xlu0 %v6560_v25, %s7008_s20  ;;  %v11521_v43 = vrot.slane %v10292_v37, 1  ;;  %v6289_v9 = vunpack.i.h.bf16 %v10045_v12  ;;  %v6328_v28 = vunpack.i.l.bf16 %v10214_v20  ;;  %vm12519_vm13 = vmmov %vm12513_vm3 }
 0x336   : > { %v10298_v45 = vsel %vm12516_vm14, %v12515_v24, %v3584_v35  ;;  %v6817_v42 = vpop.eup %6816  ;;  %v10310_v35 = vpop.permute.xlu1 %6351  ;;  %v3250_v23 = vsel %vm12335_vm6, %v9275_v58, 0.0  ;;  %v6339_v44 = vunpack.i.h.bf16 %v10260_v56  ;;  %v6338_v31 = vunpack.i.l.bf16 %v10260_v56 }
 0x337   : > { %v6550_v5 = vpack.i.bf16 %v10288_v51, %v10298_v45  ;;  %v6819_v18 = vpop.eup %6818  ;;  %v3027_v10 = vadd.f32 1.0, %v6817_v42  ;;  %vm12517_vm1 = vcmask 130048   ;;  %v10322_v24 = vsel %vm12513_vm3, %v3586_v1, %v3588_v59  ;;  %v10331_v56 = vpop.permute.xlu2 %6391 }
 0x338   : > { %5456 = vmatmul.msk.bf16.gmra.mxu3 %vm12517_vm1, %v4632_v40  ;;  %vm12518_vm0 = vmmov %vm12517_vm1  ;;  %v3090_v34 = vmul.f32 %v6819_v18, %v10187_v46  ;;  %v10327_v14 = vsel %vm12519_vm13, %v3588_v59, %v11521_v43  ;;  %v3490_v46 = vsel %vm12512_vm9, %v10039_v38, 0.0  ;;  %vm12521_vm14 = vcmask 261120  }
 0x339   : > { %6551 = vrot.lane.b32.xlu2 %v6550_v5, %s7002_s14  ;;  %v4394_v12 = vsel %vm12518_vm0, %v3250_v23, %v6284_v48  ;;  %vm12520_vm6 = vmmov %vm12518_vm0  ;;  %6820 = vrcp.f32 %v3027_v10  ;;  %v6575_v40 = vpack.i.bf16 %v10327_v14, %v10322_v24  ;;  %v6585_v59 = vpack.i.bf16 %v10114_v55, %v3490_v46 }
 0x33a   : > { %v4395_v58 = vsel %vm12520_vm6, %v9313_v27, %v6308_v62  ;;  %v4425_v1 = vsel %vm12521_vm14, %v4394_v12, %v6289_v9  ;;  %v3203_v48 = vrot.slane %v3090_v34, 7  ;;  %vm12522_vm1 = vmmov %vm12521_vm14  ;;  %v6344_v42 = vunpack.i.h.bf16 %v10116_v63  ;;  %v10358_v46 = vpop.f32.mrf.mxu3 }
 0x33b   : > { %v4426_v5 = vsel %vm12522_vm1, %v4395_v58, %v6328_v28  ;;  %vm12523_vm0 = vcmask 392192   ;;  %v3331_v18 = vrot.slane %v10292_v37, 2  ;;  %v6343_v23 = vunpack.i.l.bf16 %v10116_v63  ;;  %v10350_v28 = vpop.permute.xlu0 %6376 }
 0x33c   : > { %v4457_v27 = vsel %vm12523_vm0, %v4425_v1, %v6338_v31  ;;  %vm12524_vm3 = vmmov %vm12523_vm0  ;;  %vm12525_vm13 = vcmask 1040384   ;;  %v6349_v43 = vunpack.i.h.bf16 %v6347_v3  ;;  %v6348_v9 = vunpack.i.l.bf16 %v6347_v3  ;;  %6586 = vrot.lane.b32.xlu1 %v6585_v59, %s7007_s19 }
 0x33d   : > { %v4458_v62 = vsel %vm12524_vm3, %v4426_v5, %v6339_v44  ;;  %v10347_v10 = vsel %vm12525_vm13, %v3201_v11, %v3203_v48  ;;  %6576 = vrot.lane.b32.xlu0 %v6575_v40, %s7002_s14  ;;  %v6369_v31 = vunpack.i.h.bf16 %v10228_v19  ;;  %v6368_v44 = vunpack.i.l.bf16 %v10228_v19 }
 0x33e   : > { %v11523_v12 = vrot.slane %v10347_v10, 2  ;;  %vm12526_vm6 = vcmask 523264   ;;  %v6357_v11 = vpop.permute.xlu1 %6356  ;;  %v3459_v40 = vsel %vm12460_vm8, %v10073_v16, 0.0  ;;  %vm12528_vm1 = vcmask 1045504  }
 0x33f   : > { %v4489_v34 = vsel %vm12526_vm6, %v4457_v27, %v6343_v23  ;;  %vm12527_vm14 = vmmov %vm12526_vm6  ;;  %v6821_v58 = vpop.eup %6820  ;;  %v6359_v3 = vunpack.i.h.bf16 %v6357_v11  ;;  %v6358_v1 = vunpack.i.l.bf16 %v6357_v11  ;;  %v10367_v19 = vsel %vm12528_vm1, %v3329_v29, %v3331_v18 }
 0x340   : > { %v4490_v63 = vsel %vm12527_vm14, %v4458_v62, %v6344_v42  ;;  %v3091_v5 = vmul.f32 %v6821_v58, %v10236_v60  ;;  %vm12529_vm0 = vcmask 654336   ;;  %vm12531_vm13 = vmmov %vm12528_vm1  ;;  %vm12533_vm8 = vnez %v12532_v54 }
 0x341   : > { %6571 = vrot.lane.b32.xlu2 %v6560_v25, %s7005_s17  ;;  %v4522_v59 = vsel %vm12529_vm0, %v4490_v63, %v6349_v43  ;;  %vm12530_vm3 = vmmov %vm12529_vm0  ;;  %v10375_v27 = vsel %vm12531_vm13, %v3331_v18, %v11523_v12  ;;  %v10377_v25 = vpop.permute.xlu2 %6411  ;;  %v3394_v16 = vsel %vm12533_vm8, %v10273_v21, 0.0  ;;  %vm12534_vm6 = vcmask 785408  }
 0x342   : > { %v4521_v42 = vsel %vm12530_vm3, %v4489_v34, %v6348_v9  ;;  %v3528_v29 = vsel %vm12270_vm12, %v10375_v27, 0.0  ;;  %vm12535_vm14 = vmmov %vm12534_vm6  ;;  %v6600_v62 = vpack.i.bf16 %v10367_v19, %v3394_v16  ;;  %v6580_v23 = vpack.i.bf16 %v3459_v40, %v10062_v36  ;;  %v10405_v40 = vpop.f32.mrf.mxu3 }
 0x343   : > { %v4553_v60 = vsel %vm12534_vm6, %v4521_v42, %v6358_v1  ;;  %v4554_v43 = vsel %vm12535_vm14, %v4522_v59, %v6359_v3  ;;  %v4634_v18 = vpack.c.bf16 %v3528_v29, %v10367_v19  ;;  %vm12536_vm1 = vcmask 916480   ;;  %v6382_v58 = vpop.permute.xlu0 %6381 }
 0x344   : > { %v4585_v9 = vsel %vm12536_vm1, %v4553_v60, %v6368_v44  ;;  %vm12537_vm0 = vmmov %vm12536_vm1  ;;  %v3205_v63 = vrot.slane %v3091_v5, 7  ;;  %6601 = vrot.lane.b32.xlu1 %v6600_v62, %s7003_s15  ;;  %v6590_v3 = vpack.i.bf16 %v10298_v45, %v10166_v6  ;;  %vm12538_vm3 = vcmask 130048   ;;  %v12541_v6 = vld [vmem:[#allocation113_spill] sm:$0xff] }
 0x345   : > { %v4586_v34 = vsel %vm12537_vm0, %v4554_v43, %v6369_v31  ;;  %6581 = vrot.lane.b32.xlu0 %v6580_v23, %s7006_s18  ;;  %v11522_v36 = vrot.slane %v10347_v10, 1  ;;  %vm12539_vm13 = vcmask 1040384   ;;  %v6353_v59 = vunpack.i.l.bf16 %v10310_v35  ;;  %v12545_v23 = vld [vmem:[#allocation65_spill] sm:$0xff]  ;;  %vm12548_vm0 = vmmov %vm12538_vm3 }
 0x346   : > { %v4617_v11 = vpack.c.bf16 %v4586_v34, %v4585_v9  ;;  %v6387_v1 = vpop.permute.xlu1 %6386  ;;  %v10399_v44 = vsel %vm12539_vm13, %v3203_v48, %v3205_v63  ;;  %vm12540_vm6 = vmmov %vm12539_vm13  ;;  %vm12542_vm14 = vnez %v12541_v6  ;;  %v12543_v16 = vrot.slane %v10292_v37, 1 }
 0x347   : > { %v10402_v31 = vsel %vm12540_vm6, %v3205_v63, 0.0  ;;  %v3421_v45 = vsel %vm12542_vm14, %v10039_v38, 0.0  ;;  %vm12544_vm1 = vcmask 1046528   ;;  %v3430_v60 = vrot.slane %v10399_v44, 2  ;;  %v12547_v63 = vld [vmem:[#allocation68_spill] sm:$0xff] }
 0x348   : > { %5457 = vmatmul.msk.bf16.gmra.mxu3 %vm12538_vm3, %v4634_v18  ;;  %4774 = vmatmul.bf16.gmra.mxu2 %v4617_v11  ;;  %v11527_v42 = vrot.slane %v10402_v31, 2  ;;  %v6595_v48 = vpack.i.bf16 %v10114_v55, %v3421_v45  ;;  %v10420_v29 = vsel %vm12544_vm1, %v12543_v16, %v11522_v36  ;;  %v6309_v43 = vunpack.i.h.bf16 %v10144_v32 }
 0x349   : > { %6591 = vrot.lane.b32.xlu2 %v6590_v3, %s7008_s20  ;;  %v10407_v5 = vpop.permute.xlu2 %6431  ;;  %v6329_v62 = vunpack.i.h.bf16 %v10214_v20  ;;  %v3252_v9 = vsel %vm12350_vm5, %v12545_v23, 0.0  ;;  %v6363_v34 = vunpack.i.l.bf16 %v10174_v22  ;;  %v4397_v11 = vsel %vm12548_vm0, %v12547_v63, %v6353_v59  ;;  %vm12551_vm5 = vmmov %vm12548_vm0 }
 0x34a   : > { %v6384_v16 = vunpack.i.h.bf16 %v6382_v58  ;;  %v6383_v36 = vunpack.i.l.bf16 %v6382_v58  ;;  %v3396_v20 = vsel %vm12304_vm2, %v10375_v27, 0.0  ;;  %vm12550_vm3 = vcmask 1045504  }
 0x34b   : > { %v10434_v32 = vpop.permute.xlu0 %6396  ;;  %v4396_v23 = vsel %vm12551_vm5, %v3252_v9, %v6309_v43  ;;  %vm12552_vm13 = vcmask 261120   ;;  %v3492_v63 = vsel %vm12542_vm14, %v10140_v52, 0.0  ;;  %v6389_v55 = vunpack.i.h.bf16 %v6387_v1  ;;  %vm12555_vm1 = vmmov %vm12550_vm3 }
 0x34c   : > { %3654 = vrot.lane.b32.xlu1 %v10420_v29, %s7002_s14  ;;  %v4427_v59 = vsel %vm12552_vm13, %v4396_v23, %v6329_v62  ;;  %vm12553_vm6 = vmmov %vm12552_vm13  ;;  %v6388_v41 = vunpack.i.l.bf16 %v6387_v1  ;;  %v12554_v38 = vrot.slane %v10347_v10, 2  ;;  %v10461_v62 = vpop.f32.mrf.mxu3  ;;  %vm12556_vm0 = vcmask 392192  }
 0x34d   : > { %6596 = vrot.lane.b32.xlu0 %v6595_v48, %s7004_s16  ;;  %v10442_v48 = vsel %vm12550_vm3, %v3430_v60, %v11527_v42  ;;  %v4428_v18 = vsel %vm12553_vm6, %v4397_v11, %v6363_v34  ;;  %vm12557_vm3 = vmmov %vm12556_vm0  ;;  %v6615_v11 = vpack.i.bf16 %v10202_v13, %v3492_v63  ;;  %v3461_v1 = vsel %vm12495_vm15, %v10184_v26, 0.0 }
 0x34e   : > { %v6407_v45 = vpop.permute.xlu1 %6406  ;;  %v10456_v42 = vsel %vm12555_vm1, %v12554_v38, %v3430_v60  ;;  %v3530_v43 = vsel %vm12533_vm8, %v10442_v48, 0.0  ;;  %v4460_v9 = vsel %vm12556_vm0, %v4428_v18, %v6384_v16  ;;  %v4459_v34 = vsel %vm12557_vm3, %v4427_v59, %v6383_v36 }
 0x34f   : > { %v4636_v38 = vpack.c.bf16 %v3530_v43, %v10456_v42  ;;  %vm12558_vm5 = vcmask 523264   ;;  %v6610_v36 = vpack.i.bf16 %v3461_v1, %v10194_v30  ;;  %v6394_v16 = vunpack.i.h.bf16 %v10331_v56 }
 0x350   : > { %v4491_v60 = vsel %vm12558_vm5, %v4459_v34, %v6388_v41  ;;  %vm12559_vm13 = vmmov %vm12558_vm5  ;;  %v6393_v59 = vunpack.i.l.bf16 %v10331_v56  ;;  %vm12560_vm6 = vcmask 130048   ;;  %v6354_v47 = vunpack.i.h.bf16 %v10310_v35 }
 0x351   : > { %3778 = vrot.lane.b32.xlu2 %v3396_v20, %s7003_s15  ;;  %v10448_v58 = vpop.permute.xlu2 %6451  ;;  %v4492_v20 = vsel %vm12559_vm13, %v4460_v9, %v6389_v55  ;;  %v6409_v41 = vunpack.i.h.bf16 %v6407_v45  ;;  %v6408_v63 = vunpack.i.l.bf16 %v6407_v45  ;;  %vm12561_vm15 = vcmask 654336   ;;  %v12567_v45 = vld [vmem:[#allocation125_spill] sm:$0xff] }
 0x352   : > { %v4523_v43 = vsel %vm12561_vm15, %v4491_v60, %v6393_v59  ;;  %vm12562_vm1 = vmmov %vm12561_vm15  ;;  %vm12563_vm0 = vcmask 785408   ;;  %v6620_v34 = vpack.i.bf16 %v10322_v24, %v10288_v51  ;;  %v6373_v35 = vunpack.i.l.bf16 %v10275_v39 }
 0x353   : > { %v6402_v26 = vpop.permute.xlu0 %6401  ;;  %v4524_v30 = vsel %vm12562_vm1, %v4492_v20, %v6394_v16  ;;  %vm12564_vm3 = vmmov %vm12563_vm0  ;;  %vm12565_vm5 = vcmask 916480   ;;  %v6378_v60 = vunpack.i.l.bf16 %v10350_v28  ;;  %v6414_v51 = vunpack.i.h.bf16 %v10377_v25 }
 0x354   : > { %6606 = vrot.lane.b32.xlu1 %v6590_v3, %s7005_s17  ;;  %v6404_v3 = vunpack.i.h.bf16 %v6402_v26  ;;  %v6403_v18 = vunpack.i.l.bf16 %v6402_v26  ;;  %vm12566_vm13 = vmmov %vm12565_vm5  ;;  %v10498_v16 = vpop.f32.mrf.mxu3  ;;  %v6413_v24 = vunpack.i.l.bf16 %v10377_v25  ;;  %v12569_v26 = vld [vmem:[#allocation120_spill] sm:$0xff]  ;;  %v3463_v25 = vsel %vm12270_vm12, %v10273_v21, 0.0 }
 0x355   : > { %6616 = vrot.lane.b32.xlu0 %v6615_v11, %s7007_s19  ;;  %vm12570_vm15 = vnez %v12569_v26  ;;  %vm12573_vm1 = vcmask 261120   ;;  %v12578_v21 = vrot.slane %v10402_v31, 2  ;;  %vm12579_vm12 = vcmask 1045504  }
 0x356   : > { %v10474_v23 = vpop.permute.xlu1 %6421  ;;  %v4555_v9 = vsel %vm12563_vm0, %v4523_v43, %v6403_v18  ;;  %v4556_v56 = vsel %vm12564_vm3, %v4524_v30, %v6404_v3  ;;  %v3423_v3 = vsel %vm12570_vm15, %v10140_v52, 0.0  ;;  %v6364_v18 = vunpack.i.h.bf16 %v10174_v22  ;;  %v12571_v43 = vld [vmem:[#allocation16_spill] sm:$0xff]  ;;  %vm12574_vm0 = vmmov %vm12573_vm1 }
 0x357   : > { %v4587_v11 = vsel %vm12565_vm5, %v4555_v9, %v6408_v63  ;;  %v4588_v1 = vsel %vm12566_vm13, %v4556_v56, %v6409_v41  ;;  %v6625_v63 = vpack.i.bf16 %v10202_v13, %v3423_v3  ;;  %vm12575_vm3 = vcmask 392192  }
 0x358   : > { %5458 = vmatmul.msk.bf16.gmra.mxu3 %vm12560_vm6, %v4636_v38  ;;  %v4619_v20 = vpack.c.bf16 %v4588_v1, %v4587_v11  ;;  %vm12576_vm5 = vmmov %vm12575_vm3  ;;  %vm12580_vm13 = vcmask 523264   ;;  %v3262_v33 = vsel %vm12512_vm9, %v9813_v53, 0.0 }
 0x359   : > { %6611 = vrot.lane.b32.xlu2 %v6610_v36, %s7006_s18  ;;  %v10482_v55 = vpop.permute.xlu2 %6456  ;;  %v3254_v36 = vsel %vm12352_vm7, %v12567_v45, 0.0  ;;  %vm12572_vm7 = vmmov %vm12560_vm6 }
 0x35a   : > { %v4398_v59 = vsel %vm12560_vm6, %v3254_v36, %v6354_v47  ;;  %4779 = vmatmul.bf16.gmra.mxu2 %v4619_v20  ;;  %v4399_v30 = vsel %vm12572_vm7, %v12571_v43, %v6373_v35  ;;  %v6635_v36 = vpack.i.bf16 %v3463_v25, %v10233_v57  ;;  %v6645_v20 = vpack.i.bf16 %v10420_v29, %v10327_v14  ;;  %vm12581_vm6 = vmmov %vm12580_vm13 }
 0x35b   : > { %v6417_v47 = vpop.permute.xlu0 %6416  ;;  %v4430_v9 = vsel %vm12573_vm1, %v4399_v30, %v6378_v60  ;;  %v4429_v56 = vsel %vm12574_vm0, %v4398_v59, %v6364_v18  ;;  %v3499_v60 = vsel %vm12579_vm12, %v12578_v21, %v12577_v61  ;;  %v3494_v57 = vsel %vm12570_vm15, %v10249_v4, 0.0 }
 0x35c   : > { %6621 = vrot.lane.b32.xlu1 %v6620_v34, %s7008_s20  ;;  %v6418_v11 = vunpack.i.l.bf16 %v6417_v47  ;;  %v4461_v22 = vsel %vm12575_vm3, %v4429_v56, %v6413_v24  ;;  %v4462_v1 = vsel %vm12576_vm5, %v4430_v9, %v6414_v51  ;;  %v12582_v51 = vld [vmem:[#allocation69_spill] sm:$0xff]  ;;  %vm12583_vm7 = vcmask 654336   ;;  %v10541_v29 = vpop.f32.mrf.mxu3 }
 0x35d   : > { %6631 = vrot.lane.b32.xlu0 %v6620_v34, %s7005_s17  ;;  %v6419_v34 = vunpack.i.h.bf16 %v6417_v47  ;;  %v4638_v3 = vpack.c.bf16 %v12582_v51, %v3499_v60  ;;  %vm12584_vm1 = vmmov %vm12583_vm7  ;;  %v6640_v14 = vpack.i.bf16 %v10292_v37, %v3494_v57  ;;  %v6434_v43 = vunpack.i.h.bf16 %v10407_v5 }
 0x35e   : > { %v6427_v41 = vpop.permute.xlu1 %6426  ;;  %v4493_v24 = vsel %vm12581_vm6, %v4461_v22, %v6418_v11  ;;  %v6433_v30 = vunpack.i.l.bf16 %v10407_v5  ;;  %vm12585_vm0 = vcmask 130048   ;;  %v3465_v56 = vsel %vm12533_vm8, %v10375_v27, 0.0 }
 0x35f   : > { %v6429_v35 = vunpack.i.h.bf16 %v6427_v41  ;;  %v6428_v38 = vunpack.i.l.bf16 %v6427_v41  ;;  %v4494_v59 = vsel %vm12580_vm13, %v4462_v1, %v6419_v34  ;;  %vm12586_vm3 = vcmask 785408   ;;  %v12588_v1 = vld [vmem:[#allocation119_spill] sm:$0xff]  ;;  %vm12593_vm8 = vmmov %vm12585_vm0 }
 0x360   : > { %vm12587_vm5 = vmmov %vm12586_vm3  ;;  %vm12589_vm12 = vnez %v12588_v1  ;;  %vm12590_vm13 = vcmask 916480   ;;  %v6374_v61 = vunpack.i.h.bf16 %v10275_v39  ;;  %v6660_v27 = vpack.i.bf16 %v3465_v56, %v10367_v19  ;;  %v4750_v51 = vpop.f32.mrf.mxu2 }
 0x361   : > { %6626 = vrot.lane.b32.xlu2 %v6625_v63, %s7004_s16  ;;  %v10519_v45 = vpop.permute.xlu2 %6461  ;;  %v4526_v18 = vsel %vm12583_vm7, %v4494_v59, %v6429_v35  ;;  %v4525_v41 = vsel %vm12584_vm1, %v4493_v24, %v6428_v38  ;;  %v3425_v5 = vsel %vm12589_vm12, %v10249_v4, 0.0  ;;  %vm12591_vm6 = vmmov %vm12590_vm13  ;;  %v6379_v21 = vunpack.i.h.bf16 %v10350_v28  ;;  %v10569_v59 = vld [vmem:[%s11118_s5] ss:$0 sm:$0xff]  ;;  %v12592_v24 = vld [vmem:[#allocation126_spill] sm:$0xff] }
 0x362   : > { %v4557_v11 = vsel %vm12586_vm3, %v4525_v41, %v6433_v30  ;;  %v4558_v22 = vsel %vm12587_vm5, %v4526_v18, %v6434_v43  ;;  %v6464_v60 = vunpack.i.h.bf16 %v10519_v45  ;;  %v3256_v39 = vsel %vm12127_vm10, %v12592_v24, 0.0  ;;  %v10583_v41 = vld [vmem:[%s11119_s6] ss:$0 sm:$0xff]  ;;  %vm12595_vm7 = vmmov %vm12585_vm0 }
 0x363   : > { %v6437_v47 = vpop.permute.xlu0 %6436  ;;  %v6398_v19 = vunpack.i.l.bf16 %v10434_v32  ;;  %v6423_v28 = vunpack.i.l.bf16 %v10474_v23  ;;  %v4840_v18 = vadd.f32 %v10171_v7, %v4750_v51  ;;  %vm12594_vm10 = vcmask 261120   ;;  %vm12597_vm1 = vmmov %vm12585_vm0 }
 0x364   : > { %6636 = vrot.lane.b32.xlu1 %v6635_v36, %s7006_s18  ;;  %v6439_v25 = vunpack.i.h.bf16 %v6437_v47  ;;  %v6438_v9 = vunpack.i.l.bf16 %v6437_v47  ;;  %v6650_v36 = vpack.i.bf16 %v10292_v37, %v3425_v5  ;;  %v4406_v7 = vsel %vm12595_vm7, %v3262_v33, %v6464_v60  ;;  %vm12598_vm9 = vmmov %vm12594_vm10 }
 0x365   : > { %6646 = vrot.lane.b32.xlu0 %v6645_v20, %s7008_s20  ;;  %v3496_v56 = vsel %vm12589_vm12, %v10347_v10, 0.0  ;;  %vm12601_vm3 = vmmov %vm12598_vm9  ;;  %vm12602_vm5 = vcmask 392192   ;;  %v3941_v60 = vrot.slane %v10402_v31, 1  ;;  %v6459_v24 = vunpack.i.h.bf16 %v10482_v55 }
 0x366   : > { %v10538_v63 = vpop.permute.xlu1 %6441  ;;  %v4589_v35 = vsel %vm12590_vm13, %v4557_v11, %v6438_v9  ;;  %v4590_v38 = vsel %vm12591_vm6, %v4558_v22, %v6439_v25  ;;  %v4922_v9 = vmul.f32 %v10569_v59, %v4840_v18  ;;  %v12596_v11 = vld [vmem:[#allocation18_spill] sm:$0xff]  ;;  %vm12603_vm13 = vmmov %vm12602_vm5  ;;  %vm12604_vm6 = vcmask 523264  }
 0x367   : > { %v4621_v54 = vpack.c.bf16 %v4590_v38, %v4589_v35  ;;  %v4401_v17 = vsel %vm12597_vm1, %v12596_v11, %v6398_v19  ;;  %v6665_v35 = vpack.i.bf16 %v10399_v44, %v3496_v56  ;;  %vm12609_vm1 = vcmask 654336  }
 0x368   : > { %5459 = vmatmul.msk.bf16.gmra.mxu3 %vm12585_vm0, %v4638_v3  ;;  %v4400_v3 = vsel %vm12593_vm8, %v3256_v39, %v6374_v61  ;;  %v4432_v38 = vsel %vm12601_vm3, %v4401_v17, %v6423_v28  ;;  %v4752_v51 = vpop.f32.mrf.mxu2  ;;  %vm12605_vm8 = vmmov %vm12604_vm6  ;;  %vm12611_vm3 = vcmask 785408  }
 0x369   : > { %6641 = vrot.lane.b32.xlu2 %v6640_v14, %s7007_s19  ;;  %v10550_v34 = vpop.permute.xlu2 %6481  ;;  %v4431_v25 = vsel %vm12594_vm10, %v4400_v3, %v6379_v21  ;;  %vm12607_vm10 = vcmask 1046528  }
 0x36a   : > { %4784 = vmatmul.bf16.gmra.mxu2 %v4621_v54  ;;  %v6458_v54 = vunpack.i.l.bf16 %v10482_v55  ;;  %vm12608_vm7 = vmmov %vm12607_vm10 }
 0x36b   : > { %v10577_v57 = vpop.permute.xlu0 %6466 }
 0x36c   : > { %6651 = vrot.lane.b32.xlu1 %v6650_v36, %s7004_s16  ;;  %v6469_v43 = vunpack.i.h.bf16 %v10577_v57  ;;  %v10609_v36 = vadd.f32 %v10583_v41, %v4922_v9  ;;  %v12606_v9 = vrot.slane %v10347_v10, 1 }
 0x36d   : > { %6661 = vrot.lane.b32.xlu0 %v6660_v27, %s7006_s18 }
 0x36e   : > { %v6447_v14 = vpop.permute.xlu1 %6446  ;;  %v10599_v53 = vsel %vm12598_vm9, %v4406_v7, %v6469_v43  ;;  %v4989_v39 = vsub.f32 0.0, %v10609_v36  ;;  %v3939_v43 = vrot.slane %v10399_v44, 1  ;;  %vm12610_vm9 = vmmov %vm12609_vm1 }
 0x36f   : > { %v6449_v30 = vunpack.i.h.bf16 %v6447_v14  ;;  %v6448_v47 = vunpack.i.l.bf16 %v6447_v14  ;;  %v4842_v14 = vadd.f32 %v10242_v0, %v4752_v51 }
 0x370   : > { %v5021_v3 = vmul.f32 1.442695, %v4989_v39  ;;  %v3940_v56 = vsel %vm12607_vm10, %v12606_v9, %v3939_v43  ;;  %v3942_v11 = vsel %vm12608_vm7, %v3939_v43, %v3941_v60  ;;  %v3467_v43 = vsel %vm12304_vm2, %v10442_v48, 0.0 }
 0x371   : > { %6656 = vrot.lane.b32.xlu2 %v6645_v20, %s7005_s17  ;;  %v10601_v22 = vpop.permute.xlu2 %6501  ;;  %v12599_v20 = vld [vmem:[#allocation117_spill] sm:$0xff]  ;;  %v4463_v61 = vsel %vm12602_vm5, %v4431_v25, %v6448_v47  ;;  %v4464_v21 = vsel %vm12603_vm13, %v4432_v38, %v6449_v30  ;;  %v4923_v7 = vmul.f32 %v10569_v59, %v4842_v14  ;;  %vm12612_vm5 = vmmov %vm12611_vm3  ;;  %vm12613_vm13 = vcmask 916480  }
 0x372   : > { %vm12600_vm0 = vnez %v12599_v20  ;;  %v4495_v19 = vsel %vm12604_vm6, %v4463_v61, %v6458_v54  ;;  %v4496_v28 = vsel %vm12605_vm8, %v4464_v21, %v6459_v24  ;;  %6822 = vpow2.f32 %v5021_v3  ;;  %vm12614_vm6 = vmmov %vm12613_vm13 }
 0x373   : > { %v3427_v5 = vsel %vm12600_vm0, %v10347_v10, 0.0  ;;  %v6472_v18 = vpop.permute.xlu0 %6471  ;;  %v10634_v38 = vadd.f32 %v10583_v41, %v4923_v7  ;;  %v3498_v10 = vsel %vm12600_vm0, %v10402_v31, 0.0  ;;  %vm12616_vm8 = vmmov %vm12608_vm7  ;;  %v6399_v7 = vunpack.i.h.bf16 %v10434_v32 }
 0x374   : > { %v6675_v27 = vpack.i.bf16 %v10399_v44, %v3427_v5  ;;  %6666 = vrot.lane.b32.xlu1 %v6665_v35, %s7007_s19  ;;  %v6474_v30 = vunpack.i.h.bf16 %v6472_v18  ;;  %v6473_v47 = vunpack.i.l.bf16 %v6472_v18  ;;  %v6670_v5 = vpack.i.bf16 %v3942_v11, %v3940_v56 }
 0x375   : > { %v6484_v44 = vunpack.i.h.bf16 %v10550_v34  ;;  %v6483_v35 = vunpack.i.l.bf16 %v10550_v34  ;;  %v4990_v21 = vsub.f32 0.0, %v10634_v38  ;;  %v6424_v9 = vunpack.i.h.bf16 %v10474_v23 }
 0x376   : > { %6676 = vrot.lane.b32.xlu0 %v6675_v27, %s7004_s16  ;;  %v6477_v33 = vpop.permute.xlu1 %6476  ;;  %v4528_v17 = vsel %vm12609_vm1, %v4496_v28, %v6474_v30  ;;  %v4527_v0 = vsel %vm12610_vm9, %v4495_v19, %v6473_v47  ;;  %v6685_v47 = vpack.i.bf16 %v3467_v43, %v10456_v42  ;;  %v3258_v42 = vsel %vm12458_vm11, %v9568_v50, 0.0 }
 0x377   : > { %v6479_v25 = vunpack.i.h.bf16 %v6477_v33  ;;  %v6478_v55 = vunpack.i.l.bf16 %v6477_v33  ;;  %v5023_v51 = vmul.f32 1.442695, %v4990_v21  ;;  %v6443_v33 = vunpack.i.l.bf16 %v10538_v63 }
 0x378   : > { %v6823_v19 = vpop.eup %6822  ;;  %v4755_v18 = vpop.f32.mrf.mxu2  ;;  %vm12618_vm2 = vcmask 130048   ;;  %v3264_v23 = vsel %vm12542_vm14, %v9929_v8, 0.0  ;;  %v6453_v50 = vunpack.i.l.bf16 %v10448_v58  ;;  %vm12620_vm11 = vcmask 261120  }
 0x379   : > { %6671 = vrot.lane.b32.xlu2 %v6670_v5, %s7008_s20  ;;  %v10637_v61 = vpop.permute.xlu2 %6521  ;;  %v4559_v27 = vsel %vm12611_vm3, %v4527_v0, %v6478_v55  ;;  %v4560_v54 = vsel %vm12612_vm5, %v4528_v17, %v6479_v25  ;;  %v5085_v28 = vadd.f32 1.0, %v6823_v19  ;;  %6824 = vpow2.f32 %v5023_v51  ;;  %v12615_v25 = vld [vmem:[#allocation8_spill] sm:$0xff]  ;;  %vm12619_vm10 = vmmov %vm12618_vm2 }
 0x37a   : > { %v4591_v34 = vsel %vm12613_vm13, %v4559_v27, %v6483_v35  ;;  %v4592_v24 = vsel %vm12614_vm6, %v4560_v54, %v6484_v44  ;;  %v4845_v14 = vadd.f32 %v10301_v2, %v4755_v18  ;;  %v4291_v55 = vsel %vm12616_vm8, %v3941_v60, %v12615_v25  ;;  %v12617_v60 = vld [vmem:[#allocation74_spill] sm:$0xff]  ;;  %vm12621_vm14 = vmmov %vm12618_vm2 }
 0x37b   : > { %v4623_v39 = vpack.c.bf16 %v4592_v24, %v4591_v34  ;;  %v10649_v3 = vpop.permute.xlu0 %6486  ;;  %6826 = vrcp.f32 %v5085_v28  ;;  %v4403_v32 = vsel %vm12618_vm2, %v12617_v60, %v6443_v33  ;;  %v4402_v15 = vsel %vm12619_vm10, %v3258_v42, %v6399_v7  ;;  %v12622_v24 = vld [vmem:[#allocation9_spill] sm:$0xff]  ;;  %vm12624_vm1 = vmmov %vm12620_vm11 }
 0x37c   : > { %6681 = vrot.lane.b32.xlu1 %v6670_v5, %s7005_s17  ;;  %v4924_v30 = vmul.f32 %v10569_v59, %v4845_v14  ;;  %v6489_v2 = vunpack.i.h.bf16 %v10649_v3  ;;  %v4433_v8 = vsel %vm12620_vm11, %v4402_v15, %v6424_v9  ;;  %vm5245_vm7 = vcmask 125952   ;;  %vm12625_vm9 = vmmov %vm12624_vm1 }
 0x37d   : > { %4789 = vmatmul.bf16.gmra.mxu2 %v4623_v39  ;;  %v12623_v39 = vunpack.c.l.bf16 %v12622_v24  ;;  %v4434_v51 = vsel %vm12624_vm1, %v4403_v32, %v6453_v50  ;;  %vm12626_vm3 = vcmask 392192   ;;  %v6504_v25 = vunpack.i.h.bf16 %v10601_v22 }
 0x37e   : > { %4258 = vrot.lane.b32.xlu0 %v3498_v10, %s7007_s19  ;;  %v6497_v31 = vpop.permute.xlu1 %6496  ;;  %v10665_v56 = vadd.f32 %v10583_v41, %v4924_v30  ;;  %v4408_v21 = vsel %vm12621_vm14, %v3264_v23, %v6489_v2  ;;  %vm12627_vm5 = vmmov %vm12626_vm3  ;;  %vm12628_vm13 = vcmask 523264   ;;  %vm12630_vm8 = vcmask 654336  }
 0x37f   : > { %v6825_v48 = vpop.eup %6824  ;;  %v6499_v43 = vunpack.i.h.bf16 %v6497_v31  ;;  %v6498_v30 = vunpack.i.l.bf16 %v6497_v31  ;;  %vm12629_vm6 = vmmov %vm12628_vm13  ;;  %v12632_v50 = vunpack.c.h.bf16 %v12622_v24  ;;  %vm12633_vm10 = vcmask 785408  }
 0x380   : > { %v5086_v5 = vadd.f32 1.0, %v6825_v48  ;;  %v4991_v44 = vsub.f32 0.0, %v10665_v56  ;;  %v4757_v6 = vpop.f32.mrf.mxu2  ;;  %vm12631_vm2 = vmmov %vm12630_vm8  ;;  %vm12635_vm14 = vcmask 916480   ;;  %v6524_v49 = vunpack.i.h.bf16 %v10637_v61 }
 0x381   : > { %6686 = vrot.lane.b32.xlu2 %v6685_v47, %s7006_s18  ;;  %v10668_v12 = vpop.permute.xlu2 %6541  ;;  %v6827_v0 = vpop.eup %6826  ;;  %s10698_s18 = scalar_lea.vmem %s11120_s7, %s5462_s10  ;;  %v4847_v14 = vadd.f32 %v10358_v46, %v4757_v6  ;;  %vm12634_vm11 = vmmov %vm12633_vm10 }
 0x382   : > { %v5149_v27 = vmul.f32 %v6827_v0, %v10609_v36  ;;  %6828 = vrcp.f32 %v5086_v5  ;;  %v5025_v34 = vmul.f32 1.442695, %v4991_v44  ;;  %vm12636_vm1 = vmmov %vm12635_vm14 }
 0x383   : > { %v6492_v11 = vpop.permute.xlu0 %6491  ;;  %v4925_v47 = vmul.f32 %v10569_v59, %v4847_v14 }
 0x384   : > { %4352 = vrot.lane.b32.xlu1 %v4291_v55, %s7008_s20  ;;  %v6494_v35 = vunpack.i.h.bf16 %v6492_v11  ;;  %v6493_v10 = vunpack.i.l.bf16 %v6492_v11  ;;  %v5181_v19 = vadd.f32 %v12623_v39, %v5149_v27  ;;  %6830 = vpow2.f32 %v5025_v34 }
 0x385   : > { %v6503_v55 = vunpack.i.l.bf16 %v10601_v22  ;;  %v10711_v46 = vadd.f32 %v10583_v41, %v4925_v47  ;;  %v6463_v47 = vunpack.i.l.bf16 %v10519_v45  ;;  %v6468_v45 = vunpack.i.l.bf16 %v10577_v57 }
 0x386   : > { %v10678_v17 = vpop.permute.xlu1 %6511  ;;  %v4466_v36 = vsel %vm12626_vm3, %v4434_v51, %v6494_v35  ;;  %v4465_v18 = vsel %vm12627_vm5, %v4433_v8, %v6493_v10  ;;  %v5213_v33 = vpack.c.bf16 %v5181_v19, %v5181_v19  ;;  %v3268_v57 = vsel %vm12589_vm12, %v10140_v52, 0.0 }
 0x387   : > { %v6514_v54 = vunpack.i.h.bf16 %v10678_v17  ;;  %v4498_v7 = vsel %vm12628_vm13, %v4466_v36, %v6499_v43  ;;  %v4497_v9 = vsel %vm12629_vm6, %v4465_v18, %v6498_v30  ;;  %v4992_v44 = vsub.f32 0.0, %v10711_v46 }
 0x388   : > { %5246 = vst.msk [vmem:[%s10698_s18] sm:$0xf] %vm5245_vm7, %v5213_v33  ;;  %v6829_v42 = vpop.eup %6828  ;;  %v4529_v10 = vsel %vm12630_vm8, %v4497_v9, %v6503_v55  ;;  %v4530_v15 = vsel %vm12631_vm2, %v4498_v7, %v6504_v25  ;;  %v6444_v25 = vunpack.i.h.bf16 %v10538_v63  ;;  %v12638_v63 = vld [vmem:[#allocation10_spill] sm:$0xff]  ;;  %vm12644_vm5 = vcmask 261120  }
 0x389   : > { %v10691_v28 = vsel %vm12625_vm9, %v4408_v21, %v6514_v54  ;;  %v10713_v60 = vpop.permute.xlu2 %6546  ;;  %v5150_v11 = vmul.f32 %v6829_v42, %v10634_v38  ;;  %v5027_v8 = vmul.f32 1.442695, %v4992_v44  ;;  %vm12641_vm9 = vcmask 130048   ;;  %vm12645_vm13 = vmmov %vm12644_vm5 }
 0x38a   : > { %v6831_v22 = vpop.eup %6830  ;;  %vm12642_vm3 = vmmov %vm12641_vm9  ;;  %vm12647_vm6 = vcmask 392192   ;;  %vm12649_vm2 = vcmask 523264  }
 0x38b   : > { %v6507_v2 = vpop.permute.xlu0 %6506  ;;  %v4760_v5 = vpop.f32.mrf.mxu2  ;;  %v5182_v27 = vadd.f32 %v12632_v50, %v5150_v11  ;;  %v5087_v54 = vadd.f32 1.0, %v6831_v22  ;;  %v12639_v11 = vunpack.c.l.bf16 %v12638_v63  ;;  %vm12646_vm12 = vmmov %vm12644_vm5 }
 0x38c   : > { %v6509_v31 = vunpack.i.h.bf16 %v6507_v2  ;;  %v6508_v32 = vunpack.i.l.bf16 %v6507_v2  ;;  %v4850_v35 = vadd.f32 %v10405_v40, %v4760_v5  ;;  %vm12648_vm8 = vmmov %vm12647_vm6 }
 0x38d   : > { %v5214_v39 = vpack.c.bf16 %v5182_v27, %v5182_v27  ;;  %6832 = vrcp.f32 %v5087_v54 }
 0x38e   : > { %v6517_v48 = vpop.permute.xlu1 %6516  ;;  %v4561_v6 = vsel %vm12633_vm10, %v4529_v10, %v6508_v32  ;;  %v4562_v38 = vsel %vm12634_vm11, %v4530_v15, %v6509_v31  ;;  %v4926_v21 = vmul.f32 %v10569_v59, %v4850_v35  ;;  %6834 = vpow2.f32 %v5027_v8  ;;  %v12637_v32 = vld [vmem:[#allocation60_spill] sm:$0xff]  ;;  %vm12650_vm10 = vmmov %vm12649_vm2 }
 0x38f   : > { %v6519_v23 = vunpack.i.h.bf16 %v6517_v48  ;;  %v6518_v0 = vunpack.i.l.bf16 %v6517_v48  ;;  %5247 = vst.msk [vmem:[%s10698_s18 + $0x4] sm:$0xf] %vm5245_vm7, %v5214_v39  ;;  %v6454_v31 = vunpack.i.h.bf16 %v10448_v58  ;;  %v6523_v15 = vunpack.i.l.bf16 %v10637_v61 }
 0x390   : > { %v10728_v19 = vadd.f32 %v10583_v41, %v4926_v21  ;;  %vm12651_vm11 = vcmask 654336  }
 0x391   : > { %v4593_v34 = vsel %vm12635_vm14, %v4561_v6, %v6518_v0  ;;  %v4594_v40 = vsel %vm12636_vm1, %v4562_v38, %v6519_v23  ;;  %v3260_v23 = vsel %vm12482_vm4, %v12637_v32, 0.0  ;;  %v12640_v0 = vld [vmem:[#allocation73_spill] sm:$0xff]  ;;  %vm12643_vm4 = vmmov %vm12642_vm3  ;;  %vm12654_vm1 = vcmask 785408  }
 0x392   : > { %v4625_v24 = vpack.c.bf16 %v4594_v40, %v4593_v34  ;;  %v4993_v18 = vsub.f32 0.0, %v10728_v19  ;;  %v4404_v5 = vsel %vm12642_vm3, %v3260_v23, %v6444_v25  ;;  %vm12652_vm14 = vmmov %vm12651_vm11  ;;  %vm12656_vm3 = vcmask 916480  }
 0x393   : > { %v6527_v51 = vpop.permute.xlu0 %6526  ;;  %v4762_v14 = vpop.f32.mrf.mxu2 }
 0x394   : > { %4794 = vmatmul.bf16.gmra.mxu2 %v4625_v24  ;;  %v5029_v33 = vmul.f32 1.442695, %v4993_v18  ;;  %v10735_v43 = vpop.permute.xlu2 %6551  ;;  %v6833_v30 = vpop.eup %6832  ;;  %v4852_v55 = vadd.f32 %v10461_v62, %v4762_v14  ;;  %v6529_v27 = vunpack.i.h.bf16 %v6527_v51  ;;  %v6528_v21 = vunpack.i.l.bf16 %v6527_v51 }
 0x395   : > { %v6835_v7 = vpop.eup %6834  ;;  %v5151_v9 = vmul.f32 %v6833_v30, %v10665_v56  ;;  %v6554_v48 = vunpack.i.h.bf16 %v10735_v43  ;;  %v4405_v56 = vsel %vm12641_vm9, %v12640_v0, %v6463_v47  ;;  %v4435_v24 = vsel %vm12646_vm12, %v4404_v5, %v6454_v31  ;;  %vm12655_vm9 = vmmov %vm12654_vm1 }
 0x396   : > { %v10732_v36 = vpop.permute.xlu1 %6531  ;;  %6836 = vpow2.f32 %v5029_v33  ;;  %v5088_v2 = vadd.f32 1.0, %v6835_v7  ;;  %v4927_v42 = vmul.f32 %v10569_v59, %v4852_v55  ;;  %v4436_v8 = vsel %vm12644_vm5, %v4405_v56, %v6468_v45 }
 0x397   : > { %v5183_v62 = vadd.f32 %v12639_v11, %v5151_v9  ;;  %v4412_v50 = vsel %vm12643_vm4, %v3268_v57, %v6554_v48  ;;  %v4468_v18 = vsel %vm12647_vm6, %v4436_v8, %v6524_v49  ;;  %v4467_v30 = vsel %vm12648_vm8, %v4435_v24, %v6523_v15  ;;  %vm12657_vm4 = vmmov %vm12656_vm3 }
 0x398   : > { %6838 = vrcp.f32 %v5088_v2  ;;  %v10754_v22 = vadd.f32 %v10583_v41, %v4927_v42  ;;  %v4500_v51 = vsel %vm12649_vm2, %v4468_v18, %v6529_v27  ;;  %v6548_v55 = vunpack.i.l.bf16 %v10713_v60  ;;  %vm12665_vm8 = vmmov %vm12647_vm6 }
 0x399   : > { %v5215_v35 = vpack.c.bf16 %v5183_v62, %v5183_v62  ;;  %v12653_v42 = vunpack.c.h.bf16 %v12638_v63  ;;  %v6549_v45 = vunpack.i.h.bf16 %v10713_v60  ;;  %vm12661_vm5 = vcmask 130048  }
 0x39a   : > { %v4994_v54 = vsub.f32 0.0, %v10754_v22 }
 0x39b   : > { %5248 = vst.msk [vmem:[%s10698_s18 + $0x8] sm:$0xf] %vm5245_vm7, %v5215_v35 }
 0x39c   : > { %v6837_v38 = vpop.eup %6836  ;;  %v5031_v40 = vmul.f32 1.442695, %v4994_v54  ;;  %v6572_v11 = vpop.permute.xlu2 %6571  ;;  %v6488_v54 = vunpack.i.l.bf16 %v10649_v3 }
 0x39d   : > { %v4765_v6 = vpop.f32.mrf.mxu2  ;;  %v5089_v1 = vadd.f32 1.0, %v6837_v38 }
 0x39e   : > { %v6537_v44 = vpop.permute.xlu1 %6536  ;;  %v4855_v52 = vadd.f32 %v10498_v16, %v4765_v6  ;;  %v6839_v33 = vpop.eup %6838  ;;  %v4499_v16 = vsel %vm12650_vm10, %v4467_v30, %v6528_v21  ;;  %v12658_v6 = vld [vmem:[#allocation5_spill] sm:$0xff] }
 0x39f   : > { %v10756_v58 = vpop.permute.xlu0 %6556  ;;  %v6539_v61 = vunpack.i.h.bf16 %v6537_v44  ;;  %v6538_v39 = vunpack.i.l.bf16 %v6537_v44  ;;  %6840 = vrcp.f32 %v5089_v1  ;;  %v5152_v47 = vmul.f32 %v6839_v33, %v10711_v46 }
 0x3a0   : > { %v6559_v10 = vunpack.i.h.bf16 %v10756_v58  ;;  %v4928_v14 = vmul.f32 %v10569_v59, %v4855_v52  ;;  %6842 = vpow2.f32 %v5031_v40  ;;  %v12659_v38 = vunpack.c.l.bf16 %v12658_v6 }
 0x3a1   : > { %v4532_v7 = vsel %vm12651_vm11, %v4500_v51, %v6539_v61  ;;  %v4531_v9 = vsel %vm12652_vm14, %v4499_v16, %v6538_v39  ;;  %v5184_v31 = vadd.f32 %v12653_v42, %v5152_v47  ;;  %v6513_v52 = vunpack.i.l.bf16 %v10678_v17  ;;  %v12663_v47 = vld [vmem:[#allocation67_spill] sm:$0xff]  ;;  %vm12670_vm14 = vmmov %vm12651_vm11 }
 0x3a2   : > { %v10770_v34 = vsel %vm12645_vm13, %v4412_v50, %v6559_v10  ;;  %v10781_v25 = vadd.f32 %v10583_v41, %v4928_v14  ;;  %v4563_v44 = vsel %vm12654_vm1, %v4531_v9, %v6548_v55  ;;  %v4564_v35 = vsel %vm12655_vm9, %v4532_v7, %v6549_v45  ;;  %v4859_v10 = vpop.f32.mrf.mxu3  ;;  %v12660_v14 = vld [vmem:[#allocation121_spill] sm:$0xff]  ;;  %vm12662_vm13 = vmmov %vm12646_vm12 }
 0x3a3   : > { %v5216_v0 = vpack.c.bf16 %v5184_v31, %v5184_v31  ;;  %v4407_v33 = vsel %vm12661_vm5, %v12660_v14, %v6488_v54  ;;  %v6544_v17 = vunpack.i.h.bf16 %v10668_v12  ;;  %v3266_v16 = vsel %vm12570_vm15, %v12663_v47, 0.0  ;;  %vm12664_vm12 = vmmov %vm12661_vm5  ;;  %v12673_v14 = vld [vmem:[#allocation6_spill] sm:$0xff] }
 0x3a4   : > { %v4995_v46 = vsub.f32 0.0, %v10781_v25  ;;  %v4438_v51 = vsel %vm12662_vm13, %v4407_v33, %v6513_v52  ;;  %v6592_v7 = vpop.permute.xlu2 %6591  ;;  %v6574_v31 = vunpack.i.h.bf16 %v6572_v11  ;;  %vm12666_vm15 = vmmov %vm12649_vm2  ;;  %v12674_v33 = vunpack.c.l.bf16 %v12673_v14 }
 0x3a5   : > { %v4767_v62 = vpop.f32.mrf.mxu2  ;;  %v6841_v49 = vpop.eup %6840  ;;  %5249 = vst.msk [vmem:[%s10698_s18 + $0xc] sm:$0xf] %vm5245_vm7, %v5216_v0  ;;  %v6593_v45 = vunpack.i.l.bf16 %v6592_v7  ;;  %vm12667_vm10 = vmmov %vm12662_vm13 }
 0x3a6   : > { %v6567_v48 = vpop.permute.xlu1 %6566  ;;  %v5033_v56 = vmul.f32 1.442695, %v4995_v46  ;;  %v4857_v5 = vadd.f32 %v10541_v29, %v4767_v62  ;;  %v6843_v57 = vpop.eup %6842  ;;  %v5153_v15 = vmul.f32 %v6841_v49, %v10728_v19  ;;  %v6534_v19 = vunpack.i.h.bf16 %v10732_v36  ;;  %vm12671_vm1 = vmmov %vm12667_vm10 }
 0x3a7   : > { %v6562_v2 = vpop.permute.xlu0 %6561  ;;  %v5090_v27 = vadd.f32 1.0, %v6843_v57  ;;  %v6569_v39 = vunpack.i.h.bf16 %v6567_v48  ;;  %v6568_v24 = vunpack.i.l.bf16 %v6567_v48  ;;  %v6573_v46 = vunpack.i.l.bf16 %v6572_v11 }
 0x3a8   : > { %v6564_v32 = vunpack.i.h.bf16 %v6562_v2  ;;  %v6563_v23 = vunpack.i.l.bf16 %v6562_v2  ;;  %6844 = vpow2.f32 %v5033_v56  ;;  %v4929_v60 = vmul.f32 %v10569_v59, %v4857_v5 }
 0x3a9   : > { %v5185_v8 = vadd.f32 %v12659_v38, %v5153_v15  ;;  %6846 = vrcp.f32 %v5090_v27  ;;  %v4410_v9 = vsel %vm12664_vm12, %v3266_v16, %v6534_v19  ;;  %v4470_v2 = vsel %vm12647_vm6, %v4438_v51, %v6569_v39  ;;  %vm12679_vm12 = vmmov %vm12671_vm1 }
 0x3aa   : > { %v4595_v63 = vsel %vm12656_vm3, %v4563_v44, %v6563_v23  ;;  %v4596_v50 = vsel %vm12657_vm4, %v4564_v35, %v6564_v32  ;;  %v10803_v21 = vadd.f32 %v10583_v41, %v4929_v60  ;;  %v4469_v48 = vsel %vm12665_vm8, %v10599_v53, %v6568_v24  ;;  %v4861_v23 = vpop.f32.mrf.mxu3  ;;  %vm12672_vm3 = vmmov %vm12655_vm9 }
 0x3ab   : > { %v4627_v29 = vpack.c.bf16 %v4596_v50, %v4595_v63  ;;  %v5217_v61 = vpack.c.bf16 %v5185_v8, %v5185_v8  ;;  %v3270_v62 = vsel %vm12600_vm0, %v10249_v4, 0.0  ;;  %v4501_v56 = vsel %vm12666_vm15, %v4469_v48, %v6573_v46  ;;  %vm12669_vm0 = vmmov %vm12661_vm5 }
 0x3ac   : > { %v4996_v3 = vsub.f32 0.0, %v10803_v21  ;;  %v4502_v53 = vsel %vm12649_vm2, %v4470_v2, %v6574_v31  ;;  %v10833_v11 = vsel %vm12667_vm10, %v4410_v9, %v6544_v17  ;;  %v12668_v35 = vunpack.c.h.bf16 %v12658_v6  ;;  %vm12675_vm5 = vmmov %vm12657_vm4 }
 0x3ad   : > { %4799 = vmatmul.bf16.gmra.mxu2 %v4627_v29  ;;  %5250 = vst.msk [vmem:[%s10698_s18 + $0x10] sm:$0xf] %vm5245_vm7, %v5217_v61  ;;  %v6594_v61 = vunpack.i.h.bf16 %v6592_v7  ;;  %vm12678_vm13 = vmmov %vm12669_vm0 }
 0x3ae   : > { %v6587_v40 = vpop.permute.xlu1 %6586  ;;  %v6845_v18 = vpop.eup %6844  ;;  %v5035_v30 = vmul.f32 1.442695, %v4996_v3  ;;  %vm12680_vm8 = vmmov %vm12647_vm6 }
 0x3af   : > { %v10807_v1 = vpop.permute.xlu0 %6576  ;;  %v5091_v55 = vadd.f32 1.0, %v6845_v18  ;;  %v6847_v42 = vpop.eup %6846  ;;  %v6589_v15 = vunpack.i.h.bf16 %v6587_v40  ;;  %v6588_v60 = vunpack.i.l.bf16 %v6587_v40  ;;  %vm12681_vm15 = vmmov %vm12649_vm2 }
 0x3b0   : > { %6848 = vpow2.f32 %v5035_v30  ;;  %v6579_v32 = vunpack.i.h.bf16 %v10807_v1  ;;  %v5154_v26 = vmul.f32 %v6847_v42, %v10754_v22  ;;  %v10852_v3 = vpop.permute.xlu2 %3778  ;;  %vm12682_vm10 = vmmov %vm12651_vm11 }
 0x3b1   : > { %6850 = vrcp.f32 %v5091_v55 }
 0x3b2   : > { %v5186_v22 = vadd.f32 %v12668_v35, %v5154_v26  ;;  %v4414_v20 = vsel %vm12669_vm0, %v3270_v62, %v6579_v32  ;;  %v4864_v55 = vpop.f32.mrf.mxu3  ;;  %v6533_v32 = vunpack.i.l.bf16 %v10732_v36  ;;  %vm12683_vm0 = vmmov %vm12682_vm10 }
 0x3b4   : > { %v5218_v27 = vpack.c.bf16 %v5186_v22, %v5186_v22 }
 0x3b6   : > { %v4770_v0 = vpop.f32.mrf.mxu2  ;;  %v10830_v49 = vpop.permute.xlu1 %6601  ;;  %5251 = vst.msk [vmem:[%s10698_s18 + $0x14] sm:$0xf] %vm5245_vm7, %v5218_v27 }
 0x3b7   : > { %v6582_v5 = vpop.permute.xlu0 %6581  ;;  %v4860_v44 = vadd.f32 %v4859_v10, %v4770_v0  ;;  %v6604_v4 = vunpack.i.h.bf16 %v10830_v49  ;;  %v6849_v10 = vpop.eup %6848 }
 0x3b8   : > { %v6584_v63 = vunpack.i.h.bf16 %v6582_v5  ;;  %v6583_v57 = vunpack.i.l.bf16 %v6582_v5  ;;  %v6851_v38 = vpop.eup %6850  ;;  %v5092_v8 = vadd.f32 1.0, %v6849_v10  ;;  %v6612_v0 = vpop.permute.xlu2 %6611 }
 0x3b9   : > { %v4930_v50 = vmul.f32 %v10569_v59, %v4860_v44  ;;  %v10843_v6 = vsel %vm12671_vm1, %v4414_v20, %v6604_v4  ;;  %v5155_v40 = vmul.f32 %v6851_v38, %v10781_v25  ;;  %v12677_v44 = vld [vmem:[#allocation70_spill] sm:$0xff]  ;;  %vm12688_vm1 = vmmov %vm12657_vm4 }
 0x3ba   : > { %v4534_v29 = vsel %vm12651_vm11, %v4502_v53, %v6584_v63  ;;  %v4533_v54 = vsel %vm12670_vm14, %v4501_v56, %v6583_v57  ;;  %6852 = vrcp.f32 %v5092_v8  ;;  %v4409_v35 = vsel %vm12678_vm13, %v12677_v44, %v6533_v32  ;;  %vm12686_vm11 = vmmov %vm12672_vm3 }
 0x3bb   : > { %v4965_v52 = vadd.f32 %v10583_v41, %v4930_v50  ;;  %v4565_v19 = vsel %vm12655_vm9, %v4533_v54, %v6588_v60  ;;  %v4566_v39 = vsel %vm12672_vm3, %v4534_v29, %v6589_v15  ;;  %v5187_v30 = vadd.f32 %v12674_v33, %v5155_v40  ;;  %v4866_v15 = vpop.f32.mrf.mxu3  ;;  %vm12687_vm14 = vmmov %vm12672_vm3 }
 0x3bc   : > { %v4597_v24 = vsel %vm12657_vm4, %v4565_v19, %v6593_v45  ;;  %v4598_v17 = vsel %vm12675_vm5, %v4566_v39, %v6594_v61  ;;  %v6543_v57 = vunpack.i.l.bf16 %v10668_v12  ;;  %v6614_v8 = vunpack.i.h.bf16 %v6612_v0  ;;  %vm12689_vm9 = vmmov %vm12688_vm1 }
 0x3bd   : > { %v4997_v18 = vsub.f32 0.0, %v4965_v52  ;;  %v4629_v16 = vpack.c.bf16 %v4598_v17, %v4597_v24  ;;  %v5219_v25 = vpack.c.bf16 %v5187_v30, %v5187_v30  ;;  %v6613_v19 = vunpack.i.l.bf16 %v6612_v0  ;;  %vm12691_vm3 = vmmov %vm12678_vm13 }
 0x3be   : > { %v4772_v51 = vpop.f32.mrf.mxu2  ;;  %v10857_v2 = vpop.permute.xlu1 %3654  ;;  %v4440_v10 = vsel %vm12679_vm12, %v4409_v35, %v6543_v57  ;;  %v6553_v44 = vunpack.i.l.bf16 %v10735_v43  ;;  %v6558_v35 = vunpack.i.l.bf16 %v10756_v58  ;;  %vm12692_vm4 = vmmov %vm12679_vm12 }
 0x3bf   : > { %v5037_v47 = vmul.f32 1.442695, %v4997_v18  ;;  %v4862_v7 = vadd.f32 %v4861_v23, %v4772_v51  ;;  %v6597_v9 = vpop.permute.xlu0 %6596  ;;  %4804 = vmatmul.bf16.gmra.mxu2 %v4629_v16  ;;  %5252 = vst.msk [vmem:[%s10698_s18 + $0x18] sm:$0xf] %vm5245_vm7, %v5219_v25  ;;  %v12676_v23 = vunpack.c.h.bf16 %v12673_v14  ;;  %v12684_v25 = vld [vmem:[#allocation7_spill] sm:$0xff]  ;;  %vm12693_vm5 = vmmov %vm12647_vm6 }
 0x3c0   : > { %v6853_v42 = vpop.eup %6852  ;;  %v6599_v22 = vunpack.i.h.bf16 %v6597_v9  ;;  %v6627_v18 = vpop.permute.xlu2 %6626  ;;  %vm12695_vm13 = vmmov %vm12693_vm5 }
 0x3c1   : > { %6854 = vpow2.f32 %v5037_v47  ;;  %v4931_v48 = vmul.f32 %v10569_v59, %v4862_v7  ;;  %v5156_v31 = vmul.f32 %v6853_v42, %v10803_v21  ;;  %v6598_v21 = vunpack.i.l.bf16 %v6597_v9  ;;  %vm12696_vm12 = vmmov %vm12649_vm2 }
 0x3c2   : > { %v4472_v27 = vsel %vm12647_vm6, %v4440_v10, %v6599_v22  ;;  %v12685_v7 = vunpack.c.l.bf16 %v12684_v25  ;;  %v6628_v22 = vunpack.i.l.bf16 %v6627_v18  ;;  %vm12697_vm6 = vmmov %vm12649_vm2 }
 0x3c3   : > { %v10864_v46 = vadd.f32 %v10583_v41, %v4931_v48  ;;  %v5188_v26 = vadd.f32 %v12676_v23, %v5156_v31  ;;  %v4471_v29 = vsel %vm12680_vm8, %v10691_v28, %v6598_v21  ;;  %v4869_v23 = vpop.f32.mrf.mxu3  ;;  %vm12698_vm8 = vmmov %vm12683_vm0 }
 0x3c5   : > { %v4998_v45 = vsub.f32 0.0, %v10864_v46  ;;  %v5220_v56 = vpack.c.bf16 %v5188_v26, %v5188_v26 }
 0x3c6   : > { %v6607_v63 = vpop.permute.xlu1 %6606 }
 0x3c7   : > { %v6855_v62 = vpop.eup %6854  ;;  %v5039_v5 = vmul.f32 1.442695, %v4998_v45  ;;  %5253 = vst.msk [vmem:[%s10698_s18 + $0x1c] sm:$0xf] %vm5245_vm7, %v5220_v56  ;;  %v6609_v36 = vunpack.i.h.bf16 %v6607_v63  ;;  %v6608_v4 = vunpack.i.l.bf16 %v6607_v63  ;;  %v6617_v60 = vpop.permute.xlu0 %6616 }
 0x3c8   : > { %v5093_v53 = vadd.f32 1.0, %v6855_v62  ;;  %v6619_v51 = vunpack.i.h.bf16 %v6617_v60  ;;  %v6618_v47 = vunpack.i.l.bf16 %v6617_v60  ;;  %v6642_v60 = vpop.permute.xlu2 %6641 }
 0x3c9   : > { %v4504_v12 = vsel %vm12681_vm15, %v4472_v27, %v6609_v36  ;;  %v4503_v38 = vsel %vm12649_vm2, %v4471_v29, %v6608_v4  ;;  %v6629_v36 = vunpack.i.h.bf16 %v6627_v18  ;;  %v12690_v29 = vld [vmem:[#allocation140_spill] sm:$0xff]  ;;  %vm12699_vm15 = vmmov %vm12683_vm0 }
 0x3ca   : > { %6856 = vrcp.f32 %v5093_v53  ;;  %v4535_v14 = vsel %vm12682_vm10, %v4503_v38, %v6613_v19  ;;  %v4536_v33 = vsel %vm12683_vm0, %v4504_v12, %v6614_v8  ;;  %v4411_v43 = vsel %vm12691_vm3, %v12690_v29, %v6553_v44  ;;  %vm12700_vm2 = vmmov %vm12686_vm11 }
 0x3cb   : > { %v4775_v20 = vpop.f32.mrf.mxu2  ;;  %6858 = vpow2.f32 %v5039_v5  ;;  %v4567_v31 = vsel %vm12686_vm11, %v4535_v14, %v6618_v47  ;;  %v4568_v32 = vsel %vm12687_vm14, %v4536_v33, %v6619_v51  ;;  %v4442_v12 = vsel %vm12692_vm4, %v4411_v43, %v6558_v35  ;;  %vm12701_vm10 = vmmov %vm12700_vm2 }
 0x3cc   : > { %v4865_v50 = vadd.f32 %v4864_v55, %v4775_v20  ;;  %v4473_v38 = vsel %vm12693_vm5, %v10833_v11, %v6628_v22  ;;  %v12694_v8 = vunpack.c.h.bf16 %v12684_v25  ;;  %v6644_v11 = vunpack.i.h.bf16 %v6642_v60  ;;  %vm12702_vm0 = vmmov %vm12688_vm1 }
 0x3cd   : > { %vm12703_vm11 = vmmov %vm12702_vm0 }
 0x3ce   : > { %v4932_v54 = vmul.f32 %v10569_v59, %v4865_v50  ;;  %v6622_v30 = vpop.permute.xlu1 %6621  ;;  %vm12704_vm14 = vmmov %vm12691_vm3 }
 0x3cf   : > { %v6624_v16 = vunpack.i.h.bf16 %v6622_v30  ;;  %v6623_v42 = vunpack.i.l.bf16 %v6622_v30  ;;  %v6632_v45 = vpop.permute.xlu0 %6631  ;;  %vm12709_vm3 = vmmov %vm12693_vm5 }
 0x3d0   : > { %v10883_v40 = vadd.f32 %v10583_v41, %v4932_v54  ;;  %v6857_v61 = vpop.eup %6856  ;;  %v6633_v4 = vunpack.i.l.bf16 %v6632_v45  ;;  %v6634_v50 = vunpack.i.h.bf16 %v6632_v45 }
 0x3d1   : > { %v6859_v39 = vpop.eup %6858  ;;  %v5157_v24 = vmul.f32 %v6857_v61, %v4965_v52  ;;  %v4599_v0 = vsel %vm12688_vm1, %v4567_v31, %v6623_v42  ;;  %v4600_v56 = vsel %vm12689_vm9, %v4568_v32, %v6624_v16  ;;  %vm12707_vm1 = vmmov %vm12692_vm4 }
 0x3d2   : > { %v4999_v28 = vsub.f32 0.0, %v10883_v40  ;;  %v5094_v17 = vadd.f32 1.0, %v6859_v39  ;;  %v4631_v5 = vpack.c.bf16 %v4600_v56, %v4599_v0  ;;  %v4505_v61 = vsel %vm12696_vm12, %v4473_v38, %v6633_v4  ;;  %v4871_v39 = vpop.f32.mrf.mxu3  ;;  %vm12708_vm9 = vmmov %vm12693_vm5 }
 0x3d3   : > { %v4777_v55 = vpop.f32.mrf.mxu2  ;;  %v5189_v9 = vadd.f32 %v12685_v7, %v5157_v24  ;;  %v6578_v7 = vunpack.i.l.bf16 %v10807_v1  ;;  %vm12710_vm4 = vmmov %vm12697_vm6 }
 0x3d4   : > { %v5041_v48 = vmul.f32 1.442695, %v4999_v28  ;;  %v4867_v52 = vadd.f32 %v4866_v15, %v4777_v55  ;;  %6860 = vrcp.f32 %v5094_v17  ;;  %4809 = vmatmul.bf16.gmra.mxu2 %v4631_v5  ;;  %v6643_v28 = vunpack.i.l.bf16 %v6642_v60  ;;  %vm12711_vm5 = vmmov %vm12710_vm4 }
 0x3d5   : > { %v5221_v26 = vpack.c.bf16 %v5189_v9, %v5189_v9  ;;  %v4413_v5 = vsel %vm12704_vm14, %v10202_v13, %v6578_v7  ;;  %vm12714_vm12 = vmmov %vm12698_vm8 }
 0x3d6   : > { %6862 = vpow2.f32 %v5041_v48  ;;  %v4933_v62 = vmul.f32 %v10569_v59, %v4867_v52  ;;  %v6637_v63 = vpop.permute.xlu1 %6636  ;;  %v6603_v52 = vunpack.i.l.bf16 %v10830_v49  ;;  %v12705_v49 = vld [vmem:[#allocation14_spill] sm:$0xff] }
 0x3d7   : > { %5254 = vst.msk [vmem:[%s10698_s18 + $0x20] sm:$0xf] %vm5245_vm7, %v5221_v26  ;;  %v6638_v27 = vunpack.i.l.bf16 %v6637_v63  ;;  %v6639_v58 = vunpack.i.h.bf16 %v6637_v63  ;;  %v6647_v14 = vpop.permute.xlu0 %6646  ;;  %v12706_v44 = vunpack.c.l.bf16 %v12705_v49 }
 0x3d8   : > { %v10898_v53 = vadd.f32 %v10583_v41, %v4933_v62  ;;  %v6648_v47 = vunpack.i.l.bf16 %v6647_v14  ;;  %v6649_v9 = vunpack.i.h.bf16 %v6647_v14  ;;  %v6657_v62 = vpop.permute.xlu2 %6656 }
 0x3d9   : > { %v4537_v33 = vsel %vm12698_vm8, %v4505_v61, %v6638_v27  ;;  %v6658_v13 = vunpack.i.l.bf16 %v6657_v62 }
 0x3da   : > { %v5000_v21 = vsub.f32 0.0, %v10898_v53  ;;  %v6861_v57 = vpop.eup %6860  ;;  %v4569_v55 = vsel %vm12700_vm2, %v4537_v33, %v6643_v28  ;;  %v4874_v63 = vpop.f32.mrf.mxu3 }
 0x3db   : > { %v5158_v15 = vmul.f32 %v6861_v57, %v10864_v46  ;;  %v4474_v46 = vsel %vm12695_vm13, %v4442_v12, %v6629_v36  ;;  %v4601_v26 = vsel %vm12702_vm0, %v4569_v55, %v6648_v47  ;;  %vm12713_vm13 = vmmov %vm12698_vm8 }
 0x3dc   : > { %v6863_v20 = vpop.eup %6862  ;;  %v5043_v10 = vmul.f32 1.442695, %v5000_v21  ;;  %v4506_v18 = vsel %vm12697_vm6, %v4474_v46, %v6634_v50  ;;  %v4444_v21 = vsel %vm12707_vm1, %v4413_v5, %v6603_v52  ;;  %v12712_v46 = vunpack.c.h.bf16 %v12705_v49  ;;  %vm12715_vm6 = vmmov %vm12700_vm2 }
 0x3dd   : > { %v5095_v54 = vadd.f32 1.0, %v6863_v20  ;;  %v5190_v19 = vadd.f32 %v12694_v8, %v5158_v15  ;;  %v4538_v30 = vsel %vm12699_vm15, %v4506_v18, %v6639_v58  ;;  %v4780_v51 = vpop.f32.mrf.mxu2  ;;  %v6659_v15 = vunpack.i.h.bf16 %v6657_v62  ;;  %vm12716_vm8 = vmmov %vm12700_vm2 }
 0x3de   : > { %6864 = vpow2.f32 %v5043_v10  ;;  %v6652_v17 = vpop.permute.xlu1 %6651  ;;  %v4870_v16 = vadd.f32 %v4869_v23, %v4780_v51  ;;  %v4570_v48 = vsel %vm12701_vm10, %v4538_v30, %v6644_v11  ;;  %vm12717_vm15 = vmmov %vm12702_vm0 }
 0x3df   : > { %6866 = vrcp.f32 %v5095_v54  ;;  %v5222_v24 = vpack.c.bf16 %v5190_v19, %v5190_v19  ;;  %v6654_v23 = vunpack.i.h.bf16 %v6652_v17  ;;  %v6653_v0 = vunpack.i.l.bf16 %v6652_v17  ;;  %v6662_v60 = vpop.permute.xlu0 %6661  ;;  %vm12718_vm2 = vmmov %vm12702_vm0 }
 0x3e0   : > { %v4934_v32 = vmul.f32 %v10569_v59, %v4870_v16  ;;  %v4602_v56 = vsel %vm12703_vm11, %v4570_v48, %v6649_v9  ;;  %v6664_v8 = vunpack.i.h.bf16 %v6662_v60  ;;  %v6663_v19 = vunpack.i.l.bf16 %v6662_v60  ;;  %vm12719_vm10 = vmmov %vm12704_vm14 }
 0x3e1   : > { %5255 = vst.msk [vmem:[%s10698_s18 + $0x24] sm:$0xf] %vm5245_vm7, %v5222_v24  ;;  %v4633_v22 = vpack.c.bf16 %v4602_v56, %v4601_v26  ;;  %v4476_v36 = vsel %vm12708_vm9, %v4444_v21, %v6654_v23  ;;  %v4475_v4 = vsel %vm12709_vm3, %v10770_v34, %v6653_v0  ;;  %v6672_v24 = vpop.permute.xlu2 %6671  ;;  %v4415_v26 = vsel %vm12719_vm10, %v10292_v37, %v10857_v2  ;;  %vm12720_vm0 = vmmov %vm12707_vm1 }
 0x3e2   : > { %v10927_v1 = vadd.f32 %v10583_v41, %v4934_v32  ;;  %v4507_v43 = vsel %vm12710_vm4, %v4475_v4, %v6658_v13  ;;  %v4508_v54 = vsel %vm12711_vm5, %v4476_v36, %v6659_v15  ;;  %v6674_v51 = vunpack.i.h.bf16 %v6672_v24  ;;  %v4876_v7 = vpop.f32.mrf.mxu3  ;;  %vm12721_vm11 = vmmov %vm12709_vm3  ;;  %v12725_v13 = vld [vmem:[#allocation15_spill] sm:$0xff] }
 0x3e3   : > { %v4539_v18 = vsel %vm12713_vm13, %v4507_v43, %v6663_v19  ;;  %v4540_v14 = vsel %vm12714_vm12, %v4508_v54, %v6664_v8  ;;  %v6673_v47 = vunpack.i.l.bf16 %v6672_v24  ;;  %v4446_v49 = vsel %vm12720_vm0, %v4415_v26, %v10852_v3  ;;  %vm12722_vm14 = vmmov %vm12709_vm3 }
 0x3e4   : > { %v6865_v25 = vpop.eup %6864  ;;  %4814 = vmatmul.bf16.gmra.mxu2 %v4633_v22  ;;  %vm12723_vm1 = vmmov %vm12710_vm4  ;;  %v12726_v60 = vunpack.c.l.bf16 %v12725_v13 }
 0x3e5   : > { %v6867_v42 = vpop.eup %6866  ;;  %v5096_v31 = vadd.f32 1.0, %v6865_v25  ;;  %v4782_v20 = vpop.f32.mrf.mxu2  ;;  %vm12724_vm9 = vmmov %vm12723_vm1 }
 0x3e6   : > { %v5159_v45 = vmul.f32 %v6867_v42, %v10883_v40  ;;  %v5001_v40 = vsub.f32 0.0, %v10927_v1  ;;  %v6667_v10 = vpop.permute.xlu1 %6666  ;;  %v4872_v27 = vadd.f32 %v4871_v39, %v4782_v20  ;;  %vm12727_vm3 = vmmov %vm12714_vm12 }
 0x3e7   : > { %6868 = vrcp.f32 %v5096_v31  ;;  %v6669_v12 = vunpack.i.h.bf16 %v6667_v10  ;;  %v6668_v34 = vunpack.i.l.bf16 %v6667_v10  ;;  %vm12728_vm4 = vmmov %vm12727_vm3 }
 0x3e8   : > { %v5191_v35 = vadd.f32 %v12706_v44, %v5159_v45  ;;  %v5045_v50 = vmul.f32 1.442695, %v5001_v40  ;;  %v4935_v38 = vmul.f32 %v10569_v59, %v4872_v27  ;;  %v6677_v9 = vpop.permute.xlu0 %6676  ;;  %vm12729_vm5 = vmmov %vm12715_vm6 }
 0x3e9   : > { %v4571_v28 = vsel %vm12716_vm8, %v4539_v18, %v6668_v34  ;;  %v6679_v45 = vunpack.i.h.bf16 %v6677_v9  ;;  %v6678_v23 = vunpack.i.l.bf16 %v6677_v9  ;;  %v6687_v22 = vpop.permute.xlu2 %6686  ;;  %vm12732_vm13 = vmmov %vm12729_vm5 }
 0x3ea   : > { %v5223_v57 = vpack.c.bf16 %v5191_v35, %v5191_v35  ;;  %6870 = vpow2.f32 %v5045_v50  ;;  %v10947_v39 = vadd.f32 %v10583_v41, %v4935_v38  ;;  %v4603_v42 = vsel %vm12717_vm15, %v4571_v28, %v6673_v47  ;;  %v4879_v20 = vpop.f32.mrf.mxu3  ;;  %v10985_v50 = vld [vmem:[%s11119_s6] ss:$0 sm:$0xff]  ;;  %vm12733_vm12 = vmmov %vm12718_vm2 }
 0x3eb   : > { %v4478_v21 = vsel %vm12721_vm11, %v4446_v49, %v6679_v45  ;;  %v4477_v2 = vsel %vm12722_vm14, %v10843_v6, %v6678_v23  ;;  %v6689_v15 = vunpack.i.h.bf16 %v6687_v22  ;;  %v12738_v23 = vld [vmem:[#allocation19_spill] sm:$0xff] }
 0x3ec   : > { %5256 = vst.msk [vmem:[%s10698_s18 + $0x28] sm:$0xf] %vm5245_vm7, %v5223_v57  ;;  %v5002_v30 = vsub.f32 0.0, %v10947_v39 }
 0x3ed   : > { %v6869_v29 = vpop.eup %6868  ;;  %v4785_v11 = vpop.f32.mrf.mxu2 }
 0x3ee   : > { %v5160_v58 = vmul.f32 %v6869_v29, %v10898_v53  ;;  %v4572_v53 = vsel %vm12715_vm6, %v4540_v14, %v6669_v12  ;;  %v4875_v16 = vadd.f32 %v4874_v63, %v4785_v11  ;;  %v5047_v25 = vmul.f32 1.442695, %v5002_v30  ;;  %v6682_v31 = vpop.permute.xlu1 %6681  ;;  %v10975_v63 = vld [vmem:[%s11118_s5] ss:$0 sm:$0xff]  ;;  %v12734_v30 = vld [vmem:[#allocation122_spill] sm:$0xff]  ;;  %vm12736_vm6 = vmmov %vm12718_vm2 }
 0x3ef   : > { %v4604_v52 = vsel %vm12718_vm2, %v4572_v53, %v6674_v51  ;;  %v6683_v56 = vunpack.i.l.bf16 %v6682_v31  ;;  %v12735_v11 = vunpack.i.h.bf16 %v12734_v30 }
 0x3f0   : > { %v5192_v61 = vadd.f32 %v12712_v46, %v5160_v58  ;;  %v6871_v17 = vpop.eup %6870  ;;  %v4936_v48 = vmul.f32 %v10569_v59, %v4875_v16  ;;  %v4635_v62 = vpack.c.bf16 %v4604_v52, %v4603_v42  ;;  %v6684_v59 = vunpack.i.h.bf16 %v6682_v31  ;;  %v4259_v34 = vpop.permute.xlu0 %4258  ;;  %v12730_v46 = vld [vmem:[#allocation137_spill] sm:$0xff] }
 0x3f1   : > { %v5097_v55 = vadd.f32 1.0, %v6871_v17  ;;  %v4509_v4 = vsel %vm12724_vm9, %v4477_v2, %v6683_v56 }
 0x3f2   : > { %v5224_v33 = vpack.c.bf16 %v5192_v61, %v5192_v61  ;;  %v10960_v32 = vadd.f32 %v10583_v41, %v4936_v48  ;;  %v4510_v36 = vsel %vm12723_vm1, %v4478_v21, %v6684_v59  ;;  %v12731_v61 = vunpack.i.h.bf16 %v12730_v46  ;;  %v4881_v16 = vpop.f32.mrf.mxu3 }
 0x3f3   : > { %6872 = vrcp.f32 %v5097_v55  ;;  %v4542_v43 = vsel %vm12728_vm4, %v4510_v36, %v6689_v15  ;;  %v12737_v55 = vunpack.c.h.bf16 %v12725_v13 }
 0x3f4   : > { %5257 = vst.msk [vmem:[%s10698_s18 + $0x2c] sm:$0xf] %vm5245_vm7, %v5224_v33  ;;  %6874 = vpow2.f32 %v5047_v25  ;;  %v5003_v0 = vsub.f32 0.0, %v10960_v32  ;;  %4819 = vmatmul.bf16.gmra.mxu2 %v4635_v62  ;;  %v4574_v24 = vsel %vm12732_vm13, %v4542_v43, %v12731_v61 }
 0x3f5   : > { %v4787_v5 = vpop.f32.mrf.mxu2  ;;  %v4606_v17 = vsel %vm12736_vm6, %v4574_v24, %v12735_v11 }
 0x3f6   : > { %v5049_v44 = vmul.f32 1.442695, %v5003_v0  ;;  %v4877_v35 = vadd.f32 %v4876_v7, %v4787_v5  ;;  %v4353_v58 = vpop.permute.xlu1 %4352  ;;  %v12739_v0 = vunpack.c.l.bf16 %v12738_v23 }
 0x3f8   : > { %6876 = vpow2.f32 %v5049_v44  ;;  %v4937_v3 = vmul.f32 %v10975_v63, %v4877_v35 }
 0x3f9   : > { %v6873_v41 = vpop.eup %6872 }
 0x3fa   : > { %v6875_v40 = vpop.eup %6874  ;;  %v5161_v37 = vmul.f32 %v6873_v41, %v10927_v1  ;;  %v6688_v1 = vunpack.i.l.bf16 %v6687_v22  ;;  %v4972_v10 = vadd.f32 %v10985_v50, %v4937_v3  ;;  %v4884_v44 = vpop.f32.mrf.mxu3 }
 0x3fb   : > { %v5098_v57 = vadd.f32 1.0, %v6875_v40 }
 0x3fc   : > { %v5193_v6 = vadd.f32 %v12726_v60, %v5161_v37  ;;  %v4541_v29 = vsel %vm12727_vm3, %v4509_v4, %v6688_v1  ;;  %v5004_v54 = vsub.f32 0.0, %v4972_v10  ;;  %v12740_v37 = vunpack.c.h.bf16 %v12738_v23 }
 0x3fd   : > { %6878 = vrcp.f32 %v5098_v57  ;;  %v4573_v19 = vsel %vm12729_vm5, %v4541_v29, %v4259_v34 }
 0x3fe   : > { %v5225_v27 = vpack.c.bf16 %v5193_v6, %v5193_v6  ;;  %v6877_v12 = vpop.eup %6876  ;;  %v5051_v38 = vmul.f32 1.442695, %v5004_v54  ;;  %v4605_v14 = vsel %vm12733_vm12, %v4573_v19, %v4353_v58  ;;  %v12741_v6 = vld [vmem:[#allocation21_spill] sm:$0xff] }
 0x3ff   : > { %v5099_v8 = vadd.f32 1.0, %v6877_v12  ;;  %v4637_v47 = vpack.c.bf16 %v4606_v17, %v4605_v14  ;;  %v12743_v61 = vunpack.c.h.bf16 %v12741_v6 }
 0x400   : > { %5258 = vst.msk [vmem:[%s10698_s18 + $0x30] sm:$0xf] %vm5245_vm7, %v5225_v27  ;;  %v4790_v18 = vpop.f32.mrf.mxu2  ;;  %6880 = vpow2.f32 %v5051_v38 }
 0x401   : > { %v4880_v33 = vadd.f32 %v4879_v20, %v4790_v18  ;;  %6882 = vrcp.f32 %v5099_v8 }
 0x402   : > { %v4886_v4 = vpop.f32.mrf.mxu3 }
 0x403   : > { %v6879_v53 = vpop.eup %6878  ;;  %v4938_v51 = vmul.f32 %v10975_v63, %v4880_v33 }
 0x404   : > { %v5162_v28 = vmul.f32 %v6879_v53, %v10947_v39  ;;  %4824 = vmatmul.bf16.gmra.mxu2 %v4637_v47 }
 0x405   : > { %v4973_v7 = vadd.f32 %v10985_v50, %v4938_v51 }
 0x406   : > { %v5194_v25 = vadd.f32 %v12737_v55, %v5162_v28  ;;  %v6881_v9 = vpop.eup %6880 }
 0x407   : > { %v5005_v42 = vsub.f32 0.0, %v4973_v7  ;;  %v6883_v52 = vpop.eup %6882  ;;  %v5100_v39 = vadd.f32 1.0, %v6881_v9 }
 0x408   : > { %v5226_v48 = vpack.c.bf16 %v5194_v25, %v5194_v25  ;;  %v4792_v31 = vpop.f32.mrf.mxu2  ;;  %v5163_v26 = vmul.f32 %v6883_v52, %v10960_v32 }
 0x409   : > { %v5053_v45 = vmul.f32 1.442695, %v5005_v42  ;;  %v4882_v62 = vadd.f32 %v4881_v16, %v4792_v31  ;;  %6884 = vrcp.f32 %v5100_v39 }
 0x40a   : > { %5259 = vst.msk [vmem:[%s10698_s18 + $0x34] sm:$0xf] %vm5245_vm7, %v5226_v48  ;;  %v5195_v59 = vadd.f32 %v12739_v0, %v5163_v26  ;;  %v4889_v8 = vpop.f32.mrf.mxu3  ;;  %v12744_v48 = vld [vmem:[#allocation23_spill] sm:$0xff] }
 0x40b   : > { %6886 = vpow2.f32 %v5053_v45  ;;  %v4939_v56 = vmul.f32 %v10975_v63, %v4882_v62  ;;  %v12745_v42 = vunpack.c.l.bf16 %v12744_v48 }
 0x40c   : > { %v5227_v5 = vpack.c.bf16 %v5195_v59, %v5195_v59 }
 0x40d   : > { %v4974_v49 = vadd.f32 %v10985_v50, %v4939_v56 }
 0x40e   : > { %5260 = vst.msk [vmem:[%s10698_s18 + $0x38] sm:$0xf] %vm5245_vm7, %v5227_v5 }
 0x40f   : > { %v5006_v35 = vsub.f32 0.0, %v4974_v49  ;;  %v6885_v41 = vpop.eup %6884 }
 0x410   : > { %v5164_v32 = vmul.f32 %v6885_v41, %v4972_v10  ;;  %v12742_v10 = vunpack.c.l.bf16 %v12741_v6 }
 0x411   : > { %v6887_v22 = vpop.eup %6886  ;;  %v5055_v21 = vmul.f32 1.442695, %v5006_v35 }
 0x412   : > { %v5101_v40 = vadd.f32 1.0, %v6887_v22  ;;  %v5196_v2 = vadd.f32 %v12740_v37, %v5164_v32  ;;  %v4891_v11 = vpop.f32.mrf.mxu3 }
 0x413   : > { %6888 = vpow2.f32 %v5055_v21 }
 0x414   : > { %6890 = vrcp.f32 %v5101_v40  ;;  %v5228_v3 = vpack.c.bf16 %v5196_v2, %v5196_v2 }
 0x416   : > { %5261 = vst.msk [vmem:[%s10698_s18 + $0x3c] sm:$0xf] %vm5245_vm7, %v5228_v3 }
 0x417   : > { %v4795_v57 = vpop.f32.mrf.mxu2 }
 0x418   : > { %v4885_v20 = vadd.f32 %v4884_v44, %v4795_v57 }
 0x419   : > { %v6889_v36 = vpop.eup %6888 }
 0x41a   : > { %v6891_v15 = vpop.eup %6890  ;;  %v5102_v1 = vadd.f32 1.0, %v6889_v36  ;;  %v4940_v60 = vmul.f32 %v10975_v63, %v4885_v20  ;;  %v4894_v31 = vpop.f32.mrf.mxu3 }
 0x41b   : > { %v5165_v13 = vmul.f32 %v6891_v15, %v4973_v7 }
 0x41c   : > { %6892 = vrcp.f32 %v5102_v1  ;;  %v4975_v29 = vadd.f32 %v10985_v50, %v4940_v60 }
 0x41d   : > { %v5197_v27 = vadd.f32 %v12742_v10, %v5165_v13 }
 0x41e   : > { %v5007_v54 = vsub.f32 0.0, %v4975_v29 }
 0x41f   : > { %v5229_v43 = vpack.c.bf16 %v5197_v27, %v5197_v27  ;;  %v4797_v58 = vpop.f32.mrf.mxu2  ;;  %v12747_v27 = vld [vmem:[#allocation26_spill] sm:$0xff] }
 0x420   : > { %v5057_v12 = vmul.f32 1.442695, %v5007_v54  ;;  %v4887_v34 = vadd.f32 %v4886_v4, %v4797_v58 }
 0x421   : > { %5262 = vst.msk [vmem:[%s10698_s18 + $0x40] sm:$0xf] %vm5245_vm7, %v5229_v43 }
 0x422   : > { %v6893_v38 = vpop.eup %6892  ;;  %6894 = vpow2.f32 %v5057_v12  ;;  %v4941_v46 = vmul.f32 %v10975_v63, %v4887_v34  ;;  %v4896_v21 = vpop.f32.mrf.mxu3 }
 0x423   : > { %v5166_v19 = vmul.f32 %v6893_v38, %v4974_v49  ;;  %v12746_v49 = vunpack.c.h.bf16 %v12744_v48 }
 0x424   : > { %v4976_v18 = vadd.f32 %v10985_v50, %v4941_v46 }
 0x425   : > { %v5198_v24 = vadd.f32 %v12743_v61, %v5166_v19 }
 0x426   : > { %v5008_v33 = vsub.f32 0.0, %v4976_v18 }
 0x427   : > { %v5230_v14 = vpack.c.bf16 %v5198_v24, %v5198_v24  ;;  %v12749_v24 = vunpack.c.h.bf16 %v12747_v27 }
 0x428   : > { %v6895_v53 = vpop.eup %6894  ;;  %v5059_v28 = vmul.f32 1.442695, %v5008_v33 }
 0x429   : > { %5263 = vst.msk [vmem:[%s10698_s18 + $0x44] sm:$0xf] %vm5245_vm7, %v5230_v14  ;;  %v5103_v30 = vadd.f32 1.0, %v6895_v53 }
 0x42a   : > { %6896 = vpow2.f32 %v5059_v28  ;;  %v4899_v10 = vpop.f32.mrf.mxu3 }
 0x42b   : > { %6898 = vrcp.f32 %v5103_v30 }
 0x430   : > { %v4800_v17 = vpop.f32.mrf.mxu2  ;;  %v6897_v47 = vpop.eup %6896 }
 0x431   : > { %v4890_v51 = vadd.f32 %v4889_v8, %v4800_v17  ;;  %v6899_v16 = vpop.eup %6898  ;;  %v5104_v55 = vadd.f32 1.0, %v6897_v47 }
 0x432   : > { %v5167_v7 = vmul.f32 %v6899_v16, %v4975_v29  ;;  %v12748_v29 = vunpack.c.l.bf16 %v12747_v27  ;;  %v4901_v14 = vpop.f32.mrf.mxu3  ;;  %v12750_v16 = vld [vmem:[#allocation27_spill] sm:$0xff] }
 0x433   : > { %v4942_v25 = vmul.f32 %v10975_v63, %v4890_v51  ;;  %6900 = vrcp.f32 %v5104_v55  ;;  %v12751_v55 = vunpack.c.l.bf16 %v12750_v16 }
 0x434   : > { %v5199_v52 = vadd.f32 %v12745_v42, %v5167_v7 }
 0x435   : > { %v4977_v9 = vadd.f32 %v10985_v50, %v4942_v25 }
 0x436   : > { %v5231_v26 = vpack.c.bf16 %v5199_v52, %v5199_v52 }
 0x437   : > { %v5009_v39 = vsub.f32 0.0, %v4977_v9 }
 0x438   : > { %v4802_v45 = vpop.f32.mrf.mxu2  ;;  %5264 = vst.msk [vmem:[%s10698_s18 + $0x48] sm:$0xf] %vm5245_vm7, %v5231_v26 }
 0x439   : > { %v5061_v62 = vmul.f32 1.442695, %v5009_v39  ;;  %v4892_v23 = vadd.f32 %v4891_v11, %v4802_v45  ;;  %v6901_v0 = vpop.eup %6900 }
 0x43a   : > { %v5168_v56 = vmul.f32 %v6901_v0, %v4976_v18 }
 0x43b   : > { %6902 = vpow2.f32 %v5061_v62  ;;  %v4943_v59 = vmul.f32 %v10975_v63, %v4892_v23  ;;  %v12752_v23 = vunpack.c.h.bf16 %v12750_v16 }
 0x43c   : > { %v5200_v44 = vadd.f32 %v12746_v49, %v5168_v56 }
 0x43d   : > { %v4978_v5 = vadd.f32 %v10985_v50, %v4943_v59 }
 0x43e   : > { %v5232_v41 = vpack.c.bf16 %v5200_v44, %v5200_v44 }
 0x43f   : > { %v5010_v35 = vsub.f32 0.0, %v4978_v5 }
 0x440   : > { %5265 = vst.msk [vmem:[%s10698_s18 + $0x4c] sm:$0xf] %vm5245_vm7, %v5232_v41 }
 0x441   : > { %v6903_v22 = vpop.eup %6902  ;;  %v5063_v32 = vmul.f32 1.442695, %v5010_v35 }
 0x442   : > { %v5105_v40 = vadd.f32 1.0, %v6903_v22  ;;  %v4805_v37 = vpop.f32.mrf.mxu2 }
 0x443   : > { %6904 = vpow2.f32 %v5063_v32  ;;  %v4895_v2 = vadd.f32 %v4894_v31, %v4805_v37 }
 0x444   : > { %6906 = vrcp.f32 %v5105_v40 }
 0x445   : > { %v4944_v3 = vmul.f32 %v10975_v63, %v4895_v2 }
 0x447   : > { %v4979_v57 = vadd.f32 %v10985_v50, %v4944_v3 }
 0x449   : > { %v6905_v36 = vpop.eup %6904  ;;  %v5011_v4 = vsub.f32 0.0, %v4979_v57 }
 0x44a   : > { %v6907_v20 = vpop.eup %6906  ;;  %v5106_v15 = vadd.f32 1.0, %v6905_v36  ;;  %v4807_v1 = vpop.f32.mrf.mxu2 }
 0x44b   : > { %v5169_v13 = vmul.f32 %v6907_v20, %v4977_v9  ;;  %v5065_v60 = vmul.f32 1.442695, %v5011_v4  ;;  %v4897_v6 = vadd.f32 %v4896_v21, %v4807_v1  ;;  %v4904_v9 = vpop.f32.mrf.mxu3 }
 0x44c   : > { %6908 = vrcp.f32 %v5106_v15 }
 0x44d   : > { %v5201_v43 = vadd.f32 %v12748_v29, %v5169_v13  ;;  %6910 = vpow2.f32 %v5065_v60  ;;  %v4945_v54 = vmul.f32 %v10975_v63, %v4897_v6  ;;  %v12753_v60 = vld [vmem:[#allocation37_spill] sm:$0xff] }
 0x44e   : > { %v12754_v6 = vunpack.c.l.bf16 %v12753_v60 }
 0x44f   : > { %v5233_v58 = vpack.c.bf16 %v5201_v43, %v5201_v43  ;;  %v4980_v12 = vadd.f32 %v10985_v50, %v4945_v54 }
 0x451   : > { %5266 = vst.msk [vmem:[%s10698_s18 + $0x50] sm:$0xf] %vm5245_vm7, %v5233_v58  ;;  %v5012_v34 = vsub.f32 0.0, %v4980_v12 }
 0x452   : > { %v6909_v38 = vpop.eup %6908 }
 0x453   : > { %v6911_v8 = vpop.eup %6910  ;;  %v5170_v19 = vmul.f32 %v6909_v38, %v4978_v5  ;;  %v5067_v46 = vmul.f32 1.442695, %v5012_v34  ;;  %v4906_v49 = vpop.f32.mrf.mxu3 }
 0x454   : > { %v5107_v61 = vadd.f32 1.0, %v6911_v8 }
 0x455   : > { %v5202_v18 = vadd.f32 %v12749_v24, %v5170_v19  ;;  %6912 = vpow2.f32 %v5067_v46  ;;  %v12755_v24 = vunpack.c.h.bf16 %v12753_v60 }
 0x456   : > { %6914 = vrcp.f32 %v5107_v61 }
 0x457   : > { %v5234_v33 = vpack.c.bf16 %v5202_v18, %v5202_v18  ;;  %v4810_v53 = vpop.f32.mrf.mxu2 }
 0x458   : > { %v4900_v30 = vadd.f32 %v4899_v10, %v4810_v53 }
 0x459   : > { %5267 = vst.msk [vmem:[%s10698_s18 + $0x54] sm:$0xf] %vm5245_vm7, %v5234_v33 }
 0x45a   : > { %v4946_v47 = vmul.f32 %v10975_v63, %v4900_v30 }
 0x45b   : > { %v6913_v28 = vpop.eup %6912  ;;  %v4909_v20 = vpop.f32.mrf.mxu3 }
 0x45c   : > { %v6915_v11 = vpop.eup %6914  ;;  %v5108_v17 = vadd.f32 1.0, %v6913_v28  ;;  %v4981_v7 = vadd.f32 %v10985_v50, %v4946_v47 }
 0x45d   : > { %v5171_v51 = vmul.f32 %v6915_v11, %v4979_v57 }
 0x45e   : > { %6916 = vrcp.f32 %v5108_v17  ;;  %v5013_v42 = vsub.f32 0.0, %v4981_v7 }
 0x45f   : > { %v5203_v25 = vadd.f32 %v12751_v55, %v5171_v51  ;;  %v4812_v52 = vpop.f32.mrf.mxu2 }
 0x460   : > { %v5069_v39 = vmul.f32 1.442695, %v5013_v42  ;;  %v4902_v31 = vadd.f32 %v4901_v14, %v4812_v52 }
 0x461   : > { %v5235_v48 = vpack.c.bf16 %v5203_v25, %v5203_v25  ;;  %v12756_v25 = vld [vmem:[#allocation38_spill] sm:$0xff] }
 0x462   : > { %6918 = vpow2.f32 %v5069_v39  ;;  %v4947_v62 = vmul.f32 %v10975_v63, %v4902_v31 }
 0x463   : > { %5268 = vst.msk [vmem:[%s10698_s18 + $0x58] sm:$0xf] %vm5245_vm7, %v5235_v48  ;;  %v4911_v61 = vpop.f32.mrf.mxu3 }
 0x464   : > { %v6917_v26 = vpop.eup %6916  ;;  %v4982_v59 = vadd.f32 %v10985_v50, %v4947_v62 }
 0x465   : > { %v5172_v45 = vmul.f32 %v6917_v26, %v4980_v12 }
 0x466   : > { %v5014_v5 = vsub.f32 0.0, %v4982_v59 }
 0x467   : > { %v5204_v0 = vadd.f32 %v12752_v23, %v5172_v45  ;;  %v4815_v44 = vpop.f32.mrf.mxu2 }
 0x468   : > { %v6919_v35 = vpop.eup %6918  ;;  %v5071_v41 = vmul.f32 1.442695, %v5014_v5  ;;  %v4905_v22 = vadd.f32 %v4904_v9, %v4815_v44  ;;  %v12758_v5 = vunpack.c.h.bf16 %v12756_v25 }
 0x469   : > { %v5236_v56 = vpack.c.bf16 %v5204_v0, %v5204_v0  ;;  %v5109_v32 = vadd.f32 1.0, %v6919_v35 }
 0x46a   : > { %6920 = vpow2.f32 %v5071_v41  ;;  %v4948_v21 = vmul.f32 %v10975_v63, %v4905_v22 }
 0x46b   : > { %5269 = vst.msk [vmem:[%s10698_s18 + $0x5c] sm:$0xf] %vm5245_vm7, %v5236_v56  ;;  %6922 = vrcp.f32 %v5109_v32  ;;  %v4914_v42 = vpop.f32.mrf.mxu3 }
 0x46c   : > { %v4983_v40 = vadd.f32 %v10985_v50, %v4948_v21 }
 0x46e   : > { %v5015_v37 = vsub.f32 0.0, %v4983_v40 }
 0x46f   : > { %v4817_v2 = vpop.f32.mrf.mxu2 }
 0x470   : > { %v6921_v3 = vpop.eup %6920  ;;  %v5073_v57 = vmul.f32 1.442695, %v5015_v37  ;;  %v4907_v36 = vadd.f32 %v4906_v49, %v4817_v2 }
 0x471   : > { %v6923_v4 = vpop.eup %6922  ;;  %v5110_v15 = vadd.f32 1.0, %v6921_v3 }
 0x472   : > { %v5173_v1 = vmul.f32 %v6923_v4, %v4981_v7  ;;  %6924 = vpow2.f32 %v5073_v57  ;;  %v4949_v13 = vmul.f32 %v10975_v63, %v4907_v36  ;;  %v12757_v7 = vunpack.c.l.bf16 %v12756_v25  ;;  %v12759_v4 = vld [vmem:[#allocation39_spill] sm:$0xff] }
 0x473   : > { %6926 = vrcp.f32 %v5110_v15  ;;  %v4916_v22 = vpop.f32.mrf.mxu3 }
 0x474   : > { %v5205_v10 = vadd.f32 %v12754_v6, %v5173_v1  ;;  %v4984_v27 = vadd.f32 %v10985_v50, %v4949_v13 }
 0x476   : > { %v5237_v29 = vpack.c.bf16 %v5205_v10, %v5205_v10  ;;  %v5016_v43 = vsub.f32 0.0, %v4984_v27 }
 0x477   : > { %v4820_v54 = vpop.f32.mrf.mxu2 }
 0x478   : > { %v6925_v58 = vpop.eup %6924  ;;  %5270 = vst.msk [vmem:[%s10698_s18 + $0x60] sm:$0xf] %vm5245_vm7, %v5237_v29  ;;  %v5075_v12 = vmul.f32 1.442695, %v5016_v43  ;;  %v4910_v34 = vadd.f32 %v4909_v20, %v4820_v54  ;;  %v12760_v20 = vunpack.c.l.bf16 %v12759_v4 }
 0x479   : > { %v6927_v38 = vpop.eup %6926  ;;  %v5111_v8 = vadd.f32 1.0, %v6925_v58 }
 0x47a   : > { %v5174_v19 = vmul.f32 %v6927_v38, %v4982_v59  ;;  %6928 = vpow2.f32 %v5075_v12  ;;  %v4950_v46 = vmul.f32 %v10975_v63, %v4910_v34 }
 0x47b   : > { %6930 = vrcp.f32 %v5111_v8  ;;  %v12762_v8 = vld [vmem:[#allocation49_spill] sm:$0xff] }
 0x47c   : > { %v5206_v18 = vadd.f32 %v12755_v24, %v5174_v19  ;;  %v4985_v14 = vadd.f32 %v10985_v50, %v4950_v46  ;;  %v12763_v19 = vunpack.c.l.bf16 %v12762_v8 }
 0x47e   : > { %v5238_v33 = vpack.c.bf16 %v5206_v18, %v5206_v18  ;;  %v5017_v53 = vsub.f32 0.0, %v4985_v14 }
 0x47f   : > { %v4822_v28 = vpop.f32.mrf.mxu2 }
 0x480   : > { %v6929_v30 = vpop.eup %6928  ;;  %5271 = vst.msk [vmem:[%s10698_s18 + $0x64] sm:$0xf] %vm5245_vm7, %v5238_v33  ;;  %v5077_v11 = vmul.f32 1.442695, %v5017_v53  ;;  %v4912_v17 = vadd.f32 %v4911_v61, %v4822_v28 }
 0x481   : > { %v6931_v51 = vpop.eup %6930  ;;  %v5112_v47 = vadd.f32 1.0, %v6929_v30 }
 0x482   : > { %v5175_v16 = vmul.f32 %v6931_v51, %v4983_v40  ;;  %6932 = vpow2.f32 %v5077_v11  ;;  %v4951_v55 = vmul.f32 %v10975_v63, %v4912_v17 }
 0x483   : > { %6934 = vrcp.f32 %v5112_v47 }
 0x484   : > { %v5207_v9 = vadd.f32 %v12757_v7, %v5175_v16  ;;  %v4986_v48 = vadd.f32 %v10985_v50, %v4951_v55 }
 0x486   : > { %v5239_v52 = vpack.c.bf16 %v5207_v9, %v5207_v9  ;;  %v5018_v39 = vsub.f32 0.0, %v4986_v48 }
 0x487   : > { %v4825_v31 = vpop.f32.mrf.mxu2 }
 0x488   : > { %v6933_v26 = vpop.eup %6932  ;;  %5272 = vst.msk [vmem:[%s10698_s18 + $0x68] sm:$0xf] %vm5245_vm7, %v5239_v52  ;;  %v5079_v45 = vmul.f32 1.442695, %v5018_v39  ;;  %v4915_v62 = vadd.f32 %v4914_v42, %v4825_v31 }
 0x489   : > { %v6935_v23 = vpop.eup %6934  ;;  %v5113_v0 = vadd.f32 1.0, %v6933_v26 }
 0x48a   : > { %v5176_v59 = vmul.f32 %v6935_v23, %v4984_v27  ;;  %6936 = vpow2.f32 %v5079_v45  ;;  %v4952_v56 = vmul.f32 %v10975_v63, %v4915_v62 }
 0x48b   : > { %6938 = vrcp.f32 %v5113_v0 }
 0x48c   : > { %v5208_v49 = vadd.f32 %v12758_v5, %v5176_v59  ;;  %v4987_v44 = vadd.f32 %v10985_v50, %v4952_v56 }
 0x48e   : > { %v5240_v35 = vpack.c.bf16 %v5208_v49, %v5208_v49  ;;  %v5019_v41 = vsub.f32 0.0, %v4987_v44 }
 0x48f   : > { %v4827_v32 = vpop.f32.mrf.mxu2 }
 0x490   : > { %v6937_v21 = vpop.eup %6936  ;;  %5273 = vst.msk [vmem:[%s10698_s18 + $0x6c] sm:$0xf] %vm5245_vm7, %v5240_v35  ;;  %v5081_v40 = vmul.f32 1.442695, %v5019_v41  ;;  %v4917_v37 = vadd.f32 %v4916_v22, %v4827_v32 }
 0x491   : > { %v6939_v2 = vpop.eup %6938  ;;  %v5114_v3 = vadd.f32 1.0, %v6937_v21 }
 0x492   : > { %v5177_v57 = vmul.f32 %v6939_v2, %v4985_v14  ;;  %6940 = vpow2.f32 %v5081_v40  ;;  %v4953_v36 = vmul.f32 %v10975_v63, %v4917_v37  ;;  %v12761_v63 = vunpack.c.h.bf16 %v12759_v4 }
 0x493   : > { %6942 = vrcp.f32 %v5114_v3  ;;  %v12764_v14 = vunpack.c.h.bf16 %v12762_v8 }
 0x494   : > { %v5209_v15 = vadd.f32 %v12760_v20, %v5177_v57  ;;  %v4988_v1 = vadd.f32 %v10985_v50, %v4953_v36 }
 0x496   : > { %v5241_v13 = vpack.c.bf16 %v5209_v15, %v5209_v15  ;;  %v5020_v60 = vsub.f32 0.0, %v4988_v1 }
 0x498   : > { %v6941_v6 = vpop.eup %6940  ;;  %5274 = vst.msk [vmem:[%s10698_s18 + $0x70] sm:$0xf] %vm5245_vm7, %v5241_v13  ;;  %v5083_v10 = vmul.f32 1.442695, %v5020_v60 }
 0x499   : > { %v6943_v27 = vpop.eup %6942  ;;  %v5115_v29 = vadd.f32 1.0, %v6941_v6 }
 0x49a   : > { %v5178_v43 = vmul.f32 %v6943_v27, %v4986_v48  ;;  %6944 = vpow2.f32 %v5083_v10 }
 0x49b   : > { %6946 = vrcp.f32 %v5115_v29 }
 0x49c   : > { %v5210_v54 = vadd.f32 %v12761_v63, %v5178_v43 }
 0x49e   : > { %v5242_v58 = vpack.c.bf16 %v5210_v54, %v5210_v54 }
 0x4a0   : > { %v6945_v12 = vpop.eup %6944  ;;  %5275 = vst.msk [vmem:[%s10698_s18 + $0x74] sm:$0xf] %vm5245_vm7, %v5242_v58 }
 0x4a1   : > { %v6947_v50 = vpop.eup %6946  ;;  %v5116_v34 = vadd.f32 1.0, %v6945_v12 }
 0x4a2   : > { %v5179_v38 = vmul.f32 %v6947_v50, %v4987_v44 }
 0x4a3   : > { %6948 = vrcp.f32 %v5116_v34 }
 0x4a4   : > { %v5211_v46 = vadd.f32 %v12763_v19, %v5179_v38 }
 0x4a6   : > { %v5243_v61 = vpack.c.bf16 %v5211_v46, %v5211_v46 }
 0x4a8   : > { %5276 = vst.msk [vmem:[%s10698_s18 + $0x78] sm:$0xf] %vm5245_vm7, %v5243_v61 }
 0x4a9   : > { %v6949_v24 = vpop.eup %6948 }
 0x4aa   : > { %v5180_v18 = vmul.f32 %v6949_v24, %v4988_v1 }
 0x4ac   : > { %v5212_v33 = vadd.f32 %v12764_v14, %v5180_v18 }
 0x4ae   : > { %v5244_v53 = vpack.c.bf16 %v5212_v33, %v5212_v33 }
 0x4b0   : > { %5277 = vst.msk [vmem:[%s10698_s18 + $0x7c] sm:$0xf] %vm5245_vm7, %v5244_v53 }
 0x4b1 PF: > { %s18_s24 = sadd.s32 1, %s6996_s24  }
 0x4b2   : > { %p15_p7 = scmp.ge.s32.totalorder %s18_s24, 4  }
 0x4b4   :  { %17 = sbr.rel (!%p15_p7) target bundleno = 1 (0x1), region = 83 }
 0x4b9   :  { %5299 = vsyncpa [#allocation3], 1 }
 0x4ba   :  { %5301 = vsyncpa [#allocation3 + $0x1], 1 }

</bundles_post_ra>
